<compile_context>
chip_gen: v7x
topology: tpu7x:2x2x1
jax: 0.10.0
libtpu: 0.0.40
codegen_flags: <defaults>
</compile_context>

<pallas_src>
import functools

import jax
import jax.numpy as jnp
from jax import lax
from jax.experimental import pallas as pl
from jax.experimental.pallas import tpu as pltpu

# ---- model hyper-params (from the PyTorch module) ----
INPUT_SIZE = 3
HIDDEN_SIZE = 100
OUTPUT_SIZE = 3
NUM_LAYERS = 5
BN_EPS = 1e-5

# ---- padded sizes for TPU lanes ----
HP = 128          # padded hidden / feature dim
GP = 4 * HP       # padded gate dim (i|f|g|o blocks of 128 each)


def gesture_kernel(x_ref, wih_ref, whh_ref, b_ref, bns_ref, bnb_ref,
                   w1_ref, b1_ref, w2_ref, b2_ref, w3_ref, b3_ref,
                   out_ref, seq_ref, gx_ref):
    """Whole forward pass in one kernel (no grid; everything fits in VMEM).

    x_ref   : (T, Bp, HP)     time-major, batch- and feature-padded input (f32)
    wih_ref : (L, HP, 4*HP)   W_ih^T per layer, gate blocks [i|f|g|o]  (bf16)
    whh_ref : (L, HP, 4*HP)   W_hh^T per layer                         (bf16)
    b_ref   : (L, 1, 4*HP)    b_ih + b_hh per layer                    (f32)
    bns_ref : (1, HP)         BatchNorm eval scale  (gamma / sqrt(var+eps))
    bnb_ref : (1, HP)         BatchNorm eval shift  (beta - mean*scale)
    w1/2/3  : (HP, HP)        Linear weights, transposed + zero padded (bf16)
    b1/2/3  : (1, HP)         Linear biases, zero padded               (f32)
    out_ref : (Bp, HP)        padded logits (first OUTPUT_SIZE cols valid)
    seq_ref : (T, Bp, HP)     scratch: running layer output sequence   (f32)
    gx_ref  : (T, Bp, 4*HP)   scratch: hoisted input-projection gates  (f32)
    """
    T, Bp, _ = seq_ref.shape

    h = jnp.zeros((Bp, HP), jnp.float32)
    for layer in range(NUM_LAYERS):
        whh = whh_ref[layer]                                         # (HP, 4*HP) bf16
        last_layer = layer == NUM_LAYERS - 1

        # ---- hoisted input projection: ONE (T*Bp, HP) x (HP, 4*HP) matmul ----
        xin = x_ref[...] if layer == 0 else seq_ref[...]             # (T, Bp, HP)
        gx = (jnp.dot(xin.reshape(T * Bp, HP).astype(jnp.bfloat16),
                      wih_ref[layer],
                      preferred_element_type=jnp.float32)
              + b_ref[layer])                                        # (T*Bp, 4*HP)
        gx_ref[...] = gx.reshape(T, Bp, GP)

        # ---- recurrence: only h @ W_hh on the serial chain ----
        def step(t, carry, whh=whh, last_layer=last_layer):
            h, c = carry
            gates = gx_ref[t] + jnp.dot(h.astype(jnp.bfloat16), whh,
                                        preferred_element_type=jnp.float32)
            i = jax.nn.sigmoid(gates[:, 0 * HP:1 * HP])
            f = jax.nn.sigmoid(gates[:, 1 * HP:2 * HP])
            g = jnp.tanh(gates[:, 2 * HP:3 * HP])
            o = jax.nn.sigmoid(gates[:, 3 * HP:4 * HP])
            c = f * c + i * g
            h = o * jnp.tanh(c)
            if not last_layer:
                seq_ref[t] = h      # this layer's output sequence -> next layer's input
            return (h, c)

        h0 = jnp.zeros((Bp, HP), jnp.float32)
        c0 = jnp.zeros((Bp, HP), jnp.float32)
        h, _ = lax.fori_loop(0, T, step, (h0, c0), unroll=True)

    # Dropout (eval) = identity; take last timestep hidden state == h.
    y = h * bns_ref[...] + bnb_ref[...]                              # BatchNorm1d (eval)
    y = jnp.maximum(
        jnp.dot(y.astype(jnp.bfloat16), w1_ref[...],
                preferred_element_type=jnp.float32) + b1_ref[...], 0.0)
    y = jnp.maximum(
        jnp.dot(y.astype(jnp.bfloat16), w2_ref[...],
                preferred_element_type=jnp.float32) + b2_ref[...], 0.0)
    out_ref[...] = (
        jnp.dot(y.astype(jnp.bfloat16), w3_ref[...],
                preferred_element_type=jnp.float32) + b3_ref[...])


# ---------------------------------------------------------------------------
# parameter construction (deterministic, in-script) + padding helpers
# ---------------------------------------------------------------------------
def _pad_gate_blocks(w_t, in_pad):
    """w_t: (in_dim, 4*H) with gate blocks [i|f|g|o]; pad each block to (in_pad, HP)."""
    in_dim, four_h = w_t.shape
    h = four_h // 4
    blocks = []
    for k in range(4):
        blk = w_t[:, k * h:(k + 1) * h]
        blk = jnp.pad(blk, ((0, in_pad - in_dim), (0, HP - h)))
        blocks.append(blk)
    return jnp.concatenate(blocks, axis=1)            # (in_pad, 4*HP)


def _pad_gate_bias(b):
    h = b.shape[0] // 4
    blocks = [jnp.pad(b[k * h:(k + 1) * h], (0, HP - h)) for k in range(4)]
    return jnp.concatenate(blocks).reshape(1, GP)


def make_params(key):
    ks = iter(jax.random.split(key, 64))
    u = lambda k, shape, bound: jax.random.uniform(k, shape, jnp.float32, -bound, bound)

    lstm = []
    kbound = 1.0 / jnp.sqrt(HIDDEN_SIZE)
    for layer in range(NUM_LAYERS):
        in_dim = INPUT_SIZE if layer == 0 else HIDDEN_SIZE
        wih = u(next(ks), (4 * HIDDEN_SIZE, in_dim), kbound)
        whh = u(next(ks), (4 * HIDDEN_SIZE, HIDDEN_SIZE), kbound)
        bih = u(next(ks), (4 * HIDDEN_SIZE,), kbound)
        bhh = u(next(ks), (4 * HIDDEN_SIZE,), kbound)
        lstm.append((wih, whh, bih, bhh))

    fcb = 1.0 / jnp.sqrt(HIDDEN_SIZE)
    w1 = u(next(ks), (HIDDEN_SIZE, HIDDEN_SIZE), fcb); b1 = u(next(ks), (HIDDEN_SIZE,), fcb)
    w2 = u(next(ks), (HIDDEN_SIZE, HIDDEN_SIZE), fcb); b2 = u(next(ks), (HIDDEN_SIZE,), fcb)
    w3 = u(next(ks), (OUTPUT_SIZE, HIDDEN_SIZE), fcb); b3 = u(next(ks), (OUTPUT_SIZE,), fcb)

    # BatchNorm1d at init (eval): running_mean=0, running_var=1, gamma=1, beta=0
    bn_gamma = jnp.ones((HIDDEN_SIZE,), jnp.float32)
    bn_beta = jnp.zeros((HIDDEN_SIZE,), jnp.float32)
    bn_mean = jnp.zeros((HIDDEN_SIZE,), jnp.float32)
    bn_var = jnp.ones((HIDDEN_SIZE,), jnp.float32)

    return dict(lstm=lstm, fc=[(w1, b1), (w2, b2), (w3, b3)],
                bn=(bn_gamma, bn_beta, bn_mean, bn_var))


def pack_params(params):
    wih_p, whh_p, b_p = [], [], []
    for (wih, whh, bih, bhh) in params["lstm"]:
        wih_p.append(_pad_gate_blocks(wih.T, HP))
        whh_p.append(_pad_gate_blocks(whh.T, HP))
        b_p.append(_pad_gate_bias(bih + bhh))
    # Matmul operands in bf16 (f32 accumulation in-kernel); pad lanes are exactly 0
    # so the padded gate columns stay inert through the recurrence.
    wih_p = jnp.stack(wih_p).astype(jnp.bfloat16)     # (L, HP, 4*HP)
    whh_p = jnp.stack(whh_p).astype(jnp.bfloat16)     # (L, HP, 4*HP)
    b_p = jnp.stack(b_p)                              # (L, 1, 4*HP) f32

    gamma, beta, mean, var = params["bn"]
    scale = gamma / jnp.sqrt(var + BN_EPS)
    shift = beta - mean * scale
    bns = jnp.pad(scale, (0, HP - HIDDEN_SIZE)).reshape(1, HP)
    bnb = jnp.pad(shift, (0, HP - HIDDEN_SIZE)).reshape(1, HP)

    def pad_fc(w, b):
        wt = w.T
        wt = jnp.pad(wt, ((0, HP - wt.shape[0]), (0, HP - wt.shape[1])))
        bb = jnp.pad(b, (0, HP - b.shape[0])).reshape(1, HP)
        return wt.astype(jnp.bfloat16), bb

    (w1, b1), (w2, b2), (w3, b3) = params["fc"]
    w1p, b1p = pad_fc(w1, b1)
    w2p, b2p = pad_fc(w2, b2)
    w3p, b3p = pad_fc(w3, b3)
    return wih_p, whh_p, b_p, bns, bnb, w1p, b1p, w2p, b2p, w3p, b3p


@functools.partial(jax.jit, static_argnames=())
def gesture_forward(x, packed):
    """x: (B, T, INPUT_SIZE) float32 -> (B, OUTPUT_SIZE)."""
    B, T, _ = x.shape
    Bp = max(8, ((B + 7) // 8) * 8)                   # f32 sublane tile
    # time-major, pad batch -> Bp and features -> HP with zeros
    x_pad = jnp.pad(jnp.swapaxes(x, 0, 1),
                    ((0, 0), (0, Bp - B), (0, HP - INPUT_SIZE)))

    out_pad = pl.pallas_call(
        gesture_kernel,
        out_shape=jax.ShapeDtypeStruct((Bp, HP), jnp.float32),
        in_specs=[pl.BlockSpec(memory_space=pltpu.MemorySpace.VMEM)] * 12,
        out_specs=pl.BlockSpec(memory_space=pltpu.MemorySpace.VMEM),
        scratch_shapes=[pltpu.VMEM((T, Bp, HP), jnp.float32),   # layer output sequence
                        pltpu.VMEM((T, Bp, GP), jnp.float32)],  # hoisted x @ W_ih + b
    )(x_pad, *packed)
    return out_pad[:B, :OUTPUT_SIZE]


# ---------------------------------------------------------------------------
# pure-JAX reference (unpadded, f32 HIGHEST precision) for correctness checking
# ---------------------------------------------------------------------------
def reference_forward(x, params):
    hi = jax.lax.Precision.HIGHEST
    seq = x
    for (wih, whh, bih, bhh) in params["lstm"]:
        B, T, _ = seq.shape

        def step(carry, xt):
            h, c = carry
            gates = (jnp.dot(xt, wih.T, precision=hi)
                     + jnp.dot(h, whh.T, precision=hi) + bih + bhh)
            i, f, g, o = jnp.split(gates, 4, axis=-1)
            i, f, g, o = jax.nn.sigmoid(i), jax.nn.sigmoid(f), jnp.tanh(g), jax.nn.sigmoid(o)
            c = f * c + i * g
            h = o * jnp.tanh(c)
            return (h, c), h

        init = (jnp.zeros((B, HIDDEN_SIZE)), jnp.zeros((B, HIDDEN_SIZE)))
        _, ys = lax.scan(step, init, jnp.swapaxes(seq, 0, 1))
        seq = jnp.swapaxes(ys, 0, 1)

    last = seq[:, -1, :]
    gamma, beta, mean, var = params["bn"]
    y = (last - mean) / jnp.sqrt(var + BN_EPS) * gamma + beta
    (w1, b1), (w2, b2), (w3, b3) = params["fc"]
    y = jax.nn.relu(jnp.dot(y, w1.T, precision=hi) + b1)
    y = jax.nn.relu(jnp.dot(y, w2.T, precision=hi) + b2)
    return jnp.dot(y, w3.T, precision=hi) + b3


if __name__ == "__main__":
    B, T = 2, 8
    key = jax.random.PRNGKey(0)
    kx, kp = jax.random.split(key)
    x = jax.random.normal(kx, (B, T, INPUT_SIZE), jnp.float32)

    params = make_params(kp)
    packed = pack_params(params)

    out = gesture_forward(x, packed)
    out = jax.block_until_ready(out)

    ref = jax.block_until_ready(reference_forward(x, params))
    assert out.shape == (B, OUTPUT_SIZE)
    assert jnp.allclose(out, ref, rtol=2e-2, atol=2e-2), (out, ref)

    print("KERNEL_OK")
</pallas_src>

<mosaic_0001>
module attributes {stable_mosaic.version = 11 : i64} {
  func.func @gesture_kernel(%arg0: memref<8x8x128xf32, #tpu.memory_space<vmem>>, %arg1: memref<5x128x512xbf16, #tpu.memory_space<vmem>>, %arg2: memref<5x128x512xbf16, #tpu.memory_space<vmem>>, %arg3: memref<5x1x512xf32, #tpu.memory_space<vmem>>, %arg4: memref<1x128xf32, #tpu.memory_space<vmem>>, %arg5: memref<1x128xf32, #tpu.memory_space<vmem>>, %arg6: memref<128x128xbf16, #tpu.memory_space<vmem>>, %arg7: memref<1x128xf32, #tpu.memory_space<vmem>>, %arg8: memref<128x128xbf16, #tpu.memory_space<vmem>>, %arg9: memref<1x128xf32, #tpu.memory_space<vmem>>, %arg10: memref<128x128xbf16, #tpu.memory_space<vmem>>, %arg11: memref<1x128xf32, #tpu.memory_space<vmem>>, %arg12: memref<8x128xf32, #tpu.memory_space<vmem>>, %arg13: memref<8x8x128xf32, #tpu.memory_space<vmem>>, %arg14: memref<8x8x512xf32, #tpu.memory_space<vmem>>) attributes {dimension_semantics = [], scalar_prefetch = 0 : i64, scratch_operands = 2 : i64, tpu.core_type = #tpu.core_type<tc>} {
    %c0 = arith.constant 0 : index
    %c0_0 = arith.constant 0 : index
    %c0_1 = arith.constant 0 : index
    %0 = vector.load %arg2[%c0, %c0_0, %c0_1] : memref<5x128x512xbf16, #tpu.memory_space<vmem>>, vector<1x128x512xbf16>
    %1 = vector.shape_cast %0 : vector<1x128x512xbf16> to vector<128x512xbf16>
    %c0_2 = arith.constant 0 : index
    %c0_3 = arith.constant 0 : index
    %c0_4 = arith.constant 0 : index
    %2 = vector.load %arg0[%c0_2, %c0_3, %c0_4] : memref<8x8x128xf32, #tpu.memory_space<vmem>>, vector<8x8x128xf32>
    %3 = vector.shape_cast %2 : vector<8x8x128xf32> to vector<64x128xf32>
    %4 = arith.truncf %3 : vector<64x128xf32> to vector<64x128xbf16>
    %c0_5 = arith.constant 0 : index
    %c0_6 = arith.constant 0 : index
    %c0_7 = arith.constant 0 : index
    %5 = vector.load %arg1[%c0_5, %c0_6, %c0_7] : memref<5x128x512xbf16, #tpu.memory_space<vmem>>, vector<1x128x512xbf16>
    %6 = vector.shape_cast %5 : vector<1x128x512xbf16> to vector<128x512xbf16>
    %cst = arith.constant dense<0.000000e+00> : vector<64x512xf32>
    %7 = tpu.matmul %4, %6, %cst {dimension_numbers = #tpu.dot_dimension_numbers<[1], [0], [0], [1], [0, 0, 1, 1], [], []>} : vector<64x128xbf16>, vector<128x512xbf16>, vector<64x512xf32> -> vector<64x512xf32>
    %c0_8 = arith.constant 0 : index
    %c0_9 = arith.constant 0 : index
    %c0_10 = arith.constant 0 : index
    %8 = vector.load %arg3[%c0_8, %c0_9, %c0_10] : memref<5x1x512xf32, #tpu.memory_space<vmem>>, vector<1x1x512xf32>
    %9 = vector.shape_cast %8 : vector<1x1x512xf32> to vector<1x512xf32>
    %10 = vector.broadcast %9 : vector<1x512xf32> to vector<64x512xf32>
    %11 = arith.addf %7, %10 : vector<64x512xf32>
    %12 = vector.shape_cast %11 : vector<64x512xf32> to vector<8x8x512xf32>
    %c0_11 = arith.constant 0 : index
    %c0_12 = arith.constant 0 : index
    %c0_13 = arith.constant 0 : index
    %13 = vector.load %arg14[%c0_11, %c0_12, %c0_13] : memref<8x8x512xf32, #tpu.memory_space<vmem>>, vector<8x8x512xf32>
    tpu.vector_store %arg14[%c0_11, %c0_12, %c0_13], %12 {strides = array<i32>} : memref<8x8x512xf32, #tpu.memory_space<vmem>>, vector<8x8x512xf32>,
    %cst_14 = arith.constant 0.000000e+00 : f32
    %14 = vector.broadcast %cst_14 : f32 to vector<8x128xf32>
    %cst_15 = arith.constant 0.000000e+00 : f32
    %15 = vector.broadcast %cst_15 : f32 to vector<8x128xf32>
    %c0_i32 = arith.constant 0 : i32
    %16 = arith.index_cast %c0_i32 : i32 to index
    %c0_16 = arith.constant 0 : index
    %c0_17 = arith.constant 0 : index
    %17 = vector.load %arg14[%16, %c0_16, %c0_17] : memref<8x8x512xf32, #tpu.memory_space<vmem>>, vector<1x8x512xf32>
    %18 = vector.shape_cast %17 : vector<1x8x512xf32> to vector<8x512xf32>
    %19 = arith.truncf %14 : vector<8x128xf32> to vector<8x128xbf16>
    %cst_18 = arith.constant dense<0.000000e+00> : vector<8x512xf32>
    %20 = tpu.matmul %19, %1, %cst_18 {dimension_numbers = #tpu.dot_dimension_numbers<[1], [0], [0], [1], [0, 0, 1, 1], [], []>} : vector<8x128xbf16>, vector<128x512xbf16>, vector<8x512xf32> -> vector<8x512xf32>
    %21 = arith.addf %18, %20 : vector<8x512xf32>
    %22 = vector.extract_strided_slice %21 {offsets = [0, 0], sizes = [8, 128], strides = [1, 1]} : vector<8x512xf32> to vector<8x128xf32>
    %23 = arith.negf %22 : vector<8x128xf32>
    %24 = math.exp %23 : vector<8x128xf32>
    %cst_19 = arith.constant 1.000000e+00 : f32
    %25 = vector.broadcast %cst_19 : f32 to vector<8x128xf32>
    %26 = arith.addf %25, %24 : vector<8x128xf32>
    %27 = arith.divf %25, %26 : vector<8x128xf32>
    %28 = vector.extract_strided_slice %21 {offsets = [0, 128], sizes = [8, 128], strides = [1, 1]} : vector<8x512xf32> to vector<8x128xf32>
    %29 = arith.negf %28 : vector<8x128xf32>
    %30 = math.exp %29 : vector<8x128xf32>
    %cst_20 = arith.constant 1.000000e+00 : f32
    %31 = vector.broadcast %cst_20 : f32 to vector<8x128xf32>
    %32 = arith.addf %31, %30 : vector<8x128xf32>
    %33 = arith.divf %31, %32 : vector<8x128xf32>
    %34 = vector.extract_strided_slice %21 {offsets = [0, 256], sizes = [8, 128], strides = [1, 1]} : vector<8x512xf32> to vector<8x128xf32>
    %35 = math.tanh %34 : vector<8x128xf32>
    %36 = vector.extract_strided_slice %21 {offsets = [0, 384], sizes = [8, 128], strides = [1, 1]} : vector<8x512xf32> to vector<8x128xf32>
    %37 = arith.negf %36 : vector<8x128xf32>
    %38 = math.exp %37 : vector<8x128xf32>
    %cst_21 = arith.constant 1.000000e+00 : f32
    %39 = vector.broadcast %cst_21 : f32 to vector<8x128xf32>
    %40 = arith.addf %39, %38 : vector<8x128xf32>
    %41 = arith.divf %39, %40 : vector<8x128xf32>
    %42 = arith.mulf %33, %15 : vector<8x128xf32>
    %43 = arith.mulf %27, %35 : vector<8x128xf32>
    %44 = arith.addf %42, %43 : vector<8x128xf32>
    %45 = math.tanh %44 : vector<8x128xf32>
    %46 = arith.mulf %41, %45 : vector<8x128xf32>
    %47 = arith.index_cast %c0_i32 : i32 to index
    %c0_22 = arith.constant 0 : index
    %c0_23 = arith.constant 0 : index
    %48 = vector.load %arg13[%47, %c0_22, %c0_23] : memref<8x8x128xf32, #tpu.memory_space<vmem>>, vector<1x8x128xf32>
    %49 = vector.shape_cast %48 : vector<1x8x128xf32> to vector<8x128xf32>
    %50 = vector.shape_cast %46 : vector<8x128xf32> to vector<1x8x128xf32>
    tpu.vector_store %arg13[%47, %c0_22, %c0_23], %50 {strides = array<i32>} : memref<8x8x128xf32, #tpu.memory_space<vmem>>, vector<1x8x128xf32>,
    %c1_i32 = arith.constant 1 : i32
    %51 = arith.index_cast %c1_i32 : i32 to index
    %c0_24 = arith.constant 0 : index
    %c0_25 = arith.constant 0 : index
    %52 = vector.load %arg14[%51, %c0_24, %c0_25] : memref<8x8x512xf32, #tpu.memory_space<vmem>>, vector<1x8x512xf32>
    %53 = vector.shape_cast %52 : vector<1x8x512xf32> to vector<8x512xf32>
    %54 = arith.truncf %46 : vector<8x128xf32> to vector<8x128xbf16>
    %cst_26 = arith.constant dense<0.000000e+00> : vector<8x512xf32>
    %55 = tpu.matmul %54, %1, %cst_26 {dimension_numbers = #tpu.dot_dimension_numbers<[1], [0], [0], [1], [0, 0, 1, 1], [], []>} : vector<8x128xbf16>, vector<128x512xbf16>, vector<8x512xf32> -> vector<8x512xf32>
    %56 = arith.addf %53, %55 : vector<8x512xf32>
    %57 = vector.extract_strided_slice %56 {offsets = [0, 0], sizes = [8, 128], strides = [1, 1]} : vector<8x512xf32> to vector<8x128xf32>
    %58 = arith.negf %57 : vector<8x128xf32>
    %59 = math.exp %58 : vector<8x128xf32>
    %cst_27 = arith.constant 1.000000e+00 : f32
    %60 = vector.broadcast %cst_27 : f32 to vector<8x128xf32>
    %61 = arith.addf %60, %59 : vector<8x128xf32>
    %62 = arith.divf %60, %61 : vector<8x128xf32>
    %63 = vector.extract_strided_slice %56 {offsets = [0, 128], sizes = [8, 128], strides = [1, 1]} : vector<8x512xf32> to vector<8x128xf32>
    %64 = arith.negf %63 : vector<8x128xf32>
    %65 = math.exp %64 : vector<8x128xf32>
    %cst_28 = arith.constant 1.000000e+00 : f32
    %66 = vector.broadcast %cst_28 : f32 to vector<8x128xf32>
    %67 = arith.addf %66, %65 : vector<8x128xf32>
    %68 = arith.divf %66, %67 : vector<8x128xf32>
    %69 = vector.extract_strided_slice %56 {offsets = [0, 256], sizes = [8, 128], strides = [1, 1]} : vector<8x512xf32> to vector<8x128xf32>
    %70 = math.tanh %69 : vector<8x128xf32>
    %71 = vector.extract_strided_slice %56 {offsets = [0, 384], sizes = [8, 128], strides = [1, 1]} : vector<8x512xf32> to vector<8x128xf32>
    %72 = arith.negf %71 : vector<8x128xf32>
    %73 = math.exp %72 : vector<8x128xf32>
    %cst_29 = arith.constant 1.000000e+00 : f32
    %74 = vector.broadcast %cst_29 : f32 to vector<8x128xf32>
    %75 = arith.addf %74, %73 : vector<8x128xf32>
    %76 = arith.divf %74, %75 : vector<8x128xf32>
    %77 = arith.mulf %68, %44 : vector<8x128xf32>
    %78 = arith.mulf %62, %70 : vector<8x128xf32>
    %79 = arith.addf %77, %78 : vector<8x128xf32>
    %80 = math.tanh %79 : vector<8x128xf32>
    %81 = arith.mulf %76, %80 : vector<8x128xf32>
    %82 = arith.index_cast %c1_i32 : i32 to index
    %c0_30 = arith.constant 0 : index
    %c0_31 = arith.constant 0 : index
    %83 = vector.load %arg13[%82, %c0_30, %c0_31] : memref<8x8x128xf32, #tpu.memory_space<vmem>>, vector<1x8x128xf32>
    %84 = vector.shape_cast %83 : vector<1x8x128xf32> to vector<8x128xf32>
    %85 = vector.shape_cast %81 : vector<8x128xf32> to vector<1x8x128xf32>
    tpu.vector_store %arg13[%82, %c0_30, %c0_31], %85 {strides = array<i32>} : memref<8x8x128xf32, #tpu.memory_space<vmem>>, vector<1x8x128xf32>,
    %c2_i32 = arith.constant 2 : i32
    %86 = arith.index_cast %c2_i32 : i32 to index
    %c0_32 = arith.constant 0 : index
    %c0_33 = arith.constant 0 : index
    %87 = vector.load %arg14[%86, %c0_32, %c0_33] : memref<8x8x512xf32, #tpu.memory_space<vmem>>, vector<1x8x512xf32>
    %88 = vector.shape_cast %87 : vector<1x8x512xf32> to vector<8x512xf32>
    %89 = arith.truncf %81 : vector<8x128xf32> to vector<8x128xbf16>
    %cst_34 = arith.constant dense<0.000000e+00> : vector<8x512xf32>
    %90 = tpu.matmul %89, %1, %cst_34 {dimension_numbers = #tpu.dot_dimension_numbers<[1], [0], [0], [1], [0, 0, 1, 1], [], []>} : vector<8x128xbf16>, vector<128x512xbf16>, vector<8x512xf32> -> vector<8x512xf32>
    %91 = arith.addf %88, %90 : vector<8x512xf32>
    %92 = vector.extract_strided_slice %91 {offsets = [0, 0], sizes = [8, 128], strides = [1, 1]} : vector<8x512xf32> to vector<8x128xf32>
    %93 = arith.negf %92 : vector<8x128xf32>
    %94 = math.exp %93 : vector<8x128xf32>
    %cst_35 = arith.constant 1.000000e+00 : f32
    %95 = vector.broadcast %cst_35 : f32 to vector<8x128xf32>
    %96 = arith.addf %95, %94 : vector<8x128xf32>
    %97 = arith.divf %95, %96 : vector<8x128xf32>
    %98 = vector.extract_strided_slice %91 {offsets = [0, 128], sizes = [8, 128], strides = [1, 1]} : vector<8x512xf32> to vector<8x128xf32>
    %99 = arith.negf %98 : vector<8x128xf32>
    %100 = math.exp %99 : vector<8x128xf32>
    %cst_36 = arith.constant 1.000000e+00 : f32
    %101 = vector.broadcast %cst_36 : f32 to vector<8x128xf32>
    %102 = arith.addf %101, %100 : vector<8x128xf32>
    %103 = arith.divf %101, %102 : vector<8x128xf32>
    %104 = vector.extract_strided_slice %91 {offsets = [0, 256], sizes = [8, 128], strides = [1, 1]} : vector<8x512xf32> to vector<8x128xf32>
    %105 = math.tanh %104 : vector<8x128xf32>
    %106 = vector.extract_strided_slice %91 {offsets = [0, 384], sizes = [8, 128], strides = [1, 1]} : vector<8x512xf32> to vector<8x128xf32>
    %107 = arith.negf %106 : vector<8x128xf32>
    %108 = math.exp %107 : vector<8x128xf32>
    %cst_37 = arith.constant 1.000000e+00 : f32
    %109 = vector.broadcast %cst_37 : f32 to vector<8x128xf32>
    %110 = arith.addf %109, %108 : vector<8x128xf32>
    %111 = arith.divf %109, %110 : vector<8x128xf32>
    %112 = arith.mulf %103, %79 : vector<8x128xf32>
    %113 = arith.mulf %97, %105 : vector<8x128xf32>
    %114 = arith.addf %112, %113 : vector<8x128xf32>
    %115 = math.tanh %114 : vector<8x128xf32>
    %116 = arith.mulf %111, %115 : vector<8x128xf32>
    %117 = arith.index_cast %c2_i32 : i32 to index
    %c0_38 = arith.constant 0 : index
    %c0_39 = arith.constant 0 : index
    %118 = vector.load %arg13[%117, %c0_38, %c0_39] : memref<8x8x128xf32, #tpu.memory_space<vmem>>, vector<1x8x128xf32>
    %119 = vector.shape_cast %118 : vector<1x8x128xf32> to vector<8x128xf32>
    %120 = vector.shape_cast %116 : vector<8x128xf32> to vector<1x8x128xf32>
    tpu.vector_store %arg13[%117, %c0_38, %c0_39], %120 {strides = array<i32>} : memref<8x8x128xf32, #tpu.memory_space<vmem>>, vector<1x8x128xf32>,
    %c3_i32 = arith.constant 3 : i32
    %121 = arith.index_cast %c3_i32 : i32 to index
    %c0_40 = arith.constant 0 : index
    %c0_41 = arith.constant 0 : index
    %122 = vector.load %arg14[%121, %c0_40, %c0_41] : memref<8x8x512xf32, #tpu.memory_space<vmem>>, vector<1x8x512xf32>
    %123 = vector.shape_cast %122 : vector<1x8x512xf32> to vector<8x512xf32>
    %124 = arith.truncf %116 : vector<8x128xf32> to vector<8x128xbf16>
    %cst_42 = arith.constant dense<0.000000e+00> : vector<8x512xf32>
    %125 = tpu.matmul %124, %1, %cst_42 {dimension_numbers = #tpu.dot_dimension_numbers<[1], [0], [0], [1], [0, 0, 1, 1], [], []>} : vector<8x128xbf16>, vector<128x512xbf16>, vector<8x512xf32> -> vector<8x512xf32>
    %126 = arith.addf %123, %125 : vector<8x512xf32>
    %127 = vector.extract_strided_slice %126 {offsets = [0, 0], sizes = [8, 128], strides = [1, 1]} : vector<8x512xf32> to vector<8x128xf32>
    %128 = arith.negf %127 : vector<8x128xf32>
    %129 = math.exp %128 : vector<8x128xf32>
    %cst_43 = arith.constant 1.000000e+00 : f32
    %130 = vector.broadcast %cst_43 : f32 to vector<8x128xf32>
    %131 = arith.addf %130, %129 : vector<8x128xf32>
    %132 = arith.divf %130, %131 : vector<8x128xf32>
    %133 = vector.extract_strided_slice %126 {offsets = [0, 128], sizes = [8, 128], strides = [1, 1]} : vector<8x512xf32> to vector<8x128xf32>
    %134 = arith.negf %133 : vector<8x128xf32>
    %135 = math.exp %134 : vector<8x128xf32>
    %cst_44 = arith.constant 1.000000e+00 : f32
    %136 = vector.broadcast %cst_44 : f32 to vector<8x128xf32>
    %137 = arith.addf %136, %135 : vector<8x128xf32>
    %138 = arith.divf %136, %137 : vector<8x128xf32>
    %139 = vector.extract_strided_slice %126 {offsets = [0, 256], sizes = [8, 128], strides = [1, 1]} : vector<8x512xf32> to vector<8x128xf32>
    %140 = math.tanh %139 : vector<8x128xf32>
    %141 = vector.extract_strided_slice %126 {offsets = [0, 384], sizes = [8, 128], strides = [1, 1]} : vector<8x512xf32> to vector<8x128xf32>
    %142 = arith.negf %141 : vector<8x128xf32>
    %143 = math.exp %142 : vector<8x128xf32>
    %cst_45 = arith.constant 1.000000e+00 : f32
    %144 = vector.broadcast %cst_45 : f32 to vector<8x128xf32>
    %145 = arith.addf %144, %143 : vector<8x128xf32>
    %146 = arith.divf %144, %145 : vector<8x128xf32>
    %147 = arith.mulf %138, %114 : vector<8x128xf32>
    %148 = arith.mulf %132, %140 : vector<8x128xf32>
    %149 = arith.addf %147, %148 : vector<8x128xf32>
    %150 = math.tanh %149 : vector<8x128xf32>
    %151 = arith.mulf %146, %150 : vector<8x128xf32>
    %152 = arith.index_cast %c3_i32 : i32 to index
    %c0_46 = arith.constant 0 : index
    %c0_47 = arith.constant 0 : index
    %153 = vector.load %arg13[%152, %c0_46, %c0_47] : memref<8x8x128xf32, #tpu.memory_space<vmem>>, vector<1x8x128xf32>
    %154 = vector.shape_cast %153 : vector<1x8x128xf32> to vector<8x128xf32>
    %155 = vector.shape_cast %151 : vector<8x128xf32> to vector<1x8x128xf32>
    tpu.vector_store %arg13[%152, %c0_46, %c0_47], %155 {strides = array<i32>} : memref<8x8x128xf32, #tpu.memory_space<vmem>>, vector<1x8x128xf32>,
    %c4_i32 = arith.constant 4 : i32
    %156 = arith.index_cast %c4_i32 : i32 to index
    %c0_48 = arith.constant 0 : index
    %c0_49 = arith.constant 0 : index
    %157 = vector.load %arg14[%156, %c0_48, %c0_49] : memref<8x8x512xf32, #tpu.memory_space<vmem>>, vector<1x8x512xf32>
    %158 = vector.shape_cast %157 : vector<1x8x512xf32> to vector<8x512xf32>
    %159 = arith.truncf %151 : vector<8x128xf32> to vector<8x128xbf16>
    %cst_50 = arith.constant dense<0.000000e+00> : vector<8x512xf32>
    %160 = tpu.matmul %159, %1, %cst_50 {dimension_numbers = #tpu.dot_dimension_numbers<[1], [0], [0], [1], [0, 0, 1, 1], [], []>} : vector<8x128xbf16>, vector<128x512xbf16>, vector<8x512xf32> -> vector<8x512xf32>
    %161 = arith.addf %158, %160 : vector<8x512xf32>
    %162 = vector.extract_strided_slice %161 {offsets = [0, 0], sizes = [8, 128], strides = [1, 1]} : vector<8x512xf32> to vector<8x128xf32>
    %163 = arith.negf %162 : vector<8x128xf32>
    %164 = math.exp %163 : vector<8x128xf32>
    %cst_51 = arith.constant 1.000000e+00 : f32
    %165 = vector.broadcast %cst_51 : f32 to vector<8x128xf32>
    %166 = arith.addf %165, %164 : vector<8x128xf32>
    %167 = arith.divf %165, %166 : vector<8x128xf32>
    %168 = vector.extract_strided_slice %161 {offsets = [0, 128], sizes = [8, 128], strides = [1, 1]} : vector<8x512xf32> to vector<8x128xf32>
    %169 = arith.negf %168 : vector<8x128xf32>
    %170 = math.exp %169 : vector<8x128xf32>
    %cst_52 = arith.constant 1.000000e+00 : f32
    %171 = vector.broadcast %cst_52 : f32 to vector<8x128xf32>
    %172 = arith.addf %171, %170 : vector<8x128xf32>
    %173 = arith.divf %171, %172 : vector<8x128xf32>
    %174 = vector.extract_strided_slice %161 {offsets = [0, 256], sizes = [8, 128], strides = [1, 1]} : vector<8x512xf32> to vector<8x128xf32>
    %175 = math.tanh %174 : vector<8x128xf32>
    %176 = vector.extract_strided_slice %161 {offsets = [0, 384], sizes = [8, 128], strides = [1, 1]} : vector<8x512xf32> to vector<8x128xf32>
    %177 = arith.negf %176 : vector<8x128xf32>
    %178 = math.exp %177 : vector<8x128xf32>
    %cst_53 = arith.constant 1.000000e+00 : f32
    %179 = vector.broadcast %cst_53 : f32 to vector<8x128xf32>
    %180 = arith.addf %179, %178 : vector<8x128xf32>
    %181 = arith.divf %179, %180 : vector<8x128xf32>
    %182 = arith.mulf %173, %149 : vector<8x128xf32>
    %183 = arith.mulf %167, %175 : vector<8x128xf32>
    %184 = arith.addf %182, %183 : vector<8x128xf32>
    %185 = math.tanh %184 : vector<8x128xf32>
    %186 = arith.mulf %181, %185 : vector<8x128xf32>
    %187 = arith.index_cast %c4_i32 : i32 to index
    %c0_54 = arith.constant 0 : index
    %c0_55 = arith.constant 0 : index
    %188 = vector.load %arg13[%187, %c0_54, %c0_55] : memref<8x8x128xf32, #tpu.memory_space<vmem>>, vector<1x8x128xf32>
    %189 = vector.shape_cast %188 : vector<1x8x128xf32> to vector<8x128xf32>
    %190 = vector.shape_cast %186 : vector<8x128xf32> to vector<1x8x128xf32>
    tpu.vector_store %arg13[%187, %c0_54, %c0_55], %190 {strides = array<i32>} : memref<8x8x128xf32, #tpu.memory_space<vmem>>, vector<1x8x128xf32>,
    %c5_i32 = arith.constant 5 : i32
    %191 = arith.index_cast %c5_i32 : i32 to index
    %c0_56 = arith.constant 0 : index
    %c0_57 = arith.constant 0 : index
    %192 = vector.load %arg14[%191, %c0_56, %c0_57] : memref<8x8x512xf32, #tpu.memory_space<vmem>>, vector<1x8x512xf32>
    %193 = vector.shape_cast %192 : vector<1x8x512xf32> to vector<8x512xf32>
    %194 = arith.truncf %186 : vector<8x128xf32> to vector<8x128xbf16>
    %cst_58 = arith.constant dense<0.000000e+00> : vector<8x512xf32>
    %195 = tpu.matmul %194, %1, %cst_58 {dimension_numbers = #tpu.dot_dimension_numbers<[1], [0], [0], [1], [0, 0, 1, 1], [], []>} : vector<8x128xbf16>, vector<128x512xbf16>, vector<8x512xf32> -> vector<8x512xf32>
    %196 = arith.addf %193, %195 : vector<8x512xf32>
    %197 = vector.extract_strided_slice %196 {offsets = [0, 0], sizes = [8, 128], strides = [1, 1]} : vector<8x512xf32> to vector<8x128xf32>
    %198 = arith.negf %197 : vector<8x128xf32>
    %199 = math.exp %198 : vector<8x128xf32>
    %cst_59 = arith.constant 1.000000e+00 : f32
    %200 = vector.broadcast %cst_59 : f32 to vector<8x128xf32>
    %201 = arith.addf %200, %199 : vector<8x128xf32>
    %202 = arith.divf %200, %201 : vector<8x128xf32>
    %203 = vector.extract_strided_slice %196 {offsets = [0, 128], sizes = [8, 128], strides = [1, 1]} : vector<8x512xf32> to vector<8x128xf32>
    %204 = arith.negf %203 : vector<8x128xf32>
    %205 = math.exp %204 : vector<8x128xf32>
    %cst_60 = arith.constant 1.000000e+00 : f32
    %206 = vector.broadcast %cst_60 : f32 to vector<8x128xf32>
    %207 = arith.addf %206, %205 : vector<8x128xf32>
    %208 = arith.divf %206, %207 : vector<8x128xf32>
    %209 = vector.extract_strided_slice %196 {offsets = [0, 256], sizes = [8, 128], strides = [1, 1]} : vector<8x512xf32> to vector<8x128xf32>
    %210 = math.tanh %209 : vector<8x128xf32>
    %211 = vector.extract_strided_slice %196 {offsets = [0, 384], sizes = [8, 128], strides = [1, 1]} : vector<8x512xf32> to vector<8x128xf32>
    %212 = arith.negf %211 : vector<8x128xf32>
    %213 = math.exp %212 : vector<8x128xf32>
    %cst_61 = arith.constant 1.000000e+00 : f32
    %214 = vector.broadcast %cst_61 : f32 to vector<8x128xf32>
    %215 = arith.addf %214, %213 : vector<8x128xf32>
    %216 = arith.divf %214, %215 : vector<8x128xf32>
    %217 = arith.mulf %208, %184 : vector<8x128xf32>
    %218 = arith.mulf %202, %210 : vector<8x128xf32>
    %219 = arith.addf %217, %218 : vector<8x128xf32>
    %220 = math.tanh %219 : vector<8x128xf32>
    %221 = arith.mulf %216, %220 : vector<8x128xf32>
    %222 = arith.index_cast %c5_i32 : i32 to index
    %c0_62 = arith.constant 0 : index
    %c0_63 = arith.constant 0 : index
    %223 = vector.load %arg13[%222, %c0_62, %c0_63] : memref<8x8x128xf32, #tpu.memory_space<vmem>>, vector<1x8x128xf32>
    %224 = vector.shape_cast %223 : vector<1x8x128xf32> to vector<8x128xf32>
    %225 = vector.shape_cast %221 : vector<8x128xf32> to vector<1x8x128xf32>
    tpu.vector_store %arg13[%222, %c0_62, %c0_63], %225 {strides = array<i32>} : memref<8x8x128xf32, #tpu.memory_space<vmem>>, vector<1x8x128xf32>,
    %c6_i32 = arith.constant 6 : i32
    %226 = arith.index_cast %c6_i32 : i32 to index
    %c0_64 = arith.constant 0 : index
    %c0_65 = arith.constant 0 : index
    %227 = vector.load %arg14[%226, %c0_64, %c0_65] : memref<8x8x512xf32, #tpu.memory_space<vmem>>, vector<1x8x512xf32>
    %228 = vector.shape_cast %227 : vector<1x8x512xf32> to vector<8x512xf32>
    %229 = arith.truncf %221 : vector<8x128xf32> to vector<8x128xbf16>
    %cst_66 = arith.constant dense<0.000000e+00> : vector<8x512xf32>
    %230 = tpu.matmul %229, %1, %cst_66 {dimension_numbers = #tpu.dot_dimension_numbers<[1], [0], [0], [1], [0, 0, 1, 1], [], []>} : vector<8x128xbf16>, vector<128x512xbf16>, vector<8x512xf32> -> vector<8x512xf32>
    %231 = arith.addf %228, %230 : vector<8x512xf32>
    %232 = vector.extract_strided_slice %231 {offsets = [0, 0], sizes = [8, 128], strides = [1, 1]} : vector<8x512xf32> to vector<8x128xf32>
    %233 = arith.negf %232 : vector<8x128xf32>
    %234 = math.exp %233 : vector<8x128xf32>
    %cst_67 = arith.constant 1.000000e+00 : f32
    %235 = vector.broadcast %cst_67 : f32 to vector<8x128xf32>
    %236 = arith.addf %235, %234 : vector<8x128xf32>
    %237 = arith.divf %235, %236 : vector<8x128xf32>
    %238 = vector.extract_strided_slice %231 {offsets = [0, 128], sizes = [8, 128], strides = [1, 1]} : vector<8x512xf32> to vector<8x128xf32>
    %239 = arith.negf %238 : vector<8x128xf32>
    %240 = math.exp %239 : vector<8x128xf32>
    %cst_68 = arith.constant 1.000000e+00 : f32
    %241 = vector.broadcast %cst_68 : f32 to vector<8x128xf32>
    %242 = arith.addf %241, %240 : vector<8x128xf32>
    %243 = arith.divf %241, %242 : vector<8x128xf32>
    %244 = vector.extract_strided_slice %231 {offsets = [0, 256], sizes = [8, 128], strides = [1, 1]} : vector<8x512xf32> to vector<8x128xf32>
    %245 = math.tanh %244 : vector<8x128xf32>
    %246 = vector.extract_strided_slice %231 {offsets = [0, 384], sizes = [8, 128], strides = [1, 1]} : vector<8x512xf32> to vector<8x128xf32>
    %247 = arith.negf %246 : vector<8x128xf32>
    %248 = math.exp %247 : vector<8x128xf32>
    %cst_69 = arith.constant 1.000000e+00 : f32
    %249 = vector.broadcast %cst_69 : f32 to vector<8x128xf32>
    %250 = arith.addf %249, %248 : vector<8x128xf32>
    %251 = arith.divf %249, %250 : vector<8x128xf32>
    %252 = arith.mulf %243, %219 : vector<8x128xf32>
    %253 = arith.mulf %237, %245 : vector<8x128xf32>
    %254 = arith.addf %252, %253 : vector<8x128xf32>
    %255 = math.tanh %254 : vector<8x128xf32>
    %256 = arith.mulf %251, %255 : vector<8x128xf32>
    %257 = arith.index_cast %c6_i32 : i32 to index
    %c0_70 = arith.constant 0 : index
    %c0_71 = arith.constant 0 : index
    %258 = vector.load %arg13[%257, %c0_70, %c0_71] : memref<8x8x128xf32, #tpu.memory_space<vmem>>, vector<1x8x128xf32>
    %259 = vector.shape_cast %258 : vector<1x8x128xf32> to vector<8x128xf32>
    %260 = vector.shape_cast %256 : vector<8x128xf32> to vector<1x8x128xf32>
    tpu.vector_store %arg13[%257, %c0_70, %c0_71], %260 {strides = array<i32>} : memref<8x8x128xf32, #tpu.memory_space<vmem>>, vector<1x8x128xf32>,
    %c7_i32 = arith.constant 7 : i32
    %261 = arith.index_cast %c7_i32 : i32 to index
    %c0_72 = arith.constant 0 : index
    %c0_73 = arith.constant 0 : index
    %262 = vector.load %arg14[%261, %c0_72, %c0_73] : memref<8x8x512xf32, #tpu.memory_space<vmem>>, vector<1x8x512xf32>
    %263 = vector.shape_cast %262 : vector<1x8x512xf32> to vector<8x512xf32>
    %264 = arith.truncf %256 : vector<8x128xf32> to vector<8x128xbf16>
    %cst_74 = arith.constant dense<0.000000e+00> : vector<8x512xf32>
    %265 = tpu.matmul %264, %1, %cst_74 {dimension_numbers = #tpu.dot_dimension_numbers<[1], [0], [0], [1], [0, 0, 1, 1], [], []>} : vector<8x128xbf16>, vector<128x512xbf16>, vector<8x512xf32> -> vector<8x512xf32>
    %266 = arith.addf %263, %265 : vector<8x512xf32>
    %267 = vector.extract_strided_slice %266 {offsets = [0, 0], sizes = [8, 128], strides = [1, 1]} : vector<8x512xf32> to vector<8x128xf32>
    %268 = arith.negf %267 : vector<8x128xf32>
    %269 = math.exp %268 : vector<8x128xf32>
    %cst_75 = arith.constant 1.000000e+00 : f32
    %270 = vector.broadcast %cst_75 : f32 to vector<8x128xf32>
    %271 = arith.addf %270, %269 : vector<8x128xf32>
    %272 = arith.divf %270, %271 : vector<8x128xf32>
    %273 = vector.extract_strided_slice %266 {offsets = [0, 128], sizes = [8, 128], strides = [1, 1]} : vector<8x512xf32> to vector<8x128xf32>
    %274 = arith.negf %273 : vector<8x128xf32>
    %275 = math.exp %274 : vector<8x128xf32>
    %cst_76 = arith.constant 1.000000e+00 : f32
    %276 = vector.broadcast %cst_76 : f32 to vector<8x128xf32>
    %277 = arith.addf %276, %275 : vector<8x128xf32>
    %278 = arith.divf %276, %277 : vector<8x128xf32>
    %279 = vector.extract_strided_slice %266 {offsets = [0, 256], sizes = [8, 128], strides = [1, 1]} : vector<8x512xf32> to vector<8x128xf32>
    %280 = math.tanh %279 : vector<8x128xf32>
    %281 = vector.extract_strided_slice %266 {offsets = [0, 384], sizes = [8, 128], strides = [1, 1]} : vector<8x512xf32> to vector<8x128xf32>
    %282 = arith.negf %281 : vector<8x128xf32>
    %283 = math.exp %282 : vector<8x128xf32>
    %cst_77 = arith.constant 1.000000e+00 : f32
    %284 = vector.broadcast %cst_77 : f32 to vector<8x128xf32>
    %285 = arith.addf %284, %283 : vector<8x128xf32>
    %286 = arith.divf %284, %285 : vector<8x128xf32>
    %287 = arith.mulf %278, %254 : vector<8x128xf32>
    %288 = arith.mulf %272, %280 : vector<8x128xf32>
    %289 = arith.addf %287, %288 : vector<8x128xf32>
    %290 = math.tanh %289 : vector<8x128xf32>
    %291 = arith.mulf %286, %290 : vector<8x128xf32>
    %292 = arith.index_cast %c7_i32 : i32 to index
    %c0_78 = arith.constant 0 : index
    %c0_79 = arith.constant 0 : index
    %293 = vector.load %arg13[%292, %c0_78, %c0_79] : memref<8x8x128xf32, #tpu.memory_space<vmem>>, vector<1x8x128xf32>
    %294 = vector.shape_cast %293 : vector<1x8x128xf32> to vector<8x128xf32>
    %295 = vector.shape_cast %291 : vector<8x128xf32> to vector<1x8x128xf32>
    tpu.vector_store %arg13[%292, %c0_78, %c0_79], %295 {strides = array<i32>} : memref<8x8x128xf32, #tpu.memory_space<vmem>>, vector<1x8x128xf32>,
    %c8_i32 = arith.constant 8 : i32
    %c1 = arith.constant 1 : index
    %c0_80 = arith.constant 0 : index
    %c0_81 = arith.constant 0 : index
    %296 = vector.load %arg2[%c1, %c0_80, %c0_81] : memref<5x128x512xbf16, #tpu.memory_space<vmem>>, vector<1x128x512xbf16>
    %297 = vector.shape_cast %296 : vector<1x128x512xbf16> to vector<128x512xbf16>
    %c0_82 = arith.constant 0 : index
    %c0_83 = arith.constant 0 : index
    %c0_84 = arith.constant 0 : index
    %298 = vector.load %arg13[%c0_82, %c0_83, %c0_84] : memref<8x8x128xf32, #tpu.memory_space<vmem>>, vector<8x8x128xf32>
    %299 = vector.shape_cast %298 : vector<8x8x128xf32> to vector<64x128xf32>
    %300 = arith.truncf %299 : vector<64x128xf32> to vector<64x128xbf16>
    %c1_85 = arith.constant 1 : index
    %c0_86 = arith.constant 0 : index
    %c0_87 = arith.constant 0 : index
    %301 = vector.load %arg1[%c1_85, %c0_86, %c0_87] : memref<5x128x512xbf16, #tpu.memory_space<vmem>>, vector<1x128x512xbf16>
    %302 = vector.shape_cast %301 : vector<1x128x512xbf16> to vector<128x512xbf16>
    %cst_88 = arith.constant dense<0.000000e+00> : vector<64x512xf32>
    %303 = tpu.matmul %300, %302, %cst_88 {dimension_numbers = #tpu.dot_dimension_numbers<[1], [0], [0], [1], [0, 0, 1, 1], [], []>} : vector<64x128xbf16>, vector<128x512xbf16>, vector<64x512xf32> -> vector<64x512xf32>
    %c1_89 = arith.constant 1 : index
    %c0_90 = arith.constant 0 : index
    %c0_91 = arith.constant 0 : index
    %304 = vector.load %arg3[%c1_89, %c0_90, %c0_91] : memref<5x1x512xf32, #tpu.memory_space<vmem>>, vector<1x1x512xf32>
    %305 = vector.shape_cast %304 : vector<1x1x512xf32> to vector<1x512xf32>
    %306 = vector.broadcast %305 : vector<1x512xf32> to vector<64x512xf32>
    %307 = arith.addf %303, %306 : vector<64x512xf32>
    %308 = vector.shape_cast %307 : vector<64x512xf32> to vector<8x8x512xf32>
    %c0_92 = arith.constant 0 : index
    %c0_93 = arith.constant 0 : index
    %c0_94 = arith.constant 0 : index
    %309 = vector.load %arg14[%c0_92, %c0_93, %c0_94] : memref<8x8x512xf32, #tpu.memory_space<vmem>>, vector<8x8x512xf32>
    tpu.vector_store %arg14[%c0_92, %c0_93, %c0_94], %308 {strides = array<i32>} : memref<8x8x512xf32, #tpu.memory_space<vmem>>, vector<8x8x512xf32>,
    %cst_95 = arith.constant 0.000000e+00 : f32
    %310 = vector.broadcast %cst_95 : f32 to vector<8x128xf32>
    %cst_96 = arith.constant 0.000000e+00 : f32
    %311 = vector.broadcast %cst_96 : f32 to vector<8x128xf32>
    %c0_i32_97 = arith.constant 0 : i32
    %312 = arith.index_cast %c0_i32_97 : i32 to index
    %c0_98 = arith.constant 0 : index
    %c0_99 = arith.constant 0 : index
    %313 = vector.load %arg14[%312, %c0_98, %c0_99] : memref<8x8x512xf32, #tpu.memory_space<vmem>>, vector<1x8x512xf32>
    %314 = vector.shape_cast %313 : vector<1x8x512xf32> to vector<8x512xf32>
    %315 = arith.truncf %310 : vector<8x128xf32> to vector<8x128xbf16>
    %cst_100 = arith.constant dense<0.000000e+00> : vector<8x512xf32>
    %316 = tpu.matmul %315, %297, %cst_100 {dimension_numbers = #tpu.dot_dimension_numbers<[1], [0], [0], [1], [0, 0, 1, 1], [], []>} : vector<8x128xbf16>, vector<128x512xbf16>, vector<8x512xf32> -> vector<8x512xf32>
    %317 = arith.addf %314, %316 : vector<8x512xf32>
    %318 = vector.extract_strided_slice %317 {offsets = [0, 0], sizes = [8, 128], strides = [1, 1]} : vector<8x512xf32> to vector<8x128xf32>
    %319 = arith.negf %318 : vector<8x128xf32>
    %320 = math.exp %319 : vector<8x128xf32>
    %cst_101 = arith.constant 1.000000e+00 : f32
    %321 = vector.broadcast %cst_101 : f32 to vector<8x128xf32>
    %322 = arith.addf %321, %320 : vector<8x128xf32>
    %323 = arith.divf %321, %322 : vector<8x128xf32>
    %324 = vector.extract_strided_slice %317 {offsets = [0, 128], sizes = [8, 128], strides = [1, 1]} : vector<8x512xf32> to vector<8x128xf32>
    %325 = arith.negf %324 : vector<8x128xf32>
    %326 = math.exp %325 : vector<8x128xf32>
    %cst_102 = arith.constant 1.000000e+00 : f32
    %327 = vector.broadcast %cst_102 : f32 to vector<8x128xf32>
    %328 = arith.addf %327, %326 : vector<8x128xf32>
    %329 = arith.divf %327, %328 : vector<8x128xf32>
    %330 = vector.extract_strided_slice %317 {offsets = [0, 256], sizes = [8, 128], strides = [1, 1]} : vector<8x512xf32> to vector<8x128xf32>
    %331 = math.tanh %330 : vector<8x128xf32>
    %332 = vector.extract_strided_slice %317 {offsets = [0, 384], sizes = [8, 128], strides = [1, 1]} : vector<8x512xf32> to vector<8x128xf32>
    %333 = arith.negf %332 : vector<8x128xf32>
    %334 = math.exp %333 : vector<8x128xf32>
    %cst_103 = arith.constant 1.000000e+00 : f32
    %335 = vector.broadcast %cst_103 : f32 to vector<8x128xf32>
    %336 = arith.addf %335, %334 : vector<8x128xf32>
    %337 = arith.divf %335, %336 : vector<8x128xf32>
    %338 = arith.mulf %329, %311 : vector<8x128xf32>
    %339 = arith.mulf %323, %331 : vector<8x128xf32>
    %340 = arith.addf %338, %339 : vector<8x128xf32>
    %341 = math.tanh %340 : vector<8x128xf32>
    %342 = arith.mulf %337, %341 : vector<8x128xf32>
    %343 = arith.index_cast %c0_i32_97 : i32 to index
    %c0_104 = arith.constant 0 : index
    %c0_105 = arith.constant 0 : index
    %344 = vector.load %arg13[%343, %c0_104, %c0_105] : memref<8x8x128xf32, #tpu.memory_space<vmem>>, vector<1x8x128xf32>
    %345 = vector.shape_cast %344 : vector<1x8x128xf32> to vector<8x128xf32>
    %346 = vector.shape_cast %342 : vector<8x128xf32> to vector<1x8x128xf32>
    tpu.vector_store %arg13[%343, %c0_104, %c0_105], %346 {strides = array<i32>} : memref<8x8x128xf32, #tpu.memory_space<vmem>>, vector<1x8x128xf32>,
    %c1_i32_106 = arith.constant 1 : i32
    %347 = arith.index_cast %c1_i32_106 : i32 to index
    %c0_107 = arith.constant 0 : index
    %c0_108 = arith.constant 0 : index
    %348 = vector.load %arg14[%347, %c0_107, %c0_108] : memref<8x8x512xf32, #tpu.memory_space<vmem>>, vector<1x8x512xf32>
    %349 = vector.shape_cast %348 : vector<1x8x512xf32> to vector<8x512xf32>
    %350 = arith.truncf %342 : vector<8x128xf32> to vector<8x128xbf16>
    %cst_109 = arith.constant dense<0.000000e+00> : vector<8x512xf32>
    %351 = tpu.matmul %350, %297, %cst_109 {dimension_numbers = #tpu.dot_dimension_numbers<[1], [0], [0], [1], [0, 0, 1, 1], [], []>} : vector<8x128xbf16>, vector<128x512xbf16>, vector<8x512xf32> -> vector<8x512xf32>
    %352 = arith.addf %349, %351 : vector<8x512xf32>
    %353 = vector.extract_strided_slice %352 {offsets = [0, 0], sizes = [8, 128], strides = [1, 1]} : vector<8x512xf32> to vector<8x128xf32>
    %354 = arith.negf %353 : vector<8x128xf32>
    %355 = math.exp %354 : vector<8x128xf32>
    %cst_110 = arith.constant 1.000000e+00 : f32
    %356 = vector.broadcast %cst_110 : f32 to vector<8x128xf32>
    %357 = arith.addf %356, %355 : vector<8x128xf32>
    %358 = arith.divf %356, %357 : vector<8x128xf32>
    %359 = vector.extract_strided_slice %352 {offsets = [0, 128], sizes = [8, 128], strides = [1, 1]} : vector<8x512xf32> to vector<8x128xf32>
    %360 = arith.negf %359 : vector<8x128xf32>
    %361 = math.exp %360 : vector<8x128xf32>
    %cst_111 = arith.constant 1.000000e+00 : f32
    %362 = vector.broadcast %cst_111 : f32 to vector<8x128xf32>
    %363 = arith.addf %362, %361 : vector<8x128xf32>
    %364 = arith.divf %362, %363 : vector<8x128xf32>
    %365 = vector.extract_strided_slice %352 {offsets = [0, 256], sizes = [8, 128], strides = [1, 1]} : vector<8x512xf32> to vector<8x128xf32>
    %366 = math.tanh %365 : vector<8x128xf32>
    %367 = vector.extract_strided_slice %352 {offsets = [0, 384], sizes = [8, 128], strides = [1, 1]} : vector<8x512xf32> to vector<8x128xf32>
    %368 = arith.negf %367 : vector<8x128xf32>
    %369 = math.exp %368 : vector<8x128xf32>
    %cst_112 = arith.constant 1.000000e+00 : f32
    %370 = vector.broadcast %cst_112 : f32 to vector<8x128xf32>
    %371 = arith.addf %370, %369 : vector<8x128xf32>
    %372 = arith.divf %370, %371 : vector<8x128xf32>
    %373 = arith.mulf %364, %340 : vector<8x128xf32>
    %374 = arith.mulf %358, %366 : vector<8x128xf32>
    %375 = arith.addf %373, %374 : vector<8x128xf32>
    %376 = math.tanh %375 : vector<8x128xf32>
    %377 = arith.mulf %372, %376 : vector<8x128xf32>
    %378 = arith.index_cast %c1_i32_106 : i32 to index
    %c0_113 = arith.constant 0 : index
    %c0_114 = arith.constant 0 : index
    %379 = vector.load %arg13[%378, %c0_113, %c0_114] : memref<8x8x128xf32, #tpu.memory_space<vmem>>, vector<1x8x128xf32>
    %380 = vector.shape_cast %379 : vector<1x8x128xf32> to vector<8x128xf32>
    %381 = vector.shape_cast %377 : vector<8x128xf32> to vector<1x8x128xf32>
    tpu.vector_store %arg13[%378, %c0_113, %c0_114], %381 {strides = array<i32>} : memref<8x8x128xf32, #tpu.memory_space<vmem>>, vector<1x8x128xf32>,
    %c2_i32_115 = arith.constant 2 : i32
    %382 = arith.index_cast %c2_i32_115 : i32 to index
    %c0_116 = arith.constant 0 : index
    %c0_117 = arith.constant 0 : index
    %383 = vector.load %arg14[%382, %c0_116, %c0_117] : memref<8x8x512xf32, #tpu.memory_space<vmem>>, vector<1x8x512xf32>
    %384 = vector.shape_cast %383 : vector<1x8x512xf32> to vector<8x512xf32>
    %385 = arith.truncf %377 : vector<8x128xf32> to vector<8x128xbf16>
    %cst_118 = arith.constant dense<0.000000e+00> : vector<8x512xf32>
    %386 = tpu.matmul %385, %297, %cst_118 {dimension_numbers = #tpu.dot_dimension_numbers<[1], [0], [0], [1], [0, 0, 1, 1], [], []>} : vector<8x128xbf16>, vector<128x512xbf16>, vector<8x512xf32> -> vector<8x512xf32>
    %387 = arith.addf %384, %386 : vector<8x512xf32>
    %388 = vector.extract_strided_slice %387 {offsets = [0, 0], sizes = [8, 128], strides = [1, 1]} : vector<8x512xf32> to vector<8x128xf32>
    %389 = arith.negf %388 : vector<8x128xf32>
    %390 = math.exp %389 : vector<8x128xf32>
    %cst_119 = arith.constant 1.000000e+00 : f32
    %391 = vector.broadcast %cst_119 : f32 to vector<8x128xf32>
    %392 = arith.addf %391, %390 : vector<8x128xf32>
    %393 = arith.divf %391, %392 : vector<8x128xf32>
    %394 = vector.extract_strided_slice %387 {offsets = [0, 128], sizes = [8, 128], strides = [1, 1]} : vector<8x512xf32> to vector<8x128xf32>
    %395 = arith.negf %394 : vector<8x128xf32>
    %396 = math.exp %395 : vector<8x128xf32>
    %cst_120 = arith.constant 1.000000e+00 : f32
    %397 = vector.broadcast %cst_120 : f32 to vector<8x128xf32>
    %398 = arith.addf %397, %396 : vector<8x128xf32>
    %399 = arith.divf %397, %398 : vector<8x128xf32>
    %400 = vector.extract_strided_slice %387 {offsets = [0, 256], sizes = [8, 128], strides = [1, 1]} : vector<8x512xf32> to vector<8x128xf32>
    %401 = math.tanh %400 : vector<8x128xf32>
    %402 = vector.extract_strided_slice %387 {offsets = [0, 384], sizes = [8, 128], strides = [1, 1]} : vector<8x512xf32> to vector<8x128xf32>
    %403 = arith.negf %402 : vector<8x128xf32>
    %404 = math.exp %403 : vector<8x128xf32>
    %cst_121 = arith.constant 1.000000e+00 : f32
    %405 = vector.broadcast %cst_121 : f32 to vector<8x128xf32>
    %406 = arith.addf %405, %404 : vector<8x128xf32>
    %407 = arith.divf %405, %406 : vector<8x128xf32>
    %408 = arith.mulf %399, %375 : vector<8x128xf32>
    %409 = arith.mulf %393, %401 : vector<8x128xf32>
    %410 = arith.addf %408, %409 : vector<8x128xf32>
    %411 = math.tanh %410 : vector<8x128xf32>
    %412 = arith.mulf %407, %411 : vector<8x128xf32>
    %413 = arith.index_cast %c2_i32_115 : i32 to index
    %c0_122 = arith.constant 0 : index
    %c0_123 = arith.constant 0 : index
    %414 = vector.load %arg13[%413, %c0_122, %c0_123] : memref<8x8x128xf32, #tpu.memory_space<vmem>>, vector<1x8x128xf32>
    %415 = vector.shape_cast %414 : vector<1x8x128xf32> to vector<8x128xf32>
    %416 = vector.shape_cast %412 : vector<8x128xf32> to vector<1x8x128xf32>
    tpu.vector_store %arg13[%413, %c0_122, %c0_123], %416 {strides = array<i32>} : memref<8x8x128xf32, #tpu.memory_space<vmem>>, vector<1x8x128xf32>,
    %c3_i32_124 = arith.constant 3 : i32
    %417 = arith.index_cast %c3_i32_124 : i32 to index
    %c0_125 = arith.constant 0 : index
    %c0_126 = arith.constant 0 : index
    %418 = vector.load %arg14[%417, %c0_125, %c0_126] : memref<8x8x512xf32, #tpu.memory_space<vmem>>, vector<1x8x512xf32>
    %419 = vector.shape_cast %418 : vector<1x8x512xf32> to vector<8x512xf32>
    %420 = arith.truncf %412 : vector<8x128xf32> to vector<8x128xbf16>
    %cst_127 = arith.constant dense<0.000000e+00> : vector<8x512xf32>
    %421 = tpu.matmul %420, %297, %cst_127 {dimension_numbers = #tpu.dot_dimension_numbers<[1], [0], [0], [1], [0, 0, 1, 1], [], []>} : vector<8x128xbf16>, vector<128x512xbf16>, vector<8x512xf32> -> vector<8x512xf32>
    %422 = arith.addf %419, %421 : vector<8x512xf32>
    %423 = vector.extract_strided_slice %422 {offsets = [0, 0], sizes = [8, 128], strides = [1, 1]} : vector<8x512xf32> to vector<8x128xf32>
    %424 = arith.negf %423 : vector<8x128xf32>
    %425 = math.exp %424 : vector<8x128xf32>
    %cst_128 = arith.constant 1.000000e+00 : f32
    %426 = vector.broadcast %cst_128 : f32 to vector<8x128xf32>
    %427 = arith.addf %426, %425 : vector<8x128xf32>
    %428 = arith.divf %426, %427 : vector<8x128xf32>
    %429 = vector.extract_strided_slice %422 {offsets = [0, 128], sizes = [8, 128], strides = [1, 1]} : vector<8x512xf32> to vector<8x128xf32>
    %430 = arith.negf %429 : vector<8x128xf32>
    %431 = math.exp %430 : vector<8x128xf32>
    %cst_129 = arith.constant 1.000000e+00 : f32
    %432 = vector.broadcast %cst_129 : f32 to vector<8x128xf32>
    %433 = arith.addf %432, %431 : vector<8x128xf32>
    %434 = arith.divf %432, %433 : vector<8x128xf32>
    %435 = vector.extract_strided_slice %422 {offsets = [0, 256], sizes = [8, 128], strides = [1, 1]} : vector<8x512xf32> to vector<8x128xf32>
    %436 = math.tanh %435 : vector<8x128xf32>
    %437 = vector.extract_strided_slice %422 {offsets = [0, 384], sizes = [8, 128], strides = [1, 1]} : vector<8x512xf32> to vector<8x128xf32>
    %438 = arith.negf %437 : vector<8x128xf32>
    %439 = math.exp %438 : vector<8x128xf32>
    %cst_130 = arith.constant 1.000000e+00 : f32
    %440 = vector.broadcast %cst_130 : f32 to vector<8x128xf32>
    %441 = arith.addf %440, %439 : vector<8x128xf32>
    %442 = arith.divf %440, %441 : vector<8x128xf32>
    %443 = arith.mulf %434, %410 : vector<8x128xf32>
    %444 = arith.mulf %428, %436 : vector<8x128xf32>
    %445 = arith.addf %443, %444 : vector<8x128xf32>
    %446 = math.tanh %445 : vector<8x128xf32>
    %447 = arith.mulf %442, %446 : vector<8x128xf32>
    %448 = arith.index_cast %c3_i32_124 : i32 to index
    %c0_131 = arith.constant 0 : index
    %c0_132 = arith.constant 0 : index
    %449 = vector.load %arg13[%448, %c0_131, %c0_132] : memref<8x8x128xf32, #tpu.memory_space<vmem>>, vector<1x8x128xf32>
    %450 = vector.shape_cast %449 : vector<1x8x128xf32> to vector<8x128xf32>
    %451 = vector.shape_cast %447 : vector<8x128xf32> to vector<1x8x128xf32>
    tpu.vector_store %arg13[%448, %c0_131, %c0_132], %451 {strides = array<i32>} : memref<8x8x128xf32, #tpu.memory_space<vmem>>, vector<1x8x128xf32>,
    %c4_i32_133 = arith.constant 4 : i32
    %452 = arith.index_cast %c4_i32_133 : i32 to index
    %c0_134 = arith.constant 0 : index
    %c0_135 = arith.constant 0 : index
    %453 = vector.load %arg14[%452, %c0_134, %c0_135] : memref<8x8x512xf32, #tpu.memory_space<vmem>>, vector<1x8x512xf32>
    %454 = vector.shape_cast %453 : vector<1x8x512xf32> to vector<8x512xf32>
    %455 = arith.truncf %447 : vector<8x128xf32> to vector<8x128xbf16>
    %cst_136 = arith.constant dense<0.000000e+00> : vector<8x512xf32>
    %456 = tpu.matmul %455, %297, %cst_136 {dimension_numbers = #tpu.dot_dimension_numbers<[1], [0], [0], [1], [0, 0, 1, 1], [], []>} : vector<8x128xbf16>, vector<128x512xbf16>, vector<8x512xf32> -> vector<8x512xf32>
    %457 = arith.addf %454, %456 : vector<8x512xf32>
    %458 = vector.extract_strided_slice %457 {offsets = [0, 0], sizes = [8, 128], strides = [1, 1]} : vector<8x512xf32> to vector<8x128xf32>
    %459 = arith.negf %458 : vector<8x128xf32>
    %460 = math.exp %459 : vector<8x128xf32>
    %cst_137 = arith.constant 1.000000e+00 : f32
    %461 = vector.broadcast %cst_137 : f32 to vector<8x128xf32>
    %462 = arith.addf %461, %460 : vector<8x128xf32>
    %463 = arith.divf %461, %462 : vector<8x128xf32>
    %464 = vector.extract_strided_slice %457 {offsets = [0, 128], sizes = [8, 128], strides = [1, 1]} : vector<8x512xf32> to vector<8x128xf32>
    %465 = arith.negf %464 : vector<8x128xf32>
    %466 = math.exp %465 : vector<8x128xf32>
    %cst_138 = arith.constant 1.000000e+00 : f32
    %467 = vector.broadcast %cst_138 : f32 to vector<8x128xf32>
    %468 = arith.addf %467, %466 : vector<8x128xf32>
    %469 = arith.divf %467, %468 : vector<8x128xf32>
    %470 = vector.extract_strided_slice %457 {offsets = [0, 256], sizes = [8, 128], strides = [1, 1]} : vector<8x512xf32> to vector<8x128xf32>
    %471 = math.tanh %470 : vector<8x128xf32>
    %472 = vector.extract_strided_slice %457 {offsets = [0, 384], sizes = [8, 128], strides = [1, 1]} : vector<8x512xf32> to vector<8x128xf32>
    %473 = arith.negf %472 : vector<8x128xf32>
    %474 = math.exp %473 : vector<8x128xf32>
    %cst_139 = arith.constant 1.000000e+00 : f32
    %475 = vector.broadcast %cst_139 : f32 to vector<8x128xf32>
    %476 = arith.addf %475, %474 : vector<8x128xf32>
    %477 = arith.divf %475, %476 : vector<8x128xf32>
    %478 = arith.mulf %469, %445 : vector<8x128xf32>
    %479 = arith.mulf %463, %471 : vector<8x128xf32>
    %480 = arith.addf %478, %479 : vector<8x128xf32>
    %481 = math.tanh %480 : vector<8x128xf32>
    %482 = arith.mulf %477, %481 : vector<8x128xf32>
    %483 = arith.index_cast %c4_i32_133 : i32 to index
    %c0_140 = arith.constant 0 : index
    %c0_141 = arith.constant 0 : index
    %484 = vector.load %arg13[%483, %c0_140, %c0_141] : memref<8x8x128xf32, #tpu.memory_space<vmem>>, vector<1x8x128xf32>
    %485 = vector.shape_cast %484 : vector<1x8x128xf32> to vector<8x128xf32>
    %486 = vector.shape_cast %482 : vector<8x128xf32> to vector<1x8x128xf32>
    tpu.vector_store %arg13[%483, %c0_140, %c0_141], %486 {strides = array<i32>} : memref<8x8x128xf32, #tpu.memory_space<vmem>>, vector<1x8x128xf32>,
    %c5_i32_142 = arith.constant 5 : i32
    %487 = arith.index_cast %c5_i32_142 : i32 to index
    %c0_143 = arith.constant 0 : index
    %c0_144 = arith.constant 0 : index
    %488 = vector.load %arg14[%487, %c0_143, %c0_144] : memref<8x8x512xf32, #tpu.memory_space<vmem>>, vector<1x8x512xf32>
    %489 = vector.shape_cast %488 : vector<1x8x512xf32> to vector<8x512xf32>
    %490 = arith.truncf %482 : vector<8x128xf32> to vector<8x128xbf16>
    %cst_145 = arith.constant dense<0.000000e+00> : vector<8x512xf32>
    %491 = tpu.matmul %490, %297, %cst_145 {dimension_numbers = #tpu.dot_dimension_numbers<[1], [0], [0], [1], [0, 0, 1, 1], [], []>} : vector<8x128xbf16>, vector<128x512xbf16>, vector<8x512xf32> -> vector<8x512xf32>
    %492 = arith.addf %489, %491 : vector<8x512xf32>
    %493 = vector.extract_strided_slice %492 {offsets = [0, 0], sizes = [8, 128], strides = [1, 1]} : vector<8x512xf32> to vector<8x128xf32>
    %494 = arith.negf %493 : vector<8x128xf32>
    %495 = math.exp %494 : vector<8x128xf32>
    %cst_146 = arith.constant 1.000000e+00 : f32
    %496 = vector.broadcast %cst_146 : f32 to vector<8x128xf32>
    %497 = arith.addf %496, %495 : vector<8x128xf32>
    %498 = arith.divf %496, %497 : vector<8x128xf32>
    %499 = vector.extract_strided_slice %492 {offsets = [0, 128], sizes = [8, 128], strides = [1, 1]} : vector<8x512xf32> to vector<8x128xf32>
    %500 = arith.negf %499 : vector<8x128xf32>
    %501 = math.exp %500 : vector<8x128xf32>
    %cst_147 = arith.constant 1.000000e+00 : f32
    %502 = vector.broadcast %cst_147 : f32 to vector<8x128xf32>
    %503 = arith.addf %502, %501 : vector<8x128xf32>
    %504 = arith.divf %502, %503 : vector<8x128xf32>
    %505 = vector.extract_strided_slice %492 {offsets = [0, 256], sizes = [8, 128], strides = [1, 1]} : vector<8x512xf32> to vector<8x128xf32>
    %506 = math.tanh %505 : vector<8x128xf32>
    %507 = vector.extract_strided_slice %492 {offsets = [0, 384], sizes = [8, 128], strides = [1, 1]} : vector<8x512xf32> to vector<8x128xf32>
    %508 = arith.negf %507 : vector<8x128xf32>
    %509 = math.exp %508 : vector<8x128xf32>
    %cst_148 = arith.constant 1.000000e+00 : f32
    %510 = vector.broadcast %cst_148 : f32 to vector<8x128xf32>
    %511 = arith.addf %510, %509 : vector<8x128xf32>
    %512 = arith.divf %510, %511 : vector<8x128xf32>
    %513 = arith.mulf %504, %480 : vector<8x128xf32>
    %514 = arith.mulf %498, %506 : vector<8x128xf32>
    %515 = arith.addf %513, %514 : vector<8x128xf32>
    %516 = math.tanh %515 : vector<8x128xf32>
    %517 = arith.mulf %512, %516 : vector<8x128xf32>
    %518 = arith.index_cast %c5_i32_142 : i32 to index
    %c0_149 = arith.constant 0 : index
    %c0_150 = arith.constant 0 : index
    %519 = vector.load %arg13[%518, %c0_149, %c0_150] : memref<8x8x128xf32, #tpu.memory_space<vmem>>, vector<1x8x128xf32>
    %520 = vector.shape_cast %519 : vector<1x8x128xf32> to vector<8x128xf32>
    %521 = vector.shape_cast %517 : vector<8x128xf32> to vector<1x8x128xf32>
    tpu.vector_store %arg13[%518, %c0_149, %c0_150], %521 {strides = array<i32>} : memref<8x8x128xf32, #tpu.memory_space<vmem>>, vector<1x8x128xf32>,
    %c6_i32_151 = arith.constant 6 : i32
    %522 = arith.index_cast %c6_i32_151 : i32 to index
    %c0_152 = arith.constant 0 : index
    %c0_153 = arith.constant 0 : index
    %523 = vector.load %arg14[%522, %c0_152, %c0_153] : memref<8x8x512xf32, #tpu.memory_space<vmem>>, vector<1x8x512xf32>
    %524 = vector.shape_cast %523 : vector<1x8x512xf32> to vector<8x512xf32>
    %525 = arith.truncf %517 : vector<8x128xf32> to vector<8x128xbf16>
    %cst_154 = arith.constant dense<0.000000e+00> : vector<8x512xf32>
    %526 = tpu.matmul %525, %297, %cst_154 {dimension_numbers = #tpu.dot_dimension_numbers<[1], [0], [0], [1], [0, 0, 1, 1], [], []>} : vector<8x128xbf16>, vector<128x512xbf16>, vector<8x512xf32> -> vector<8x512xf32>
    %527 = arith.addf %524, %526 : vector<8x512xf32>
    %528 = vector.extract_strided_slice %527 {offsets = [0, 0], sizes = [8, 128], strides = [1, 1]} : vector<8x512xf32> to vector<8x128xf32>
    %529 = arith.negf %528 : vector<8x128xf32>
    %530 = math.exp %529 : vector<8x128xf32>
    %cst_155 = arith.constant 1.000000e+00 : f32
    %531 = vector.broadcast %cst_155 : f32 to vector<8x128xf32>
    %532 = arith.addf %531, %530 : vector<8x128xf32>
    %533 = arith.divf %531, %532 : vector<8x128xf32>
    %534 = vector.extract_strided_slice %527 {offsets = [0, 128], sizes = [8, 128], strides = [1, 1]} : vector<8x512xf32> to vector<8x128xf32>
    %535 = arith.negf %534 : vector<8x128xf32>
    %536 = math.exp %535 : vector<8x128xf32>
    %cst_156 = arith.constant 1.000000e+00 : f32
    %537 = vector.broadcast %cst_156 : f32 to vector<8x128xf32>
    %538 = arith.addf %537, %536 : vector<8x128xf32>
    %539 = arith.divf %537, %538 : vector<8x128xf32>
    %540 = vector.extract_strided_slice %527 {offsets = [0, 256], sizes = [8, 128], strides = [1, 1]} : vector<8x512xf32> to vector<8x128xf32>
    %541 = math.tanh %540 : vector<8x128xf32>
    %542 = vector.extract_strided_slice %527 {offsets = [0, 384], sizes = [8, 128], strides = [1, 1]} : vector<8x512xf32> to vector<8x128xf32>
    %543 = arith.negf %542 : vector<8x128xf32>
    %544 = math.exp %543 : vector<8x128xf32>
    %cst_157 = arith.constant 1.000000e+00 : f32
    %545 = vector.broadcast %cst_157 : f32 to vector<8x128xf32>
    %546 = arith.addf %545, %544 : vector<8x128xf32>
    %547 = arith.divf %545, %546 : vector<8x128xf32>
    %548 = arith.mulf %539, %515 : vector<8x128xf32>
    %549 = arith.mulf %533, %541 : vector<8x128xf32>
    %550 = arith.addf %548, %549 : vector<8x128xf32>
    %551 = math.tanh %550 : vector<8x128xf32>
    %552 = arith.mulf %547, %551 : vector<8x128xf32>
    %553 = arith.index_cast %c6_i32_151 : i32 to index
    %c0_158 = arith.constant 0 : index
    %c0_159 = arith.constant 0 : index
    %554 = vector.load %arg13[%553, %c0_158, %c0_159] : memref<8x8x128xf32, #tpu.memory_space<vmem>>, vector<1x8x128xf32>
    %555 = vector.shape_cast %554 : vector<1x8x128xf32> to vector<8x128xf32>
    %556 = vector.shape_cast %552 : vector<8x128xf32> to vector<1x8x128xf32>
    tpu.vector_store %arg13[%553, %c0_158, %c0_159], %556 {strides = array<i32>} : memref<8x8x128xf32, #tpu.memory_space<vmem>>, vector<1x8x128xf32>,
    %c7_i32_160 = arith.constant 7 : i32
    %557 = arith.index_cast %c7_i32_160 : i32 to index
    %c0_161 = arith.constant 0 : index
    %c0_162 = arith.constant 0 : index
    %558 = vector.load %arg14[%557, %c0_161, %c0_162] : memref<8x8x512xf32, #tpu.memory_space<vmem>>, vector<1x8x512xf32>
    %559 = vector.shape_cast %558 : vector<1x8x512xf32> to vector<8x512xf32>
    %560 = arith.truncf %552 : vector<8x128xf32> to vector<8x128xbf16>
    %cst_163 = arith.constant dense<0.000000e+00> : vector<8x512xf32>
    %561 = tpu.matmul %560, %297, %cst_163 {dimension_numbers = #tpu.dot_dimension_numbers<[1], [0], [0], [1], [0, 0, 1, 1], [], []>} : vector<8x128xbf16>, vector<128x512xbf16>, vector<8x512xf32> -> vector<8x512xf32>
    %562 = arith.addf %559, %561 : vector<8x512xf32>
    %563 = vector.extract_strided_slice %562 {offsets = [0, 0], sizes = [8, 128], strides = [1, 1]} : vector<8x512xf32> to vector<8x128xf32>
    %564 = arith.negf %563 : vector<8x128xf32>
    %565 = math.exp %564 : vector<8x128xf32>
    %cst_164 = arith.constant 1.000000e+00 : f32
    %566 = vector.broadcast %cst_164 : f32 to vector<8x128xf32>
    %567 = arith.addf %566, %565 : vector<8x128xf32>
    %568 = arith.divf %566, %567 : vector<8x128xf32>
    %569 = vector.extract_strided_slice %562 {offsets = [0, 128], sizes = [8, 128], strides = [1, 1]} : vector<8x512xf32> to vector<8x128xf32>
    %570 = arith.negf %569 : vector<8x128xf32>
    %571 = math.exp %570 : vector<8x128xf32>
    %cst_165 = arith.constant 1.000000e+00 : f32
    %572 = vector.broadcast %cst_165 : f32 to vector<8x128xf32>
    %573 = arith.addf %572, %571 : vector<8x128xf32>
    %574 = arith.divf %572, %573 : vector<8x128xf32>
    %575 = vector.extract_strided_slice %562 {offsets = [0, 256], sizes = [8, 128], strides = [1, 1]} : vector<8x512xf32> to vector<8x128xf32>
    %576 = math.tanh %575 : vector<8x128xf32>
    %577 = vector.extract_strided_slice %562 {offsets = [0, 384], sizes = [8, 128], strides = [1, 1]} : vector<8x512xf32> to vector<8x128xf32>
    %578 = arith.negf %577 : vector<8x128xf32>
    %579 = math.exp %578 : vector<8x128xf32>
    %cst_166 = arith.constant 1.000000e+00 : f32
    %580 = vector.broadcast %cst_166 : f32 to vector<8x128xf32>
    %581 = arith.addf %580, %579 : vector<8x128xf32>
    %582 = arith.divf %580, %581 : vector<8x128xf32>
    %583 = arith.mulf %574, %550 : vector<8x128xf32>
    %584 = arith.mulf %568, %576 : vector<8x128xf32>
    %585 = arith.addf %583, %584 : vector<8x128xf32>
    %586 = math.tanh %585 : vector<8x128xf32>
    %587 = arith.mulf %582, %586 : vector<8x128xf32>
    %588 = arith.index_cast %c7_i32_160 : i32 to index
    %c0_167 = arith.constant 0 : index
    %c0_168 = arith.constant 0 : index
    %589 = vector.load %arg13[%588, %c0_167, %c0_168] : memref<8x8x128xf32, #tpu.memory_space<vmem>>, vector<1x8x128xf32>
    %590 = vector.shape_cast %589 : vector<1x8x128xf32> to vector<8x128xf32>
    %591 = vector.shape_cast %587 : vector<8x128xf32> to vector<1x8x128xf32>
    tpu.vector_store %arg13[%588, %c0_167, %c0_168], %591 {strides = array<i32>} : memref<8x8x128xf32, #tpu.memory_space<vmem>>, vector<1x8x128xf32>,
    %c8_i32_169 = arith.constant 8 : i32
    %c2 = arith.constant 2 : index
    %c0_170 = arith.constant 0 : index
    %c0_171 = arith.constant 0 : index
    %592 = vector.load %arg2[%c2, %c0_170, %c0_171] : memref<5x128x512xbf16, #tpu.memory_space<vmem>>, vector<1x128x512xbf16>
    %593 = vector.shape_cast %592 : vector<1x128x512xbf16> to vector<128x512xbf16>
    %c0_172 = arith.constant 0 : index
    %c0_173 = arith.constant 0 : index
    %c0_174 = arith.constant 0 : index
    %594 = vector.load %arg13[%c0_172, %c0_173, %c0_174] : memref<8x8x128xf32, #tpu.memory_space<vmem>>, vector<8x8x128xf32>
    %595 = vector.shape_cast %594 : vector<8x8x128xf32> to vector<64x128xf32>
    %596 = arith.truncf %595 : vector<64x128xf32> to vector<64x128xbf16>
    %c2_175 = arith.constant 2 : index
    %c0_176 = arith.constant 0 : index
    %c0_177 = arith.constant 0 : index
    %597 = vector.load %arg1[%c2_175, %c0_176, %c0_177] : memref<5x128x512xbf16, #tpu.memory_space<vmem>>, vector<1x128x512xbf16>
    %598 = vector.shape_cast %597 : vector<1x128x512xbf16> to vector<128x512xbf16>
    %cst_178 = arith.constant dense<0.000000e+00> : vector<64x512xf32>
    %599 = tpu.matmul %596, %598, %cst_178 {dimension_numbers = #tpu.dot_dimension_numbers<[1], [0], [0], [1], [0, 0, 1, 1], [], []>} : vector<64x128xbf16>, vector<128x512xbf16>, vector<64x512xf32> -> vector<64x512xf32>
    %c2_179 = arith.constant 2 : index
    %c0_180 = arith.constant 0 : index
    %c0_181 = arith.constant 0 : index
    %600 = vector.load %arg3[%c2_179, %c0_180, %c0_181] : memref<5x1x512xf32, #tpu.memory_space<vmem>>, vector<1x1x512xf32>
    %601 = vector.shape_cast %600 : vector<1x1x512xf32> to vector<1x512xf32>
    %602 = vector.broadcast %601 : vector<1x512xf32> to vector<64x512xf32>
    %603 = arith.addf %599, %602 : vector<64x512xf32>
    %604 = vector.shape_cast %603 : vector<64x512xf32> to vector<8x8x512xf32>
    %c0_182 = arith.constant 0 : index
    %c0_183 = arith.constant 0 : index
    %c0_184 = arith.constant 0 : index
    %605 = vector.load %arg14[%c0_182, %c0_183, %c0_184] : memref<8x8x512xf32, #tpu.memory_space<vmem>>, vector<8x8x512xf32>
    tpu.vector_store %arg14[%c0_182, %c0_183, %c0_184], %604 {strides = array<i32>} : memref<8x8x512xf32, #tpu.memory_space<vmem>>, vector<8x8x512xf32>,
    %cst_185 = arith.constant 0.000000e+00 : f32
    %606 = vector.broadcast %cst_185 : f32 to vector<8x128xf32>
    %cst_186 = arith.constant 0.000000e+00 : f32
    %607 = vector.broadcast %cst_186 : f32 to vector<8x128xf32>
    %c0_i32_187 = arith.constant 0 : i32
    %608 = arith.index_cast %c0_i32_187 : i32 to index
    %c0_188 = arith.constant 0 : index
    %c0_189 = arith.constant 0 : index
    %609 = vector.load %arg14[%608, %c0_188, %c0_189] : memref<8x8x512xf32, #tpu.memory_space<vmem>>, vector<1x8x512xf32>
    %610 = vector.shape_cast %609 : vector<1x8x512xf32> to vector<8x512xf32>
    %611 = arith.truncf %606 : vector<8x128xf32> to vector<8x128xbf16>
    %cst_190 = arith.constant dense<0.000000e+00> : vector<8x512xf32>
    %612 = tpu.matmul %611, %593, %cst_190 {dimension_numbers = #tpu.dot_dimension_numbers<[1], [0], [0], [1], [0, 0, 1, 1], [], []>} : vector<8x128xbf16>, vector<128x512xbf16>, vector<8x512xf32> -> vector<8x512xf32>
    %613 = arith.addf %610, %612 : vector<8x512xf32>
    %614 = vector.extract_strided_slice %613 {offsets = [0, 0], sizes = [8, 128], strides = [1, 1]} : vector<8x512xf32> to vector<8x128xf32>
    %615 = arith.negf %614 : vector<8x128xf32>
    %616 = math.exp %615 : vector<8x128xf32>
    %cst_191 = arith.constant 1.000000e+00 : f32
    %617 = vector.broadcast %cst_191 : f32 to vector<8x128xf32>
    %618 = arith.addf %617, %616 : vector<8x128xf32>
    %619 = arith.divf %617, %618 : vector<8x128xf32>
    %620 = vector.extract_strided_slice %613 {offsets = [0, 128], sizes = [8, 128], strides = [1, 1]} : vector<8x512xf32> to vector<8x128xf32>
    %621 = arith.negf %620 : vector<8x128xf32>
    %622 = math.exp %621 : vector<8x128xf32>
    %cst_192 = arith.constant 1.000000e+00 : f32
    %623 = vector.broadcast %cst_192 : f32 to vector<8x128xf32>
    %624 = arith.addf %623, %622 : vector<8x128xf32>
    %625 = arith.divf %623, %624 : vector<8x128xf32>
    %626 = vector.extract_strided_slice %613 {offsets = [0, 256], sizes = [8, 128], strides = [1, 1]} : vector<8x512xf32> to vector<8x128xf32>
    %627 = math.tanh %626 : vector<8x128xf32>
    %628 = vector.extract_strided_slice %613 {offsets = [0, 384], sizes = [8, 128], strides = [1, 1]} : vector<8x512xf32> to vector<8x128xf32>
    %629 = arith.negf %628 : vector<8x128xf32>
    %630 = math.exp %629 : vector<8x128xf32>
    %cst_193 = arith.constant 1.000000e+00 : f32
    %631 = vector.broadcast %cst_193 : f32 to vector<8x128xf32>
    %632 = arith.addf %631, %630 : vector<8x128xf32>
    %633 = arith.divf %631, %632 : vector<8x128xf32>
    %634 = arith.mulf %625, %607 : vector<8x128xf32>
    %635 = arith.mulf %619, %627 : vector<8x128xf32>
    %636 = arith.addf %634, %635 : vector<8x128xf32>
    %637 = math.tanh %636 : vector<8x128xf32>
    %638 = arith.mulf %633, %637 : vector<8x128xf32>
    %639 = arith.index_cast %c0_i32_187 : i32 to index
    %c0_194 = arith.constant 0 : index
    %c0_195 = arith.constant 0 : index
    %640 = vector.load %arg13[%639, %c0_194, %c0_195] : memref<8x8x128xf32, #tpu.memory_space<vmem>>, vector<1x8x128xf32>
    %641 = vector.shape_cast %640 : vector<1x8x128xf32> to vector<8x128xf32>
    %642 = vector.shape_cast %638 : vector<8x128xf32> to vector<1x8x128xf32>
    tpu.vector_store %arg13[%639, %c0_194, %c0_195], %642 {strides = array<i32>} : memref<8x8x128xf32, #tpu.memory_space<vmem>>, vector<1x8x128xf32>,
    %c1_i32_196 = arith.constant 1 : i32
    %643 = arith.index_cast %c1_i32_196 : i32 to index
    %c0_197 = arith.constant 0 : index
    %c0_198 = arith.constant 0 : index
    %644 = vector.load %arg14[%643, %c0_197, %c0_198] : memref<8x8x512xf32, #tpu.memory_space<vmem>>, vector<1x8x512xf32>
    %645 = vector.shape_cast %644 : vector<1x8x512xf32> to vector<8x512xf32>
    %646 = arith.truncf %638 : vector<8x128xf32> to vector<8x128xbf16>
    %cst_199 = arith.constant dense<0.000000e+00> : vector<8x512xf32>
    %647 = tpu.matmul %646, %593, %cst_199 {dimension_numbers = #tpu.dot_dimension_numbers<[1], [0], [0], [1], [0, 0, 1, 1], [], []>} : vector<8x128xbf16>, vector<128x512xbf16>, vector<8x512xf32> -> vector<8x512xf32>
    %648 = arith.addf %645, %647 : vector<8x512xf32>
    %649 = vector.extract_strided_slice %648 {offsets = [0, 0], sizes = [8, 128], strides = [1, 1]} : vector<8x512xf32> to vector<8x128xf32>
    %650 = arith.negf %649 : vector<8x128xf32>
    %651 = math.exp %650 : vector<8x128xf32>
    %cst_200 = arith.constant 1.000000e+00 : f32
    %652 = vector.broadcast %cst_200 : f32 to vector<8x128xf32>
    %653 = arith.addf %652, %651 : vector<8x128xf32>
    %654 = arith.divf %652, %653 : vector<8x128xf32>
    %655 = vector.extract_strided_slice %648 {offsets = [0, 128], sizes = [8, 128], strides = [1, 1]} : vector<8x512xf32> to vector<8x128xf32>
    %656 = arith.negf %655 : vector<8x128xf32>
    %657 = math.exp %656 : vector<8x128xf32>
    %cst_201 = arith.constant 1.000000e+00 : f32
    %658 = vector.broadcast %cst_201 : f32 to vector<8x128xf32>
    %659 = arith.addf %658, %657 : vector<8x128xf32>
    %660 = arith.divf %658, %659 : vector<8x128xf32>
    %661 = vector.extract_strided_slice %648 {offsets = [0, 256], sizes = [8, 128], strides = [1, 1]} : vector<8x512xf32> to vector<8x128xf32>
    %662 = math.tanh %661 : vector<8x128xf32>
    %663 = vector.extract_strided_slice %648 {offsets = [0, 384], sizes = [8, 128], strides = [1, 1]} : vector<8x512xf32> to vector<8x128xf32>
    %664 = arith.negf %663 : vector<8x128xf32>
    %665 = math.exp %664 : vector<8x128xf32>
    %cst_202 = arith.constant 1.000000e+00 : f32
    %666 = vector.broadcast %cst_202 : f32 to vector<8x128xf32>
    %667 = arith.addf %666, %665 : vector<8x128xf32>
    %668 = arith.divf %666, %667 : vector<8x128xf32>
    %669 = arith.mulf %660, %636 : vector<8x128xf32>
    %670 = arith.mulf %654, %662 : vector<8x128xf32>
    %671 = arith.addf %669, %670 : vector<8x128xf32>
    %672 = math.tanh %671 : vector<8x128xf32>
    %673 = arith.mulf %668, %672 : vector<8x128xf32>
    %674 = arith.index_cast %c1_i32_196 : i32 to index
    %c0_203 = arith.constant 0 : index
    %c0_204 = arith.constant 0 : index
    %675 = vector.load %arg13[%674, %c0_203, %c0_204] : memref<8x8x128xf32, #tpu.memory_space<vmem>>, vector<1x8x128xf32>
    %676 = vector.shape_cast %675 : vector<1x8x128xf32> to vector<8x128xf32>
    %677 = vector.shape_cast %673 : vector<8x128xf32> to vector<1x8x128xf32>
    tpu.vector_store %arg13[%674, %c0_203, %c0_204], %677 {strides = array<i32>} : memref<8x8x128xf32, #tpu.memory_space<vmem>>, vector<1x8x128xf32>,
    %c2_i32_205 = arith.constant 2 : i32
    %678 = arith.index_cast %c2_i32_205 : i32 to index
    %c0_206 = arith.constant 0 : index
    %c0_207 = arith.constant 0 : index
    %679 = vector.load %arg14[%678, %c0_206, %c0_207] : memref<8x8x512xf32, #tpu.memory_space<vmem>>, vector<1x8x512xf32>
    %680 = vector.shape_cast %679 : vector<1x8x512xf32> to vector<8x512xf32>
    %681 = arith.truncf %673 : vector<8x128xf32> to vector<8x128xbf16>
    %cst_208 = arith.constant dense<0.000000e+00> : vector<8x512xf32>
    %682 = tpu.matmul %681, %593, %cst_208 {dimension_numbers = #tpu.dot_dimension_numbers<[1], [0], [0], [1], [0, 0, 1, 1], [], []>} : vector<8x128xbf16>, vector<128x512xbf16>, vector<8x512xf32> -> vector<8x512xf32>
    %683 = arith.addf %680, %682 : vector<8x512xf32>
    %684 = vector.extract_strided_slice %683 {offsets = [0, 0], sizes = [8, 128], strides = [1, 1]} : vector<8x512xf32> to vector<8x128xf32>
    %685 = arith.negf %684 : vector<8x128xf32>
    %686 = math.exp %685 : vector<8x128xf32>
    %cst_209 = arith.constant 1.000000e+00 : f32
    %687 = vector.broadcast %cst_209 : f32 to vector<8x128xf32>
    %688 = arith.addf %687, %686 : vector<8x128xf32>
    %689 = arith.divf %687, %688 : vector<8x128xf32>
    %690 = vector.extract_strided_slice %683 {offsets = [0, 128], sizes = [8, 128], strides = [1, 1]} : vector<8x512xf32> to vector<8x128xf32>
    %691 = arith.negf %690 : vector<8x128xf32>
    %692 = math.exp %691 : vector<8x128xf32>
    %cst_210 = arith.constant 1.000000e+00 : f32
    %693 = vector.broadcast %cst_210 : f32 to vector<8x128xf32>
    %694 = arith.addf %693, %692 : vector<8x128xf32>
    %695 = arith.divf %693, %694 : vector<8x128xf32>
    %696 = vector.extract_strided_slice %683 {offsets = [0, 256], sizes = [8, 128], strides = [1, 1]} : vector<8x512xf32> to vector<8x128xf32>
    %697 = math.tanh %696 : vector<8x128xf32>
    %698 = vector.extract_strided_slice %683 {offsets = [0, 384], sizes = [8, 128], strides = [1, 1]} : vector<8x512xf32> to vector<8x128xf32>
    %699 = arith.negf %698 : vector<8x128xf32>
    %700 = math.exp %699 : vector<8x128xf32>
    %cst_211 = arith.constant 1.000000e+00 : f32
    %701 = vector.broadcast %cst_211 : f32 to vector<8x128xf32>
    %702 = arith.addf %701, %700 : vector<8x128xf32>
    %703 = arith.divf %701, %702 : vector<8x128xf32>
    %704 = arith.mulf %695, %671 : vector<8x128xf32>
    %705 = arith.mulf %689, %697 : vector<8x128xf32>
    %706 = arith.addf %704, %705 : vector<8x128xf32>
    %707 = math.tanh %706 : vector<8x128xf32>
    %708 = arith.mulf %703, %707 : vector<8x128xf32>
    %709 = arith.index_cast %c2_i32_205 : i32 to index
    %c0_212 = arith.constant 0 : index
    %c0_213 = arith.constant 0 : index
    %710 = vector.load %arg13[%709, %c0_212, %c0_213] : memref<8x8x128xf32, #tpu.memory_space<vmem>>, vector<1x8x128xf32>
    %711 = vector.shape_cast %710 : vector<1x8x128xf32> to vector<8x128xf32>
    %712 = vector.shape_cast %708 : vector<8x128xf32> to vector<1x8x128xf32>
    tpu.vector_store %arg13[%709, %c0_212, %c0_213], %712 {strides = array<i32>} : memref<8x8x128xf32, #tpu.memory_space<vmem>>, vector<1x8x128xf32>,
    %c3_i32_214 = arith.constant 3 : i32
    %713 = arith.index_cast %c3_i32_214 : i32 to index
    %c0_215 = arith.constant 0 : index
    %c0_216 = arith.constant 0 : index
    %714 = vector.load %arg14[%713, %c0_215, %c0_216] : memref<8x8x512xf32, #tpu.memory_space<vmem>>, vector<1x8x512xf32>
    %715 = vector.shape_cast %714 : vector<1x8x512xf32> to vector<8x512xf32>
    %716 = arith.truncf %708 : vector<8x128xf32> to vector<8x128xbf16>
    %cst_217 = arith.constant dense<0.000000e+00> : vector<8x512xf32>
    %717 = tpu.matmul %716, %593, %cst_217 {dimension_numbers = #tpu.dot_dimension_numbers<[1], [0], [0], [1], [0, 0, 1, 1], [], []>} : vector<8x128xbf16>, vector<128x512xbf16>, vector<8x512xf32> -> vector<8x512xf32>
    %718 = arith.addf %715, %717 : vector<8x512xf32>
    %719 = vector.extract_strided_slice %718 {offsets = [0, 0], sizes = [8, 128], strides = [1, 1]} : vector<8x512xf32> to vector<8x128xf32>
    %720 = arith.negf %719 : vector<8x128xf32>
    %721 = math.exp %720 : vector<8x128xf32>
    %cst_218 = arith.constant 1.000000e+00 : f32
    %722 = vector.broadcast %cst_218 : f32 to vector<8x128xf32>
    %723 = arith.addf %722, %721 : vector<8x128xf32>
    %724 = arith.divf %722, %723 : vector<8x128xf32>
    %725 = vector.extract_strided_slice %718 {offsets = [0, 128], sizes = [8, 128], strides = [1, 1]} : vector<8x512xf32> to vector<8x128xf32>
    %726 = arith.negf %725 : vector<8x128xf32>
    %727 = math.exp %726 : vector<8x128xf32>
    %cst_219 = arith.constant 1.000000e+00 : f32
    %728 = vector.broadcast %cst_219 : f32 to vector<8x128xf32>
    %729 = arith.addf %728, %727 : vector<8x128xf32>
    %730 = arith.divf %728, %729 : vector<8x128xf32>
    %731 = vector.extract_strided_slice %718 {offsets = [0, 256], sizes = [8, 128], strides = [1, 1]} : vector<8x512xf32> to vector<8x128xf32>
    %732 = math.tanh %731 : vector<8x128xf32>
    %733 = vector.extract_strided_slice %718 {offsets = [0, 384], sizes = [8, 128], strides = [1, 1]} : vector<8x512xf32> to vector<8x128xf32>
    %734 = arith.negf %733 : vector<8x128xf32>
    %735 = math.exp %734 : vector<8x128xf32>
    %cst_220 = arith.constant 1.000000e+00 : f32
    %736 = vector.broadcast %cst_220 : f32 to vector<8x128xf32>
    %737 = arith.addf %736, %735 : vector<8x128xf32>
    %738 = arith.divf %736, %737 : vector<8x128xf32>
    %739 = arith.mulf %730, %706 : vector<8x128xf32>
    %740 = arith.mulf %724, %732 : vector<8x128xf32>
    %741 = arith.addf %739, %740 : vector<8x128xf32>
    %742 = math.tanh %741 : vector<8x128xf32>
    %743 = arith.mulf %738, %742 : vector<8x128xf32>
    %744 = arith.index_cast %c3_i32_214 : i32 to index
    %c0_221 = arith.constant 0 : index
    %c0_222 = arith.constant 0 : index
    %745 = vector.load %arg13[%744, %c0_221, %c0_222] : memref<8x8x128xf32, #tpu.memory_space<vmem>>, vector<1x8x128xf32>
    %746 = vector.shape_cast %745 : vector<1x8x128xf32> to vector<8x128xf32>
    %747 = vector.shape_cast %743 : vector<8x128xf32> to vector<1x8x128xf32>
    tpu.vector_store %arg13[%744, %c0_221, %c0_222], %747 {strides = array<i32>} : memref<8x8x128xf32, #tpu.memory_space<vmem>>, vector<1x8x128xf32>,
    %c4_i32_223 = arith.constant 4 : i32
    %748 = arith.index_cast %c4_i32_223 : i32 to index
    %c0_224 = arith.constant 0 : index
    %c0_225 = arith.constant 0 : index
    %749 = vector.load %arg14[%748, %c0_224, %c0_225] : memref<8x8x512xf32, #tpu.memory_space<vmem>>, vector<1x8x512xf32>
    %750 = vector.shape_cast %749 : vector<1x8x512xf32> to vector<8x512xf32>
    %751 = arith.truncf %743 : vector<8x128xf32> to vector<8x128xbf16>
    %cst_226 = arith.constant dense<0.000000e+00> : vector<8x512xf32>
    %752 = tpu.matmul %751, %593, %cst_226 {dimension_numbers = #tpu.dot_dimension_numbers<[1], [0], [0], [1], [0, 0, 1, 1], [], []>} : vector<8x128xbf16>, vector<128x512xbf16>, vector<8x512xf32> -> vector<8x512xf32>
    %753 = arith.addf %750, %752 : vector<8x512xf32>
    %754 = vector.extract_strided_slice %753 {offsets = [0, 0], sizes = [8, 128], strides = [1, 1]} : vector<8x512xf32> to vector<8x128xf32>
    %755 = arith.negf %754 : vector<8x128xf32>
    %756 = math.exp %755 : vector<8x128xf32>
    %cst_227 = arith.constant 1.000000e+00 : f32
    %757 = vector.broadcast %cst_227 : f32 to vector<8x128xf32>
    %758 = arith.addf %757, %756 : vector<8x128xf32>
    %759 = arith.divf %757, %758 : vector<8x128xf32>
    %760 = vector.extract_strided_slice %753 {offsets = [0, 128], sizes = [8, 128], strides = [1, 1]} : vector<8x512xf32> to vector<8x128xf32>
    %761 = arith.negf %760 : vector<8x128xf32>
    %762 = math.exp %761 : vector<8x128xf32>
    %cst_228 = arith.constant 1.000000e+00 : f32
    %763 = vector.broadcast %cst_228 : f32 to vector<8x128xf32>
    %764 = arith.addf %763, %762 : vector<8x128xf32>
    %765 = arith.divf %763, %764 : vector<8x128xf32>
    %766 = vector.extract_strided_slice %753 {offsets = [0, 256], sizes = [8, 128], strides = [1, 1]} : vector<8x512xf32> to vector<8x128xf32>
    %767 = math.tanh %766 : vector<8x128xf32>
    %768 = vector.extract_strided_slice %753 {offsets = [0, 384], sizes = [8, 128], strides = [1, 1]} : vector<8x512xf32> to vector<8x128xf32>
    %769 = arith.negf %768 : vector<8x128xf32>
    %770 = math.exp %769 : vector<8x128xf32>
    %cst_229 = arith.constant 1.000000e+00 : f32
    %771 = vector.broadcast %cst_229 : f32 to vector<8x128xf32>
    %772 = arith.addf %771, %770 : vector<8x128xf32>
    %773 = arith.divf %771, %772 : vector<8x128xf32>
    %774 = arith.mulf %765, %741 : vector<8x128xf32>
    %775 = arith.mulf %759, %767 : vector<8x128xf32>
    %776 = arith.addf %774, %775 : vector<8x128xf32>
    %777 = math.tanh %776 : vector<8x128xf32>
    %778 = arith.mulf %773, %777 : vector<8x128xf32>
    %779 = arith.index_cast %c4_i32_223 : i32 to index
    %c0_230 = arith.constant 0 : index
    %c0_231 = arith.constant 0 : index
    %780 = vector.load %arg13[%779, %c0_230, %c0_231] : memref<8x8x128xf32, #tpu.memory_space<vmem>>, vector<1x8x128xf32>
    %781 = vector.shape_cast %780 : vector<1x8x128xf32> to vector<8x128xf32>
    %782 = vector.shape_cast %778 : vector<8x128xf32> to vector<1x8x128xf32>
    tpu.vector_store %arg13[%779, %c0_230, %c0_231], %782 {strides = array<i32>} : memref<8x8x128xf32, #tpu.memory_space<vmem>>, vector<1x8x128xf32>,
    %c5_i32_232 = arith.constant 5 : i32
    %783 = arith.index_cast %c5_i32_232 : i32 to index
    %c0_233 = arith.constant 0 : index
    %c0_234 = arith.constant 0 : index
    %784 = vector.load %arg14[%783, %c0_233, %c0_234] : memref<8x8x512xf32, #tpu.memory_space<vmem>>, vector<1x8x512xf32>
    %785 = vector.shape_cast %784 : vector<1x8x512xf32> to vector<8x512xf32>
    %786 = arith.truncf %778 : vector<8x128xf32> to vector<8x128xbf16>
    %cst_235 = arith.constant dense<0.000000e+00> : vector<8x512xf32>
    %787 = tpu.matmul %786, %593, %cst_235 {dimension_numbers = #tpu.dot_dimension_numbers<[1], [0], [0], [1], [0, 0, 1, 1], [], []>} : vector<8x128xbf16>, vector<128x512xbf16>, vector<8x512xf32> -> vector<8x512xf32>
    %788 = arith.addf %785, %787 : vector<8x512xf32>
    %789 = vector.extract_strided_slice %788 {offsets = [0, 0], sizes = [8, 128], strides = [1, 1]} : vector<8x512xf32> to vector<8x128xf32>
    %790 = arith.negf %789 : vector<8x128xf32>
    %791 = math.exp %790 : vector<8x128xf32>
    %cst_236 = arith.constant 1.000000e+00 : f32
    %792 = vector.broadcast %cst_236 : f32 to vector<8x128xf32>
    %793 = arith.addf %792, %791 : vector<8x128xf32>
    %794 = arith.divf %792, %793 : vector<8x128xf32>
    %795 = vector.extract_strided_slice %788 {offsets = [0, 128], sizes = [8, 128], strides = [1, 1]} : vector<8x512xf32> to vector<8x128xf32>
    %796 = arith.negf %795 : vector<8x128xf32>
    %797 = math.exp %796 : vector<8x128xf32>
    %cst_237 = arith.constant 1.000000e+00 : f32
    %798 = vector.broadcast %cst_237 : f32 to vector<8x128xf32>
    %799 = arith.addf %798, %797 : vector<8x128xf32>
    %800 = arith.divf %798, %799 : vector<8x128xf32>
    %801 = vector.extract_strided_slice %788 {offsets = [0, 256], sizes = [8, 128], strides = [1, 1]} : vector<8x512xf32> to vector<8x128xf32>
    %802 = math.tanh %801 : vector<8x128xf32>
    %803 = vector.extract_strided_slice %788 {offsets = [0, 384], sizes = [8, 128], strides = [1, 1]} : vector<8x512xf32> to vector<8x128xf32>
    %804 = arith.negf %803 : vector<8x128xf32>
    %805 = math.exp %804 : vector<8x128xf32>
    %cst_238 = arith.constant 1.000000e+00 : f32
    %806 = vector.broadcast %cst_238 : f32 to vector<8x128xf32>
    %807 = arith.addf %806, %805 : vector<8x128xf32>
    %808 = arith.divf %806, %807 : vector<8x128xf32>
    %809 = arith.mulf %800, %776 : vector<8x128xf32>
    %810 = arith.mulf %794, %802 : vector<8x128xf32>
    %811 = arith.addf %809, %810 : vector<8x128xf32>
    %812 = math.tanh %811 : vector<8x128xf32>
    %813 = arith.mulf %808, %812 : vector<8x128xf32>
    %814 = arith.index_cast %c5_i32_232 : i32 to index
    %c0_239 = arith.constant 0 : index
    %c0_240 = arith.constant 0 : index
    %815 = vector.load %arg13[%814, %c0_239, %c0_240] : memref<8x8x128xf32, #tpu.memory_space<vmem>>, vector<1x8x128xf32>
    %816 = vector.shape_cast %815 : vector<1x8x128xf32> to vector<8x128xf32>
    %817 = vector.shape_cast %813 : vector<8x128xf32> to vector<1x8x128xf32>
    tpu.vector_store %arg13[%814, %c0_239, %c0_240], %817 {strides = array<i32>} : memref<8x8x128xf32, #tpu.memory_space<vmem>>, vector<1x8x128xf32>,
    %c6_i32_241 = arith.constant 6 : i32
    %818 = arith.index_cast %c6_i32_241 : i32 to index
    %c0_242 = arith.constant 0 : index
    %c0_243 = arith.constant 0 : index
    %819 = vector.load %arg14[%818, %c0_242, %c0_243] : memref<8x8x512xf32, #tpu.memory_space<vmem>>, vector<1x8x512xf32>
    %820 = vector.shape_cast %819 : vector<1x8x512xf32> to vector<8x512xf32>
    %821 = arith.truncf %813 : vector<8x128xf32> to vector<8x128xbf16>
    %cst_244 = arith.constant dense<0.000000e+00> : vector<8x512xf32>
    %822 = tpu.matmul %821, %593, %cst_244 {dimension_numbers = #tpu.dot_dimension_numbers<[1], [0], [0], [1], [0, 0, 1, 1], [], []>} : vector<8x128xbf16>, vector<128x512xbf16>, vector<8x512xf32> -> vector<8x512xf32>
    %823 = arith.addf %820, %822 : vector<8x512xf32>
    %824 = vector.extract_strided_slice %823 {offsets = [0, 0], sizes = [8, 128], strides = [1, 1]} : vector<8x512xf32> to vector<8x128xf32>
    %825 = arith.negf %824 : vector<8x128xf32>
    %826 = math.exp %825 : vector<8x128xf32>
    %cst_245 = arith.constant 1.000000e+00 : f32
    %827 = vector.broadcast %cst_245 : f32 to vector<8x128xf32>
    %828 = arith.addf %827, %826 : vector<8x128xf32>
    %829 = arith.divf %827, %828 : vector<8x128xf32>
    %830 = vector.extract_strided_slice %823 {offsets = [0, 128], sizes = [8, 128], strides = [1, 1]} : vector<8x512xf32> to vector<8x128xf32>
    %831 = arith.negf %830 : vector<8x128xf32>
    %832 = math.exp %831 : vector<8x128xf32>
    %cst_246 = arith.constant 1.000000e+00 : f32
    %833 = vector.broadcast %cst_246 : f32 to vector<8x128xf32>
    %834 = arith.addf %833, %832 : vector<8x128xf32>
    %835 = arith.divf %833, %834 : vector<8x128xf32>
    %836 = vector.extract_strided_slice %823 {offsets = [0, 256], sizes = [8, 128], strides = [1, 1]} : vector<8x512xf32> to vector<8x128xf32>
    %837 = math.tanh %836 : vector<8x128xf32>
    %838 = vector.extract_strided_slice %823 {offsets = [0, 384], sizes = [8, 128], strides = [1, 1]} : vector<8x512xf32> to vector<8x128xf32>
    %839 = arith.negf %838 : vector<8x128xf32>
    %840 = math.exp %839 : vector<8x128xf32>
    %cst_247 = arith.constant 1.000000e+00 : f32
    %841 = vector.broadcast %cst_247 : f32 to vector<8x128xf32>
    %842 = arith.addf %841, %840 : vector<8x128xf32>
    %843 = arith.divf %841, %842 : vector<8x128xf32>
    %844 = arith.mulf %835, %811 : vector<8x128xf32>
    %845 = arith.mulf %829, %837 : vector<8x128xf32>
    %846 = arith.addf %844, %845 : vector<8x128xf32>
    %847 = math.tanh %846 : vector<8x128xf32>
    %848 = arith.mulf %843, %847 : vector<8x128xf32>
    %849 = arith.index_cast %c6_i32_241 : i32 to index
    %c0_248 = arith.constant 0 : index
    %c0_249 = arith.constant 0 : index
    %850 = vector.load %arg13[%849, %c0_248, %c0_249] : memref<8x8x128xf32, #tpu.memory_space<vmem>>, vector<1x8x128xf32>
    %851 = vector.shape_cast %850 : vector<1x8x128xf32> to vector<8x128xf32>
    %852 = vector.shape_cast %848 : vector<8x128xf32> to vector<1x8x128xf32>
    tpu.vector_store %arg13[%849, %c0_248, %c0_249], %852 {strides = array<i32>} : memref<8x8x128xf32, #tpu.memory_space<vmem>>, vector<1x8x128xf32>,
    %c7_i32_250 = arith.constant 7 : i32
    %853 = arith.index_cast %c7_i32_250 : i32 to index
    %c0_251 = arith.constant 0 : index
    %c0_252 = arith.constant 0 : index
    %854 = vector.load %arg14[%853, %c0_251, %c0_252] : memref<8x8x512xf32, #tpu.memory_space<vmem>>, vector<1x8x512xf32>
    %855 = vector.shape_cast %854 : vector<1x8x512xf32> to vector<8x512xf32>
    %856 = arith.truncf %848 : vector<8x128xf32> to vector<8x128xbf16>
    %cst_253 = arith.constant dense<0.000000e+00> : vector<8x512xf32>
    %857 = tpu.matmul %856, %593, %cst_253 {dimension_numbers = #tpu.dot_dimension_numbers<[1], [0], [0], [1], [0, 0, 1, 1], [], []>} : vector<8x128xbf16>, vector<128x512xbf16>, vector<8x512xf32> -> vector<8x512xf32>
    %858 = arith.addf %855, %857 : vector<8x512xf32>
    %859 = vector.extract_strided_slice %858 {offsets = [0, 0], sizes = [8, 128], strides = [1, 1]} : vector<8x512xf32> to vector<8x128xf32>
    %860 = arith.negf %859 : vector<8x128xf32>
    %861 = math.exp %860 : vector<8x128xf32>
    %cst_254 = arith.constant 1.000000e+00 : f32
    %862 = vector.broadcast %cst_254 : f32 to vector<8x128xf32>
    %863 = arith.addf %862, %861 : vector<8x128xf32>
    %864 = arith.divf %862, %863 : vector<8x128xf32>
    %865 = vector.extract_strided_slice %858 {offsets = [0, 128], sizes = [8, 128], strides = [1, 1]} : vector<8x512xf32> to vector<8x128xf32>
    %866 = arith.negf %865 : vector<8x128xf32>
    %867 = math.exp %866 : vector<8x128xf32>
    %cst_255 = arith.constant 1.000000e+00 : f32
    %868 = vector.broadcast %cst_255 : f32 to vector<8x128xf32>
    %869 = arith.addf %868, %867 : vector<8x128xf32>
    %870 = arith.divf %868, %869 : vector<8x128xf32>
    %871 = vector.extract_strided_slice %858 {offsets = [0, 256], sizes = [8, 128], strides = [1, 1]} : vector<8x512xf32> to vector<8x128xf32>
    %872 = math.tanh %871 : vector<8x128xf32>
    %873 = vector.extract_strided_slice %858 {offsets = [0, 384], sizes = [8, 128], strides = [1, 1]} : vector<8x512xf32> to vector<8x128xf32>
    %874 = arith.negf %873 : vector<8x128xf32>
    %875 = math.exp %874 : vector<8x128xf32>
    %cst_256 = arith.constant 1.000000e+00 : f32
    %876 = vector.broadcast %cst_256 : f32 to vector<8x128xf32>
    %877 = arith.addf %876, %875 : vector<8x128xf32>
    %878 = arith.divf %876, %877 : vector<8x128xf32>
    %879 = arith.mulf %870, %846 : vector<8x128xf32>
    %880 = arith.mulf %864, %872 : vector<8x128xf32>
    %881 = arith.addf %879, %880 : vector<8x128xf32>
    %882 = math.tanh %881 : vector<8x128xf32>
    %883 = arith.mulf %878, %882 : vector<8x128xf32>
    %884 = arith.index_cast %c7_i32_250 : i32 to index
    %c0_257 = arith.constant 0 : index
    %c0_258 = arith.constant 0 : index
    %885 = vector.load %arg13[%884, %c0_257, %c0_258] : memref<8x8x128xf32, #tpu.memory_space<vmem>>, vector<1x8x128xf32>
    %886 = vector.shape_cast %885 : vector<1x8x128xf32> to vector<8x128xf32>
    %887 = vector.shape_cast %883 : vector<8x128xf32> to vector<1x8x128xf32>
    tpu.vector_store %arg13[%884, %c0_257, %c0_258], %887 {strides = array<i32>} : memref<8x8x128xf32, #tpu.memory_space<vmem>>, vector<1x8x128xf32>,
    %c8_i32_259 = arith.constant 8 : i32
    %c3 = arith.constant 3 : index
    %c0_260 = arith.constant 0 : index
    %c0_261 = arith.constant 0 : index
    %888 = vector.load %arg2[%c3, %c0_260, %c0_261] : memref<5x128x512xbf16, #tpu.memory_space<vmem>>, vector<1x128x512xbf16>
    %889 = vector.shape_cast %888 : vector<1x128x512xbf16> to vector<128x512xbf16>
    %c0_262 = arith.constant 0 : index
    %c0_263 = arith.constant 0 : index
    %c0_264 = arith.constant 0 : index
    %890 = vector.load %arg13[%c0_262, %c0_263, %c0_264] : memref<8x8x128xf32, #tpu.memory_space<vmem>>, vector<8x8x128xf32>
    %891 = vector.shape_cast %890 : vector<8x8x128xf32> to vector<64x128xf32>
    %892 = arith.truncf %891 : vector<64x128xf32> to vector<64x128xbf16>
    %c3_265 = arith.constant 3 : index
    %c0_266 = arith.constant 0 : index
    %c0_267 = arith.constant 0 : index
    %893 = vector.load %arg1[%c3_265, %c0_266, %c0_267] : memref<5x128x512xbf16, #tpu.memory_space<vmem>>, vector<1x128x512xbf16>
    %894 = vector.shape_cast %893 : vector<1x128x512xbf16> to vector<128x512xbf16>
    %cst_268 = arith.constant dense<0.000000e+00> : vector<64x512xf32>
    %895 = tpu.matmul %892, %894, %cst_268 {dimension_numbers = #tpu.dot_dimension_numbers<[1], [0], [0], [1], [0, 0, 1, 1], [], []>} : vector<64x128xbf16>, vector<128x512xbf16>, vector<64x512xf32> -> vector<64x512xf32>
    %c3_269 = arith.constant 3 : index
    %c0_270 = arith.constant 0 : index
    %c0_271 = arith.constant 0 : index
    %896 = vector.load %arg3[%c3_269, %c0_270, %c0_271] : memref<5x1x512xf32, #tpu.memory_space<vmem>>, vector<1x1x512xf32>
    %897 = vector.shape_cast %896 : vector<1x1x512xf32> to vector<1x512xf32>
    %898 = vector.broadcast %897 : vector<1x512xf32> to vector<64x512xf32>
    %899 = arith.addf %895, %898 : vector<64x512xf32>
    %900 = vector.shape_cast %899 : vector<64x512xf32> to vector<8x8x512xf32>
    %c0_272 = arith.constant 0 : index
    %c0_273 = arith.constant 0 : index
    %c0_274 = arith.constant 0 : index
    %901 = vector.load %arg14[%c0_272, %c0_273, %c0_274] : memref<8x8x512xf32, #tpu.memory_space<vmem>>, vector<8x8x512xf32>
    tpu.vector_store %arg14[%c0_272, %c0_273, %c0_274], %900 {strides = array<i32>} : memref<8x8x512xf32, #tpu.memory_space<vmem>>, vector<8x8x512xf32>,
    %cst_275 = arith.constant 0.000000e+00 : f32
    %902 = vector.broadcast %cst_275 : f32 to vector<8x128xf32>
    %cst_276 = arith.constant 0.000000e+00 : f32
    %903 = vector.broadcast %cst_276 : f32 to vector<8x128xf32>
    %c0_i32_277 = arith.constant 0 : i32
    %904 = arith.index_cast %c0_i32_277 : i32 to index
    %c0_278 = arith.constant 0 : index
    %c0_279 = arith.constant 0 : index
    %905 = vector.load %arg14[%904, %c0_278, %c0_279] : memref<8x8x512xf32, #tpu.memory_space<vmem>>, vector<1x8x512xf32>
    %906 = vector.shape_cast %905 : vector<1x8x512xf32> to vector<8x512xf32>
    %907 = arith.truncf %902 : vector<8x128xf32> to vector<8x128xbf16>
    %cst_280 = arith.constant dense<0.000000e+00> : vector<8x512xf32>
    %908 = tpu.matmul %907, %889, %cst_280 {dimension_numbers = #tpu.dot_dimension_numbers<[1], [0], [0], [1], [0, 0, 1, 1], [], []>} : vector<8x128xbf16>, vector<128x512xbf16>, vector<8x512xf32> -> vector<8x512xf32>
    %909 = arith.addf %906, %908 : vector<8x512xf32>
    %910 = vector.extract_strided_slice %909 {offsets = [0, 0], sizes = [8, 128], strides = [1, 1]} : vector<8x512xf32> to vector<8x128xf32>
    %911 = arith.negf %910 : vector<8x128xf32>
    %912 = math.exp %911 : vector<8x128xf32>
    %cst_281 = arith.constant 1.000000e+00 : f32
    %913 = vector.broadcast %cst_281 : f32 to vector<8x128xf32>
    %914 = arith.addf %913, %912 : vector<8x128xf32>
    %915 = arith.divf %913, %914 : vector<8x128xf32>
    %916 = vector.extract_strided_slice %909 {offsets = [0, 128], sizes = [8, 128], strides = [1, 1]} : vector<8x512xf32> to vector<8x128xf32>
    %917 = arith.negf %916 : vector<8x128xf32>
    %918 = math.exp %917 : vector<8x128xf32>
    %cst_282 = arith.constant 1.000000e+00 : f32
    %919 = vector.broadcast %cst_282 : f32 to vector<8x128xf32>
    %920 = arith.addf %919, %918 : vector<8x128xf32>
    %921 = arith.divf %919, %920 : vector<8x128xf32>
    %922 = vector.extract_strided_slice %909 {offsets = [0, 256], sizes = [8, 128], strides = [1, 1]} : vector<8x512xf32> to vector<8x128xf32>
    %923 = math.tanh %922 : vector<8x128xf32>
    %924 = vector.extract_strided_slice %909 {offsets = [0, 384], sizes = [8, 128], strides = [1, 1]} : vector<8x512xf32> to vector<8x128xf32>
    %925 = arith.negf %924 : vector<8x128xf32>
    %926 = math.exp %925 : vector<8x128xf32>
    %cst_283 = arith.constant 1.000000e+00 : f32
    %927 = vector.broadcast %cst_283 : f32 to vector<8x128xf32>
    %928 = arith.addf %927, %926 : vector<8x128xf32>
    %929 = arith.divf %927, %928 : vector<8x128xf32>
    %930 = arith.mulf %921, %903 : vector<8x128xf32>
    %931 = arith.mulf %915, %923 : vector<8x128xf32>
    %932 = arith.addf %930, %931 : vector<8x128xf32>
    %933 = math.tanh %932 : vector<8x128xf32>
    %934 = arith.mulf %929, %933 : vector<8x128xf32>
    %935 = arith.index_cast %c0_i32_277 : i32 to index
    %c0_284 = arith.constant 0 : index
    %c0_285 = arith.constant 0 : index
    %936 = vector.load %arg13[%935, %c0_284, %c0_285] : memref<8x8x128xf32, #tpu.memory_space<vmem>>, vector<1x8x128xf32>
    %937 = vector.shape_cast %936 : vector<1x8x128xf32> to vector<8x128xf32>
    %938 = vector.shape_cast %934 : vector<8x128xf32> to vector<1x8x128xf32>
    tpu.vector_store %arg13[%935, %c0_284, %c0_285], %938 {strides = array<i32>} : memref<8x8x128xf32, #tpu.memory_space<vmem>>, vector<1x8x128xf32>,
    %c1_i32_286 = arith.constant 1 : i32
    %939 = arith.index_cast %c1_i32_286 : i32 to index
    %c0_287 = arith.constant 0 : index
    %c0_288 = arith.constant 0 : index
    %940 = vector.load %arg14[%939, %c0_287, %c0_288] : memref<8x8x512xf32, #tpu.memory_space<vmem>>, vector<1x8x512xf32>
    %941 = vector.shape_cast %940 : vector<1x8x512xf32> to vector<8x512xf32>
    %942 = arith.truncf %934 : vector<8x128xf32> to vector<8x128xbf16>
    %cst_289 = arith.constant dense<0.000000e+00> : vector<8x512xf32>
    %943 = tpu.matmul %942, %889, %cst_289 {dimension_numbers = #tpu.dot_dimension_numbers<[1], [0], [0], [1], [0, 0, 1, 1], [], []>} : vector<8x128xbf16>, vector<128x512xbf16>, vector<8x512xf32> -> vector<8x512xf32>
    %944 = arith.addf %941, %943 : vector<8x512xf32>
    %945 = vector.extract_strided_slice %944 {offsets = [0, 0], sizes = [8, 128], strides = [1, 1]} : vector<8x512xf32> to vector<8x128xf32>
    %946 = arith.negf %945 : vector<8x128xf32>
    %947 = math.exp %946 : vector<8x128xf32>
    %cst_290 = arith.constant 1.000000e+00 : f32
    %948 = vector.broadcast %cst_290 : f32 to vector<8x128xf32>
    %949 = arith.addf %948, %947 : vector<8x128xf32>
    %950 = arith.divf %948, %949 : vector<8x128xf32>
    %951 = vector.extract_strided_slice %944 {offsets = [0, 128], sizes = [8, 128], strides = [1, 1]} : vector<8x512xf32> to vector<8x128xf32>
    %952 = arith.negf %951 : vector<8x128xf32>
    %953 = math.exp %952 : vector<8x128xf32>
    %cst_291 = arith.constant 1.000000e+00 : f32
    %954 = vector.broadcast %cst_291 : f32 to vector<8x128xf32>
    %955 = arith.addf %954, %953 : vector<8x128xf32>
    %956 = arith.divf %954, %955 : vector<8x128xf32>
    %957 = vector.extract_strided_slice %944 {offsets = [0, 256], sizes = [8, 128], strides = [1, 1]} : vector<8x512xf32> to vector<8x128xf32>
    %958 = math.tanh %957 : vector<8x128xf32>
    %959 = vector.extract_strided_slice %944 {offsets = [0, 384], sizes = [8, 128], strides = [1, 1]} : vector<8x512xf32> to vector<8x128xf32>
    %960 = arith.negf %959 : vector<8x128xf32>
    %961 = math.exp %960 : vector<8x128xf32>
    %cst_292 = arith.constant 1.000000e+00 : f32
    %962 = vector.broadcast %cst_292 : f32 to vector<8x128xf32>
    %963 = arith.addf %962, %961 : vector<8x128xf32>
    %964 = arith.divf %962, %963 : vector<8x128xf32>
    %965 = arith.mulf %956, %932 : vector<8x128xf32>
    %966 = arith.mulf %950, %958 : vector<8x128xf32>
    %967 = arith.addf %965, %966 : vector<8x128xf32>
    %968 = math.tanh %967 : vector<8x128xf32>
    %969 = arith.mulf %964, %968 : vector<8x128xf32>
    %970 = arith.index_cast %c1_i32_286 : i32 to index
    %c0_293 = arith.constant 0 : index
    %c0_294 = arith.constant 0 : index
    %971 = vector.load %arg13[%970, %c0_293, %c0_294] : memref<8x8x128xf32, #tpu.memory_space<vmem>>, vector<1x8x128xf32>
    %972 = vector.shape_cast %971 : vector<1x8x128xf32> to vector<8x128xf32>
    %973 = vector.shape_cast %969 : vector<8x128xf32> to vector<1x8x128xf32>
    tpu.vector_store %arg13[%970, %c0_293, %c0_294], %973 {strides = array<i32>} : memref<8x8x128xf32, #tpu.memory_space<vmem>>, vector<1x8x128xf32>,
    %c2_i32_295 = arith.constant 2 : i32
    %974 = arith.index_cast %c2_i32_295 : i32 to index
    %c0_296 = arith.constant 0 : index
    %c0_297 = arith.constant 0 : index
    %975 = vector.load %arg14[%974, %c0_296, %c0_297] : memref<8x8x512xf32, #tpu.memory_space<vmem>>, vector<1x8x512xf32>
    %976 = vector.shape_cast %975 : vector<1x8x512xf32> to vector<8x512xf32>
    %977 = arith.truncf %969 : vector<8x128xf32> to vector<8x128xbf16>
    %cst_298 = arith.constant dense<0.000000e+00> : vector<8x512xf32>
    %978 = tpu.matmul %977, %889, %cst_298 {dimension_numbers = #tpu.dot_dimension_numbers<[1], [0], [0], [1], [0, 0, 1, 1], [], []>} : vector<8x128xbf16>, vector<128x512xbf16>, vector<8x512xf32> -> vector<8x512xf32>
    %979 = arith.addf %976, %978 : vector<8x512xf32>
    %980 = vector.extract_strided_slice %979 {offsets = [0, 0], sizes = [8, 128], strides = [1, 1]} : vector<8x512xf32> to vector<8x128xf32>
    %981 = arith.negf %980 : vector<8x128xf32>
    %982 = math.exp %981 : vector<8x128xf32>
    %cst_299 = arith.constant 1.000000e+00 : f32
    %983 = vector.broadcast %cst_299 : f32 to vector<8x128xf32>
    %984 = arith.addf %983, %982 : vector<8x128xf32>
    %985 = arith.divf %983, %984 : vector<8x128xf32>
    %986 = vector.extract_strided_slice %979 {offsets = [0, 128], sizes = [8, 128], strides = [1, 1]} : vector<8x512xf32> to vector<8x128xf32>
    %987 = arith.negf %986 : vector<8x128xf32>
    %988 = math.exp %987 : vector<8x128xf32>
    %cst_300 = arith.constant 1.000000e+00 : f32
    %989 = vector.broadcast %cst_300 : f32 to vector<8x128xf32>
    %990 = arith.addf %989, %988 : vector<8x128xf32>
    %991 = arith.divf %989, %990 : vector<8x128xf32>
    %992 = vector.extract_strided_slice %979 {offsets = [0, 256], sizes = [8, 128], strides = [1, 1]} : vector<8x512xf32> to vector<8x128xf32>
    %993 = math.tanh %992 : vector<8x128xf32>
    %994 = vector.extract_strided_slice %979 {offsets = [0, 384], sizes = [8, 128], strides = [1, 1]} : vector<8x512xf32> to vector<8x128xf32>
    %995 = arith.negf %994 : vector<8x128xf32>
    %996 = math.exp %995 : vector<8x128xf32>
    %cst_301 = arith.constant 1.000000e+00 : f32
    %997 = vector.broadcast %cst_301 : f32 to vector<8x128xf32>
    %998 = arith.addf %997, %996 : vector<8x128xf32>
    %999 = arith.divf %997, %998 : vector<8x128xf32>
    %1000 = arith.mulf %991, %967 : vector<8x128xf32>
    %1001 = arith.mulf %985, %993 : vector<8x128xf32>
    %1002 = arith.addf %1000, %1001 : vector<8x128xf32>
    %1003 = math.tanh %1002 : vector<8x128xf32>
    %1004 = arith.mulf %999, %1003 : vector<8x128xf32>
    %1005 = arith.index_cast %c2_i32_295 : i32 to index
    %c0_302 = arith.constant 0 : index
    %c0_303 = arith.constant 0 : index
    %1006 = vector.load %arg13[%1005, %c0_302, %c0_303] : memref<8x8x128xf32, #tpu.memory_space<vmem>>, vector<1x8x128xf32>
    %1007 = vector.shape_cast %1006 : vector<1x8x128xf32> to vector<8x128xf32>
    %1008 = vector.shape_cast %1004 : vector<8x128xf32> to vector<1x8x128xf32>
    tpu.vector_store %arg13[%1005, %c0_302, %c0_303], %1008 {strides = array<i32>} : memref<8x8x128xf32, #tpu.memory_space<vmem>>, vector<1x8x128xf32>,
    %c3_i32_304 = arith.constant 3 : i32
    %1009 = arith.index_cast %c3_i32_304 : i32 to index
    %c0_305 = arith.constant 0 : index
    %c0_306 = arith.constant 0 : index
    %1010 = vector.load %arg14[%1009, %c0_305, %c0_306] : memref<8x8x512xf32, #tpu.memory_space<vmem>>, vector<1x8x512xf32>
    %1011 = vector.shape_cast %1010 : vector<1x8x512xf32> to vector<8x512xf32>
    %1012 = arith.truncf %1004 : vector<8x128xf32> to vector<8x128xbf16>
    %cst_307 = arith.constant dense<0.000000e+00> : vector<8x512xf32>
    %1013 = tpu.matmul %1012, %889, %cst_307 {dimension_numbers = #tpu.dot_dimension_numbers<[1], [0], [0], [1], [0, 0, 1, 1], [], []>} : vector<8x128xbf16>, vector<128x512xbf16>, vector<8x512xf32> -> vector<8x512xf32>
    %1014 = arith.addf %1011, %1013 : vector<8x512xf32>
    %1015 = vector.extract_strided_slice %1014 {offsets = [0, 0], sizes = [8, 128], strides = [1, 1]} : vector<8x512xf32> to vector<8x128xf32>
    %1016 = arith.negf %1015 : vector<8x128xf32>
    %1017 = math.exp %1016 : vector<8x128xf32>
    %cst_308 = arith.constant 1.000000e+00 : f32
    %1018 = vector.broadcast %cst_308 : f32 to vector<8x128xf32>
    %1019 = arith.addf %1018, %1017 : vector<8x128xf32>
    %1020 = arith.divf %1018, %1019 : vector<8x128xf32>
    %1021 = vector.extract_strided_slice %1014 {offsets = [0, 128], sizes = [8, 128], strides = [1, 1]} : vector<8x512xf32> to vector<8x128xf32>
    %1022 = arith.negf %1021 : vector<8x128xf32>
    %1023 = math.exp %1022 : vector<8x128xf32>
    %cst_309 = arith.constant 1.000000e+00 : f32
    %1024 = vector.broadcast %cst_309 : f32 to vector<8x128xf32>
    %1025 = arith.addf %1024, %1023 : vector<8x128xf32>
    %1026 = arith.divf %1024, %1025 : vector<8x128xf32>
    %1027 = vector.extract_strided_slice %1014 {offsets = [0, 256], sizes = [8, 128], strides = [1, 1]} : vector<8x512xf32> to vector<8x128xf32>
    %1028 = math.tanh %1027 : vector<8x128xf32>
    %1029 = vector.extract_strided_slice %1014 {offsets = [0, 384], sizes = [8, 128], strides = [1, 1]} : vector<8x512xf32> to vector<8x128xf32>
    %1030 = arith.negf %1029 : vector<8x128xf32>
    %1031 = math.exp %1030 : vector<8x128xf32>
    %cst_310 = arith.constant 1.000000e+00 : f32
    %1032 = vector.broadcast %cst_310 : f32 to vector<8x128xf32>
    %1033 = arith.addf %1032, %1031 : vector<8x128xf32>
    %1034 = arith.divf %1032, %1033 : vector<8x128xf32>
    %1035 = arith.mulf %1026, %1002 : vector<8x128xf32>
    %1036 = arith.mulf %1020, %1028 : vector<8x128xf32>
    %1037 = arith.addf %1035, %1036 : vector<8x128xf32>
    %1038 = math.tanh %1037 : vector<8x128xf32>
    %1039 = arith.mulf %1034, %1038 : vector<8x128xf32>
    %1040 = arith.index_cast %c3_i32_304 : i32 to index
    %c0_311 = arith.constant 0 : index
    %c0_312 = arith.constant 0 : index
    %1041 = vector.load %arg13[%1040, %c0_311, %c0_312] : memref<8x8x128xf32, #tpu.memory_space<vmem>>, vector<1x8x128xf32>
    %1042 = vector.shape_cast %1041 : vector<1x8x128xf32> to vector<8x128xf32>
    %1043 = vector.shape_cast %1039 : vector<8x128xf32> to vector<1x8x128xf32>
    tpu.vector_store %arg13[%1040, %c0_311, %c0_312], %1043 {strides = array<i32>} : memref<8x8x128xf32, #tpu.memory_space<vmem>>, vector<1x8x128xf32>,
    %c4_i32_313 = arith.constant 4 : i32
    %1044 = arith.index_cast %c4_i32_313 : i32 to index
    %c0_314 = arith.constant 0 : index
    %c0_315 = arith.constant 0 : index
    %1045 = vector.load %arg14[%1044, %c0_314, %c0_315] : memref<8x8x512xf32, #tpu.memory_space<vmem>>, vector<1x8x512xf32>
    %1046 = vector.shape_cast %1045 : vector<1x8x512xf32> to vector<8x512xf32>
    %1047 = arith.truncf %1039 : vector<8x128xf32> to vector<8x128xbf16>
    %cst_316 = arith.constant dense<0.000000e+00> : vector<8x512xf32>
    %1048 = tpu.matmul %1047, %889, %cst_316 {dimension_numbers = #tpu.dot_dimension_numbers<[1], [0], [0], [1], [0, 0, 1, 1], [], []>} : vector<8x128xbf16>, vector<128x512xbf16>, vector<8x512xf32> -> vector<8x512xf32>
    %1049 = arith.addf %1046, %1048 : vector<8x512xf32>
    %1050 = vector.extract_strided_slice %1049 {offsets = [0, 0], sizes = [8, 128], strides = [1, 1]} : vector<8x512xf32> to vector<8x128xf32>
    %1051 = arith.negf %1050 : vector<8x128xf32>
    %1052 = math.exp %1051 : vector<8x128xf32>
    %cst_317 = arith.constant 1.000000e+00 : f32
    %1053 = vector.broadcast %cst_317 : f32 to vector<8x128xf32>
    %1054 = arith.addf %1053, %1052 : vector<8x128xf32>
    %1055 = arith.divf %1053, %1054 : vector<8x128xf32>
    %1056 = vector.extract_strided_slice %1049 {offsets = [0, 128], sizes = [8, 128], strides = [1, 1]} : vector<8x512xf32> to vector<8x128xf32>
    %1057 = arith.negf %1056 : vector<8x128xf32>
    %1058 = math.exp %1057 : vector<8x128xf32>
    %cst_318 = arith.constant 1.000000e+00 : f32
    %1059 = vector.broadcast %cst_318 : f32 to vector<8x128xf32>
    %1060 = arith.addf %1059, %1058 : vector<8x128xf32>
    %1061 = arith.divf %1059, %1060 : vector<8x128xf32>
    %1062 = vector.extract_strided_slice %1049 {offsets = [0, 256], sizes = [8, 128], strides = [1, 1]} : vector<8x512xf32> to vector<8x128xf32>
    %1063 = math.tanh %1062 : vector<8x128xf32>
    %1064 = vector.extract_strided_slice %1049 {offsets = [0, 384], sizes = [8, 128], strides = [1, 1]} : vector<8x512xf32> to vector<8x128xf32>
    %1065 = arith.negf %1064 : vector<8x128xf32>
    %1066 = math.exp %1065 : vector<8x128xf32>
    %cst_319 = arith.constant 1.000000e+00 : f32
    %1067 = vector.broadcast %cst_319 : f32 to vector<8x128xf32>
    %1068 = arith.addf %1067, %1066 : vector<8x128xf32>
    %1069 = arith.divf %1067, %1068 : vector<8x128xf32>
    %1070 = arith.mulf %1061, %1037 : vector<8x128xf32>
    %1071 = arith.mulf %1055, %1063 : vector<8x128xf32>
    %1072 = arith.addf %1070, %1071 : vector<8x128xf32>
    %1073 = math.tanh %1072 : vector<8x128xf32>
    %1074 = arith.mulf %1069, %1073 : vector<8x128xf32>
    %1075 = arith.index_cast %c4_i32_313 : i32 to index
    %c0_320 = arith.constant 0 : index
    %c0_321 = arith.constant 0 : index
    %1076 = vector.load %arg13[%1075, %c0_320, %c0_321] : memref<8x8x128xf32, #tpu.memory_space<vmem>>, vector<1x8x128xf32>
    %1077 = vector.shape_cast %1076 : vector<1x8x128xf32> to vector<8x128xf32>
    %1078 = vector.shape_cast %1074 : vector<8x128xf32> to vector<1x8x128xf32>
    tpu.vector_store %arg13[%1075, %c0_320, %c0_321], %1078 {strides = array<i32>} : memref<8x8x128xf32, #tpu.memory_space<vmem>>, vector<1x8x128xf32>,
    %c5_i32_322 = arith.constant 5 : i32
    %1079 = arith.index_cast %c5_i32_322 : i32 to index
    %c0_323 = arith.constant 0 : index
    %c0_324 = arith.constant 0 : index
    %1080 = vector.load %arg14[%1079, %c0_323, %c0_324] : memref<8x8x512xf32, #tpu.memory_space<vmem>>, vector<1x8x512xf32>
    %1081 = vector.shape_cast %1080 : vector<1x8x512xf32> to vector<8x512xf32>
    %1082 = arith.truncf %1074 : vector<8x128xf32> to vector<8x128xbf16>
    %cst_325 = arith.constant dense<0.000000e+00> : vector<8x512xf32>
    %1083 = tpu.matmul %1082, %889, %cst_325 {dimension_numbers = #tpu.dot_dimension_numbers<[1], [0], [0], [1], [0, 0, 1, 1], [], []>} : vector<8x128xbf16>, vector<128x512xbf16>, vector<8x512xf32> -> vector<8x512xf32>
    %1084 = arith.addf %1081, %1083 : vector<8x512xf32>
    %1085 = vector.extract_strided_slice %1084 {offsets = [0, 0], sizes = [8, 128], strides = [1, 1]} : vector<8x512xf32> to vector<8x128xf32>
    %1086 = arith.negf %1085 : vector<8x128xf32>
    %1087 = math.exp %1086 : vector<8x128xf32>
    %cst_326 = arith.constant 1.000000e+00 : f32
    %1088 = vector.broadcast %cst_326 : f32 to vector<8x128xf32>
    %1089 = arith.addf %1088, %1087 : vector<8x128xf32>
    %1090 = arith.divf %1088, %1089 : vector<8x128xf32>
    %1091 = vector.extract_strided_slice %1084 {offsets = [0, 128], sizes = [8, 128], strides = [1, 1]} : vector<8x512xf32> to vector<8x128xf32>
    %1092 = arith.negf %1091 : vector<8x128xf32>
    %1093 = math.exp %1092 : vector<8x128xf32>
    %cst_327 = arith.constant 1.000000e+00 : f32
    %1094 = vector.broadcast %cst_327 : f32 to vector<8x128xf32>
    %1095 = arith.addf %1094, %1093 : vector<8x128xf32>
    %1096 = arith.divf %1094, %1095 : vector<8x128xf32>
    %1097 = vector.extract_strided_slice %1084 {offsets = [0, 256], sizes = [8, 128], strides = [1, 1]} : vector<8x512xf32> to vector<8x128xf32>
    %1098 = math.tanh %1097 : vector<8x128xf32>
    %1099 = vector.extract_strided_slice %1084 {offsets = [0, 384], sizes = [8, 128], strides = [1, 1]} : vector<8x512xf32> to vector<8x128xf32>
    %1100 = arith.negf %1099 : vector<8x128xf32>
    %1101 = math.exp %1100 : vector<8x128xf32>
    %cst_328 = arith.constant 1.000000e+00 : f32
    %1102 = vector.broadcast %cst_328 : f32 to vector<8x128xf32>
    %1103 = arith.addf %1102, %1101 : vector<8x128xf32>
    %1104 = arith.divf %1102, %1103 : vector<8x128xf32>
    %1105 = arith.mulf %1096, %1072 : vector<8x128xf32>
    %1106 = arith.mulf %1090, %1098 : vector<8x128xf32>
    %1107 = arith.addf %1105, %1106 : vector<8x128xf32>
    %1108 = math.tanh %1107 : vector<8x128xf32>
    %1109 = arith.mulf %1104, %1108 : vector<8x128xf32>
    %1110 = arith.index_cast %c5_i32_322 : i32 to index
    %c0_329 = arith.constant 0 : index
    %c0_330 = arith.constant 0 : index
    %1111 = vector.load %arg13[%1110, %c0_329, %c0_330] : memref<8x8x128xf32, #tpu.memory_space<vmem>>, vector<1x8x128xf32>
    %1112 = vector.shape_cast %1111 : vector<1x8x128xf32> to vector<8x128xf32>
    %1113 = vector.shape_cast %1109 : vector<8x128xf32> to vector<1x8x128xf32>
    tpu.vector_store %arg13[%1110, %c0_329, %c0_330], %1113 {strides = array<i32>} : memref<8x8x128xf32, #tpu.memory_space<vmem>>, vector<1x8x128xf32>,
    %c6_i32_331 = arith.constant 6 : i32
    %1114 = arith.index_cast %c6_i32_331 : i32 to index
    %c0_332 = arith.constant 0 : index
    %c0_333 = arith.constant 0 : index
    %1115 = vector.load %arg14[%1114, %c0_332, %c0_333] : memref<8x8x512xf32, #tpu.memory_space<vmem>>, vector<1x8x512xf32>
    %1116 = vector.shape_cast %1115 : vector<1x8x512xf32> to vector<8x512xf32>
    %1117 = arith.truncf %1109 : vector<8x128xf32> to vector<8x128xbf16>
    %cst_334 = arith.constant dense<0.000000e+00> : vector<8x512xf32>
    %1118 = tpu.matmul %1117, %889, %cst_334 {dimension_numbers = #tpu.dot_dimension_numbers<[1], [0], [0], [1], [0, 0, 1, 1], [], []>} : vector<8x128xbf16>, vector<128x512xbf16>, vector<8x512xf32> -> vector<8x512xf32>
    %1119 = arith.addf %1116, %1118 : vector<8x512xf32>
    %1120 = vector.extract_strided_slice %1119 {offsets = [0, 0], sizes = [8, 128], strides = [1, 1]} : vector<8x512xf32> to vector<8x128xf32>
    %1121 = arith.negf %1120 : vector<8x128xf32>
    %1122 = math.exp %1121 : vector<8x128xf32>
    %cst_335 = arith.constant 1.000000e+00 : f32
    %1123 = vector.broadcast %cst_335 : f32 to vector<8x128xf32>
    %1124 = arith.addf %1123, %1122 : vector<8x128xf32>
    %1125 = arith.divf %1123, %1124 : vector<8x128xf32>
    %1126 = vector.extract_strided_slice %1119 {offsets = [0, 128], sizes = [8, 128], strides = [1, 1]} : vector<8x512xf32> to vector<8x128xf32>
    %1127 = arith.negf %1126 : vector<8x128xf32>
    %1128 = math.exp %1127 : vector<8x128xf32>
    %cst_336 = arith.constant 1.000000e+00 : f32
    %1129 = vector.broadcast %cst_336 : f32 to vector<8x128xf32>
    %1130 = arith.addf %1129, %1128 : vector<8x128xf32>
    %1131 = arith.divf %1129, %1130 : vector<8x128xf32>
    %1132 = vector.extract_strided_slice %1119 {offsets = [0, 256], sizes = [8, 128], strides = [1, 1]} : vector<8x512xf32> to vector<8x128xf32>
    %1133 = math.tanh %1132 : vector<8x128xf32>
    %1134 = vector.extract_strided_slice %1119 {offsets = [0, 384], sizes = [8, 128], strides = [1, 1]} : vector<8x512xf32> to vector<8x128xf32>
    %1135 = arith.negf %1134 : vector<8x128xf32>
    %1136 = math.exp %1135 : vector<8x128xf32>
    %cst_337 = arith.constant 1.000000e+00 : f32
    %1137 = vector.broadcast %cst_337 : f32 to vector<8x128xf32>
    %1138 = arith.addf %1137, %1136 : vector<8x128xf32>
    %1139 = arith.divf %1137, %1138 : vector<8x128xf32>
    %1140 = arith.mulf %1131, %1107 : vector<8x128xf32>
    %1141 = arith.mulf %1125, %1133 : vector<8x128xf32>
    %1142 = arith.addf %1140, %1141 : vector<8x128xf32>
    %1143 = math.tanh %1142 : vector<8x128xf32>
    %1144 = arith.mulf %1139, %1143 : vector<8x128xf32>
    %1145 = arith.index_cast %c6_i32_331 : i32 to index
    %c0_338 = arith.constant 0 : index
    %c0_339 = arith.constant 0 : index
    %1146 = vector.load %arg13[%1145, %c0_338, %c0_339] : memref<8x8x128xf32, #tpu.memory_space<vmem>>, vector<1x8x128xf32>
    %1147 = vector.shape_cast %1146 : vector<1x8x128xf32> to vector<8x128xf32>
    %1148 = vector.shape_cast %1144 : vector<8x128xf32> to vector<1x8x128xf32>
    tpu.vector_store %arg13[%1145, %c0_338, %c0_339], %1148 {strides = array<i32>} : memref<8x8x128xf32, #tpu.memory_space<vmem>>, vector<1x8x128xf32>,
    %c7_i32_340 = arith.constant 7 : i32
    %1149 = arith.index_cast %c7_i32_340 : i32 to index
    %c0_341 = arith.constant 0 : index
    %c0_342 = arith.constant 0 : index
    %1150 = vector.load %arg14[%1149, %c0_341, %c0_342] : memref<8x8x512xf32, #tpu.memory_space<vmem>>, vector<1x8x512xf32>
    %1151 = vector.shape_cast %1150 : vector<1x8x512xf32> to vector<8x512xf32>
    %1152 = arith.truncf %1144 : vector<8x128xf32> to vector<8x128xbf16>
    %cst_343 = arith.constant dense<0.000000e+00> : vector<8x512xf32>
    %1153 = tpu.matmul %1152, %889, %cst_343 {dimension_numbers = #tpu.dot_dimension_numbers<[1], [0], [0], [1], [0, 0, 1, 1], [], []>} : vector<8x128xbf16>, vector<128x512xbf16>, vector<8x512xf32> -> vector<8x512xf32>
    %1154 = arith.addf %1151, %1153 : vector<8x512xf32>
    %1155 = vector.extract_strided_slice %1154 {offsets = [0, 0], sizes = [8, 128], strides = [1, 1]} : vector<8x512xf32> to vector<8x128xf32>
    %1156 = arith.negf %1155 : vector<8x128xf32>
    %1157 = math.exp %1156 : vector<8x128xf32>
    %cst_344 = arith.constant 1.000000e+00 : f32
    %1158 = vector.broadcast %cst_344 : f32 to vector<8x128xf32>
    %1159 = arith.addf %1158, %1157 : vector<8x128xf32>
    %1160 = arith.divf %1158, %1159 : vector<8x128xf32>
    %1161 = vector.extract_strided_slice %1154 {offsets = [0, 128], sizes = [8, 128], strides = [1, 1]} : vector<8x512xf32> to vector<8x128xf32>
    %1162 = arith.negf %1161 : vector<8x128xf32>
    %1163 = math.exp %1162 : vector<8x128xf32>
    %cst_345 = arith.constant 1.000000e+00 : f32
    %1164 = vector.broadcast %cst_345 : f32 to vector<8x128xf32>
    %1165 = arith.addf %1164, %1163 : vector<8x128xf32>
    %1166 = arith.divf %1164, %1165 : vector<8x128xf32>
    %1167 = vector.extract_strided_slice %1154 {offsets = [0, 256], sizes = [8, 128], strides = [1, 1]} : vector<8x512xf32> to vector<8x128xf32>
    %1168 = math.tanh %1167 : vector<8x128xf32>
    %1169 = vector.extract_strided_slice %1154 {offsets = [0, 384], sizes = [8, 128], strides = [1, 1]} : vector<8x512xf32> to vector<8x128xf32>
    %1170 = arith.negf %1169 : vector<8x128xf32>
    %1171 = math.exp %1170 : vector<8x128xf32>
    %cst_346 = arith.constant 1.000000e+00 : f32
    %1172 = vector.broadcast %cst_346 : f32 to vector<8x128xf32>
    %1173 = arith.addf %1172, %1171 : vector<8x128xf32>
    %1174 = arith.divf %1172, %1173 : vector<8x128xf32>
    %1175 = arith.mulf %1166, %1142 : vector<8x128xf32>
    %1176 = arith.mulf %1160, %1168 : vector<8x128xf32>
    %1177 = arith.addf %1175, %1176 : vector<8x128xf32>
    %1178 = math.tanh %1177 : vector<8x128xf32>
    %1179 = arith.mulf %1174, %1178 : vector<8x128xf32>
    %1180 = arith.index_cast %c7_i32_340 : i32 to index
    %c0_347 = arith.constant 0 : index
    %c0_348 = arith.constant 0 : index
    %1181 = vector.load %arg13[%1180, %c0_347, %c0_348] : memref<8x8x128xf32, #tpu.memory_space<vmem>>, vector<1x8x128xf32>
    %1182 = vector.shape_cast %1181 : vector<1x8x128xf32> to vector<8x128xf32>
    %1183 = vector.shape_cast %1179 : vector<8x128xf32> to vector<1x8x128xf32>
    tpu.vector_store %arg13[%1180, %c0_347, %c0_348], %1183 {strides = array<i32>} : memref<8x8x128xf32, #tpu.memory_space<vmem>>, vector<1x8x128xf32>,
    %c8_i32_349 = arith.constant 8 : i32
    %c4 = arith.constant 4 : index
    %c0_350 = arith.constant 0 : index
    %c0_351 = arith.constant 0 : index
    %1184 = vector.load %arg2[%c4, %c0_350, %c0_351] : memref<5x128x512xbf16, #tpu.memory_space<vmem>>, vector<1x128x512xbf16>
    %1185 = vector.shape_cast %1184 : vector<1x128x512xbf16> to vector<128x512xbf16>
    %c0_352 = arith.constant 0 : index
    %c0_353 = arith.constant 0 : index
    %c0_354 = arith.constant 0 : index
    %1186 = vector.load %arg13[%c0_352, %c0_353, %c0_354] : memref<8x8x128xf32, #tpu.memory_space<vmem>>, vector<8x8x128xf32>
    %1187 = vector.shape_cast %1186 : vector<8x8x128xf32> to vector<64x128xf32>
    %1188 = arith.truncf %1187 : vector<64x128xf32> to vector<64x128xbf16>
    %c4_355 = arith.constant 4 : index
    %c0_356 = arith.constant 0 : index
    %c0_357 = arith.constant 0 : index
    %1189 = vector.load %arg1[%c4_355, %c0_356, %c0_357] : memref<5x128x512xbf16, #tpu.memory_space<vmem>>, vector<1x128x512xbf16>
    %1190 = vector.shape_cast %1189 : vector<1x128x512xbf16> to vector<128x512xbf16>
    %cst_358 = arith.constant dense<0.000000e+00> : vector<64x512xf32>
    %1191 = tpu.matmul %1188, %1190, %cst_358 {dimension_numbers = #tpu.dot_dimension_numbers<[1], [0], [0], [1], [0, 0, 1, 1], [], []>} : vector<64x128xbf16>, vector<128x512xbf16>, vector<64x512xf32> -> vector<64x512xf32>
    %c4_359 = arith.constant 4 : index
    %c0_360 = arith.constant 0 : index
    %c0_361 = arith.constant 0 : index
    %1192 = vector.load %arg3[%c4_359, %c0_360, %c0_361] : memref<5x1x512xf32, #tpu.memory_space<vmem>>, vector<1x1x512xf32>
    %1193 = vector.shape_cast %1192 : vector<1x1x512xf32> to vector<1x512xf32>
    %1194 = vector.broadcast %1193 : vector<1x512xf32> to vector<64x512xf32>
    %1195 = arith.addf %1191, %1194 : vector<64x512xf32>
    %1196 = vector.shape_cast %1195 : vector<64x512xf32> to vector<8x8x512xf32>
    %c0_362 = arith.constant 0 : index
    %c0_363 = arith.constant 0 : index
    %c0_364 = arith.constant 0 : index
    %1197 = vector.load %arg14[%c0_362, %c0_363, %c0_364] : memref<8x8x512xf32, #tpu.memory_space<vmem>>, vector<8x8x512xf32>
    tpu.vector_store %arg14[%c0_362, %c0_363, %c0_364], %1196 {strides = array<i32>} : memref<8x8x512xf32, #tpu.memory_space<vmem>>, vector<8x8x512xf32>,
    %cst_365 = arith.constant 0.000000e+00 : f32
    %1198 = vector.broadcast %cst_365 : f32 to vector<8x128xf32>
    %cst_366 = arith.constant 0.000000e+00 : f32
    %1199 = vector.broadcast %cst_366 : f32 to vector<8x128xf32>
    %c0_i32_367 = arith.constant 0 : i32
    %1200 = arith.index_cast %c0_i32_367 : i32 to index
    %c0_368 = arith.constant 0 : index
    %c0_369 = arith.constant 0 : index
    %1201 = vector.load %arg14[%1200, %c0_368, %c0_369] : memref<8x8x512xf32, #tpu.memory_space<vmem>>, vector<1x8x512xf32>
    %1202 = vector.shape_cast %1201 : vector<1x8x512xf32> to vector<8x512xf32>
    %1203 = arith.truncf %1198 : vector<8x128xf32> to vector<8x128xbf16>
    %cst_370 = arith.constant dense<0.000000e+00> : vector<8x512xf32>
    %1204 = tpu.matmul %1203, %1185, %cst_370 {dimension_numbers = #tpu.dot_dimension_numbers<[1], [0], [0], [1], [0, 0, 1, 1], [], []>} : vector<8x128xbf16>, vector<128x512xbf16>, vector<8x512xf32> -> vector<8x512xf32>
    %1205 = arith.addf %1202, %1204 : vector<8x512xf32>
    %1206 = vector.extract_strided_slice %1205 {offsets = [0, 0], sizes = [8, 128], strides = [1, 1]} : vector<8x512xf32> to vector<8x128xf32>
    %1207 = arith.negf %1206 : vector<8x128xf32>
    %1208 = math.exp %1207 : vector<8x128xf32>
    %cst_371 = arith.constant 1.000000e+00 : f32
    %1209 = vector.broadcast %cst_371 : f32 to vector<8x128xf32>
    %1210 = arith.addf %1209, %1208 : vector<8x128xf32>
    %1211 = arith.divf %1209, %1210 : vector<8x128xf32>
    %1212 = vector.extract_strided_slice %1205 {offsets = [0, 128], sizes = [8, 128], strides = [1, 1]} : vector<8x512xf32> to vector<8x128xf32>
    %1213 = arith.negf %1212 : vector<8x128xf32>
    %1214 = math.exp %1213 : vector<8x128xf32>
    %cst_372 = arith.constant 1.000000e+00 : f32
    %1215 = vector.broadcast %cst_372 : f32 to vector<8x128xf32>
    %1216 = arith.addf %1215, %1214 : vector<8x128xf32>
    %1217 = arith.divf %1215, %1216 : vector<8x128xf32>
    %1218 = vector.extract_strided_slice %1205 {offsets = [0, 256], sizes = [8, 128], strides = [1, 1]} : vector<8x512xf32> to vector<8x128xf32>
    %1219 = math.tanh %1218 : vector<8x128xf32>
    %1220 = vector.extract_strided_slice %1205 {offsets = [0, 384], sizes = [8, 128], strides = [1, 1]} : vector<8x512xf32> to vector<8x128xf32>
    %1221 = arith.negf %1220 : vector<8x128xf32>
    %1222 = math.exp %1221 : vector<8x128xf32>
    %cst_373 = arith.constant 1.000000e+00 : f32
    %1223 = vector.broadcast %cst_373 : f32 to vector<8x128xf32>
    %1224 = arith.addf %1223, %1222 : vector<8x128xf32>
    %1225 = arith.divf %1223, %1224 : vector<8x128xf32>
    %1226 = arith.mulf %1217, %1199 : vector<8x128xf32>
    %1227 = arith.mulf %1211, %1219 : vector<8x128xf32>
    %1228 = arith.addf %1226, %1227 : vector<8x128xf32>
    %1229 = math.tanh %1228 : vector<8x128xf32>
    %1230 = arith.mulf %1225, %1229 : vector<8x128xf32>
    %c1_i32_374 = arith.constant 1 : i32
    %1231 = arith.index_cast %c1_i32_374 : i32 to index
    %c0_375 = arith.constant 0 : index
    %c0_376 = arith.constant 0 : index
    %1232 = vector.load %arg14[%1231, %c0_375, %c0_376] : memref<8x8x512xf32, #tpu.memory_space<vmem>>, vector<1x8x512xf32>
    %1233 = vector.shape_cast %1232 : vector<1x8x512xf32> to vector<8x512xf32>
    %1234 = arith.truncf %1230 : vector<8x128xf32> to vector<8x128xbf16>
    %cst_377 = arith.constant dense<0.000000e+00> : vector<8x512xf32>
    %1235 = tpu.matmul %1234, %1185, %cst_377 {dimension_numbers = #tpu.dot_dimension_numbers<[1], [0], [0], [1], [0, 0, 1, 1], [], []>} : vector<8x128xbf16>, vector<128x512xbf16>, vector<8x512xf32> -> vector<8x512xf32>
    %1236 = arith.addf %1233, %1235 : vector<8x512xf32>
    %1237 = vector.extract_strided_slice %1236 {offsets = [0, 0], sizes = [8, 128], strides = [1, 1]} : vector<8x512xf32> to vector<8x128xf32>
    %1238 = arith.negf %1237 : vector<8x128xf32>
    %1239 = math.exp %1238 : vector<8x128xf32>
    %cst_378 = arith.constant 1.000000e+00 : f32
    %1240 = vector.broadcast %cst_378 : f32 to vector<8x128xf32>
    %1241 = arith.addf %1240, %1239 : vector<8x128xf32>
    %1242 = arith.divf %1240, %1241 : vector<8x128xf32>
    %1243 = vector.extract_strided_slice %1236 {offsets = [0, 128], sizes = [8, 128], strides = [1, 1]} : vector<8x512xf32> to vector<8x128xf32>
    %1244 = arith.negf %1243 : vector<8x128xf32>
    %1245 = math.exp %1244 : vector<8x128xf32>
    %cst_379 = arith.constant 1.000000e+00 : f32
    %1246 = vector.broadcast %cst_379 : f32 to vector<8x128xf32>
    %1247 = arith.addf %1246, %1245 : vector<8x128xf32>
    %1248 = arith.divf %1246, %1247 : vector<8x128xf32>
    %1249 = vector.extract_strided_slice %1236 {offsets = [0, 256], sizes = [8, 128], strides = [1, 1]} : vector<8x512xf32> to vector<8x128xf32>
    %1250 = math.tanh %1249 : vector<8x128xf32>
    %1251 = vector.extract_strided_slice %1236 {offsets = [0, 384], sizes = [8, 128], strides = [1, 1]} : vector<8x512xf32> to vector<8x128xf32>
    %1252 = arith.negf %1251 : vector<8x128xf32>
    %1253 = math.exp %1252 : vector<8x128xf32>
    %cst_380 = arith.constant 1.000000e+00 : f32
    %1254 = vector.broadcast %cst_380 : f32 to vector<8x128xf32>
    %1255 = arith.addf %1254, %1253 : vector<8x128xf32>
    %1256 = arith.divf %1254, %1255 : vector<8x128xf32>
    %1257 = arith.mulf %1248, %1228 : vector<8x128xf32>
    %1258 = arith.mulf %1242, %1250 : vector<8x128xf32>
    %1259 = arith.addf %1257, %1258 : vector<8x128xf32>
    %1260 = math.tanh %1259 : vector<8x128xf32>
    %1261 = arith.mulf %1256, %1260 : vector<8x128xf32>
    %c2_i32_381 = arith.constant 2 : i32
    %1262 = arith.index_cast %c2_i32_381 : i32 to index
    %c0_382 = arith.constant 0 : index
    %c0_383 = arith.constant 0 : index
    %1263 = vector.load %arg14[%1262, %c0_382, %c0_383] : memref<8x8x512xf32, #tpu.memory_space<vmem>>, vector<1x8x512xf32>
    %1264 = vector.shape_cast %1263 : vector<1x8x512xf32> to vector<8x512xf32>
    %1265 = arith.truncf %1261 : vector<8x128xf32> to vector<8x128xbf16>
    %cst_384 = arith.constant dense<0.000000e+00> : vector<8x512xf32>
    %1266 = tpu.matmul %1265, %1185, %cst_384 {dimension_numbers = #tpu.dot_dimension_numbers<[1], [0], [0], [1], [0, 0, 1, 1], [], []>} : vector<8x128xbf16>, vector<128x512xbf16>, vector<8x512xf32> -> vector<8x512xf32>
    %1267 = arith.addf %1264, %1266 : vector<8x512xf32>
    %1268 = vector.extract_strided_slice %1267 {offsets = [0, 0], sizes = [8, 128], strides = [1, 1]} : vector<8x512xf32> to vector<8x128xf32>
    %1269 = arith.negf %1268 : vector<8x128xf32>
    %1270 = math.exp %1269 : vector<8x128xf32>
    %cst_385 = arith.constant 1.000000e+00 : f32
    %1271 = vector.broadcast %cst_385 : f32 to vector<8x128xf32>
    %1272 = arith.addf %1271, %1270 : vector<8x128xf32>
    %1273 = arith.divf %1271, %1272 : vector<8x128xf32>
    %1274 = vector.extract_strided_slice %1267 {offsets = [0, 128], sizes = [8, 128], strides = [1, 1]} : vector<8x512xf32> to vector<8x128xf32>
    %1275 = arith.negf %1274 : vector<8x128xf32>
    %1276 = math.exp %1275 : vector<8x128xf32>
    %cst_386 = arith.constant 1.000000e+00 : f32
    %1277 = vector.broadcast %cst_386 : f32 to vector<8x128xf32>
    %1278 = arith.addf %1277, %1276 : vector<8x128xf32>
    %1279 = arith.divf %1277, %1278 : vector<8x128xf32>
    %1280 = vector.extract_strided_slice %1267 {offsets = [0, 256], sizes = [8, 128], strides = [1, 1]} : vector<8x512xf32> to vector<8x128xf32>
    %1281 = math.tanh %1280 : vector<8x128xf32>
    %1282 = vector.extract_strided_slice %1267 {offsets = [0, 384], sizes = [8, 128], strides = [1, 1]} : vector<8x512xf32> to vector<8x128xf32>
    %1283 = arith.negf %1282 : vector<8x128xf32>
    %1284 = math.exp %1283 : vector<8x128xf32>
    %cst_387 = arith.constant 1.000000e+00 : f32
    %1285 = vector.broadcast %cst_387 : f32 to vector<8x128xf32>
    %1286 = arith.addf %1285, %1284 : vector<8x128xf32>
    %1287 = arith.divf %1285, %1286 : vector<8x128xf32>
    %1288 = arith.mulf %1279, %1259 : vector<8x128xf32>
    %1289 = arith.mulf %1273, %1281 : vector<8x128xf32>
    %1290 = arith.addf %1288, %1289 : vector<8x128xf32>
    %1291 = math.tanh %1290 : vector<8x128xf32>
    %1292 = arith.mulf %1287, %1291 : vector<8x128xf32>
    %c3_i32_388 = arith.constant 3 : i32
    %1293 = arith.index_cast %c3_i32_388 : i32 to index
    %c0_389 = arith.constant 0 : index
    %c0_390 = arith.constant 0 : index
    %1294 = vector.load %arg14[%1293, %c0_389, %c0_390] : memref<8x8x512xf32, #tpu.memory_space<vmem>>, vector<1x8x512xf32>
    %1295 = vector.shape_cast %1294 : vector<1x8x512xf32> to vector<8x512xf32>
    %1296 = arith.truncf %1292 : vector<8x128xf32> to vector<8x128xbf16>
    %cst_391 = arith.constant dense<0.000000e+00> : vector<8x512xf32>
    %1297 = tpu.matmul %1296, %1185, %cst_391 {dimension_numbers = #tpu.dot_dimension_numbers<[1], [0], [0], [1], [0, 0, 1, 1], [], []>} : vector<8x128xbf16>, vector<128x512xbf16>, vector<8x512xf32> -> vector<8x512xf32>
    %1298 = arith.addf %1295, %1297 : vector<8x512xf32>
    %1299 = vector.extract_strided_slice %1298 {offsets = [0, 0], sizes = [8, 128], strides = [1, 1]} : vector<8x512xf32> to vector<8x128xf32>
    %1300 = arith.negf %1299 : vector<8x128xf32>
    %1301 = math.exp %1300 : vector<8x128xf32>
    %cst_392 = arith.constant 1.000000e+00 : f32
    %1302 = vector.broadcast %cst_392 : f32 to vector<8x128xf32>
    %1303 = arith.addf %1302, %1301 : vector<8x128xf32>
    %1304 = arith.divf %1302, %1303 : vector<8x128xf32>
    %1305 = vector.extract_strided_slice %1298 {offsets = [0, 128], sizes = [8, 128], strides = [1, 1]} : vector<8x512xf32> to vector<8x128xf32>
    %1306 = arith.negf %1305 : vector<8x128xf32>
    %1307 = math.exp %1306 : vector<8x128xf32>
    %cst_393 = arith.constant 1.000000e+00 : f32
    %1308 = vector.broadcast %cst_393 : f32 to vector<8x128xf32>
    %1309 = arith.addf %1308, %1307 : vector<8x128xf32>
    %1310 = arith.divf %1308, %1309 : vector<8x128xf32>
    %1311 = vector.extract_strided_slice %1298 {offsets = [0, 256], sizes = [8, 128], strides = [1, 1]} : vector<8x512xf32> to vector<8x128xf32>
    %1312 = math.tanh %1311 : vector<8x128xf32>
    %1313 = vector.extract_strided_slice %1298 {offsets = [0, 384], sizes = [8, 128], strides = [1, 1]} : vector<8x512xf32> to vector<8x128xf32>
    %1314 = arith.negf %1313 : vector<8x128xf32>
    %1315 = math.exp %1314 : vector<8x128xf32>
    %cst_394 = arith.constant 1.000000e+00 : f32
    %1316 = vector.broadcast %cst_394 : f32 to vector<8x128xf32>
    %1317 = arith.addf %1316, %1315 : vector<8x128xf32>
    %1318 = arith.divf %1316, %1317 : vector<8x128xf32>
    %1319 = arith.mulf %1310, %1290 : vector<8x128xf32>
    %1320 = arith.mulf %1304, %1312 : vector<8x128xf32>
    %1321 = arith.addf %1319, %1320 : vector<8x128xf32>
    %1322 = math.tanh %1321 : vector<8x128xf32>
    %1323 = arith.mulf %1318, %1322 : vector<8x128xf32>
    %c4_i32_395 = arith.constant 4 : i32
    %1324 = arith.index_cast %c4_i32_395 : i32 to index
    %c0_396 = arith.constant 0 : index
    %c0_397 = arith.constant 0 : index
    %1325 = vector.load %arg14[%1324, %c0_396, %c0_397] : memref<8x8x512xf32, #tpu.memory_space<vmem>>, vector<1x8x512xf32>
    %1326 = vector.shape_cast %1325 : vector<1x8x512xf32> to vector<8x512xf32>
    %1327 = arith.truncf %1323 : vector<8x128xf32> to vector<8x128xbf16>
    %cst_398 = arith.constant dense<0.000000e+00> : vector<8x512xf32>
    %1328 = tpu.matmul %1327, %1185, %cst_398 {dimension_numbers = #tpu.dot_dimension_numbers<[1], [0], [0], [1], [0, 0, 1, 1], [], []>} : vector<8x128xbf16>, vector<128x512xbf16>, vector<8x512xf32> -> vector<8x512xf32>
    %1329 = arith.addf %1326, %1328 : vector<8x512xf32>
    %1330 = vector.extract_strided_slice %1329 {offsets = [0, 0], sizes = [8, 128], strides = [1, 1]} : vector<8x512xf32> to vector<8x128xf32>
    %1331 = arith.negf %1330 : vector<8x128xf32>
    %1332 = math.exp %1331 : vector<8x128xf32>
    %cst_399 = arith.constant 1.000000e+00 : f32
    %1333 = vector.broadcast %cst_399 : f32 to vector<8x128xf32>
    %1334 = arith.addf %1333, %1332 : vector<8x128xf32>
    %1335 = arith.divf %1333, %1334 : vector<8x128xf32>
    %1336 = vector.extract_strided_slice %1329 {offsets = [0, 128], sizes = [8, 128], strides = [1, 1]} : vector<8x512xf32> to vector<8x128xf32>
    %1337 = arith.negf %1336 : vector<8x128xf32>
    %1338 = math.exp %1337 : vector<8x128xf32>
    %cst_400 = arith.constant 1.000000e+00 : f32
    %1339 = vector.broadcast %cst_400 : f32 to vector<8x128xf32>
    %1340 = arith.addf %1339, %1338 : vector<8x128xf32>
    %1341 = arith.divf %1339, %1340 : vector<8x128xf32>
    %1342 = vector.extract_strided_slice %1329 {offsets = [0, 256], sizes = [8, 128], strides = [1, 1]} : vector<8x512xf32> to vector<8x128xf32>
    %1343 = math.tanh %1342 : vector<8x128xf32>
    %1344 = vector.extract_strided_slice %1329 {offsets = [0, 384], sizes = [8, 128], strides = [1, 1]} : vector<8x512xf32> to vector<8x128xf32>
    %1345 = arith.negf %1344 : vector<8x128xf32>
    %1346 = math.exp %1345 : vector<8x128xf32>
    %cst_401 = arith.constant 1.000000e+00 : f32
    %1347 = vector.broadcast %cst_401 : f32 to vector<8x128xf32>
    %1348 = arith.addf %1347, %1346 : vector<8x128xf32>
    %1349 = arith.divf %1347, %1348 : vector<8x128xf32>
    %1350 = arith.mulf %1341, %1321 : vector<8x128xf32>
    %1351 = arith.mulf %1335, %1343 : vector<8x128xf32>
    %1352 = arith.addf %1350, %1351 : vector<8x128xf32>
    %1353 = math.tanh %1352 : vector<8x128xf32>
    %1354 = arith.mulf %1349, %1353 : vector<8x128xf32>
    %c5_i32_402 = arith.constant 5 : i32
    %1355 = arith.index_cast %c5_i32_402 : i32 to index
    %c0_403 = arith.constant 0 : index
    %c0_404 = arith.constant 0 : index
    %1356 = vector.load %arg14[%1355, %c0_403, %c0_404] : memref<8x8x512xf32, #tpu.memory_space<vmem>>, vector<1x8x512xf32>
    %1357 = vector.shape_cast %1356 : vector<1x8x512xf32> to vector<8x512xf32>
    %1358 = arith.truncf %1354 : vector<8x128xf32> to vector<8x128xbf16>
    %cst_405 = arith.constant dense<0.000000e+00> : vector<8x512xf32>
    %1359 = tpu.matmul %1358, %1185, %cst_405 {dimension_numbers = #tpu.dot_dimension_numbers<[1], [0], [0], [1], [0, 0, 1, 1], [], []>} : vector<8x128xbf16>, vector<128x512xbf16>, vector<8x512xf32> -> vector<8x512xf32>
    %1360 = arith.addf %1357, %1359 : vector<8x512xf32>
    %1361 = vector.extract_strided_slice %1360 {offsets = [0, 0], sizes = [8, 128], strides = [1, 1]} : vector<8x512xf32> to vector<8x128xf32>
    %1362 = arith.negf %1361 : vector<8x128xf32>
    %1363 = math.exp %1362 : vector<8x128xf32>
    %cst_406 = arith.constant 1.000000e+00 : f32
    %1364 = vector.broadcast %cst_406 : f32 to vector<8x128xf32>
    %1365 = arith.addf %1364, %1363 : vector<8x128xf32>
    %1366 = arith.divf %1364, %1365 : vector<8x128xf32>
    %1367 = vector.extract_strided_slice %1360 {offsets = [0, 128], sizes = [8, 128], strides = [1, 1]} : vector<8x512xf32> to vector<8x128xf32>
    %1368 = arith.negf %1367 : vector<8x128xf32>
    %1369 = math.exp %1368 : vector<8x128xf32>
    %cst_407 = arith.constant 1.000000e+00 : f32
    %1370 = vector.broadcast %cst_407 : f32 to vector<8x128xf32>
    %1371 = arith.addf %1370, %1369 : vector<8x128xf32>
    %1372 = arith.divf %1370, %1371 : vector<8x128xf32>
    %1373 = vector.extract_strided_slice %1360 {offsets = [0, 256], sizes = [8, 128], strides = [1, 1]} : vector<8x512xf32> to vector<8x128xf32>
    %1374 = math.tanh %1373 : vector<8x128xf32>
    %1375 = vector.extract_strided_slice %1360 {offsets = [0, 384], sizes = [8, 128], strides = [1, 1]} : vector<8x512xf32> to vector<8x128xf32>
    %1376 = arith.negf %1375 : vector<8x128xf32>
    %1377 = math.exp %1376 : vector<8x128xf32>
    %cst_408 = arith.constant 1.000000e+00 : f32
    %1378 = vector.broadcast %cst_408 : f32 to vector<8x128xf32>
    %1379 = arith.addf %1378, %1377 : vector<8x128xf32>
    %1380 = arith.divf %1378, %1379 : vector<8x128xf32>
    %1381 = arith.mulf %1372, %1352 : vector<8x128xf32>
    %1382 = arith.mulf %1366, %1374 : vector<8x128xf32>
    %1383 = arith.addf %1381, %1382 : vector<8x128xf32>
    %1384 = math.tanh %1383 : vector<8x128xf32>
    %1385 = arith.mulf %1380, %1384 : vector<8x128xf32>
    %c6_i32_409 = arith.constant 6 : i32
    %1386 = arith.index_cast %c6_i32_409 : i32 to index
    %c0_410 = arith.constant 0 : index
    %c0_411 = arith.constant 0 : index
    %1387 = vector.load %arg14[%1386, %c0_410, %c0_411] : memref<8x8x512xf32, #tpu.memory_space<vmem>>, vector<1x8x512xf32>
    %1388 = vector.shape_cast %1387 : vector<1x8x512xf32> to vector<8x512xf32>
    %1389 = arith.truncf %1385 : vector<8x128xf32> to vector<8x128xbf16>
    %cst_412 = arith.constant dense<0.000000e+00> : vector<8x512xf32>
    %1390 = tpu.matmul %1389, %1185, %cst_412 {dimension_numbers = #tpu.dot_dimension_numbers<[1], [0], [0], [1], [0, 0, 1, 1], [], []>} : vector<8x128xbf16>, vector<128x512xbf16>, vector<8x512xf32> -> vector<8x512xf32>
    %1391 = arith.addf %1388, %1390 : vector<8x512xf32>
    %1392 = vector.extract_strided_slice %1391 {offsets = [0, 0], sizes = [8, 128], strides = [1, 1]} : vector<8x512xf32> to vector<8x128xf32>
    %1393 = arith.negf %1392 : vector<8x128xf32>
    %1394 = math.exp %1393 : vector<8x128xf32>
    %cst_413 = arith.constant 1.000000e+00 : f32
    %1395 = vector.broadcast %cst_413 : f32 to vector<8x128xf32>
    %1396 = arith.addf %1395, %1394 : vector<8x128xf32>
    %1397 = arith.divf %1395, %1396 : vector<8x128xf32>
    %1398 = vector.extract_strided_slice %1391 {offsets = [0, 128], sizes = [8, 128], strides = [1, 1]} : vector<8x512xf32> to vector<8x128xf32>
    %1399 = arith.negf %1398 : vector<8x128xf32>
    %1400 = math.exp %1399 : vector<8x128xf32>
    %cst_414 = arith.constant 1.000000e+00 : f32
    %1401 = vector.broadcast %cst_414 : f32 to vector<8x128xf32>
    %1402 = arith.addf %1401, %1400 : vector<8x128xf32>
    %1403 = arith.divf %1401, %1402 : vector<8x128xf32>
    %1404 = vector.extract_strided_slice %1391 {offsets = [0, 256], sizes = [8, 128], strides = [1, 1]} : vector<8x512xf32> to vector<8x128xf32>
    %1405 = math.tanh %1404 : vector<8x128xf32>
    %1406 = vector.extract_strided_slice %1391 {offsets = [0, 384], sizes = [8, 128], strides = [1, 1]} : vector<8x512xf32> to vector<8x128xf32>
    %1407 = arith.negf %1406 : vector<8x128xf32>
    %1408 = math.exp %1407 : vector<8x128xf32>
    %cst_415 = arith.constant 1.000000e+00 : f32
    %1409 = vector.broadcast %cst_415 : f32 to vector<8x128xf32>
    %1410 = arith.addf %1409, %1408 : vector<8x128xf32>
    %1411 = arith.divf %1409, %1410 : vector<8x128xf32>
    %1412 = arith.mulf %1403, %1383 : vector<8x128xf32>
    %1413 = arith.mulf %1397, %1405 : vector<8x128xf32>
    %1414 = arith.addf %1412, %1413 : vector<8x128xf32>
    %1415 = math.tanh %1414 : vector<8x128xf32>
    %1416 = arith.mulf %1411, %1415 : vector<8x128xf32>
    %c7_i32_416 = arith.constant 7 : i32
    %1417 = arith.index_cast %c7_i32_416 : i32 to index
    %c0_417 = arith.constant 0 : index
    %c0_418 = arith.constant 0 : index
    %1418 = vector.load %arg14[%1417, %c0_417, %c0_418] : memref<8x8x512xf32, #tpu.memory_space<vmem>>, vector<1x8x512xf32>
    %1419 = vector.shape_cast %1418 : vector<1x8x512xf32> to vector<8x512xf32>
    %1420 = arith.truncf %1416 : vector<8x128xf32> to vector<8x128xbf16>
    %cst_419 = arith.constant dense<0.000000e+00> : vector<8x512xf32>
    %1421 = tpu.matmul %1420, %1185, %cst_419 {dimension_numbers = #tpu.dot_dimension_numbers<[1], [0], [0], [1], [0, 0, 1, 1], [], []>} : vector<8x128xbf16>, vector<128x512xbf16>, vector<8x512xf32> -> vector<8x512xf32>
    %1422 = arith.addf %1419, %1421 : vector<8x512xf32>
    %1423 = vector.extract_strided_slice %1422 {offsets = [0, 0], sizes = [8, 128], strides = [1, 1]} : vector<8x512xf32> to vector<8x128xf32>
    %1424 = arith.negf %1423 : vector<8x128xf32>
    %1425 = math.exp %1424 : vector<8x128xf32>
    %cst_420 = arith.constant 1.000000e+00 : f32
    %1426 = vector.broadcast %cst_420 : f32 to vector<8x128xf32>
    %1427 = arith.addf %1426, %1425 : vector<8x128xf32>
    %1428 = arith.divf %1426, %1427 : vector<8x128xf32>
    %1429 = vector.extract_strided_slice %1422 {offsets = [0, 128], sizes = [8, 128], strides = [1, 1]} : vector<8x512xf32> to vector<8x128xf32>
    %1430 = arith.negf %1429 : vector<8x128xf32>
    %1431 = math.exp %1430 : vector<8x128xf32>
    %cst_421 = arith.constant 1.000000e+00 : f32
    %1432 = vector.broadcast %cst_421 : f32 to vector<8x128xf32>
    %1433 = arith.addf %1432, %1431 : vector<8x128xf32>
    %1434 = arith.divf %1432, %1433 : vector<8x128xf32>
    %1435 = vector.extract_strided_slice %1422 {offsets = [0, 256], sizes = [8, 128], strides = [1, 1]} : vector<8x512xf32> to vector<8x128xf32>
    %1436 = math.tanh %1435 : vector<8x128xf32>
    %1437 = vector.extract_strided_slice %1422 {offsets = [0, 384], sizes = [8, 128], strides = [1, 1]} : vector<8x512xf32> to vector<8x128xf32>
    %1438 = arith.negf %1437 : vector<8x128xf32>
    %1439 = math.exp %1438 : vector<8x128xf32>
    %cst_422 = arith.constant 1.000000e+00 : f32
    %1440 = vector.broadcast %cst_422 : f32 to vector<8x128xf32>
    %1441 = arith.addf %1440, %1439 : vector<8x128xf32>
    %1442 = arith.divf %1440, %1441 : vector<8x128xf32>
    %1443 = arith.mulf %1434, %1414 : vector<8x128xf32>
    %1444 = arith.mulf %1428, %1436 : vector<8x128xf32>
    %1445 = arith.addf %1443, %1444 : vector<8x128xf32>
    %1446 = math.tanh %1445 : vector<8x128xf32>
    %1447 = arith.mulf %1442, %1446 : vector<8x128xf32>
    %c8_i32_423 = arith.constant 8 : i32
    %c0_424 = arith.constant 0 : index
    %c0_425 = arith.constant 0 : index
    %1448 = vector.load %arg4[%c0_424, %c0_425] : memref<1x128xf32, #tpu.memory_space<vmem>>, vector<1x128xf32>
    %1449 = vector.broadcast %1448 : vector<1x128xf32> to vector<8x128xf32>
    %1450 = arith.mulf %1447, %1449 : vector<8x128xf32>
    %c0_426 = arith.constant 0 : index
    %c0_427 = arith.constant 0 : index
    %1451 = vector.load %arg5[%c0_426, %c0_427] : memref<1x128xf32, #tpu.memory_space<vmem>>, vector<1x128xf32>
    %1452 = vector.broadcast %1451 : vector<1x128xf32> to vector<8x128xf32>
    %1453 = arith.addf %1450, %1452 : vector<8x128xf32>
    %1454 = arith.truncf %1453 : vector<8x128xf32> to vector<8x128xbf16>
    %c0_428 = arith.constant 0 : index
    %c0_429 = arith.constant 0 : index
    %1455 = vector.load %arg6[%c0_428, %c0_429] : memref<128x128xbf16, #tpu.memory_space<vmem>>, vector<128x128xbf16>
    %cst_430 = arith.constant dense<0.000000e+00> : vector<8x128xf32>
    %1456 = tpu.matmul %1454, %1455, %cst_430 {dimension_numbers = #tpu.dot_dimension_numbers<[1], [0], [0], [1], [0, 0, 1, 1], [], []>} : vector<8x128xbf16>, vector<128x128xbf16>, vector<8x128xf32> -> vector<8x128xf32>
    %c0_431 = arith.constant 0 : index
    %c0_432 = arith.constant 0 : index
    %1457 = vector.load %arg7[%c0_431, %c0_432] : memref<1x128xf32, #tpu.memory_space<vmem>>, vector<1x128xf32>
    %1458 = vector.broadcast %1457 : vector<1x128xf32> to vector<8x128xf32>
    %1459 = arith.addf %1456, %1458 : vector<8x128xf32>
    %cst_433 = arith.constant 0.000000e+00 : f32
    %1460 = vector.broadcast %cst_433 : f32 to vector<8x128xf32>
    %1461 = arith.maximumf %1459, %1460 : vector<8x128xf32>
    %1462 = arith.truncf %1461 : vector<8x128xf32> to vector<8x128xbf16>
    %c0_434 = arith.constant 0 : index
    %c0_435 = arith.constant 0 : index
    %1463 = vector.load %arg8[%c0_434, %c0_435] : memref<128x128xbf16, #tpu.memory_space<vmem>>, vector<128x128xbf16>
    %cst_436 = arith.constant dense<0.000000e+00> : vector<8x128xf32>
    %1464 = tpu.matmul %1462, %1463, %cst_436 {dimension_numbers = #tpu.dot_dimension_numbers<[1], [0], [0], [1], [0, 0, 1, 1], [], []>} : vector<8x128xbf16>, vector<128x128xbf16>, vector<8x128xf32> -> vector<8x128xf32>
    %c0_437 = arith.constant 0 : index
    %c0_438 = arith.constant 0 : index
    %1465 = vector.load %arg9[%c0_437, %c0_438] : memref<1x128xf32, #tpu.memory_space<vmem>>, vector<1x128xf32>
    %1466 = vector.broadcast %1465 : vector<1x128xf32> to vector<8x128xf32>
    %1467 = arith.addf %1464, %1466 : vector<8x128xf32>
    %cst_439 = arith.constant 0.000000e+00 : f32
    %1468 = vector.broadcast %cst_439 : f32 to vector<8x128xf32>
    %1469 = arith.maximumf %1467, %1468 : vector<8x128xf32>
    %1470 = arith.truncf %1469 : vector<8x128xf32> to vector<8x128xbf16>
    %c0_440 = arith.constant 0 : index
    %c0_441 = arith.constant 0 : index
    %1471 = vector.load %arg10[%c0_440, %c0_441] : memref<128x128xbf16, #tpu.memory_space<vmem>>, vector<128x128xbf16>
    %cst_442 = arith.constant dense<0.000000e+00> : vector<8x128xf32>
    %1472 = tpu.matmul %1470, %1471, %cst_442 {dimension_numbers = #tpu.dot_dimension_numbers<[1], [0], [0], [1], [0, 0, 1, 1], [], []>} : vector<8x128xbf16>, vector<128x128xbf16>, vector<8x128xf32> -> vector<8x128xf32>
    %c0_443 = arith.constant 0 : index
    %c0_444 = arith.constant 0 : index
    %1473 = vector.load %arg11[%c0_443, %c0_444] : memref<1x128xf32, #tpu.memory_space<vmem>>, vector<1x128xf32>
    %1474 = vector.broadcast %1473 : vector<1x128xf32> to vector<8x128xf32>
    %1475 = arith.addf %1472, %1474 : vector<8x128xf32>
    %c0_445 = arith.constant 0 : index
    %c0_446 = arith.constant 0 : index
    %1476 = vector.load %arg12[%c0_445, %c0_446] : memref<8x128xf32, #tpu.memory_space<vmem>>, vector<8x128xf32>
    tpu.vector_store %arg12[%c0_445, %c0_446], %1475 {strides = array<i32>} : memref<8x128xf32, #tpu.memory_space<vmem>>, vector<8x128xf32>,
    return
  }
}

</mosaic_0001>

<bundles_post_ra>
// kernel: gesture_forward.1
= control target key start
LH: loop header
LB: loop body
LE: loop exit
PB: predicated region body
PF: predicated region fallthrough
CT: control target
= control target key end

     0   :  { %17 = vsyncpa [#allocation5], 0  ;;  %s13354_s0 = inlined_call_operand.vmem [shape: f32[8,8,128], index: 0, kind: input, shape index: {}]   ;;  %s13355_s1 = inlined_call_operand.hbm [shape: bf16[5,128,512], index: 1, kind: input, shape index: {}]   ;;  %s13356_s2 = inlined_call_operand.hbm [shape: bf16[5,128,512], index: 2, kind: input, shape index: {}]   ;;  %s13357_s3 = inlined_call_operand.hbm [shape: f32[5,1,512], index: 3, kind: input, shape index: {}]   ;;  %s13358_s4 = inlined_call_operand.vmem [shape: f32[1,128], index: 4, kind: input, shape index: {}]   ;;  %s13359_s5 = inlined_call_operand.hbm [shape: f32[1,128], index: 5, kind: input, shape index: {}]   ;;  %s13360_s6 = inlined_call_operand.vmem [shape: bf16[128,128], index: 6, kind: input, shape index: {}]   ;;  %s13361_s7 = inlined_call_operand.vmem [shape: f32[1,128], index: 7, kind: input, shape index: {}]   ;;  %s13362_s8 = inlined_call_operand.vmem [shape: bf16[128,128], index: 8, kind: input, shape index: {}]   ;;  %s13363_s9 = inlined_call_operand.vmem [shape: f32[1,128], index: 9, kind: input, shape index: {}]   ;;  %s13364_s10 = inlined_call_operand.hbm [shape: bf16[128,128], index: 10, kind: input, shape index: {}]   ;;  %s13365_s11 = inlined_call_operand.vmem [shape: f32[1,128], index: 11, kind: input, shape index: {}]   ;;  %s13366_s12 = inlined_call_operand.vmem [shape: f32[8,128], index: 12, kind: output, shape index: {}]  }
   0x1   :  { %18 = vsyncpa [#allocation7], 0 }
   0x2   :  { %19 = vsyncpa [#allocation10], 0  ;;  %s10091_s21 = smov [#allocation6]   ;;  %s10092_s23 = smov [#allocation9]  }
   0x3   :  { %s39_s22 = sshll.u32 %s10091_s21, 4  ;;  %s66_s24 = sshll.u32 %s10092_s23, 4  ;;  %s40_s22 = int_to_ptr.vmem [resolvable:$true] %s39_s22  ;;  %s10168_s24 = int_to_ptr.vmem [resolvable:$true] %s66_s24 }
   0x4   :  { %s9975_s27 = scalar_lea.hbm %s13356_s2, 20480 }
   0x5   :  { %p9976_p0 = scmp.ne.s32.totalorder %s13356_s2, %s9975_s27  ;;  %p9979_p1 = scmp.lt.u32.totalorder %s9975_s27, %s13356_s2 }
   0x7   :  { %p9981_p2 = pnand %p9979_p1, %p9976_p0 }
   0x9   :  { %9984 = shalt.err (!%p9981_p2)
}
   0xa   :  { %s9985_s14 = scalar_lea.vmem %s40_s22, 20480  ;;  %p9990_p4 = scmp.lt.s32.totalorder %s40_s22, %s40_s22 }
   0xb   :  { %p9986_p3 = scmp.ne.s32.totalorder %s40_s22, %s9985_s14  ;;  %p9991_p5 = scmp.lt.s32.totalorder %s9985_s14, %s9985_s14 }
   0xd   :  { %p9992_p6 = por %p9991_p5, %p9990_p4 }
   0xf   :  { %p9993_p7 = pnand %p9992_p6, %p9986_p3 }
  0x11   :  { %9996 = shalt.err (!%p9993_p7)
}
  0x12   :  { %s10093_s15 = smov 256   ;;  %s10094_s16 = smov 16  }
  0x13   :  { %45 = dma.hbm_to_vmem [thread:$0]  %s13356_s2, 20480, %s40_s22, [#allocation7], %s10093_s15, %s10093_s15, %s10094_s16  }
  0x14   :  { %s9997_s21 = scalar_lea.hbm %s13359_s5, 16 }
  0x15   :  { %p9998_p8 = scmp.ne.s32.totalorder %s13359_s5, %s9997_s21  ;;  %p10001_p9 = scmp.lt.u32.totalorder %s9997_s21, %s13359_s5 }
  0x17   :  { %p10003_p10 = pnand %p10001_p9, %p9998_p8 }
  0x19   :  { %10006 = shalt.err (!%p10003_p10)
}
  0x1a   :  { %s10007_s28 = scalar_lea.vmem %s10168_s24, 16  ;;  %s10011_s2 = scalar_lea.vmem %s10168_s24, 32 }
  0x1b   :  { %p10008_p11 = scmp.ne.s32.totalorder %s10168_s24, %s10007_s28  ;;  %p10012_p12 = scmp.lt.s32.totalorder %s10168_s24, %s10168_s24 }
  0x1c   :  { %p10013_p13 = scmp.lt.s32.totalorder %s10011_s2, %s10007_s28 }
  0x1e   :  { %p10014_p0 = por %p10013_p13, %p10012_p12 }
  0x20   :  { %p10015_p1 = pnand %p10014_p0, %p10008_p11 }
  0x22   :  { %10018 = shalt.err (!%p10015_p1)
}
  0x23   :  { %69 = dma.hbm_to_vmem [thread:$0]  %s13359_s5, 16, %s10168_s24, [#allocation10]  }
  0x24   :  { %s10095_s30 = smov [#allocation4]   ;;  %s10096_s14 = smov [#allocation8]  }
  0x25   :  { %s27_s13 = sshll.u32 %s10095_s30, 4  ;;  %s51_s17 = sshll.u32 %s10096_s14, 4  ;;  %s28_s13 = int_to_ptr.vmem [resolvable:$true] %s27_s13  ;;  %s10203_s17 = int_to_ptr.vmem [resolvable:$true] %s51_s17 }
  0x26   :  { %s10019_s20 = scalar_lea.hbm %s13355_s1, 20480 }
  0x27   :  { %p10020_p2 = scmp.ne.s32.totalorder %s13355_s1, %s10019_s20  ;;  %p10023_p3 = scmp.lt.u32.totalorder %s10019_s20, %s13355_s1 }
  0x29   :  { %p10025_p4 = pnand %p10023_p3, %p10020_p2 }
  0x2b   :  { %10028 = shalt.err (!%p10025_p4)
}
  0x2c   :  { %s10029_s5 = scalar_lea.vmem %s28_s13, 20480  ;;  %p10034_p6 = scmp.lt.s32.totalorder %s28_s13, %s28_s13 }
  0x2d   :  { %p10030_p5 = scmp.ne.s32.totalorder %s28_s13, %s10029_s5  ;;  %p10035_p7 = scmp.lt.s32.totalorder %s10029_s5, %s10029_s5 }
  0x2f   :  { %p10036_p8 = por %p10035_p7, %p10034_p6 }
  0x31   :  { %p10037_p9 = pnand %p10036_p8, %p10030_p5 }
  0x33   :  { %10040 = shalt.err (!%p10037_p9)
}
  0x34   :  { %33 = dma.hbm_to_vmem [thread:$0]  %s13355_s1, 20480, %s28_s13, [#allocation5], %s10093_s15, %s10093_s15, %s10094_s16  }
  0x35   :  { %s10041_s22 = scalar_lea.hbm %s13357_s3, 320 }
  0x36   :  { %p10042_p10 = scmp.ne.s32.totalorder %s13357_s3, %s10041_s22  ;;  %p10045_p11 = scmp.lt.u32.totalorder %s10041_s22, %s13357_s3 }
  0x38   :  { %p10047_p12 = pnand %p10045_p11, %p10042_p10 }
  0x3a   :  { %10050 = shalt.err (!%p10047_p12)
}
  0x3b   :  { %s10051_s19 = scalar_lea.vmem %s10203_s17, 320  ;;  %p10056_p0 = scmp.lt.s32.totalorder %s10203_s17, %s10203_s17 }
  0x3c   :  { %p10052_p13 = scmp.ne.s32.totalorder %s10203_s17, %s10051_s19  ;;  %p10057_p1 = scmp.lt.s32.totalorder %s10051_s19, %s10051_s19 }
  0x3e   :  { %p10058_p2 = por %p10057_p1, %p10056_p0 }
  0x40   :  { %p10059_p3 = pnand %p10058_p2, %p10052_p13 }
  0x42   :  { %10062 = shalt.err (!%p10059_p3)
}
  0x43   :  { %s10097_s1 = smov 64   ;;  %s10098_s15 = smov 4  }
  0x44   :  { %57 = dma.hbm_to_vmem [thread:$0]  %s13357_s3, 320, %s10203_s17, [#allocation7], %s10097_s1, %s10097_s1, %s10098_s15  }
  0x45   :  { %s10099_s20 = smov [#allocation11]   ;;  %s10063_s26 = scalar_lea.hbm %s13364_s10, 1024 }
  0x46   :  { %s83_s21 = sshll.u32 %s10099_s20, 4  ;;  %p10064_p4 = scmp.ne.s32.totalorder %s13364_s10, %s10063_s26  ;;  %s84_s21 = int_to_ptr.vmem [resolvable:$true] %s83_s21 }
  0x47   :  { %p10067_p5 = scmp.lt.u32.totalorder %s10063_s26, %s13364_s10 }
  0x49   :  { %p10069_p6 = pnand %p10067_p5, %p10064_p4 }
  0x4b   :  { %10072 = shalt.err (!%p10069_p6)
}
  0x4c   :  { %s10073_s2 = scalar_lea.vmem %s84_s21, 1024  ;;  %p10078_p8 = scmp.lt.s32.totalorder %s84_s21, %s84_s21 }
  0x4d   :  { %p10074_p7 = scmp.ne.s32.totalorder %s84_s21, %s10073_s2  ;;  %p10079_p9 = scmp.lt.s32.totalorder %s10073_s2, %s10073_s2 }
  0x4f   :  { %p10080_p10 = por %p10079_p9, %p10078_p8 }
  0x51   :  { %p10081_p11 = pnand %p10080_p10, %p10074_p7 }
  0x53   :  { %10084 = shalt.err (!%p10081_p11)
}
  0x54   :  { %89 = dma.hbm_to_vmem [thread:$0]  %s13364_s10, 1024, %s84_s21, [#allocation10], %s10097_s1, %s10097_s1, %s10098_s15  }
  0x55   :  { %10085 = dma.done.wait [#allocation5], 20480  }
  0x56   :  { %10086 = vsyncadd [#allocation5], 4294946816 }
  0x57   :  { %10087 = dma.done.wait [#allocation7], 20800  }
  0x58   :  { %10088 = vsyncadd [#allocation7], 4294946496 }
  0x59   :  { %10089 = dma.done.wait [#allocation10], 1040  }
  0x5a   :  { %10090 = vsyncadd [#allocation10], 4294966256  ;;  %v13367_v0 = vmov 0   ;;  %v8671_v1 = vld [vmem:[#allocation4 + $0x4] ss:$16 sps:$4 sm:$0xff]   ;;  %v141_v34 = vld [vmem:[%s13354_s0 + $0x8] sm:$0xff] }
  0x5b   :  { %398 = vmatprep.mubr.bf16.mxu0 %v13367_v0  ;;  %471 = vmatprep.mubr.bf16.mxu1 %v13367_v0  ;;  %v8673_v2 = vld [vmem:[#allocation4 + $0xc] ss:$16 sps:$4 sm:$0xff]   ;;  %v8675_v3 = vld [vmem:[#allocation4] ss:$16 sps:$4 sm:$0xff]   ;;  %v8676_v4 = vld [vmem:[#allocation4 + $0x8] ss:$16 sps:$4 sm:$0xff]  }
  0x5c   :  { %366 = vmatprep.subr.bf16.mxu0 %v8671_v1  ;;  %439 = vmatprep.subr.bf16.mxu1 %v8673_v2  ;;  %v8677_v5 = vld [vmem:[#allocation4 + $0x24] ss:$16 sps:$4 sm:$0xff]   ;;  %v8679_v6 = vld [vmem:[#allocation4 + $0x2c] ss:$16 sps:$4 sm:$0xff]   ;;  %v8681_v7 = vld [vmem:[#allocation4 + $0x20] ss:$16 sps:$4 sm:$0xff]  }
  0x5d   :  { %367 = vmatpush1.bf16.msra.mxu0 %v8675_v3  ;;  %440 = vmatpush1.bf16.msra.mxu1 %v8676_v4  ;;  %v8682_v8 = vld [vmem:[#allocation4 + $0x28] ss:$16 sps:$4 sm:$0xff]   ;;  %v8683_v9 = vld [vmem:[#allocation4 + $0x44] ss:$16 sps:$4 sm:$0xff]   ;;  %v8685_v10 = vld [vmem:[#allocation4 + $0x4c] ss:$16 sps:$4 sm:$0xff]  }
  0x5e   :  { %368 = vmatprep.subr.bf16.mxu0 %v8677_v5  ;;  %441 = vmatprep.subr.bf16.mxu1 %v8679_v6  ;;  %v8687_v11 = vld [vmem:[#allocation4 + $0x40] ss:$16 sps:$4 sm:$0xff]   ;;  %v8688_v12 = vld [vmem:[#allocation4 + $0x48] ss:$16 sps:$4 sm:$0xff]   ;;  %v8689_v13 = vld [vmem:[#allocation4 + $0x64] ss:$16 sps:$4 sm:$0xff]  }
  0x5f   :  { %v8691_v14 = vld [vmem:[#allocation4 + $0x6c] ss:$16 sps:$4 sm:$0xff]   ;;  %v8693_v15 = vld [vmem:[#allocation4 + $0x60] ss:$16 sps:$4 sm:$0xff]   ;;  %v8694_v16 = vld [vmem:[#allocation4 + $0x68] ss:$16 sps:$4 sm:$0xff]  }
  0x60   :  { %v8695_v17 = vld [vmem:[#allocation4 + $0x84] ss:$16 sps:$4 sm:$0xff]   ;;  %v8697_v18 = vld [vmem:[#allocation4 + $0x8c] ss:$16 sps:$4 sm:$0xff]   ;;  %v8699_v19 = vld [vmem:[#allocation4 + $0x80] ss:$16 sps:$4 sm:$0xff]  }
  0x61   :  { %369 = vmatpush1.bf16.msra.mxu0 %v8681_v7  ;;  %442 = vmatpush1.bf16.msra.mxu1 %v8682_v8  ;;  %v8700_v20 = vld [vmem:[#allocation4 + $0x88] ss:$16 sps:$4 sm:$0xff]   ;;  %v8701_v21 = vld [vmem:[#allocation4 + $0xa4] ss:$16 sps:$4 sm:$0xff]   ;;  %v8703_v22 = vld [vmem:[#allocation4 + $0xac] ss:$16 sps:$4 sm:$0xff]  }
  0x62   :  { %370 = vmatprep.subr.bf16.mxu0 %v8683_v9  ;;  %443 = vmatprep.subr.bf16.mxu1 %v8685_v10  ;;  %v8705_v23 = vld [vmem:[#allocation4 + $0xa0] ss:$16 sps:$4 sm:$0xff]   ;;  %v8706_v24 = vld [vmem:[#allocation4 + $0xa8] ss:$16 sps:$4 sm:$0xff]   ;;  %v8707_v25 = vld [vmem:[#allocation4 + $0xc4] ss:$16 sps:$4 sm:$0xff]  }
  0x63   :  { %v8709_v26 = vld [vmem:[#allocation4 + $0xcc] ss:$16 sps:$4 sm:$0xff]   ;;  %v8711_v27 = vld [vmem:[#allocation4 + $0xc0] ss:$16 sps:$4 sm:$0xff]   ;;  %v8712_v28 = vld [vmem:[#allocation4 + $0xc8] ss:$16 sps:$4 sm:$0xff]  }
  0x64   :  { %v8713_v29 = vld [vmem:[#allocation4 + $0xe4] ss:$16 sps:$4 sm:$0xff]   ;;  %v8715_v30 = vld [vmem:[#allocation4 + $0xec] ss:$16 sps:$4 sm:$0xff]   ;;  %v8717_v31 = vld [vmem:[#allocation4 + $0xe0] ss:$16 sps:$4 sm:$0xff]  }
  0x65   :  { %371 = vmatpush1.bf16.msra.mxu0 %v8687_v11  ;;  %444 = vmatpush1.bf16.msra.mxu1 %v8688_v12  ;;  %v8718_v32 = vld [vmem:[#allocation4 + $0xe8] ss:$16 sps:$4 sm:$0xff]   ;;  %v140_v33 = vld [vmem:[%s13354_s0] sm:$0xff]  ;;  %v10259_v36 = vld [vmem:[#allocation6 + $0xc] ss:$16 sps:$4 sm:$0xff]   ;;  %vm10102_vm0 = vmmov 0  }
  0x66   :  { %372 = vmatprep.subr.bf16.mxu0 %v8689_v13  ;;  %445 = vmatprep.subr.bf16.mxu1 %v8691_v14  ;;  %v10257_v35 = vld [vmem:[#allocation6 + $0x4] ss:$16 sps:$4 sm:$0xff]   ;;  %v148_v37 = vpack.c.bf16 %v141_v34, %v140_v33  ;;  %v10261_v38 = vld [vmem:[#allocation6] ss:$16 sps:$4 sm:$0xff]   ;;  %v10263_v39 = vld [vmem:[#allocation6 + $0x8] ss:$16 sps:$4 sm:$0xff]   ;;  %v186_v14 = vlaneseq }
  0x67   :  { %v10267_v40 = vld [vmem:[#allocation6 + $0x24] ss:$16 sps:$4 sm:$0xff]   ;;  %v10269_v41 = vld [vmem:[#allocation6 + $0x2c] ss:$16 sps:$4 sm:$0xff]   ;;  %v10271_v42 = vld [vmem:[#allocation6 + $0x20] ss:$16 sps:$4 sm:$0xff]  }
  0x68   :  { %v10273_v43 = vld [vmem:[#allocation6 + $0x28] ss:$16 sps:$4 sm:$0xff]   ;;  %v142_v44 = vld [vmem:[%s13354_s0 + $0x10] sm:$0xff]  ;;  %v10287_v47 = vld [vmem:[#allocation6 + $0x4c] ss:$16 sps:$4 sm:$0xff]  }
  0x69   :  { %373 = vmatpush1.bf16.msra.mxu0 %v8693_v15  ;;  %446 = vmatpush1.bf16.msra.mxu1 %v8694_v16  ;;  %v143_v45 = vld [vmem:[%s13354_s0 + $0x18] sm:$0xff]  ;;  %v10283_v46 = vld [vmem:[#allocation6 + $0x44] ss:$16 sps:$4 sm:$0xff]   ;;  %v10291_v49 = vld [vmem:[#allocation6 + $0x40] ss:$16 sps:$4 sm:$0xff]   ;;  %v187_v15 = vshrl.u32 %v186_v14, 7 }
  0x6a   :  { %374 = vmatprep.subr.bf16.mxu0 %v8695_v17  ;;  %447 = vmatprep.subr.bf16.mxu1 %v8697_v18  ;;  %v149_v48 = vpack.c.bf16 %v143_v45, %v142_v44  ;;  %v10293_v50 = vld [vmem:[#allocation6 + $0x48] ss:$16 sps:$4 sm:$0xff]   ;;  %v10297_v51 = vld [vmem:[#allocation6 + $0x64] ss:$16 sps:$4 sm:$0xff]   ;;  %v10301_v52 = vld [vmem:[#allocation6 + $0x6c] ss:$16 sps:$4 sm:$0xff]  }
  0x6b   :  { %v10303_v53 = vld [vmem:[#allocation6 + $0x60] ss:$16 sps:$4 sm:$0xff]   ;;  %v10305_v54 = vld [vmem:[#allocation6 + $0x68] ss:$16 sps:$4 sm:$0xff]   ;;  %v10317_v57 = vld [vmem:[#allocation6 + $0x84] ss:$16 sps:$4 sm:$0xff]  }
  0x6c   :  { %v144_v55 = vld [vmem:[%s13354_s0 + $0x20] sm:$0xff]  ;;  %v145_v56 = vld [vmem:[%s13354_s0 + $0x28] sm:$0xff]  ;;  %v146_v3 = vld [vmem:[%s13354_s0 + $0x30] sm:$0xff]  ;;  %v10417_v16 = vsub.s32 2, %v187_v15  ;;  %v10419_v17 = vsub.s32 3, %v187_v15  ;;  %v10421_v18 = vsub.s32 0, %v187_v15 }
  0x6d   :  { %375 = vmatpush1.bf16.msra.mxu0 %v8699_v19  ;;  %448 = vmatpush1.bf16.msra.mxu1 %v8700_v20  ;;  %v10319_v58 = vld [vmem:[#allocation6 + $0x8c] ss:$16 sps:$4 sm:$0xff]   ;;  %v10323_v59 = vld [vmem:[#allocation6 + $0x80] ss:$16 sps:$4 sm:$0xff]   ;;  %v10325_v60 = vld [vmem:[#allocation6 + $0x88] ss:$16 sps:$4 sm:$0xff]   ;;  %v150_v61 = vpack.c.bf16 %v145_v56, %v144_v55 }
  0x6e   :  { %376 = vmatprep.subr.bf16.mxu0 %v8701_v21  ;;  %449 = vmatprep.subr.bf16.mxu1 %v8703_v22  ;;  %v10327_v62 = vld [vmem:[#allocation6 + $0xa4] ss:$16 sps:$4 sm:$0xff]   ;;  %v10329_v63 = vld [vmem:[#allocation6 + $0xac] ss:$16 sps:$4 sm:$0xff]   ;;  %v10335_v1 = vld [vmem:[#allocation6 + $0xa0] ss:$16 sps:$4 sm:$0xff]  }
  0x6f   :  { %v10337_v2 = vld [vmem:[#allocation6 + $0xa8] ss:$16 sps:$4 sm:$0xff]   ;;  %v10345_v5 = vld [vmem:[#allocation6 + $0xc4] ss:$16 sps:$4 sm:$0xff]   ;;  %v10347_v6 = vld [vmem:[#allocation6 + $0xcc] ss:$16 sps:$4 sm:$0xff]  }
  0x70   :  { %v147_v4 = vld [vmem:[%s13354_s0 + $0x38] sm:$0xff]  ;;  %v10355_v7 = vld [vmem:[#allocation6 + $0xc0] ss:$16 sps:$4 sm:$0xff]   ;;  %v10359_v10 = vld [vmem:[#allocation6 + $0xe4] ss:$16 sps:$4 sm:$0xff]   ;;  %13379 = vst [vmem:[#allocation15_spill] sm:$0xff] %v10417_v16 }
  0x71   :  { %377 = vmatpush1.bf16.msra.mxu0 %v8705_v23  ;;  %450 = vmatpush1.bf16.msra.mxu1 %v8706_v24  ;;  %v10357_v8 = vld [vmem:[#allocation6 + $0xc8] ss:$16 sps:$4 sm:$0xff]   ;;  %v151_v9 = vpack.c.bf16 %v147_v4, %v146_v3  ;;  %v10361_v11 = vld [vmem:[#allocation6 + $0xec] ss:$16 sps:$4 sm:$0xff]   ;;  %v10367_v12 = vld [vmem:[#allocation6 + $0xe0] ss:$16 sps:$4 sm:$0xff]  }
  0x72   :  { %378 = vmatprep.subr.bf16.mxu0 %v8707_v25  ;;  %451 = vmatprep.subr.bf16.mxu1 %v8709_v26  ;;  %v10369_v13 = vld [vmem:[#allocation6 + $0xe8] ss:$16 sps:$4 sm:$0xff]   ;;  %13380 = vst [vmem:[#allocation16_spill] sm:$0xff] %v10419_v17  ;;  %13381 = vst [vmem:[#allocation17_spill] sm:$0xff] %v10421_v18  ;;  %v184_v19 = vld [vmem:[#allocation8] sm:$0xf] }
  0x73   :  { %v10423_v20 = vsub.s32 1, %v187_v15  ;;  %v10426_v21 = vrot.slane %v184_v19, %v10417_v16  ;;  %v10433_v24 = vrot.slane %v184_v19, %v10419_v17  ;;  %v189_v25 = vrot.slane %v184_v19, %v10421_v18 }
  0x75   :  { %379 = vmatpush1.bf16.msra.mxu0 %v8711_v27  ;;  %452 = vmatpush1.bf16.msra.mxu1 %v8712_v28  ;;  %13382 = vst [vmem:[#allocation18_spill] sm:$0xff] %v10423_v20  ;;  %v193_v28 = vrot.slane %v184_v19, %v10423_v20 }
  0x76   :  { %380 = vmatprep.subr.bf16.mxu0 %v8713_v29  ;;  %453 = vmatprep.subr.bf16.mxu1 %v8715_v30 }
  0x79   :  { %381 = vmatpush1.bf16.msra.mxu0 %v8717_v31  ;;  %454 = vmatpush1.bf16.msra.mxu1 %v8718_v32 }
  0x7a   :  { %708 = vmatprep.subr.bf16.mxu0 %v10257_v35  ;;  %749 = vmatprep.subr.bf16.mxu1 %v10259_v36 }
  0x7c   :  { %399 = vmatmul.mubr.bf16.vlgmr.msra.gmra.mrb[0].mxu0 %v148_v37  ;;  %472 = vmatmul.mubr.bf16.vlgmr.msra.gmra.mrb[0].mxu1 %v148_v37 }
  0x7d   :  { %709 = vmatpush1.bf16.msra.mxu0 %v10261_v38  ;;  %750 = vmatpush1.bf16.msra.mxu1 %v10263_v39 }
  0x7e   :  { %710 = vmatprep.subr.bf16.mxu0 %v10267_v40  ;;  %751 = vmatprep.subr.bf16.mxu1 %v10269_v41 }
  0x7f   :  { %408 = vmatprep.mubr.bf16.mxu0 %v13367_v0  ;;  %481 = vmatprep.mubr.bf16.mxu1 %v13367_v0 }
  0x81   :  { %711 = vmatpush1.bf16.msra.mxu0 %v10271_v42  ;;  %752 = vmatpush1.bf16.msra.mxu1 %v10273_v43 }
  0x82   :  { %712 = vmatprep.subr.bf16.mxu0 %v10283_v46  ;;  %753 = vmatprep.subr.bf16.mxu1 %v10287_v47 }
  0x84   :  { %409 = vmatmul.mubr.bf16.gmra.mrb[4].mxu0 %v149_v48  ;;  %482 = vmatmul.mubr.bf16.gmra.mrb[4].mxu1 %v149_v48 }
  0x85   :  { %713 = vmatpush1.bf16.msra.mxu0 %v10291_v49  ;;  %754 = vmatpush1.bf16.msra.mxu1 %v10293_v50 }
  0x86   :  { %714 = vmatprep.subr.bf16.mxu0 %v10297_v51  ;;  %755 = vmatprep.subr.bf16.mxu1 %v10301_v52 }
  0x87   :  { %418 = vmatprep.mubr.bf16.mxu0 %v13367_v0  ;;  %491 = vmatprep.mubr.bf16.mxu1 %v13367_v0 }
  0x89   :  { %715 = vmatpush1.bf16.msra.mxu0 %v10303_v53  ;;  %756 = vmatpush1.bf16.msra.mxu1 %v10305_v54 }
  0x8a   :  { %716 = vmatprep.subr.bf16.mxu0 %v10317_v57  ;;  %757 = vmatprep.subr.bf16.mxu1 %v10319_v58 }
  0x8c   :  { %419 = vmatmul.mubr.bf16.gmra.mrb[8].mxu0 %v150_v61  ;;  %492 = vmatmul.mubr.bf16.gmra.mrb[8].mxu1 %v150_v61 }
  0x8d   :  { %717 = vmatpush1.bf16.msra.mxu0 %v10323_v59  ;;  %758 = vmatpush1.bf16.msra.mxu1 %v10325_v60 }
  0x8e   :  { %718 = vmatprep.subr.bf16.mxu0 %v10327_v62  ;;  %759 = vmatprep.subr.bf16.mxu1 %v10329_v63 }
  0x8f   :  { %428 = vmatprep.mubr.bf16.mxu0 %v13367_v0  ;;  %501 = vmatprep.mubr.bf16.mxu1 %v13367_v0 }
  0x91   :  { %719 = vmatpush1.bf16.msra.mxu0 %v10335_v1  ;;  %760 = vmatpush1.bf16.msra.mxu1 %v10337_v2 }
  0x92   :  { %720 = vmatprep.subr.bf16.mxu0 %v10345_v5  ;;  %761 = vmatprep.subr.bf16.mxu1 %v10347_v6 }
  0x94   :  { %429 = vmatmul.mubr.bf16.gmra.mrb[12].mxu0 %v151_v9  ;;  %502 = vmatmul.mubr.bf16.gmra.mrb[12].mxu1 %v151_v9 }
  0x95   :  { %721 = vmatpush1.bf16.msra.mxu0 %v10355_v7  ;;  %762 = vmatpush1.bf16.msra.mxu1 %v10357_v8 }
  0x96   :  { %722 = vmatprep.subr.bf16.mxu0 %v10359_v10  ;;  %763 = vmatprep.subr.bf16.mxu1 %v10361_v11 }
  0x97   :  { %740 = vmatprep.mubr.bf16.mxu0 %v13367_v0  ;;  %781 = vmatprep.mubr.bf16.mxu1 %v13367_v0 }
  0x99   :  { %723 = vmatpush1.bf16.msra.mxu0 %v10367_v12  ;;  %764 = vmatpush1.bf16.msra.mxu1 %v10369_v13 }
  0x9a   :  { %825 = vmatprep.subr.bf16.mxu0 %v10257_v35  ;;  %866 = vmatprep.subr.bf16.mxu1 %v10259_v36 }
  0x9c   :  { %741 = vmatmul.mubr.bf16.vlgmr.msra.gmra.mrb[16].mxu0 %v13367_v0  ;;  %782 = vmatmul.mubr.bf16.vlgmr.msra.gmra.mrb[16].mxu1 %v13367_v0 }
  0x9d   :  { %826 = vmatpush1.bf16.msra.mxu0 %v10261_v38  ;;  %867 = vmatpush1.bf16.msra.mxu1 %v10263_v39 }
  0x9e   :  { %827 = vmatprep.subr.bf16.mxu0 %v10267_v40  ;;  %868 = vmatprep.subr.bf16.mxu1 %v10269_v41 }
  0x9f   :  { %857 = vmatprep.mubr.bf16.mxu0 %v13367_v0  ;;  %898 = vmatprep.mubr.bf16.mxu1 %v13367_v0 }
  0xa1   :  { %828 = vmatpush1.bf16.msra.mxu0 %v10271_v42  ;;  %869 = vmatpush1.bf16.msra.mxu1 %v10273_v43 }
  0xa2   :  { %829 = vmatprep.subr.bf16.mxu0 %v10283_v46  ;;  %870 = vmatprep.subr.bf16.mxu1 %v10287_v47 }
  0xa5   :  { %830 = vmatpush1.bf16.msra.mxu0 %v10291_v49  ;;  %871 = vmatpush1.bf16.msra.mxu1 %v10293_v50 }
  0xa6   :  { %831 = vmatprep.subr.bf16.mxu0 %v10297_v51  ;;  %872 = vmatprep.subr.bf16.mxu1 %v10301_v52 }
  0xa9   :  { %832 = vmatpush1.bf16.msra.mxu0 %v10303_v53  ;;  %873 = vmatpush1.bf16.msra.mxu1 %v10305_v54 }
  0xaa   :  { %833 = vmatprep.subr.bf16.mxu0 %v10317_v57  ;;  %874 = vmatprep.subr.bf16.mxu1 %v10319_v58 }
  0xad   :  { %834 = vmatpush1.bf16.msra.mxu0 %v10323_v59  ;;  %875 = vmatpush1.bf16.msra.mxu1 %v10325_v60 }
  0xae   :  { %835 = vmatprep.subr.bf16.mxu0 %v10327_v62  ;;  %876 = vmatprep.subr.bf16.mxu1 %v10329_v63 }
  0xb1   :  { %836 = vmatpush1.bf16.msra.mxu0 %v10335_v1  ;;  %877 = vmatpush1.bf16.msra.mxu1 %v10337_v2 }
  0xb2   :  { %837 = vmatprep.subr.bf16.mxu0 %v10345_v5  ;;  %878 = vmatprep.subr.bf16.mxu1 %v10347_v6 }
  0xb5   :  { %838 = vmatpush1.bf16.msra.mxu0 %v10355_v7  ;;  %879 = vmatpush1.bf16.msra.mxu1 %v10357_v8 }
  0xb6   :  { %839 = vmatprep.subr.bf16.mxu0 %v10359_v10  ;;  %880 = vmatprep.subr.bf16.mxu1 %v10361_v11 }
  0xb9   :  { %840 = vmatpush1.bf16.msra.mxu0 %v10367_v12  ;;  %881 = vmatpush1.bf16.msra.mxu1 %v10369_v13 }
  0xba   :  { %943 = vmatprep.subr.bf16.mxu0 %v10257_v35  ;;  %984 = vmatprep.subr.bf16.mxu1 %v10259_v36 }
 0x14f   :  { %v10428_v22 = vpop.f32.mrb[0].mxu0  ;;  %v10430_v23 = vpop.f32.mrb[0].mxu1 }
 0x150   :  { %v402_v26 = vpop.f32.mrb[1].mxu0  ;;  %v475_v27 = vpop.f32.mrb[1].mxu1 }
 0x151   :  { %v404_v29 = vpop.f32.mrb[2].mxu0  ;;  %v477_v30 = vpop.f32.mrb[2].mxu1 }
 0x152   :  { %v10437_v31 = vadd.f32 %v404_v29, %v189_v25  ;;  %v406_v32 = vpop.f32.mrb[3].mxu0  ;;  %v10440_v33 = vadd.f32 %v477_v30, %v10426_v21  ;;  %v479_v34 = vpop.f32.mrb[3].mxu1 }
 0x153   :  { %v10442_v35 = vadd.f32 %v406_v32, %v193_v28  ;;  %v10445_v36 = vadd.f32 %v479_v34, %v10433_v24 }
 0x157   :  { %v410_v37 = vpop.f32.mrb[4].mxu0  ;;  %v483_v38 = vpop.f32.mrb[4].mxu1 }
 0x158   :  { %v10447_v39 = vadd.f32 %v410_v37, %v189_v25  ;;  %v412_v40 = vpop.f32.mrb[5].mxu0  ;;  %v10450_v41 = vadd.f32 %v483_v38, %v10426_v21  ;;  %v485_v42 = vpop.f32.mrb[5].mxu1 }
 0x159   :  { %v10452_v43 = vadd.f32 %v412_v40, %v193_v28  ;;  %v414_v44 = vpop.f32.mrb[6].mxu0  ;;  %v10455_v45 = vadd.f32 %v485_v42, %v10433_v24  ;;  %v487_v46 = vpop.f32.mrb[6].mxu1 }
 0x15a   :  { %v10457_v47 = vadd.f32 %v414_v44, %v189_v25  ;;  %v416_v48 = vpop.f32.mrb[7].mxu0  ;;  %v10460_v49 = vadd.f32 %v487_v46, %v10426_v21  ;;  %v489_v50 = vpop.f32.mrb[7].mxu1 }
 0x15b   :  { %v10462_v51 = vadd.f32 %v416_v48, %v193_v28  ;;  %v10465_v52 = vadd.f32 %v489_v50, %v10433_v24 }
 0x15f   :  { %v420_v53 = vpop.f32.mrb[8].mxu0  ;;  %v493_v54 = vpop.f32.mrb[8].mxu1 }
 0x160   :  { %v10467_v55 = vadd.f32 %v420_v53, %v189_v25  ;;  %v422_v56 = vpop.f32.mrb[9].mxu0  ;;  %v10470_v57 = vadd.f32 %v493_v54, %v10426_v21  ;;  %v495_v58 = vpop.f32.mrb[9].mxu1 }
 0x161   :  { %v10472_v59 = vadd.f32 %v422_v56, %v193_v28  ;;  %v424_v60 = vpop.f32.mrb[10].mxu0  ;;  %v10475_v61 = vadd.f32 %v495_v58, %v10433_v24  ;;  %v497_v62 = vpop.f32.mrb[10].mxu1  ;;  %v401_v58 = vadd.f32 %v10428_v22, %v189_v25 }
 0x162   :  { %v10477_v63 = vadd.f32 %v424_v60, %v189_v25  ;;  %v426_v3 = vpop.f32.mrb[11].mxu0  ;;  %v10480_v4 = vadd.f32 %v497_v62, %v10426_v21  ;;  %v499_v9 = vpop.f32.mrb[11].mxu1  ;;  %v474_v60 = vadd.f32 %v10430_v23, %v10426_v21  ;;  %v403_v62 = vadd.f32 %v402_v26, %v193_v28 }
 0x163   :  { %v10482_v14 = vadd.f32 %v426_v3, %v193_v28  ;;  %v10485_v15 = vadd.f32 %v499_v9, %v10433_v24  ;;  %v476_v3 = vadd.f32 %v475_v27, %v10433_v24 }
 0x164   :  { %13383 = vst [vmem:[#allocation19_spill] sm:$0xff] %v10480_v4 }
 0x165   :  { %13384 = vst [vmem:[#allocation20_spill] sm:$0xff] %v10482_v14  ;;  %13385 = vst [vmem:[#allocation21_spill] sm:$0xff] %v10485_v15 }
 0x167   :  { %v430_v19 = vpop.f32.mrb[12].mxu0  ;;  %v503_v29 = vpop.f32.mrb[12].mxu1 }
 0x168   :  { %v10487_v30 = vadd.f32 %v430_v19, %v189_v25  ;;  %v432_v32 = vpop.f32.mrb[13].mxu0  ;;  %v10490_v34 = vadd.f32 %v503_v29, %v10426_v21  ;;  %v505_v37 = vpop.f32.mrb[13].mxu1 }
 0x169   :  { %v10492_v38 = vadd.f32 %v432_v32, %v193_v28  ;;  %v434_v40 = vpop.f32.mrb[14].mxu0  ;;  %v10495_v42 = vadd.f32 %v505_v37, %v10433_v24  ;;  %v507_v44 = vpop.f32.mrb[14].mxu1 }
 0x16a   :  { %13386 = vst [vmem:[#allocation22_spill] sm:$0xff] %v10487_v30  ;;  %13387 = vst [vmem:[#allocation23_spill] sm:$0xff] %v10490_v34  ;;  %v10497_v46 = vadd.f32 %v434_v40, %v189_v25  ;;  %v436_v48 = vpop.f32.mrb[15].mxu0  ;;  %v10500_v50 = vadd.f32 %v507_v44, %v10426_v21  ;;  %v509_v53 = vpop.f32.mrb[15].mxu1 }
 0x16b   :  { %13388 = vst [vmem:[#allocation24_spill] sm:$0xff] %v10492_v38  ;;  %13389 = vst [vmem:[#allocation25_spill] sm:$0xff] %v10495_v42  ;;  %v10502_v54 = vadd.f32 %v436_v48, %v193_v28  ;;  %v10505_v56 = vadd.f32 %v509_v53, %v10433_v24 }
 0x16c   :  { %13390 = vst [vmem:[#allocation26_spill] sm:$0xff] %v10497_v46  ;;  %13391 = vst [vmem:[#allocation27_spill] sm:$0xff] %v10500_v50 }
 0x16d   :  { %13392 = vst [vmem:[#allocation28_spill] sm:$0xff] %v10502_v54  ;;  %13393 = vst [vmem:[#allocation29_spill] sm:$0xff] %v10505_v56 }
 0x16f   :  { %v742_v9 = vpop.f32.mrb[16].mxu0  ;;  %v783_v19 = vpop.f32.mrb[16].mxu1 }
 0x170   :  { %v790_v29 = vadd.f32 %v742_v9, %v401_v58  ;;  %v792_v32 = vadd.f32 %v783_v19, %v474_v60  ;;  %v744_v37 = vpop.f32.mrb[17].mxu0  ;;  %v785_v40 = vpop.f32.mrb[17].mxu1 }
 0x171   :  { %v791_v44 = vadd.f32 %v744_v37, %v403_v62  ;;  %v793_v48 = vadd.f32 %v785_v40, %v476_v3  ;;  %v746_v0 = vpop.f32.mrb[18].mxu0  ;;  %v787_v17 = vpop.f32.mrb[18].mxu1  ;;  %v10524_v37 = vld [vmem:[#allocation6 + $0x24] ss:$16 sps:$4 sm:$0xff]   ;;  %v10527_v40 = vld [vmem:[#allocation6 + $0x2c] ss:$16 sps:$4 sm:$0xff]  }
 0x172   :  { %v8167_v53 = vmul.f32 -1.442695, %v790_v29  ;;  %v747_v20 = vpop.f32.mrb[19].mxu0  ;;  %v788_v16 = vpop.f32.mrb[19].mxu1  ;;  %v10518_v29 = vld [vmem:[#allocation6] ss:$16 sps:$4 sm:$0xff]  }
 0x173   :  { %v8168_v22 = vmul.f32 -1.442695, %v791_v44  ;;  %v8169_v21 = vmul.f32 -1.442695, %v793_v48  ;;  %v13395_v44 = vmov 0  }
 0x174   :  { %9175 = vpow2.f32 %v8167_v53  ;;  %v10532_v48 = vld [vmem:[#allocation6 + $0x20] ss:$16 sps:$4 sm:$0xff]   ;;  %v10535_v53 = vld [vmem:[#allocation6 + $0x28] ss:$16 sps:$4 sm:$0xff]  }
 0x175   :  { %9177 = vpow2.f32 %v8168_v22  ;;  %v10538_v22 = vld [vmem:[#allocation6 + $0x44] ss:$16 sps:$4 sm:$0xff]  }
 0x176   :  { %9179 = vpow2.f32 %v8169_v21  ;;  %v10541_v21 = vld [vmem:[#allocation6 + $0x4c] ss:$16 sps:$4 sm:$0xff]  }
 0x177   :  { %9181 = vtanh.f32 %v792_v32  ;;  %v10521_v32 = vld [vmem:[#allocation6 + $0x8] ss:$16 sps:$4 sm:$0xff]  }
 0x17e   :  { %v9176_v23 = vpop.eup %9175 }
 0x17f   :  { %v9178_v25 = vpop.eup %9177  ;;  %v797_v24 = vadd.f32 1.0, %v9176_v23  ;;  %v10544_v23 = vld [vmem:[#allocation6 + $0x40] ss:$16 sps:$4 sm:$0xff]  }
 0x180   :  { %v803_v26 = vadd.f32 1.0, %v9178_v25  ;;  %v9180_v27 = vpop.eup %9179  ;;  %v10547_v25 = vld [vmem:[#allocation6 + $0x48] ss:$16 sps:$4 sm:$0xff]  }
 0x181   :  { %9183 = vrcp.f32 %v797_v24  ;;  %v9182_v28 = vpop.eup %9181  ;;  %v810_v60 = vadd.f32 1.0, %v9180_v27  ;;  %v10550_v24 = vld [vmem:[#allocation6 + $0x64] ss:$16 sps:$4 sm:$0xff]   ;;  %v10556_v27 = vld [vmem:[#allocation6 + $0x60] ss:$16 sps:$4 sm:$0xff]  }
 0x182   :  { %9185 = vrcp.f32 %v803_v26  ;;  %v10553_v26 = vld [vmem:[#allocation6 + $0x6c] ss:$16 sps:$4 sm:$0xff]  }
 0x183   :  { %9187 = vrcp.f32 %v810_v60  ;;  %v10571_v60 = vld [vmem:[#allocation6 + $0x88] ss:$16 sps:$4 sm:$0xff]  }
 0x18b   :  { %v9184_v58 = vpop.eup %9183 }
 0x18c   :  { %v9186_v0 = vpop.eup %9185  ;;  %v814_v17 = vmul.f32 %v9184_v58, %v9182_v28  ;;  %v10559_v28 = vld [vmem:[#allocation6 + $0x68] ss:$16 sps:$4 sm:$0xff]   ;;  %v10562_v58 = vld [vmem:[#allocation6 + $0x84] ss:$16 sps:$4 sm:$0xff]  }
 0x18d   :  { %v813_v20 = vmul.f32 0.0, %v9186_v0  ;;  %v9188_v62 = vpop.eup %9187  ;;  %v10565_v0 = vld [vmem:[#allocation6 + $0x8c] ss:$16 sps:$4 sm:$0xff]  }
 0x18f   :  { %v10511_v16 = vadd.f32 %v814_v17, %v813_v20  ;;  %v10568_v17 = vld [vmem:[#allocation6 + $0x80] ss:$16 sps:$4 sm:$0xff]   ;;  %v10574_v20 = vld [vmem:[#allocation6 + $0xa4] ss:$16 sps:$4 sm:$0xff]  }
 0x191   :  { %9189 = vtanh.f32 %v10511_v16 }
 0x19b   :  { %v9190_v3 = vpop.eup %9189 }
 0x19c   :  { %v10514_v9 = vmul.f32 %v9190_v3, %v9188_v62  ;;  %v10577_v62 = vld [vmem:[#allocation6 + $0xac] ss:$16 sps:$4 sm:$0xff]   ;;  %v10590_v3 = vld [vmem:[#allocation6 + $0x4] ss:$16 sps:$4 sm:$0xff]  }
 0x19e   :  { %13394 = vst [vmem:[#allocation30_spill] sm:$0xff] %v10514_v9  ;;  %v824_v19 = vpack.c.bf16 %v10514_v9, %v10514_v9 }
 0x1a0   :  { %858 = vmatmul.mubr.bf16.vlgmr.msra.gmra.mrb[20].mxu0 %v824_v19  ;;  %899 = vmatmul.mubr.bf16.vlgmr.msra.gmra.mrb[20].mxu1 %v824_v19 }
 0x1a1   :  { %944 = vmatpush1.bf16.msra.mxu0 %v10518_v29  ;;  %985 = vmatpush1.bf16.msra.mxu1 %v10521_v32 }
 0x1a2   :  { %945 = vmatprep.subr.bf16.mxu0 %v10524_v37  ;;  %986 = vmatprep.subr.bf16.mxu1 %v10527_v40 }
 0x1a3   :  { %975 = vmatprep.mubr.bf16.mxu0 %v13395_v44  ;;  %1016 = vmatprep.mubr.bf16.mxu1 %v13395_v44 }
 0x1a5   :  { %946 = vmatpush1.bf16.msra.mxu0 %v10532_v48  ;;  %987 = vmatpush1.bf16.msra.mxu1 %v10535_v53 }
 0x1a6   :  { %947 = vmatprep.subr.bf16.mxu0 %v10538_v22  ;;  %988 = vmatprep.subr.bf16.mxu1 %v10541_v21 }
 0x1a9   :  { %948 = vmatpush1.bf16.msra.mxu0 %v10544_v23  ;;  %989 = vmatpush1.bf16.msra.mxu1 %v10547_v25 }
 0x1aa   :  { %949 = vmatprep.subr.bf16.mxu0 %v10550_v24  ;;  %990 = vmatprep.subr.bf16.mxu1 %v10553_v26 }
 0x1ad   :  { %950 = vmatpush1.bf16.msra.mxu0 %v10556_v27  ;;  %991 = vmatpush1.bf16.msra.mxu1 %v10559_v28 }
 0x1ae   :  { %951 = vmatprep.subr.bf16.mxu0 %v10562_v58  ;;  %992 = vmatprep.subr.bf16.mxu1 %v10565_v0 }
 0x1b1   :  { %952 = vmatpush1.bf16.msra.mxu0 %v10568_v17  ;;  %993 = vmatpush1.bf16.msra.mxu1 %v10571_v60 }
 0x1b2   :  { %953 = vmatprep.subr.bf16.mxu0 %v10574_v20  ;;  %994 = vmatprep.subr.bf16.mxu1 %v10577_v62 }
 0x1b5   :  { %954 = vmatpush1.bf16.msra.mxu0 %v10335_v1  ;;  %995 = vmatpush1.bf16.msra.mxu1 %v10337_v2  ;;  %v10593_v1 = vld [vmem:[#allocation6 + $0xc] ss:$16 sps:$4 sm:$0xff]  }
 0x1b6   :  { %955 = vmatprep.subr.bf16.mxu0 %v10345_v5  ;;  %996 = vmatprep.subr.bf16.mxu1 %v10347_v6 }
 0x1b9   :  { %956 = vmatpush1.bf16.msra.mxu0 %v10355_v7  ;;  %997 = vmatpush1.bf16.msra.mxu1 %v10357_v8 }
 0x1ba   :  { %957 = vmatprep.subr.bf16.mxu0 %v10359_v10  ;;  %998 = vmatprep.subr.bf16.mxu1 %v10361_v11 }
 0x1bd   :  { %958 = vmatpush1.bf16.msra.mxu0 %v10367_v12  ;;  %999 = vmatpush1.bf16.msra.mxu1 %v10369_v13 }
 0x1be   :  { %1061 = vmatprep.subr.bf16.mxu0 %v10590_v3  ;;  %1102 = vmatprep.subr.bf16.mxu1 %v10593_v1 }
 0x273   :  { %v859_v2 = vpop.f32.mrb[20].mxu0  ;;  %v900_v5 = vpop.f32.mrb[20].mxu1 }
 0x274   :  { %v907_v6 = vadd.f32 %v859_v2, %v10437_v31  ;;  %v909_v7 = vadd.f32 %v900_v5, %v10440_v33  ;;  %v861_v8 = vpop.f32.mrb[21].mxu0  ;;  %v902_v10 = vpop.f32.mrb[21].mxu1 }
 0x275   :  { %v908_v11 = vadd.f32 %v861_v8, %v10442_v35  ;;  %v910_v12 = vadd.f32 %v902_v10, %v10445_v36  ;;  %v863_v13 = vpop.f32.mrb[22].mxu0  ;;  %v904_v19 = vpop.f32.mrb[22].mxu1  ;;  %v10639_v10 = vld [vmem:[#allocation6 + $0xcc] ss:$16 sps:$4 sm:$0xff]  }
 0x276   :  { %v8170_v18 = vmul.f32 -1.442695, %v907_v6  ;;  %v864_v56 = vpop.f32.mrb[23].mxu0  ;;  %v905_v54 = vpop.f32.mrb[23].mxu1  ;;  %v10648_v13 = vld [vmem:[#allocation6 + $0xe4] ss:$16 sps:$4 sm:$0xff]  }
 0x277   :  { %v8171_v50 = vmul.f32 -1.442695, %v908_v11  ;;  %v8172_v46 = vmul.f32 -1.442695, %v910_v12  ;;  %v10642_v11 = vld [vmem:[#allocation6 + $0xc0] ss:$16 sps:$4 sm:$0xff]  }
 0x278   :  { %9191 = vpow2.f32 %v8170_v18  ;;  %v10645_v12 = vld [vmem:[#allocation6 + $0xc8] ss:$16 sps:$4 sm:$0xff]   ;;  %v10651_v19 = vld [vmem:[#allocation6 + $0xec] ss:$16 sps:$4 sm:$0xff]  }
 0x279   :  { %9193 = vpow2.f32 %v8171_v50 }
 0x27a   :  { %9195 = vpow2.f32 %v8172_v46 }
 0x27b   :  { %9197 = vtanh.f32 %v909_v7  ;;  %v10636_v7 = vld [vmem:[#allocation6 + $0xc4] ss:$16 sps:$4 sm:$0xff]  }
 0x282   :  { %v9192_v9 = vpop.eup %9191 }
 0x283   :  { %v9194_v42 = vpop.eup %9193  ;;  %v914_v31 = vadd.f32 1.0, %v9192_v9  ;;  %v10633_v9 = vld [vmem:[#allocation6 + $0xa8] ss:$16 sps:$4 sm:$0xff]  }
 0x284   :  { %v920_v33 = vadd.f32 1.0, %v9194_v42  ;;  %v9196_v35 = vpop.eup %9195 }
 0x285   :  { %9199 = vrcp.f32 %v914_v31  ;;  %v9198_v2 = vpop.eup %9197  ;;  %v927_v6 = vadd.f32 1.0, %v9196_v35  ;;  %v10654_v31 = vld [vmem:[#allocation6 + $0xe0] ss:$16 sps:$4 sm:$0xff]  }
 0x286   :  { %9201 = vrcp.f32 %v920_v33  ;;  %v10657_v33 = vld [vmem:[#allocation6 + $0xe8] ss:$16 sps:$4 sm:$0xff]  }
 0x287   :  { %9203 = vrcp.f32 %v927_v6 }
 0x28f   :  { %v9200_v36 = vpop.eup %9199 }
 0x290   :  { %v9202_v5 = vpop.eup %9201  ;;  %v931_v8 = vmul.f32 %v9200_v36, %v9198_v2 }
 0x291   :  { %v930_v54 = vmul.f32 %v9202_v5, %v10511_v16  ;;  %v9204_v18 = vpop.eup %9203  ;;  %v10630_v16 = vld [vmem:[#allocation6 + $0xa0] ss:$16 sps:$4 sm:$0xff]  }
 0x293   :  { %v10601_v56 = vadd.f32 %v931_v8, %v930_v54 }
 0x295   :  { %9205 = vtanh.f32 %v10601_v56 }
 0x29f   :  { %v9206_v50 = vpop.eup %9205 }
 0x2a0   :  { %v10604_v46 = vmul.f32 %v9206_v50, %v9204_v18 }
 0x2a2   :  { %13396 = vst [vmem:[#allocation31_spill] sm:$0xff] %v10604_v46  ;;  %v942_v42 = vpack.c.bf16 %v10604_v46, %v10604_v46 }
 0x2a4   :  { %976 = vmatmul.mubr.bf16.vlgmr.msra.gmra.mrb[24].mxu0 %v942_v42  ;;  %1017 = vmatmul.mubr.bf16.vlgmr.msra.gmra.mrb[24].mxu1 %v942_v42 }
 0x2a5   :  { %1062 = vmatpush1.bf16.msra.mxu0 %v10518_v29  ;;  %1103 = vmatpush1.bf16.msra.mxu1 %v10521_v32 }
 0x2a6   :  { %1063 = vmatprep.subr.bf16.mxu0 %v10524_v37  ;;  %1104 = vmatprep.subr.bf16.mxu1 %v10527_v40 }
 0x2a7   :  { %1093 = vmatprep.mubr.bf16.mxu0 %v13395_v44  ;;  %1134 = vmatprep.mubr.bf16.mxu1 %v13395_v44 }
 0x2a9   :  { %1064 = vmatpush1.bf16.msra.mxu0 %v10532_v48  ;;  %1105 = vmatpush1.bf16.msra.mxu1 %v10535_v53 }
 0x2aa   :  { %1065 = vmatprep.subr.bf16.mxu0 %v10538_v22  ;;  %1106 = vmatprep.subr.bf16.mxu1 %v10541_v21 }
 0x2ad   :  { %1066 = vmatpush1.bf16.msra.mxu0 %v10544_v23  ;;  %1107 = vmatpush1.bf16.msra.mxu1 %v10547_v25 }
 0x2ae   :  { %1067 = vmatprep.subr.bf16.mxu0 %v10550_v24  ;;  %1108 = vmatprep.subr.bf16.mxu1 %v10553_v26 }
 0x2b1   :  { %1068 = vmatpush1.bf16.msra.mxu0 %v10556_v27  ;;  %1109 = vmatpush1.bf16.msra.mxu1 %v10559_v28 }
 0x2b2   :  { %1069 = vmatprep.subr.bf16.mxu0 %v10562_v58  ;;  %1110 = vmatprep.subr.bf16.mxu1 %v10565_v0 }
 0x2b5   :  { %1070 = vmatpush1.bf16.msra.mxu0 %v10568_v17  ;;  %1111 = vmatpush1.bf16.msra.mxu1 %v10571_v60 }
 0x2b6   :  { %1071 = vmatprep.subr.bf16.mxu0 %v10574_v20  ;;  %1112 = vmatprep.subr.bf16.mxu1 %v10577_v62 }
 0x2b9   :  { %1072 = vmatpush1.bf16.msra.mxu0 %v10630_v16  ;;  %1113 = vmatpush1.bf16.msra.mxu1 %v10633_v9 }
 0x2ba   :  { %1073 = vmatprep.subr.bf16.mxu0 %v10636_v7  ;;  %1114 = vmatprep.subr.bf16.mxu1 %v10639_v10 }
 0x2bd   :  { %1074 = vmatpush1.bf16.msra.mxu0 %v10642_v11  ;;  %1115 = vmatpush1.bf16.msra.mxu1 %v10645_v12 }
 0x2be   :  { %1075 = vmatprep.subr.bf16.mxu0 %v10648_v13  ;;  %1116 = vmatprep.subr.bf16.mxu1 %v10651_v19 }
 0x2c1   :  { %1076 = vmatpush1.bf16.msra.mxu0 %v10654_v31  ;;  %1117 = vmatpush1.bf16.msra.mxu1 %v10657_v33 }
 0x2c2   :  { %1179 = vmatprep.subr.bf16.mxu0 %v10590_v3  ;;  %1220 = vmatprep.subr.bf16.mxu1 %v10593_v1 }
 0x377   :  { %v977_v35 = vpop.f32.mrb[24].mxu0  ;;  %v1018_v2 = vpop.f32.mrb[24].mxu1 }
 0x378   :  { %v1025_v36 = vadd.f32 %v977_v35, %v10447_v39  ;;  %v1027_v5 = vadd.f32 %v1018_v2, %v10450_v41  ;;  %v979_v8 = vpop.f32.mrb[25].mxu0  ;;  %v1020_v6 = vpop.f32.mrb[25].mxu1 }
 0x379   :  { %v1026_v54 = vadd.f32 %v979_v8, %v10452_v43  ;;  %v1028_v18 = vadd.f32 %v1020_v6, %v10455_v45  ;;  %v981_v50 = vpop.f32.mrb[26].mxu0  ;;  %v1022_v42 = vpop.f32.mrb[26].mxu1 }
 0x37a   :  { %v8173_v46 = vmul.f32 -1.442695, %v1025_v36  ;;  %v982_v38 = vpop.f32.mrb[27].mxu0  ;;  %v1023_v34 = vpop.f32.mrb[27].mxu1 }
 0x37b   :  { %v8174_v30 = vmul.f32 -1.442695, %v1026_v54  ;;  %v8175_v15 = vmul.f32 -1.442695, %v1028_v18 }
 0x37c   :  { %9207 = vpow2.f32 %v8173_v46 }
 0x37d   :  { %9209 = vpow2.f32 %v8174_v30 }
 0x37e   :  { %9211 = vpow2.f32 %v8175_v15 }
 0x37f   :  { %9213 = vtanh.f32 %v1027_v5 }
 0x386   :  { %v9208_v14 = vpop.eup %9207 }
 0x387   :  { %v9210_v4 = vpop.eup %9209  ;;  %v1032_v39 = vadd.f32 1.0, %v9208_v14 }
 0x388   :  { %v1038_v41 = vadd.f32 1.0, %v9210_v4  ;;  %v9212_v43 = vpop.eup %9211 }
 0x389   :  { %9215 = vrcp.f32 %v1032_v39  ;;  %v9214_v35 = vpop.eup %9213  ;;  %v1045_v36 = vadd.f32 1.0, %v9212_v43 }
 0x38a   :  { %9217 = vrcp.f32 %v1038_v41 }
 0x38b   :  { %9219 = vrcp.f32 %v1045_v36 }
 0x393   :  { %v9216_v45 = vpop.eup %9215 }
 0x394   :  { %v9218_v2 = vpop.eup %9217  ;;  %v1049_v8 = vmul.f32 %v9216_v45, %v9214_v35 }
 0x395   :  { %v1048_v34 = vmul.f32 %v9218_v2, %v10601_v56  ;;  %v9220_v30 = vpop.eup %9219 }
 0x397   :  { %v10667_v38 = vadd.f32 %v1049_v8, %v1048_v34 }
 0x399   :  { %9221 = vtanh.f32 %v10667_v38 }
 0x3a3   :  { %v9222_v14 = vpop.eup %9221 }
 0x3a4   :  { %v10670_v15 = vmul.f32 %v9222_v14, %v9220_v30 }
 0x3a6   :  { %v1060_v4 = vpack.c.bf16 %v10670_v15, %v10670_v15 }
 0x3a8   :  { %1094 = vmatmul.mubr.bf16.vlgmr.msra.gmra.mrb[28].mxu0 %v1060_v4  ;;  %1135 = vmatmul.mubr.bf16.vlgmr.msra.gmra.mrb[28].mxu1 %v1060_v4 }
 0x3a9   :  { %1180 = vmatpush1.bf16.msra.mxu0 %v10518_v29  ;;  %1221 = vmatpush1.bf16.msra.mxu1 %v10521_v32 }
 0x3aa   :  { %1181 = vmatprep.subr.bf16.mxu0 %v10524_v37  ;;  %1222 = vmatprep.subr.bf16.mxu1 %v10527_v40 }
 0x3ab   :  { %1211 = vmatprep.mubr.bf16.mxu0 %v13395_v44  ;;  %1252 = vmatprep.mubr.bf16.mxu1 %v13395_v44 }
 0x3ad   :  { %1182 = vmatpush1.bf16.msra.mxu0 %v10532_v48  ;;  %1223 = vmatpush1.bf16.msra.mxu1 %v10535_v53 }
 0x3ae   :  { %1183 = vmatprep.subr.bf16.mxu0 %v10538_v22  ;;  %1224 = vmatprep.subr.bf16.mxu1 %v10541_v21 }
 0x3b1   :  { %1184 = vmatpush1.bf16.msra.mxu0 %v10544_v23  ;;  %1225 = vmatpush1.bf16.msra.mxu1 %v10547_v25 }
 0x3b2   :  { %1185 = vmatprep.subr.bf16.mxu0 %v10550_v24  ;;  %1226 = vmatprep.subr.bf16.mxu1 %v10553_v26 }
 0x3b5   :  { %1186 = vmatpush1.bf16.msra.mxu0 %v10556_v27  ;;  %1227 = vmatpush1.bf16.msra.mxu1 %v10559_v28 }
 0x3b6   :  { %1187 = vmatprep.subr.bf16.mxu0 %v10562_v58  ;;  %1228 = vmatprep.subr.bf16.mxu1 %v10565_v0 }
 0x3b9   :  { %1188 = vmatpush1.bf16.msra.mxu0 %v10568_v17  ;;  %1229 = vmatpush1.bf16.msra.mxu1 %v10571_v60 }
 0x3ba   :  { %1189 = vmatprep.subr.bf16.mxu0 %v10574_v20  ;;  %1230 = vmatprep.subr.bf16.mxu1 %v10577_v62 }
 0x3bd   :  { %1190 = vmatpush1.bf16.msra.mxu0 %v10630_v16  ;;  %1231 = vmatpush1.bf16.msra.mxu1 %v10633_v9 }
 0x3be   :  { %1191 = vmatprep.subr.bf16.mxu0 %v10636_v7  ;;  %1232 = vmatprep.subr.bf16.mxu1 %v10639_v10 }
 0x3c1   :  { %1192 = vmatpush1.bf16.msra.mxu0 %v10642_v11  ;;  %1233 = vmatpush1.bf16.msra.mxu1 %v10645_v12 }
 0x3c2   :  { %1193 = vmatprep.subr.bf16.mxu0 %v10648_v13  ;;  %1234 = vmatprep.subr.bf16.mxu1 %v10651_v19 }
 0x3c5   :  { %1194 = vmatpush1.bf16.msra.mxu0 %v10654_v31  ;;  %1235 = vmatpush1.bf16.msra.mxu1 %v10657_v33 }
 0x3c6   :  { %1297 = vmatprep.subr.bf16.mxu0 %v10590_v3  ;;  %1338 = vmatprep.subr.bf16.mxu1 %v10593_v1 }
 0x47b   :  { %v1095_v56 = vpop.f32.mrb[28].mxu0  ;;  %v1136_v46 = vpop.f32.mrb[28].mxu1 }
 0x47c   :  { %v1143_v5 = vadd.f32 %v1095_v56, %v10457_v47  ;;  %v1145_v6 = vadd.f32 %v1136_v46, %v10460_v49  ;;  %v1097_v54 = vpop.f32.mrb[29].mxu0  ;;  %v1138_v18 = vpop.f32.mrb[29].mxu1 }
 0x47d   :  { %v1144_v50 = vadd.f32 %v1097_v54, %v10462_v51  ;;  %v1146_v42 = vadd.f32 %v1138_v18, %v10465_v52  ;;  %v1099_v39 = vpop.f32.mrb[30].mxu0  ;;  %v1140_v41 = vpop.f32.mrb[30].mxu1 }
 0x47e   :  { %v8176_v43 = vmul.f32 -1.442695, %v1143_v5  ;;  %v1100_v35 = vpop.f32.mrb[31].mxu0  ;;  %v1141_v45 = vpop.f32.mrb[31].mxu1 }
 0x47f   :  { %v8177_v2 = vmul.f32 -1.442695, %v1144_v50  ;;  %v8178_v8 = vmul.f32 -1.442695, %v1146_v42 }
 0x480   :  { %9223 = vpow2.f32 %v8176_v43 }
 0x481   :  { %9225 = vpow2.f32 %v8177_v2 }
 0x482   :  { %9227 = vpow2.f32 %v8178_v8 }
 0x483   :  { %9229 = vtanh.f32 %v1145_v6 }
 0x48a   :  { %v9224_v36 = vpop.eup %9223 }
 0x48b   :  { %v9226_v34 = vpop.eup %9225  ;;  %v1150_v47 = vadd.f32 1.0, %v9224_v36 }
 0x48c   :  { %v1156_v49 = vadd.f32 1.0, %v9226_v34  ;;  %v9228_v51 = vpop.eup %9227 }
 0x48d   :  { %9231 = vrcp.f32 %v1150_v47  ;;  %v9230_v30 = vpop.eup %9229  ;;  %v1163_v56 = vadd.f32 1.0, %v9228_v51 }
 0x48e   :  { %9233 = vrcp.f32 %v1156_v49 }
 0x48f   :  { %9235 = vrcp.f32 %v1163_v56 }
 0x497   :  { %v9232_v52 = vpop.eup %9231 }
 0x498   :  { %v9234_v14 = vpop.eup %9233  ;;  %v1167_v4 = vmul.f32 %v9232_v52, %v9230_v30 }
 0x499   :  { %v1166_v46 = vmul.f32 %v9234_v14, %v10667_v38  ;;  %v9236_v54 = vpop.eup %9235 }
 0x49b   :  { %v10713_v5 = vadd.f32 %v1167_v4, %v1166_v46 }
 0x49d   :  { %9237 = vtanh.f32 %v10713_v5 }
 0x4a7   :  { %v9238_v18 = vpop.eup %9237 }
 0x4a8   :  { %v10716_v50 = vmul.f32 %v9238_v18, %v9236_v54 }
 0x4aa   :  { %v1178_v6 = vpack.c.bf16 %v10716_v50, %v10716_v50 }
 0x4ac   :  { %1212 = vmatmul.mubr.bf16.vlgmr.msra.gmra.mrb[32].mxu0 %v1178_v6  ;;  %1253 = vmatmul.mubr.bf16.vlgmr.msra.gmra.mrb[32].mxu1 %v1178_v6 }
 0x4ad   :  { %1298 = vmatpush1.bf16.msra.mxu0 %v10518_v29  ;;  %1339 = vmatpush1.bf16.msra.mxu1 %v10521_v32 }
 0x4ae   :  { %1299 = vmatprep.subr.bf16.mxu0 %v10524_v37  ;;  %1340 = vmatprep.subr.bf16.mxu1 %v10527_v40 }
 0x4af   :  { %1329 = vmatprep.mubr.bf16.mxu0 %v13395_v44  ;;  %1370 = vmatprep.mubr.bf16.mxu1 %v13395_v44 }
 0x4b1   :  { %1300 = vmatpush1.bf16.msra.mxu0 %v10532_v48  ;;  %1341 = vmatpush1.bf16.msra.mxu1 %v10535_v53 }
 0x4b2   :  { %1301 = vmatprep.subr.bf16.mxu0 %v10538_v22  ;;  %1342 = vmatprep.subr.bf16.mxu1 %v10541_v21 }
 0x4b5   :  { %1302 = vmatpush1.bf16.msra.mxu0 %v10544_v23  ;;  %1343 = vmatpush1.bf16.msra.mxu1 %v10547_v25 }
 0x4b6   :  { %1303 = vmatprep.subr.bf16.mxu0 %v10550_v24  ;;  %1344 = vmatprep.subr.bf16.mxu1 %v10553_v26 }
 0x4b9   :  { %1304 = vmatpush1.bf16.msra.mxu0 %v10556_v27  ;;  %1345 = vmatpush1.bf16.msra.mxu1 %v10559_v28 }
 0x4ba   :  { %1305 = vmatprep.subr.bf16.mxu0 %v10562_v58  ;;  %1346 = vmatprep.subr.bf16.mxu1 %v10565_v0 }
 0x4bd   :  { %1306 = vmatpush1.bf16.msra.mxu0 %v10568_v17  ;;  %1347 = vmatpush1.bf16.msra.mxu1 %v10571_v60 }
 0x4be   :  { %1307 = vmatprep.subr.bf16.mxu0 %v10574_v20  ;;  %1348 = vmatprep.subr.bf16.mxu1 %v10577_v62 }
 0x4c1   :  { %1308 = vmatpush1.bf16.msra.mxu0 %v10630_v16  ;;  %1349 = vmatpush1.bf16.msra.mxu1 %v10633_v9 }
 0x4c2   :  { %1309 = vmatprep.subr.bf16.mxu0 %v10636_v7  ;;  %1350 = vmatprep.subr.bf16.mxu1 %v10639_v10 }
 0x4c5   :  { %1310 = vmatpush1.bf16.msra.mxu0 %v10642_v11  ;;  %1351 = vmatpush1.bf16.msra.mxu1 %v10645_v12 }
 0x4c6   :  { %1311 = vmatprep.subr.bf16.mxu0 %v10648_v13  ;;  %1352 = vmatprep.subr.bf16.mxu1 %v10651_v19 }
 0x4c9   :  { %1312 = vmatpush1.bf16.msra.mxu0 %v10654_v31  ;;  %1353 = vmatpush1.bf16.msra.mxu1 %v10657_v33 }
 0x4ca   :  { %1415 = vmatprep.subr.bf16.mxu0 %v10590_v3  ;;  %1456 = vmatprep.subr.bf16.mxu1 %v10593_v1 }
 0x57f   :  { %v1213_v38 = vpop.f32.mrb[32].mxu0  ;;  %v1254_v42 = vpop.f32.mrb[32].mxu1 }
 0x580   :  { %v1261_v39 = vadd.f32 %v1213_v38, %v10467_v55  ;;  %v1263_v41 = vadd.f32 %v1254_v42, %v10470_v57  ;;  %v1215_v43 = vpop.f32.mrb[33].mxu0  ;;  %v1256_v35 = vpop.f32.mrb[33].mxu1 }
 0x581   :  { %v1262_v45 = vadd.f32 %v1215_v43, %v10472_v59  ;;  %v1264_v2 = vadd.f32 %v1256_v35, %v10475_v61  ;;  %v1217_v8 = vpop.f32.mrb[34].mxu0  ;;  %v1258_v36 = vpop.f32.mrb[34].mxu1 }
 0x582   :  { %v8179_v34 = vmul.f32 -1.442695, %v1261_v39  ;;  %v1218_v47 = vpop.f32.mrb[35].mxu0  ;;  %v1259_v49 = vpop.f32.mrb[35].mxu1 }
 0x583   :  { %v8180_v51 = vmul.f32 -1.442695, %v1262_v45  ;;  %v8181_v30 = vmul.f32 -1.442695, %v1264_v2  ;;  %v13397_v45 = vld [vmem:[#allocation19_spill] sm:$0xff]  ;;  %v13399_v49 = vld [vmem:[#allocation21_spill] sm:$0xff] }
 0x584   :  { %9239 = vpow2.f32 %v8179_v34  ;;  %v13398_v34 = vld [vmem:[#allocation20_spill] sm:$0xff] }
 0x585   :  { %9241 = vpow2.f32 %v8180_v51 }
 0x586   :  { %9243 = vpow2.f32 %v8181_v30 }
 0x587   :  { %9245 = vtanh.f32 %v1263_v41 }
 0x58e   :  { %v9240_v52 = vpop.eup %9239 }
 0x58f   :  { %v9242_v14 = vpop.eup %9241  ;;  %v1268_v55 = vadd.f32 1.0, %v9240_v52 }
 0x590   :  { %v1274_v57 = vadd.f32 1.0, %v9242_v14  ;;  %v9244_v59 = vpop.eup %9243 }
 0x591   :  { %9247 = vrcp.f32 %v1268_v55  ;;  %v9246_v4 = vpop.eup %9245  ;;  %v1281_v54 = vadd.f32 1.0, %v9244_v59 }
 0x592   :  { %9249 = vrcp.f32 %v1274_v57 }
 0x593   :  { %9251 = vrcp.f32 %v1281_v54 }
 0x59b   :  { %v9248_v61 = vpop.eup %9247 }
 0x59c   :  { %v9250_v56 = vpop.eup %9249  ;;  %v1285_v46 = vmul.f32 %v9248_v61, %v9246_v4 }
 0x59d   :  { %v1284_v18 = vmul.f32 %v9250_v56, %v10713_v5  ;;  %v9252_v38 = vpop.eup %9251 }
 0x59f   :  { %v10759_v6 = vadd.f32 %v1285_v46, %v1284_v18 }
 0x5a1   :  { %9253 = vtanh.f32 %v10759_v6 }
 0x5ab   :  { %v9254_v42 = vpop.eup %9253 }
 0x5ac   :  { %v10762_v39 = vmul.f32 %v9254_v42, %v9252_v38 }
 0x5ae   :  { %v1296_v41 = vpack.c.bf16 %v10762_v39, %v10762_v39 }
 0x5b0   :  { %1330 = vmatmul.mubr.bf16.vlgmr.msra.gmra.mrb[36].mxu0 %v1296_v41  ;;  %1371 = vmatmul.mubr.bf16.vlgmr.msra.gmra.mrb[36].mxu1 %v1296_v41 }
 0x5b1   :  { %1416 = vmatpush1.bf16.msra.mxu0 %v10518_v29  ;;  %1457 = vmatpush1.bf16.msra.mxu1 %v10521_v32 }
 0x5b2   :  { %1417 = vmatprep.subr.bf16.mxu0 %v10524_v37  ;;  %1458 = vmatprep.subr.bf16.mxu1 %v10527_v40 }
 0x5b3   :  { %1447 = vmatprep.mubr.bf16.mxu0 %v13395_v44  ;;  %1488 = vmatprep.mubr.bf16.mxu1 %v13395_v44 }
 0x5b5   :  { %1418 = vmatpush1.bf16.msra.mxu0 %v10532_v48  ;;  %1459 = vmatpush1.bf16.msra.mxu1 %v10535_v53 }
 0x5b6   :  { %1419 = vmatprep.subr.bf16.mxu0 %v10538_v22  ;;  %1460 = vmatprep.subr.bf16.mxu1 %v10541_v21 }
 0x5b9   :  { %1420 = vmatpush1.bf16.msra.mxu0 %v10544_v23  ;;  %1461 = vmatpush1.bf16.msra.mxu1 %v10547_v25 }
 0x5ba   :  { %1421 = vmatprep.subr.bf16.mxu0 %v10550_v24  ;;  %1462 = vmatprep.subr.bf16.mxu1 %v10553_v26 }
 0x5bd   :  { %1422 = vmatpush1.bf16.msra.mxu0 %v10556_v27  ;;  %1463 = vmatpush1.bf16.msra.mxu1 %v10559_v28 }
 0x5be   :  { %1423 = vmatprep.subr.bf16.mxu0 %v10562_v58  ;;  %1464 = vmatprep.subr.bf16.mxu1 %v10565_v0 }
 0x5c1   :  { %1424 = vmatpush1.bf16.msra.mxu0 %v10568_v17  ;;  %1465 = vmatpush1.bf16.msra.mxu1 %v10571_v60 }
 0x5c2   :  { %1425 = vmatprep.subr.bf16.mxu0 %v10574_v20  ;;  %1466 = vmatprep.subr.bf16.mxu1 %v10577_v62 }
 0x5c5   :  { %1426 = vmatpush1.bf16.msra.mxu0 %v10630_v16  ;;  %1467 = vmatpush1.bf16.msra.mxu1 %v10633_v9 }
 0x5c6   :  { %1427 = vmatprep.subr.bf16.mxu0 %v10636_v7  ;;  %1468 = vmatprep.subr.bf16.mxu1 %v10639_v10 }
 0x5c9   :  { %1428 = vmatpush1.bf16.msra.mxu0 %v10642_v11  ;;  %1469 = vmatpush1.bf16.msra.mxu1 %v10645_v12 }
 0x5ca   :  { %1429 = vmatprep.subr.bf16.mxu0 %v10648_v13  ;;  %1470 = vmatprep.subr.bf16.mxu1 %v10651_v19 }
 0x5cd   :  { %1430 = vmatpush1.bf16.msra.mxu0 %v10654_v31  ;;  %1471 = vmatpush1.bf16.msra.mxu1 %v10657_v33 }
 0x5ce   :  { %1533 = vmatprep.subr.bf16.mxu0 %v10590_v3  ;;  %1574 = vmatprep.subr.bf16.mxu1 %v10593_v1 }
 0x683   :  { %v1331_v5 = vpop.f32.mrb[36].mxu0  ;;  %v1372_v43 = vpop.f32.mrb[36].mxu1 }
 0x684   :  { %v1379_v35 = vadd.f32 %v1331_v5, %v10477_v63  ;;  %v1381_v2 = vadd.f32 %v1372_v43, %v13397_v45  ;;  %v1333_v8 = vpop.f32.mrb[37].mxu0  ;;  %v1374_v36 = vpop.f32.mrb[37].mxu1 }
 0x685   :  { %v1380_v47 = vadd.f32 %v1333_v8, %v13398_v34  ;;  %v1382_v51 = vadd.f32 %v1374_v36, %v13399_v49  ;;  %v1335_v30 = vpop.f32.mrb[38].mxu0  ;;  %v1376_v52 = vpop.f32.mrb[38].mxu1 }
 0x686   :  { %v8182_v14 = vmul.f32 -1.442695, %v1379_v35  ;;  %v1336_v55 = vpop.f32.mrb[39].mxu0  ;;  %v1377_v57 = vpop.f32.mrb[39].mxu1  ;;  %v8770_v30 = vld [vmem:[#allocation4 + $0x108] ss:$16 sps:$4 sm:$0xff]  }
 0x687   :  { %v8183_v3 = vmul.f32 -1.442695, %v1380_v47  ;;  %v8184_v1 = vmul.f32 -1.442695, %v1382_v51  ;;  %v8767_v51 = vld [vmem:[#allocation4 + $0x100] ss:$16 sps:$4 sm:$0xff]  }
 0x688   :  { %9255 = vpow2.f32 %v8182_v14  ;;  %v8775_v14 = vld [vmem:[#allocation4 + $0x124] ss:$16 sps:$4 sm:$0xff]   ;;  %v8778_v55 = vld [vmem:[#allocation4 + $0x12c] ss:$16 sps:$4 sm:$0xff]   ;;  %v8773_v57 = vld [vmem:[#allocation4 + $0x120] ss:$16 sps:$4 sm:$0xff]  }
 0x689   :  { %9257 = vpow2.f32 %v8183_v3  ;;  %v8776_v3 = vld [vmem:[#allocation4 + $0x128] ss:$16 sps:$4 sm:$0xff]  }
 0x68a   :  { %9259 = vpow2.f32 %v8184_v1  ;;  %v8781_v1 = vld [vmem:[#allocation4 + $0x144] ss:$16 sps:$4 sm:$0xff]  }
 0x68b   :  { %9261 = vtanh.f32 %v1381_v2 }
 0x692   :  { %v9256_v59 = vpop.eup %9255 }
 0x693   :  { %v9258_v4 = vpop.eup %9257  ;;  %v1386_v63 = vadd.f32 1.0, %v9256_v59  ;;  %v8784_v59 = vld [vmem:[#allocation4 + $0x14c] ss:$16 sps:$4 sm:$0xff]  }
 0x694   :  { %v1392_v61 = vadd.f32 1.0, %v9258_v4  ;;  %v9260_v56 = vpop.eup %9259  ;;  %v8779_v4 = vld [vmem:[#allocation4 + $0x140] ss:$16 sps:$4 sm:$0xff]  }
 0x695   :  { %9263 = vrcp.f32 %v1386_v63  ;;  %v9262_v46 = vpop.eup %9261  ;;  %v1399_v42 = vadd.f32 1.0, %v9260_v56  ;;  %v8782_v63 = vld [vmem:[#allocation4 + $0x148] ss:$16 sps:$4 sm:$0xff]   ;;  %v8790_v56 = vld [vmem:[#allocation4 + $0x16c] ss:$16 sps:$4 sm:$0xff]  }
 0x696   :  { %9265 = vrcp.f32 %v1392_v61  ;;  %v8787_v61 = vld [vmem:[#allocation4 + $0x164] ss:$16 sps:$4 sm:$0xff]  }
 0x697   :  { %9267 = vrcp.f32 %v1399_v42  ;;  %v8791_v42 = vld [vmem:[#allocation4 + $0x180] ss:$16 sps:$4 sm:$0xff]  }
 0x69f   :  { %v9264_v54 = vpop.eup %9263 }
 0x6a0   :  { %v9266_v18 = vpop.eup %9265  ;;  %v1403_v38 = vmul.f32 %v9264_v54, %v9262_v46  ;;  %v8785_v46 = vld [vmem:[#allocation4 + $0x160] ss:$16 sps:$4 sm:$0xff]   ;;  %v8788_v54 = vld [vmem:[#allocation4 + $0x168] ss:$16 sps:$4 sm:$0xff]  }
 0x6a1   :  { %v1402_v41 = vmul.f32 %v9266_v18, %v10759_v6  ;;  %v9268_v43 = vpop.eup %9267  ;;  %v8793_v18 = vld [vmem:[#allocation4 + $0x184] ss:$16 sps:$4 sm:$0xff]  }
 0x6a3   :  { %v10805_v5 = vadd.f32 %v1403_v38, %v1402_v41  ;;  %v8796_v38 = vld [vmem:[#allocation4 + $0x18c] ss:$16 sps:$4 sm:$0xff]   ;;  %v8794_v41 = vld [vmem:[#allocation4 + $0x188] ss:$16 sps:$4 sm:$0xff]  }
 0x6a5   :  { %9269 = vtanh.f32 %v10805_v5 }
 0x6af   :  { %v9270_v35 = vpop.eup %9269 }
 0x6b0   :  { %v10808_v45 = vmul.f32 %v9270_v35, %v9268_v43  ;;  %v8802_v43 = vld [vmem:[#allocation4 + $0x1ac] ss:$16 sps:$4 sm:$0xff]   ;;  %v8797_v35 = vld [vmem:[#allocation4 + $0x1a0] ss:$16 sps:$4 sm:$0xff]  }
 0x6b2   :  { %v1414_v2 = vpack.c.bf16 %v10808_v45, %v10808_v45 }
 0x6b4   :  { %1448 = vmatmul.mubr.bf16.vlgmr.msra.gmra.mrb[40].mxu0 %v1414_v2  ;;  %1489 = vmatmul.mubr.bf16.vlgmr.msra.gmra.mrb[40].mxu1 %v1414_v2  ;;  %v8800_v2 = vld [vmem:[#allocation4 + $0x1a8] ss:$16 sps:$4 sm:$0xff]  }
 0x6b5   :  { %1534 = vmatpush1.bf16.msra.mxu0 %v10518_v29  ;;  %1575 = vmatpush1.bf16.msra.mxu1 %v10521_v32  ;;  %v8769_v29 = vld [vmem:[#allocation4 + $0x104] ss:$16 sps:$4 sm:$0xff]   ;;  %v8772_v32 = vld [vmem:[#allocation4 + $0x10c] ss:$16 sps:$4 sm:$0xff]  }
 0x6b6   :  { %1535 = vmatprep.subr.bf16.mxu0 %v10524_v37  ;;  %1576 = vmatprep.subr.bf16.mxu1 %v10527_v40 }
 0x6b7   :  { %1565 = vmatprep.mubr.bf16.mxu0 %v13395_v44  ;;  %1606 = vmatprep.mubr.bf16.mxu1 %v13395_v44 }
 0x6b9   :  { %1536 = vmatpush1.bf16.msra.mxu0 %v10532_v48  ;;  %1577 = vmatpush1.bf16.msra.mxu1 %v10535_v53  ;;  %v13400_v48 = vld [vmem:[#allocation22_spill] sm:$0xff] }
 0x6ba   :  { %1537 = vmatprep.subr.bf16.mxu0 %v10538_v22  ;;  %1578 = vmatprep.subr.bf16.mxu1 %v10541_v21  ;;  %v13401_v22 = vld [vmem:[#allocation23_spill] sm:$0xff] }
 0x6bd   :  { %1538 = vmatpush1.bf16.msra.mxu0 %v10544_v23  ;;  %1579 = vmatpush1.bf16.msra.mxu1 %v10547_v25 }
 0x6be   :  { %1539 = vmatprep.subr.bf16.mxu0 %v10550_v24  ;;  %1580 = vmatprep.subr.bf16.mxu1 %v10553_v26  ;;  %v13402_v24 = vld [vmem:[#allocation24_spill] sm:$0xff] }
 0x6c1   :  { %1540 = vmatpush1.bf16.msra.mxu0 %v10556_v27  ;;  %1581 = vmatpush1.bf16.msra.mxu1 %v10559_v28  ;;  %v13403_v27 = vld [vmem:[#allocation25_spill] sm:$0xff] }
 0x6c2   :  { %1541 = vmatprep.subr.bf16.mxu0 %v10562_v58  ;;  %1582 = vmatprep.subr.bf16.mxu1 %v10565_v0 }
 0x6c5   :  { %1542 = vmatpush1.bf16.msra.mxu0 %v10568_v17  ;;  %1583 = vmatpush1.bf16.msra.mxu1 %v10571_v60 }
 0x6c6   :  { %1543 = vmatprep.subr.bf16.mxu0 %v10574_v20  ;;  %1584 = vmatprep.subr.bf16.mxu1 %v10577_v62 }
 0x6c9   :  { %1544 = vmatpush1.bf16.msra.mxu0 %v10630_v16  ;;  %1585 = vmatpush1.bf16.msra.mxu1 %v10633_v9 }
 0x6ca   :  { %1545 = vmatprep.subr.bf16.mxu0 %v10636_v7  ;;  %1586 = vmatprep.subr.bf16.mxu1 %v10639_v10 }
 0x6cd   :  { %1546 = vmatpush1.bf16.msra.mxu0 %v10642_v11  ;;  %1587 = vmatpush1.bf16.msra.mxu1 %v10645_v12 }
 0x6ce   :  { %1547 = vmatprep.subr.bf16.mxu0 %v10648_v13  ;;  %1588 = vmatprep.subr.bf16.mxu1 %v10651_v19 }
 0x6d1   :  { %1548 = vmatpush1.bf16.msra.mxu0 %v10654_v31  ;;  %1589 = vmatpush1.bf16.msra.mxu1 %v10657_v33 }
 0x6d2   :  { %1906 = vmatprep.subr.bf16.mxu0 %v8769_v29  ;;  %1979 = vmatprep.subr.bf16.mxu1 %v8772_v32  ;;  %v8805_v29 = vld [vmem:[#allocation4 + $0x1c4] ss:$16 sps:$4 sm:$0xff]   ;;  %v8808_v32 = vld [vmem:[#allocation4 + $0x1cc] ss:$16 sps:$4 sm:$0xff]  }
 0x787   :  { %v1449_v37 = vpop.f32.mrb[40].mxu0  ;;  %v1490_v40 = vpop.f32.mrb[40].mxu1 }
 0x788   :  { %v1497_v53 = vadd.f32 %v1449_v37, %v13400_v48  ;;  %v1499_v21 = vadd.f32 %v1490_v40, %v13401_v22  ;;  %v1451_v23 = vpop.f32.mrb[41].mxu0  ;;  %v1492_v25 = vpop.f32.mrb[41].mxu1  ;;  %v8803_v37 = vld [vmem:[#allocation4 + $0x1c0] ss:$16 sps:$4 sm:$0xff]   ;;  %v8806_v40 = vld [vmem:[#allocation4 + $0x1c8] ss:$16 sps:$4 sm:$0xff]  }
 0x789   :  { %v1498_v26 = vadd.f32 %v1451_v23, %v13402_v24  ;;  %v1500_v28 = vadd.f32 %v1492_v25, %v13403_v27  ;;  %v1453_v58 = vpop.f32.mrb[42].mxu0  ;;  %v1494_v0 = vpop.f32.mrb[42].mxu1  ;;  %v8811_v48 = vld [vmem:[#allocation4 + $0x1e4] ss:$16 sps:$4 sm:$0xff]   ;;  %v8809_v22 = vld [vmem:[#allocation4 + $0x1e0] ss:$16 sps:$4 sm:$0xff]   ;;  %v1688_v27 = vpack.c.bf16 %v10808_v45, %v10762_v39 }
 0x78a   :  { %v8185_v17 = vmul.f32 -1.442695, %v1497_v53  ;;  %v1454_v60 = vpop.f32.mrb[43].mxu0  ;;  %v1495_v20 = vpop.f32.mrb[43].mxu1  ;;  %v8814_v53 = vld [vmem:[#allocation4 + $0x1ec] ss:$16 sps:$4 sm:$0xff]  }
 0x78b   :  { %v8186_v62 = vmul.f32 -1.442695, %v1498_v26  ;;  %v8187_v16 = vmul.f32 -1.442695, %v1500_v28  ;;  %v13404_v23 = vld [vmem:[#allocation30_spill] sm:$0xff]  ;;  %v13405_v25 = vld [vmem:[#allocation31_spill] sm:$0xff]  ;;  %v1687_v26 = vpack.c.bf16 %v10716_v50, %v10670_v15 }
 0x78c   :  { %9271 = vpow2.f32 %v8185_v17  ;;  %v1686_v24 = vpack.c.bf16 %v13405_v25, %v13404_v23  ;;  %v10870_v28 = vld [vmem:[#allocation6 + $0x104] ss:$16 sps:$4 sm:$0xff]   ;;  %v10872_v58 = vld [vmem:[#allocation6 + $0x10c] ss:$16 sps:$4 sm:$0xff]   ;;  %v10874_v15 = vld [vmem:[#allocation6 + $0x100] ss:$16 sps:$4 sm:$0xff]  }
 0x78d   :  { %9273 = vpow2.f32 %v8186_v62  ;;  %v10876_v50 = vld [vmem:[#allocation6 + $0x108] ss:$16 sps:$4 sm:$0xff]   ;;  %v10882_v39 = vld [vmem:[#allocation6 + $0x124] ss:$16 sps:$4 sm:$0xff]   ;;  %v10884_v45 = vld [vmem:[#allocation6 + $0x12c] ss:$16 sps:$4 sm:$0xff]  }
 0x78e   :  { %9275 = vpow2.f32 %v8187_v16  ;;  %v10886_v0 = vld [vmem:[#allocation6 + $0x120] ss:$16 sps:$4 sm:$0xff]   ;;  %v10888_v17 = vld [vmem:[#allocation6 + $0x128] ss:$16 sps:$4 sm:$0xff]   ;;  %v10894_v60 = vld [vmem:[#allocation6 + $0x144] ss:$16 sps:$4 sm:$0xff]  }
 0x78f   :  { %9277 = vtanh.f32 %v1499_v21  ;;  %v8812_v21 = vld [vmem:[#allocation4 + $0x1e8] ss:$16 sps:$4 sm:$0xff]   ;;  %v10896_v20 = vld [vmem:[#allocation6 + $0x14c] ss:$16 sps:$4 sm:$0xff]   ;;  %v10898_v62 = vld [vmem:[#allocation6 + $0x140] ss:$16 sps:$4 sm:$0xff]  }
 0x790   :  { %v10900_v16 = vld [vmem:[#allocation6 + $0x148] ss:$16 sps:$4 sm:$0xff]  }
 0x796   :  { %v9272_v9 = vpop.eup %9271 }
 0x797   :  { %v9274_v7 = vpop.eup %9273  ;;  %v1504_v10 = vadd.f32 1.0, %v9272_v9  ;;  %v10906_v9 = vld [vmem:[#allocation6 + $0x164] ss:$16 sps:$4 sm:$0xff]  }
 0x798   :  { %v1510_v11 = vadd.f32 1.0, %v9274_v7  ;;  %v9276_v12 = vpop.eup %9275  ;;  %v10908_v7 = vld [vmem:[#allocation6 + $0x16c] ss:$16 sps:$4 sm:$0xff]  }
 0x799   :  { %9279 = vrcp.f32 %v1504_v10  ;;  %v9278_v13 = vpop.eup %9277  ;;  %v1517_v6 = vadd.f32 1.0, %v9276_v12  ;;  %v10910_v10 = vld [vmem:[#allocation6 + $0x160] ss:$16 sps:$4 sm:$0xff]   ;;  %v10918_v12 = vld [vmem:[#allocation6 + $0x184] ss:$16 sps:$4 sm:$0xff]  }
 0x79a   :  { %9281 = vrcp.f32 %v1510_v11  ;;  %v10912_v11 = vld [vmem:[#allocation6 + $0x168] ss:$16 sps:$4 sm:$0xff]  }
 0x79b   :  { %9283 = vrcp.f32 %v1517_v6  ;;  %v10932_v6 = vld [vmem:[#allocation6 + $0x1ac] ss:$16 sps:$4 sm:$0xff]  }
 0x7a3   :  { %v9280_v19 = vpop.eup %9279 }
 0x7a4   :  { %v9282_v31 = vpop.eup %9281  ;;  %v1521_v33 = vmul.f32 %v9280_v19, %v9278_v13  ;;  %v10920_v13 = vld [vmem:[#allocation6 + $0x18c] ss:$16 sps:$4 sm:$0xff]   ;;  %v10922_v19 = vld [vmem:[#allocation6 + $0x180] ss:$16 sps:$4 sm:$0xff]  }
 0x7a5   :  { %v1520_v8 = vmul.f32 %v9282_v31, %v10805_v5  ;;  %v9284_v34 = vpop.eup %9283  ;;  %v8799_v5 = vld [vmem:[#allocation4 + $0x1a4] ss:$16 sps:$4 sm:$0xff]   ;;  %v10924_v31 = vld [vmem:[#allocation6 + $0x188] ss:$16 sps:$4 sm:$0xff]  }
 0x7a7   :  { %v10849_v36 = vadd.f32 %v1521_v33, %v1520_v8  ;;  %v10930_v33 = vld [vmem:[#allocation6 + $0x1a4] ss:$16 sps:$4 sm:$0xff]   ;;  %v10934_v8 = vld [vmem:[#allocation6 + $0x1a0] ss:$16 sps:$4 sm:$0xff]  }
 0x7a9   :  { %9285 = vtanh.f32 %v10849_v36 }
 0x7b3   :  { %v9286_v47 = vpop.eup %9285 }
 0x7b4   :  { %v10852_v49 = vmul.f32 %v9286_v47, %v9284_v34  ;;  %v10936_v34 = vld [vmem:[#allocation6 + $0x1a8] ss:$16 sps:$4 sm:$0xff]   ;;  %v10942_v47 = vld [vmem:[#allocation6 + $0x1c4] ss:$16 sps:$4 sm:$0xff]  }
 0x7b6   :  { %v1532_v52 = vpack.c.bf16 %v10852_v49, %v10852_v49 }
 0x7b8   :  { %1566 = vmatmul.mubr.bf16.vlgmr.msra.gmra.mrb[44].mxu0 %v1532_v52  ;;  %1607 = vmatmul.mubr.bf16.vlgmr.msra.gmra.mrb[44].mxu1 %v1532_v52  ;;  %v10948_v52 = vld [vmem:[#allocation6 + $0x1c8] ss:$16 sps:$4 sm:$0xff]  }
 0x7b9   :  { %1907 = vmatpush1.bf16.msra.mxu0 %v8767_v51  ;;  %1980 = vmatpush1.bf16.msra.mxu1 %v8770_v30  ;;  %v10944_v51 = vld [vmem:[#allocation6 + $0x1cc] ss:$16 sps:$4 sm:$0xff]   ;;  %v10946_v30 = vld [vmem:[#allocation6 + $0x1c0] ss:$16 sps:$4 sm:$0xff]  }
 0x7ba   :  { %1908 = vmatprep.subr.bf16.mxu0 %v8775_v14  ;;  %1981 = vmatprep.subr.bf16.mxu1 %v8778_v55  ;;  %v10954_v14 = vld [vmem:[#allocation6 + $0x1e4] ss:$16 sps:$4 sm:$0xff]   ;;  %v10956_v55 = vld [vmem:[#allocation6 + $0x1ec] ss:$16 sps:$4 sm:$0xff]  }
 0x7bb   :  { %1938 = vmatprep.mubr.bf16.mxu0 %v13395_v44  ;;  %2011 = vmatprep.mubr.bf16.mxu1 %v13395_v44 }
 0x7bd   :  { %1909 = vmatpush1.bf16.msra.mxu0 %v8773_v57  ;;  %1982 = vmatpush1.bf16.msra.mxu1 %v8776_v3  ;;  %v10958_v57 = vld [vmem:[#allocation6 + $0x1e0] ss:$16 sps:$4 sm:$0xff]   ;;  %v10960_v3 = vld [vmem:[#allocation6 + $0x1e8] ss:$16 sps:$4 sm:$0xff]  }
 0x7be   :  { %1910 = vmatprep.subr.bf16.mxu0 %v8781_v1  ;;  %1983 = vmatprep.subr.bf16.mxu1 %v8784_v59 }
 0x7c1   :  { %1911 = vmatpush1.bf16.msra.mxu0 %v8779_v4  ;;  %1984 = vmatpush1.bf16.msra.mxu1 %v8782_v63  ;;  %v13406_v4 = vld [vmem:[#allocation26_spill] sm:$0xff] }
 0x7c2   :  { %1912 = vmatprep.subr.bf16.mxu0 %v8787_v61  ;;  %1985 = vmatprep.subr.bf16.mxu1 %v8790_v56  ;;  %v13407_v61 = vld [vmem:[#allocation27_spill] sm:$0xff] }
 0x7c5   :  { %1913 = vmatpush1.bf16.msra.mxu0 %v8785_v46  ;;  %1986 = vmatpush1.bf16.msra.mxu1 %v8788_v54 }
 0x7c6   :  { %1914 = vmatprep.subr.bf16.mxu0 %v8793_v18  ;;  %1987 = vmatprep.subr.bf16.mxu1 %v8796_v38  ;;  %v13408_v18 = vld [vmem:[#allocation28_spill] sm:$0xff] }
 0x7c9   :  { %1915 = vmatpush1.bf16.msra.mxu0 %v8791_v42  ;;  %1988 = vmatpush1.bf16.msra.mxu1 %v8794_v41  ;;  %v13409_v42 = vld [vmem:[#allocation29_spill] sm:$0xff] }
 0x7ca   :  { %1916 = vmatprep.subr.bf16.mxu0 %v8799_v5  ;;  %1989 = vmatprep.subr.bf16.mxu1 %v8802_v43 }
 0x7cd   :  { %1917 = vmatpush1.bf16.msra.mxu0 %v8797_v35  ;;  %1990 = vmatpush1.bf16.msra.mxu1 %v8800_v2 }
 0x7ce   :  { %1918 = vmatprep.subr.bf16.mxu0 %v8805_v29  ;;  %1991 = vmatprep.subr.bf16.mxu1 %v8808_v32 }
 0x7d1   :  { %1919 = vmatpush1.bf16.msra.mxu0 %v8803_v37  ;;  %1992 = vmatpush1.bf16.msra.mxu1 %v8806_v40 }
 0x7d2   :  { %1920 = vmatprep.subr.bf16.mxu0 %v8811_v48  ;;  %1993 = vmatprep.subr.bf16.mxu1 %v8814_v53 }
 0x7d5   :  { %1921 = vmatpush1.bf16.msra.mxu0 %v8809_v22  ;;  %1994 = vmatpush1.bf16.msra.mxu1 %v8812_v21 }
 0x7d6   :  { %2248 = vmatprep.subr.bf16.mxu0 %v10870_v28  ;;  %2289 = vmatprep.subr.bf16.mxu1 %v10872_v58 }
 0x7d8   :  { %1939 = vmatmul.mubr.bf16.vlgmr.msra.gmra.mrb[48].mxu0 %v1686_v24  ;;  %2012 = vmatmul.mubr.bf16.vlgmr.msra.gmra.mrb[48].mxu1 %v1686_v24 }
 0x7d9   :  { %1948 = vmatprep.mubr.bf16.mxu0 %v13395_v44  ;;  %2021 = vmatprep.mubr.bf16.mxu1 %v13395_v44 }
 0x7da   :  { %2249 = vmatpush1.bf16.msra.mxu0 %v10874_v15  ;;  %2290 = vmatpush1.bf16.msra.mxu1 %v10876_v50 }
 0x7db   :  { %2250 = vmatprep.subr.bf16.mxu0 %v10882_v39  ;;  %2291 = vmatprep.subr.bf16.mxu1 %v10884_v45 }
 0x7de   :  { %2251 = vmatpush1.bf16.msra.mxu0 %v10886_v0  ;;  %2292 = vmatpush1.bf16.msra.mxu1 %v10888_v17 }
 0x7df   :  { %2252 = vmatprep.subr.bf16.mxu0 %v10894_v60  ;;  %2293 = vmatprep.subr.bf16.mxu1 %v10896_v20 }
 0x7e0   :  { %1949 = vmatmul.mubr.bf16.gmra.mrb[52].mxu0 %v1687_v26  ;;  %2022 = vmatmul.mubr.bf16.gmra.mrb[52].mxu1 %v1687_v26 }
 0x7e1   :  { %1958 = vmatprep.mubr.bf16.mxu0 %v13395_v44  ;;  %2031 = vmatprep.mubr.bf16.mxu1 %v13395_v44 }
 0x7e2   :  { %2253 = vmatpush1.bf16.msra.mxu0 %v10898_v62  ;;  %2294 = vmatpush1.bf16.msra.mxu1 %v10900_v16 }
 0x7e3   :  { %2254 = vmatprep.subr.bf16.mxu0 %v10906_v9  ;;  %2295 = vmatprep.subr.bf16.mxu1 %v10908_v7 }
 0x7e6   :  { %2255 = vmatpush1.bf16.msra.mxu0 %v10910_v10  ;;  %2296 = vmatpush1.bf16.msra.mxu1 %v10912_v11 }
 0x7e7   :  { %2256 = vmatprep.subr.bf16.mxu0 %v10918_v12  ;;  %2297 = vmatprep.subr.bf16.mxu1 %v10920_v13 }
 0x7e8   :  { %1959 = vmatmul.mubr.bf16.gmra.mrb[56].mxu0 %v1688_v27  ;;  %2032 = vmatmul.mubr.bf16.gmra.mrb[56].mxu1 %v1688_v27 }
 0x7e9   :  { %1968 = vmatprep.mubr.bf16.mxu0 %v13395_v44  ;;  %2041 = vmatprep.mubr.bf16.mxu1 %v13395_v44 }
 0x7ea   :  { %2257 = vmatpush1.bf16.msra.mxu0 %v10922_v19  ;;  %2298 = vmatpush1.bf16.msra.mxu1 %v10924_v31 }
 0x7eb   :  { %2258 = vmatprep.subr.bf16.mxu0 %v10930_v33  ;;  %2299 = vmatprep.subr.bf16.mxu1 %v10932_v6 }
 0x7ee   :  { %2259 = vmatpush1.bf16.msra.mxu0 %v10934_v8  ;;  %2300 = vmatpush1.bf16.msra.mxu1 %v10936_v34 }
 0x7ef   :  { %2260 = vmatprep.subr.bf16.mxu0 %v10942_v47  ;;  %2301 = vmatprep.subr.bf16.mxu1 %v10944_v51 }
 0x7f2   :  { %2261 = vmatpush1.bf16.msra.mxu0 %v10946_v30  ;;  %2302 = vmatpush1.bf16.msra.mxu1 %v10948_v52 }
 0x7f3   :  { %2262 = vmatprep.subr.bf16.mxu0 %v10954_v14  ;;  %2303 = vmatprep.subr.bf16.mxu1 %v10956_v55 }
 0x7f6   :  { %2263 = vmatpush1.bf16.msra.mxu0 %v10958_v57  ;;  %2304 = vmatpush1.bf16.msra.mxu1 %v10960_v3 }
 0x7f7   :  { %2364 = vmatprep.subr.bf16.mxu0 %v10870_v28  ;;  %2405 = vmatprep.subr.bf16.mxu1 %v10872_v58 }
 0x88b   :  { %v1567_v1 = vpop.f32.mrb[44].mxu0  ;;  %v1608_v59 = vpop.f32.mrb[44].mxu1 }
 0x88c   :  { %v1615_v63 = vadd.f32 %v1567_v1, %v13406_v4  ;;  %v1617_v56 = vadd.f32 %v1608_v59, %v13407_v61  ;;  %v1569_v46 = vpop.f32.mrb[45].mxu0  ;;  %v1610_v54 = vpop.f32.mrb[45].mxu1 }
 0x88d   :  { %v1616_v38 = vadd.f32 %v1569_v46, %v13408_v18  ;;  %v1618_v41 = vadd.f32 %v1610_v54, %v13409_v42  ;;  %v1571_v5 = vpop.f32.mrb[46].mxu0  ;;  %v1612_v43 = vpop.f32.mrb[46].mxu1 }
 0x88e   :  { %v8188_v35 = vmul.f32 -1.442695, %v1615_v63  ;;  %v1572_v2 = vpop.f32.mrb[47].mxu0  ;;  %v1613_v29 = vpop.f32.mrb[47].mxu1 }
 0x88f   :  { %v8189_v32 = vmul.f32 -1.442695, %v1616_v38  ;;  %v8190_v37 = vmul.f32 -1.442695, %v1618_v41 }
 0x890   :  { %9287 = vpow2.f32 %v8188_v35 }
 0x891   :  { %9289 = vpow2.f32 %v8189_v32 }
 0x892   :  { %9291 = vpow2.f32 %v8190_v37 }
 0x893   :  { %9293 = vtanh.f32 %v1617_v56 }
 0x89a   :  { %v9288_v40 = vpop.eup %9287 }
 0x89b   :  { %v9290_v48 = vpop.eup %9289  ;;  %v1622_v53 = vadd.f32 1.0, %v9288_v40 }
 0x89c   :  { %v1628_v22 = vadd.f32 1.0, %v9290_v48  ;;  %v9292_v21 = vpop.eup %9291 }
 0x89d   :  { %9295 = vrcp.f32 %v1622_v53  ;;  %v9294_v23 = vpop.eup %9293  ;;  %v1635_v27 = vadd.f32 1.0, %v9292_v21 }
 0x89e   :  { %9297 = vrcp.f32 %v1628_v22 }
 0x89f   :  { %9299 = vrcp.f32 %v1635_v27  ;;  %v1724_v27 = vld [vmem:[#allocation8 + $0x4] sm:$0xf] }
 0x8a7   :  { %v9296_v25 = vpop.eup %9295 }
 0x8a8   :  { %v9298_v24 = vpop.eup %9297  ;;  %v1639_v26 = vmul.f32 %v9296_v25, %v9294_v23 }
 0x8a9   :  { %v1638_v1 = vmul.f32 %v9298_v24, %v10849_v36  ;;  %v9300_v2 = vpop.eup %9299 }
 0x8ab   :  { %v10973_v59 = vpop.f32.mrb[48].mxu0  ;;  %v10975_v4 = vpop.f32.mrb[48].mxu1  ;;  %v1640_v63 = vadd.f32 %v1639_v26, %v1638_v1 }
 0x8ac   :  { %v10977_v61 = vpop.f32.mrb[49].mxu0  ;;  %v10979_v56 = vpop.f32.mrb[49].mxu1 }
 0x8ad   :  { %v10981_v46 = vpop.f32.mrb[50].mxu0  ;;  %v10983_v54 = vpop.f32.mrb[50].mxu1  ;;  %9301 = vtanh.f32 %v1640_v63 }
 0x8ae   :  { %v10985_v18 = vpop.f32.mrb[51].mxu0  ;;  %v10987_v38 = vpop.f32.mrb[51].mxu1 }
 0x8b3   :  { %v10989_v36 = vpop.f32.mrb[52].mxu0  ;;  %v10991_v42 = vpop.f32.mrb[52].mxu1 }
 0x8b4   :  { %13410 = vst [vmem:[#allocation19_spill] sm:$0xff] %v10991_v42  ;;  %v10993_v41 = vpop.f32.mrb[53].mxu0  ;;  %v10995_v5 = vpop.f32.mrb[53].mxu1 }
 0x8b5   :  { %13411 = vst [vmem:[#allocation20_spill] sm:$0xff] %v10993_v41  ;;  %13412 = vst [vmem:[#allocation21_spill] sm:$0xff] %v10995_v5  ;;  %v10997_v43 = vpop.f32.mrb[54].mxu0  ;;  %v10999_v35 = vpop.f32.mrb[54].mxu1 }
 0x8b6   :  { %13413 = vst [vmem:[#allocation22_spill] sm:$0xff] %v10997_v43  ;;  %13414 = vst [vmem:[#allocation23_spill] sm:$0xff] %v10999_v35  ;;  %v11001_v29 = vpop.f32.mrb[55].mxu0  ;;  %v11003_v32 = vpop.f32.mrb[55].mxu1 }
 0x8b7   :  { %13415 = vst [vmem:[#allocation24_spill] sm:$0xff] %v11001_v29  ;;  %13416 = vst [vmem:[#allocation25_spill] sm:$0xff] %v11003_v32  ;;  %v9302_v37 = vpop.eup %9301 }
 0x8b8   :  { %v1642_v40 = vmul.f32 %v9302_v37, %v9300_v2 }
 0x8ba   :  { %v1689_v48 = vpack.c.bf16 %v1642_v40, %v10852_v49 }
 0x8bb   :  { %v11006_v53 = vpop.f32.mrb[56].mxu0  ;;  %v11008_v22 = vpop.f32.mrb[56].mxu1 }
 0x8bc   :  { %13417 = vst [vmem:[#allocation30_spill] sm:$0xff] %v11006_v53  ;;  %13418 = vst [vmem:[#allocation31_spill] sm:$0xff] %v11008_v22  ;;  %v11010_v21 = vpop.f32.mrb[57].mxu0  ;;  %v11012_v23 = vpop.f32.mrb[57].mxu1  ;;  %1969 = vmatmul.mubr.bf16.gmra.mrb[60].mxu0 %v1689_v48  ;;  %2042 = vmatmul.mubr.bf16.gmra.mrb[60].mxu1 %v1689_v48 }
 0x8bd   :  { %13419 = vst [vmem:[#allocation26_spill] sm:$0xff] %v11010_v21  ;;  %13420 = vst [vmem:[#allocation27_spill] sm:$0xff] %v11012_v23  ;;  %v11014_v25 = vpop.f32.mrb[58].mxu0  ;;  %v11016_v24 = vpop.f32.mrb[58].mxu1  ;;  %2280 = vmatprep.mubr.bf16.mxu0 %v13395_v44  ;;  %2321 = vmatprep.mubr.bf16.mxu1 %v13395_v44 }
 0x8be   :  { %13421 = vst [vmem:[#allocation28_spill] sm:$0xff] %v11014_v25  ;;  %13422 = vst [vmem:[#allocation29_spill] sm:$0xff] %v11016_v24  ;;  %v11020_v26 = vpop.f32.mrb[59].mxu0  ;;  %v11022_v49 = vpop.f32.mrb[59].mxu1  ;;  %v13432_v24 = vld [vmem:[#allocation15_spill] sm:$0xff] }
 0x8bf   :  { %13423 = vst [vmem:[#allocation32_spill] sm:$0xff] %v11020_v26  ;;  %13424 = vst [vmem:[#allocation33_spill] sm:$0xff] %v11022_v49  ;;  %v13431_v49 = vld [vmem:[#allocation17_spill] sm:$0xff]  ;;  %v11076_v25 = vrot.slane %v1724_v27, %v13432_v24 }
 0x8c0   :  { %v11073_v26 = vrot.slane %v1724_v27, %v13431_v49 }
 0x8c1   :  { %v2014_v49 = vadd.f32 %v10975_v4, %v11076_v25 }
 0x8c4   :  { %2281 = vmatmul.mubr.bf16.vlgmr.msra.gmra.mrb[64].mxu0 %v13395_v44  ;;  %2322 = vmatmul.mubr.bf16.vlgmr.msra.gmra.mrb[64].mxu1 %v13395_v44 }
 0x8c5   :  { %2365 = vmatpush1.bf16.msra.mxu0 %v10874_v15  ;;  %2406 = vmatpush1.bf16.msra.mxu1 %v10876_v50 }
 0x8c6   :  { %2366 = vmatprep.subr.bf16.mxu0 %v10882_v39  ;;  %2407 = vmatprep.subr.bf16.mxu1 %v10884_v45 }
 0x8c7   :  { %2396 = vmatprep.mubr.bf16.mxu0 %v13395_v44  ;;  %2437 = vmatprep.mubr.bf16.mxu1 %v13395_v44 }
 0x8c9   :  { %2367 = vmatpush1.bf16.msra.mxu0 %v10886_v0  ;;  %2408 = vmatpush1.bf16.msra.mxu1 %v10888_v17 }
 0x8ca   :  { %2368 = vmatprep.subr.bf16.mxu0 %v10894_v60  ;;  %2409 = vmatprep.subr.bf16.mxu1 %v10896_v20 }
 0x8cd   :  { %2369 = vmatpush1.bf16.msra.mxu0 %v10898_v62  ;;  %2410 = vmatpush1.bf16.msra.mxu1 %v10900_v16 }
 0x8ce   :  { %2370 = vmatprep.subr.bf16.mxu0 %v10906_v9  ;;  %2411 = vmatprep.subr.bf16.mxu1 %v10908_v7 }
 0x8d1   :  { %2371 = vmatpush1.bf16.msra.mxu0 %v10910_v10  ;;  %2412 = vmatpush1.bf16.msra.mxu1 %v10912_v11 }
 0x8d2   :  { %2372 = vmatprep.subr.bf16.mxu0 %v10918_v12  ;;  %2413 = vmatprep.subr.bf16.mxu1 %v10920_v13 }
 0x8d5   :  { %2373 = vmatpush1.bf16.msra.mxu0 %v10922_v19  ;;  %2414 = vmatpush1.bf16.msra.mxu1 %v10924_v31 }
 0x8d6   :  { %2374 = vmatprep.subr.bf16.mxu0 %v10930_v33  ;;  %2415 = vmatprep.subr.bf16.mxu1 %v10932_v6 }
 0x8d9   :  { %2375 = vmatpush1.bf16.msra.mxu0 %v10934_v8  ;;  %2416 = vmatpush1.bf16.msra.mxu1 %v10936_v34 }
 0x8da   :  { %2376 = vmatprep.subr.bf16.mxu0 %v10942_v47  ;;  %2417 = vmatprep.subr.bf16.mxu1 %v10944_v51 }
 0x8dd   :  { %2377 = vmatpush1.bf16.msra.mxu0 %v10946_v30  ;;  %2418 = vmatpush1.bf16.msra.mxu1 %v10948_v52 }
 0x8de   :  { %2378 = vmatprep.subr.bf16.mxu0 %v10954_v14  ;;  %2419 = vmatprep.subr.bf16.mxu1 %v10956_v55 }
 0x8e1   :  { %2379 = vmatpush1.bf16.msra.mxu0 %v10958_v57  ;;  %2420 = vmatpush1.bf16.msra.mxu1 %v10960_v3 }
 0x8e2   :  { %2480 = vmatprep.subr.bf16.mxu0 %v10870_v28  ;;  %2521 = vmatprep.subr.bf16.mxu1 %v10872_v58 }
 0x98f   :  { %v11060_v1 = vpop.f32.mrb[60].mxu0  ;;  %v11062_v63 = vpop.f32.mrb[60].mxu1 }
 0x990   :  { %13425 = vst [vmem:[#allocation34_spill] sm:$0xff] %v11060_v1  ;;  %13426 = vst [vmem:[#allocation35_spill] sm:$0xff] %v11062_v63  ;;  %v11064_v2 = vpop.f32.mrb[61].mxu0  ;;  %v11066_v37 = vpop.f32.mrb[61].mxu1  ;;  %v13435_v1 = vld [vmem:[#allocation18_spill] sm:$0xff] }
 0x991   :  { %13427 = vst [vmem:[#allocation36_spill] sm:$0xff] %v11064_v2  ;;  %13428 = vst [vmem:[#allocation37_spill] sm:$0xff] %v11066_v37  ;;  %v11068_v40 = vpop.f32.mrb[62].mxu0  ;;  %v11070_v48 = vpop.f32.mrb[62].mxu1  ;;  %v11083_v63 = vrot.slane %v1724_v27, %v13435_v1  ;;  %v13436_v2 = vld [vmem:[#allocation16_spill] sm:$0xff] }
 0x992   :  { %13429 = vst [vmem:[#allocation38_spill] sm:$0xff] %v11068_v40  ;;  %13430 = vst [vmem:[#allocation39_spill] sm:$0xff] %v11070_v48  ;;  %v11078_v23 = vpop.f32.mrb[63].mxu0  ;;  %v11080_v21 = vpop.f32.mrb[63].mxu1  ;;  %v11086_v22 = vrot.slane %v1724_v27, %v13436_v2  ;;  %v1941_v40 = vadd.f32 %v10973_v59, %v11073_v26 }
 0x993   :  { %13433 = vst [vmem:[#allocation40_spill] sm:$0xff] %v11078_v23  ;;  %13434 = vst [vmem:[#allocation41_spill] sm:$0xff] %v11080_v21  ;;  %v1943_v24 = vadd.f32 %v10977_v61, %v11083_v63 }
 0x994   :  { %v2016_v23 = vadd.f32 %v10979_v56, %v11086_v22 }
 0x997   :  { %v2282_v48 = vpop.f32.mrb[64].mxu0  ;;  %v2323_v21 = vpop.f32.mrb[64].mxu1 }
 0x998   :  { %v2330_v37 = vadd.f32 %v2282_v48, %v1941_v40  ;;  %v2332_v1 = vadd.f32 %v2323_v21, %v2014_v49  ;;  %v2284_v53 = vpop.f32.mrb[65].mxu0  ;;  %v2325_v32 = vpop.f32.mrb[65].mxu1  ;;  %v2020_v48 = vadd.f32 %v10987_v38, %v11086_v22 }
 0x999   :  { %v2331_v27 = vadd.f32 %v2284_v53, %v1943_v24  ;;  %v2333_v2 = vadd.f32 %v2325_v32, %v2016_v23  ;;  %v2286_v29 = vpop.f32.mrb[66].mxu0  ;;  %v2327_v35 = vpop.f32.mrb[66].mxu1 }
 0x99a   :  { %v8255_v59 = vmul.f32 -1.442695, %v2330_v37  ;;  %v2287_v43 = vpop.f32.mrb[67].mxu0  ;;  %v2328_v5 = vpop.f32.mrb[67].mxu1  ;;  %v1947_v37 = vadd.f32 %v10985_v18, %v11083_v63 }
 0x99b   :  { %v8256_v4 = vmul.f32 -1.442695, %v2331_v27  ;;  %v8257_v61 = vmul.f32 -1.442695, %v2333_v2  ;;  %v2018_v2 = vadd.f32 %v10983_v54, %v11076_v25 }
 0x99c   :  { %9303 = vpow2.f32 %v8255_v59 }
 0x99d   :  { %9305 = vpow2.f32 %v8256_v4 }
 0x99e   :  { %9307 = vpow2.f32 %v8257_v61 }
 0x99f   :  { %9309 = vtanh.f32 %v2332_v1  ;;  %v1945_v1 = vadd.f32 %v10981_v46, %v11073_v26 }
 0x9a6   :  { %v9304_v41 = vpop.eup %9303 }
 0x9a7   :  { %v9306_v42 = vpop.eup %9305  ;;  %v2337_v56 = vadd.f32 1.0, %v9304_v41 }
 0x9a8   :  { %v2343_v40 = vadd.f32 1.0, %v9306_v42  ;;  %v9308_v21 = vpop.eup %9307 }
 0x9a9   :  { %9311 = vrcp.f32 %v2337_v56  ;;  %v9310_v53 = vpop.eup %9309  ;;  %v2350_v23 = vadd.f32 1.0, %v9308_v21 }
 0x9aa   :  { %9313 = vrcp.f32 %v2343_v40 }
 0x9ab   :  { %9315 = vrcp.f32 %v2350_v23 }
 0x9b3   :  { %v9312_v32 = vpop.eup %9311 }
 0x9b4   :  { %v9314_v29 = vpop.eup %9313  ;;  %v2354_v35 = vmul.f32 %v9312_v32, %v9310_v53 }
 0x9b5   :  { %v2353_v43 = vmul.f32 0.0, %v9314_v29  ;;  %v9316_v24 = vpop.eup %9315 }
 0x9b7   :  { %v11096_v5 = vadd.f32 %v2354_v35, %v2353_v43 }
 0x9b9   :  { %9317 = vtanh.f32 %v11096_v5 }
 0x9c3   :  { %v9318_v49 = vpop.eup %9317 }
 0x9c4   :  { %v11099_v41 = vmul.f32 %v9318_v49, %v9316_v24 }
 0x9c6   :  { %v2363_v42 = vpack.c.bf16 %v11099_v41, %v11099_v41 }
 0x9c8   :  { %2397 = vmatmul.mubr.bf16.vlgmr.msra.gmra.mrb[68].mxu0 %v2363_v42  ;;  %2438 = vmatmul.mubr.bf16.vlgmr.msra.gmra.mrb[68].mxu1 %v2363_v42 }
 0x9c9   :  { %2481 = vmatpush1.bf16.msra.mxu0 %v10874_v15  ;;  %2522 = vmatpush1.bf16.msra.mxu1 %v10876_v50 }
 0x9ca   :  { %2482 = vmatprep.subr.bf16.mxu0 %v10882_v39  ;;  %2523 = vmatprep.subr.bf16.mxu1 %v10884_v45 }
 0x9cb   :  { %2512 = vmatprep.mubr.bf16.mxu0 %v13395_v44  ;;  %2553 = vmatprep.mubr.bf16.mxu1 %v13395_v44 }
 0x9cd   :  { %2483 = vmatpush1.bf16.msra.mxu0 %v10886_v0  ;;  %2524 = vmatpush1.bf16.msra.mxu1 %v10888_v17 }
 0x9ce   :  { %2484 = vmatprep.subr.bf16.mxu0 %v10894_v60  ;;  %2525 = vmatprep.subr.bf16.mxu1 %v10896_v20 }
 0x9d1   :  { %2485 = vmatpush1.bf16.msra.mxu0 %v10898_v62  ;;  %2526 = vmatpush1.bf16.msra.mxu1 %v10900_v16 }
 0x9d2   :  { %2486 = vmatprep.subr.bf16.mxu0 %v10906_v9  ;;  %2527 = vmatprep.subr.bf16.mxu1 %v10908_v7 }
 0x9d5   :  { %2487 = vmatpush1.bf16.msra.mxu0 %v10910_v10  ;;  %2528 = vmatpush1.bf16.msra.mxu1 %v10912_v11 }
 0x9d6   :  { %2488 = vmatprep.subr.bf16.mxu0 %v10918_v12  ;;  %2529 = vmatprep.subr.bf16.mxu1 %v10920_v13 }
 0x9d9   :  { %2489 = vmatpush1.bf16.msra.mxu0 %v10922_v19  ;;  %2530 = vmatpush1.bf16.msra.mxu1 %v10924_v31 }
 0x9da   :  { %2490 = vmatprep.subr.bf16.mxu0 %v10930_v33  ;;  %2531 = vmatprep.subr.bf16.mxu1 %v10932_v6 }
 0x9dd   :  { %2491 = vmatpush1.bf16.msra.mxu0 %v10934_v8  ;;  %2532 = vmatpush1.bf16.msra.mxu1 %v10936_v34 }
 0x9de   :  { %2492 = vmatprep.subr.bf16.mxu0 %v10942_v47  ;;  %2533 = vmatprep.subr.bf16.mxu1 %v10944_v51 }
 0x9e1   :  { %2493 = vmatpush1.bf16.msra.mxu0 %v10946_v30  ;;  %2534 = vmatpush1.bf16.msra.mxu1 %v10948_v52 }
 0x9e2   :  { %2494 = vmatprep.subr.bf16.mxu0 %v10954_v14  ;;  %2535 = vmatprep.subr.bf16.mxu1 %v10956_v55 }
 0x9e5   :  { %2495 = vmatpush1.bf16.msra.mxu0 %v10958_v57  ;;  %2536 = vmatpush1.bf16.msra.mxu1 %v10960_v3 }
 0x9e6   :  { %2596 = vmatprep.subr.bf16.mxu0 %v10870_v28  ;;  %2637 = vmatprep.subr.bf16.mxu1 %v10872_v58 }
 0xa9b   :  { %v2398_v27 = vpop.f32.mrb[68].mxu0  ;;  %v2439_v59 = vpop.f32.mrb[68].mxu1 }
 0xa9c   :  { %v2446_v4 = vadd.f32 %v2398_v27, %v1945_v1  ;;  %v2448_v61 = vadd.f32 %v2439_v59, %v2018_v2  ;;  %v2400_v56 = vpop.f32.mrb[69].mxu0  ;;  %v2441_v40 = vpop.f32.mrb[69].mxu1 }
 0xa9d   :  { %v2447_v21 = vadd.f32 %v2400_v56, %v1947_v37  ;;  %v2449_v53 = vadd.f32 %v2441_v40, %v2020_v48  ;;  %v2402_v32 = vpop.f32.mrb[70].mxu0  ;;  %v2443_v29 = vpop.f32.mrb[70].mxu1 }
 0xa9e   :  { %v8258_v46 = vmul.f32 -1.442695, %v2446_v4  ;;  %v2403_v35 = vpop.f32.mrb[71].mxu0  ;;  %v2444_v23 = vpop.f32.mrb[71].mxu1  ;;  %v13438_v29 = vld [vmem:[#allocation20_spill] sm:$0xff] }
 0xa9f   :  { %v8259_v54 = vmul.f32 -1.442695, %v2447_v21  ;;  %v8260_v18 = vmul.f32 -1.442695, %v2449_v53  ;;  %v13437_v53 = vld [vmem:[#allocation19_spill] sm:$0xff]  ;;  %v13439_v35 = vld [vmem:[#allocation21_spill] sm:$0xff] }
 0xaa0   :  { %9319 = vpow2.f32 %v8258_v46  ;;  %v2024_v32 = vadd.f32 %v13437_v53, %v11076_v25  ;;  %v1953_v46 = vadd.f32 %v13438_v29, %v11083_v63  ;;  %v2026_v23 = vadd.f32 %v13439_v35, %v11086_v22 }
 0xaa1   :  { %9321 = vpow2.f32 %v8259_v54 }
 0xaa2   :  { %9323 = vpow2.f32 %v8260_v18 }
 0xaa3   :  { %9325 = vtanh.f32 %v2448_v61 }
 0xaaa   :  { %v9320_v43 = vpop.eup %9319 }
 0xaab   :  { %v9322_v24 = vpop.eup %9321  ;;  %v2453_v38 = vadd.f32 1.0, %v9320_v43 }
 0xaac   :  { %v2459_v49 = vadd.f32 1.0, %v9322_v24  ;;  %v9324_v42 = vpop.eup %9323 }
 0xaad   :  { %9327 = vrcp.f32 %v2453_v38  ;;  %v9326_v1 = vpop.eup %9325  ;;  %v2466_v27 = vadd.f32 1.0, %v9324_v42 }
 0xaae   :  { %9329 = vrcp.f32 %v2459_v49 }
 0xaaf   :  { %9331 = vrcp.f32 %v2466_v27 }
 0xab7   :  { %v9328_v2 = vpop.eup %9327 }
 0xab8   :  { %v9330_v37 = vpop.eup %9329  ;;  %v2470_v48 = vmul.f32 %v9328_v2, %v9326_v1 }
 0xab9   :  { %v2469_v59 = vmul.f32 %v9330_v37, %v11096_v5  ;;  %v9332_v56 = vpop.eup %9331  ;;  %v1951_v5 = vadd.f32 %v10989_v36, %v11073_v26 }
 0xabb   :  { %v11146_v4 = vadd.f32 %v2470_v48, %v2469_v59 }
 0xabd   :  { %9333 = vtanh.f32 %v11146_v4 }
 0xac7   :  { %v9334_v40 = vpop.eup %9333 }
 0xac8   :  { %v11149_v21 = vmul.f32 %v9334_v40, %v9332_v56 }
 0xaca   :  { %v2479_v61 = vpack.c.bf16 %v11149_v21, %v11149_v21 }
 0xacc   :  { %2513 = vmatmul.mubr.bf16.vlgmr.msra.gmra.mrb[72].mxu0 %v2479_v61  ;;  %2554 = vmatmul.mubr.bf16.vlgmr.msra.gmra.mrb[72].mxu1 %v2479_v61 }
 0xacd   :  { %2597 = vmatpush1.bf16.msra.mxu0 %v10874_v15  ;;  %2638 = vmatpush1.bf16.msra.mxu1 %v10876_v50 }
 0xace   :  { %2598 = vmatprep.subr.bf16.mxu0 %v10882_v39  ;;  %2639 = vmatprep.subr.bf16.mxu1 %v10884_v45 }
 0xacf   :  { %2628 = vmatprep.mubr.bf16.mxu0 %v13395_v44  ;;  %2669 = vmatprep.mubr.bf16.mxu1 %v13395_v44 }
 0xad1   :  { %2599 = vmatpush1.bf16.msra.mxu0 %v10886_v0  ;;  %2640 = vmatpush1.bf16.msra.mxu1 %v10888_v17 }
 0xad2   :  { %2600 = vmatprep.subr.bf16.mxu0 %v10894_v60  ;;  %2641 = vmatprep.subr.bf16.mxu1 %v10896_v20 }
 0xad5   :  { %2601 = vmatpush1.bf16.msra.mxu0 %v10898_v62  ;;  %2642 = vmatpush1.bf16.msra.mxu1 %v10900_v16 }
 0xad6   :  { %2602 = vmatprep.subr.bf16.mxu0 %v10906_v9  ;;  %2643 = vmatprep.subr.bf16.mxu1 %v10908_v7 }
 0xad9   :  { %2603 = vmatpush1.bf16.msra.mxu0 %v10910_v10  ;;  %2644 = vmatpush1.bf16.msra.mxu1 %v10912_v11 }
 0xada   :  { %2604 = vmatprep.subr.bf16.mxu0 %v10918_v12  ;;  %2645 = vmatprep.subr.bf16.mxu1 %v10920_v13 }
 0xadd   :  { %2605 = vmatpush1.bf16.msra.mxu0 %v10922_v19  ;;  %2646 = vmatpush1.bf16.msra.mxu1 %v10924_v31 }
 0xade   :  { %2606 = vmatprep.subr.bf16.mxu0 %v10930_v33  ;;  %2647 = vmatprep.subr.bf16.mxu1 %v10932_v6 }
 0xae1   :  { %2607 = vmatpush1.bf16.msra.mxu0 %v10934_v8  ;;  %2648 = vmatpush1.bf16.msra.mxu1 %v10936_v34 }
 0xae2   :  { %2608 = vmatprep.subr.bf16.mxu0 %v10942_v47  ;;  %2649 = vmatprep.subr.bf16.mxu1 %v10944_v51 }
 0xae5   :  { %2609 = vmatpush1.bf16.msra.mxu0 %v10946_v30  ;;  %2650 = vmatpush1.bf16.msra.mxu1 %v10948_v52 }
 0xae6   :  { %2610 = vmatprep.subr.bf16.mxu0 %v10954_v14  ;;  %2651 = vmatprep.subr.bf16.mxu1 %v10956_v55 }
 0xae9   :  { %2611 = vmatpush1.bf16.msra.mxu0 %v10958_v57  ;;  %2652 = vmatpush1.bf16.msra.mxu1 %v10960_v3 }
 0xaea   :  { %2712 = vmatprep.subr.bf16.mxu0 %v10870_v28  ;;  %2753 = vmatprep.subr.bf16.mxu1 %v10872_v58 }
 0xb9f   :  { %v2514_v54 = vpop.f32.mrb[72].mxu0  ;;  %v2555_v18 = vpop.f32.mrb[72].mxu1 }
 0xba0   :  { %v2562_v43 = vadd.f32 %v2514_v54, %v1951_v5  ;;  %v2564_v24 = vadd.f32 %v2555_v18, %v2024_v32  ;;  %v2516_v38 = vpop.f32.mrb[73].mxu0  ;;  %v2557_v49 = vpop.f32.mrb[73].mxu1 }
 0xba1   :  { %v2563_v42 = vadd.f32 %v2516_v38, %v1953_v46  ;;  %v2565_v1 = vadd.f32 %v2557_v49, %v2026_v23  ;;  %v2518_v2 = vpop.f32.mrb[74].mxu0  ;;  %v2559_v37 = vpop.f32.mrb[74].mxu1 }
 0xba2   :  { %v8261_v36 = vmul.f32 -1.442695, %v2562_v43  ;;  %v2519_v48 = vpop.f32.mrb[75].mxu0  ;;  %v2560_v27 = vpop.f32.mrb[75].mxu1  ;;  %v13441_v2 = vld [vmem:[#allocation23_spill] sm:$0xff] }
 0xba3   :  { %v8262_v59 = vmul.f32 -1.442695, %v2563_v42  ;;  %v8263_v56 = vmul.f32 -1.442695, %v2565_v1  ;;  %v2028_v37 = vadd.f32 %v13441_v2, %v11076_v25  ;;  %v13443_v27 = vld [vmem:[#allocation25_spill] sm:$0xff] }
 0xba4   :  { %9335 = vpow2.f32 %v8261_v36  ;;  %v13442_v36 = vld [vmem:[#allocation24_spill] sm:$0xff] }
 0xba5   :  { %9337 = vpow2.f32 %v8262_v59  ;;  %v1957_v48 = vadd.f32 %v13442_v36, %v11083_v63  ;;  %v2030_v59 = vadd.f32 %v13443_v27, %v11086_v22 }
 0xba6   :  { %9339 = vpow2.f32 %v8263_v56 }
 0xba7   :  { %9341 = vtanh.f32 %v2564_v24 }
 0xbae   :  { %v9336_v40 = vpop.eup %9335 }
 0xbaf   :  { %v9338_v61 = vpop.eup %9337  ;;  %v2569_v53 = vadd.f32 1.0, %v9336_v40 }
 0xbb0   :  { %v2575_v5 = vadd.f32 1.0, %v9338_v61  ;;  %v9340_v32 = vpop.eup %9339 }
 0xbb1   :  { %9343 = vrcp.f32 %v2569_v53  ;;  %v9342_v29 = vpop.eup %9341  ;;  %v2582_v54 = vadd.f32 1.0, %v9340_v32 }
 0xbb2   :  { %9345 = vrcp.f32 %v2575_v5 }
 0xbb3   :  { %9347 = vrcp.f32 %v2582_v54 }
 0xbbb   :  { %v9344_v46 = vpop.eup %9343 }
 0xbbc   :  { %v9346_v35 = vpop.eup %9345  ;;  %v2586_v23 = vmul.f32 %v9344_v46, %v9342_v29 }
 0xbbd   :  { %v2585_v18 = vmul.f32 %v9346_v35, %v11146_v4  ;;  %v9348_v38 = vpop.eup %9347  ;;  %v13440_v4 = vld [vmem:[#allocation22_spill] sm:$0xff] }
 0xbbe   :  { %v1955_v1 = vadd.f32 %v13440_v4, %v11073_v26 }
 0xbbf   :  { %v11196_v43 = vadd.f32 %v2586_v23, %v2585_v18 }
 0xbc1   :  { %9349 = vtanh.f32 %v11196_v43 }
 0xbcb   :  { %v9350_v49 = vpop.eup %9349 }
 0xbcc   :  { %v11199_v42 = vmul.f32 %v9350_v49, %v9348_v38 }
 0xbce   :  { %v2595_v24 = vpack.c.bf16 %v11199_v42, %v11199_v42 }
 0xbd0   :  { %2629 = vmatmul.mubr.bf16.vlgmr.msra.gmra.mrb[76].mxu0 %v2595_v24  ;;  %2670 = vmatmul.mubr.bf16.vlgmr.msra.gmra.mrb[76].mxu1 %v2595_v24 }
 0xbd1   :  { %2713 = vmatpush1.bf16.msra.mxu0 %v10874_v15  ;;  %2754 = vmatpush1.bf16.msra.mxu1 %v10876_v50 }
 0xbd2   :  { %2714 = vmatprep.subr.bf16.mxu0 %v10882_v39  ;;  %2755 = vmatprep.subr.bf16.mxu1 %v10884_v45 }
 0xbd3   :  { %2744 = vmatprep.mubr.bf16.mxu0 %v13395_v44  ;;  %2785 = vmatprep.mubr.bf16.mxu1 %v13395_v44 }
 0xbd5   :  { %2715 = vmatpush1.bf16.msra.mxu0 %v10886_v0  ;;  %2756 = vmatpush1.bf16.msra.mxu1 %v10888_v17 }
 0xbd6   :  { %2716 = vmatprep.subr.bf16.mxu0 %v10894_v60  ;;  %2757 = vmatprep.subr.bf16.mxu1 %v10896_v20 }
 0xbd9   :  { %2717 = vmatpush1.bf16.msra.mxu0 %v10898_v62  ;;  %2758 = vmatpush1.bf16.msra.mxu1 %v10900_v16 }
 0xbda   :  { %2718 = vmatprep.subr.bf16.mxu0 %v10906_v9  ;;  %2759 = vmatprep.subr.bf16.mxu1 %v10908_v7 }
 0xbdd   :  { %2719 = vmatpush1.bf16.msra.mxu0 %v10910_v10  ;;  %2760 = vmatpush1.bf16.msra.mxu1 %v10912_v11 }
 0xbde   :  { %2720 = vmatprep.subr.bf16.mxu0 %v10918_v12  ;;  %2761 = vmatprep.subr.bf16.mxu1 %v10920_v13 }
 0xbe1   :  { %2721 = vmatpush1.bf16.msra.mxu0 %v10922_v19  ;;  %2762 = vmatpush1.bf16.msra.mxu1 %v10924_v31 }
 0xbe2   :  { %2722 = vmatprep.subr.bf16.mxu0 %v10930_v33  ;;  %2763 = vmatprep.subr.bf16.mxu1 %v10932_v6 }
 0xbe5   :  { %2723 = vmatpush1.bf16.msra.mxu0 %v10934_v8  ;;  %2764 = vmatpush1.bf16.msra.mxu1 %v10936_v34 }
 0xbe6   :  { %2724 = vmatprep.subr.bf16.mxu0 %v10942_v47  ;;  %2765 = vmatprep.subr.bf16.mxu1 %v10944_v51 }
 0xbe9   :  { %2725 = vmatpush1.bf16.msra.mxu0 %v10946_v30  ;;  %2766 = vmatpush1.bf16.msra.mxu1 %v10948_v52 }
 0xbea   :  { %2726 = vmatprep.subr.bf16.mxu0 %v10954_v14  ;;  %2767 = vmatprep.subr.bf16.mxu1 %v10956_v55 }
 0xbed   :  { %2727 = vmatpush1.bf16.msra.mxu0 %v10958_v57  ;;  %2768 = vmatpush1.bf16.msra.mxu1 %v10960_v3 }
 0xbee   :  { %2828 = vmatprep.subr.bf16.mxu0 %v10870_v28  ;;  %2869 = vmatprep.subr.bf16.mxu1 %v10872_v58 }
 0xca3   :  { %v2630_v56 = vpop.f32.mrb[76].mxu0  ;;  %v2671_v40 = vpop.f32.mrb[76].mxu1 }
 0xca4   :  { %v2678_v61 = vadd.f32 %v2630_v56, %v1955_v1  ;;  %v2680_v53 = vadd.f32 %v2671_v40, %v2028_v37  ;;  %v2632_v5 = vpop.f32.mrb[77].mxu0  ;;  %v2673_v32 = vpop.f32.mrb[77].mxu1 }
 0xca5   :  { %v2679_v29 = vadd.f32 %v2632_v5, %v1957_v48  ;;  %v2681_v46 = vadd.f32 %v2673_v32, %v2030_v59  ;;  %v2634_v35 = vpop.f32.mrb[78].mxu0  ;;  %v2675_v23 = vpop.f32.mrb[78].mxu1 }
 0xca6   :  { %v8264_v54 = vmul.f32 -1.442695, %v2678_v61  ;;  %v2635_v18 = vpop.f32.mrb[79].mxu0  ;;  %v2676_v38 = vpop.f32.mrb[79].mxu1 }
 0xca7   :  { %v8265_v49 = vmul.f32 -1.442695, %v2679_v29  ;;  %v8266_v24 = vmul.f32 -1.442695, %v2681_v46 }
 0xca8   :  { %9351 = vpow2.f32 %v8264_v54 }
 0xca9   :  { %9353 = vpow2.f32 %v8265_v49 }
 0xcaa   :  { %9355 = vpow2.f32 %v8266_v24  ;;  %v11303_v24 = vld [vmem:[#allocation6 + $0x100] ss:$16 sps:$4 sm:$0xff]  }
 0xcab   :  { %9357 = vtanh.f32 %v2680_v53 }
 0xcb2   :  { %v9352_v4 = vpop.eup %9351 }
 0xcb3   :  { %v9354_v2 = vpop.eup %9353  ;;  %v2685_v36 = vadd.f32 1.0, %v9352_v4  ;;  %v11306_v4 = vld [vmem:[#allocation6 + $0x108] ss:$16 sps:$4 sm:$0xff]  }
 0xcb4   :  { %v2691_v1 = vadd.f32 1.0, %v9354_v2  ;;  %v9356_v37 = vpop.eup %9355  ;;  %v11309_v2 = vld [vmem:[#allocation6 + $0x124] ss:$16 sps:$4 sm:$0xff]  }
 0xcb5   :  { %9359 = vrcp.f32 %v2685_v36  ;;  %v9358_v48 = vpop.eup %9357  ;;  %v2698_v40 = vadd.f32 1.0, %v9356_v37  ;;  %v11312_v36 = vld [vmem:[#allocation6 + $0x12c] ss:$16 sps:$4 sm:$0xff]   ;;  %v11320_v37 = vld [vmem:[#allocation6 + $0x128] ss:$16 sps:$4 sm:$0xff]  }
 0xcb6   :  { %9361 = vrcp.f32 %v2691_v1  ;;  %v11317_v1 = vld [vmem:[#allocation6 + $0x120] ss:$16 sps:$4 sm:$0xff]  }
 0xcb7   :  { %9363 = vrcp.f32 %v2698_v40  ;;  %v11335_v40 = vld [vmem:[#allocation6 + $0x164] ss:$16 sps:$4 sm:$0xff]  }
 0xcbf   :  { %v9360_v27 = vpop.eup %9359 }
 0xcc0   :  { %v9362_v59 = vpop.eup %9361  ;;  %v2702_v56 = vmul.f32 %v9360_v27, %v9358_v48  ;;  %v11323_v48 = vld [vmem:[#allocation6 + $0x144] ss:$16 sps:$4 sm:$0xff]   ;;  %v11326_v27 = vld [vmem:[#allocation6 + $0x14c] ss:$16 sps:$4 sm:$0xff]  }
 0xcc1   :  { %v2701_v61 = vmul.f32 %v9362_v59, %v11196_v43  ;;  %v9364_v32 = vpop.eup %9363  ;;  %v11329_v59 = vld [vmem:[#allocation6 + $0x140] ss:$16 sps:$4 sm:$0xff]  }
 0xcc3   :  { %v11246_v5 = vadd.f32 %v2702_v56, %v2701_v61  ;;  %v11332_v56 = vld [vmem:[#allocation6 + $0x148] ss:$16 sps:$4 sm:$0xff]   ;;  %v11338_v61 = vld [vmem:[#allocation6 + $0x16c] ss:$16 sps:$4 sm:$0xff]  }
 0xcc5   :  { %9365 = vtanh.f32 %v11246_v5 }
 0xccf   :  { %v9366_v29 = vpop.eup %9365 }
 0xcd0   :  { %v11249_v46 = vmul.f32 %v9366_v29, %v9364_v32  ;;  %v11344_v32 = vld [vmem:[#allocation6 + $0x168] ss:$16 sps:$4 sm:$0xff]   ;;  %v11347_v29 = vld [vmem:[#allocation6 + $0x184] ss:$16 sps:$4 sm:$0xff]  }
 0xcd2   :  { %v2711_v53 = vpack.c.bf16 %v11249_v46, %v11249_v46 }
 0xcd4   :  { %2745 = vmatmul.mubr.bf16.vlgmr.msra.gmra.mrb[80].mxu0 %v2711_v53  ;;  %2786 = vmatmul.mubr.bf16.vlgmr.msra.gmra.mrb[80].mxu1 %v2711_v53  ;;  %v11350_v53 = vld [vmem:[#allocation6 + $0x18c] ss:$16 sps:$4 sm:$0xff]  }
 0xcd5   :  { %2829 = vmatpush1.bf16.msra.mxu0 %v10874_v15  ;;  %2870 = vmatpush1.bf16.msra.mxu1 %v10876_v50  ;;  %v13444_v15 = vld [vmem:[#allocation30_spill] sm:$0xff] }
 0xcd6   :  { %2830 = vmatprep.subr.bf16.mxu0 %v10882_v39  ;;  %2871 = vmatprep.subr.bf16.mxu1 %v10884_v45  ;;  %v1961_v50 = vadd.f32 %v13444_v15, %v11073_v26  ;;  %v13445_v39 = vld [vmem:[#allocation31_spill] sm:$0xff]  ;;  %v11353_v15 = vld [vmem:[#allocation6 + $0x180] ss:$16 sps:$4 sm:$0xff]  }
 0xcd7   :  { %2860 = vmatprep.mubr.bf16.mxu0 %v13395_v44  ;;  %2901 = vmatprep.mubr.bf16.mxu1 %v13395_v44  ;;  %v2034_v45 = vadd.f32 %v13445_v39, %v11076_v25  ;;  %v11359_v39 = vld [vmem:[#allocation6 + $0x1a4] ss:$16 sps:$4 sm:$0xff]  }
 0xcd9   :  { %2831 = vmatpush1.bf16.msra.mxu0 %v10886_v0  ;;  %2872 = vmatpush1.bf16.msra.mxu1 %v10888_v17  ;;  %v13446_v0 = vld [vmem:[#allocation26_spill] sm:$0xff] }
 0xcda   :  { %2832 = vmatprep.subr.bf16.mxu0 %v10894_v60  ;;  %2873 = vmatprep.subr.bf16.mxu1 %v10896_v20  ;;  %v1963_v17 = vadd.f32 %v13446_v0, %v11083_v63  ;;  %v13447_v60 = vld [vmem:[#allocation27_spill] sm:$0xff]  ;;  %v11365_v0 = vld [vmem:[#allocation6 + $0x1a0] ss:$16 sps:$4 sm:$0xff]  }
 0xcdb   :  { %v2036_v20 = vadd.f32 %v13447_v60, %v11086_v22  ;;  %v11371_v60 = vld [vmem:[#allocation6 + $0x1c4] ss:$16 sps:$4 sm:$0xff]  }
 0xcdd   :  { %2833 = vmatpush1.bf16.msra.mxu0 %v10898_v62  ;;  %2874 = vmatpush1.bf16.msra.mxu1 %v10900_v16 }
 0xcde   :  { %2834 = vmatprep.subr.bf16.mxu0 %v10906_v9  ;;  %2875 = vmatprep.subr.bf16.mxu1 %v10908_v7 }
 0xce1   :  { %2835 = vmatpush1.bf16.msra.mxu0 %v10910_v10  ;;  %2876 = vmatpush1.bf16.msra.mxu1 %v10912_v11 }
 0xce2   :  { %2836 = vmatprep.subr.bf16.mxu0 %v10918_v12  ;;  %2877 = vmatprep.subr.bf16.mxu1 %v10920_v13 }
 0xce5   :  { %2837 = vmatpush1.bf16.msra.mxu0 %v10922_v19  ;;  %2878 = vmatpush1.bf16.msra.mxu1 %v10924_v31 }
 0xce6   :  { %2838 = vmatprep.subr.bf16.mxu0 %v10930_v33  ;;  %2879 = vmatprep.subr.bf16.mxu1 %v10932_v6 }
 0xce9   :  { %2839 = vmatpush1.bf16.msra.mxu0 %v10934_v8  ;;  %2880 = vmatpush1.bf16.msra.mxu1 %v10936_v34 }
 0xcea   :  { %2840 = vmatprep.subr.bf16.mxu0 %v10942_v47  ;;  %2881 = vmatprep.subr.bf16.mxu1 %v10944_v51 }
 0xced   :  { %2841 = vmatpush1.bf16.msra.mxu0 %v10946_v30  ;;  %2882 = vmatpush1.bf16.msra.mxu1 %v10948_v52 }
 0xcee   :  { %2842 = vmatprep.subr.bf16.mxu0 %v10954_v14  ;;  %2883 = vmatprep.subr.bf16.mxu1 %v10956_v55 }
 0xcf1   :  { %2843 = vmatpush1.bf16.msra.mxu0 %v10958_v57  ;;  %2884 = vmatpush1.bf16.msra.mxu1 %v10960_v3 }
 0xcf2   :  { %2944 = vmatprep.subr.bf16.mxu0 %v10870_v28  ;;  %2985 = vmatprep.subr.bf16.mxu1 %v10872_v58 }
 0xda7   :  { %v2746_v62 = vpop.f32.mrb[80].mxu0  ;;  %v2787_v16 = vpop.f32.mrb[80].mxu1 }
 0xda8   :  { %v2794_v9 = vadd.f32 %v2746_v62, %v1961_v50  ;;  %v2796_v7 = vadd.f32 %v2787_v16, %v2034_v45  ;;  %v2748_v10 = vpop.f32.mrb[81].mxu0  ;;  %v2789_v28 = vpop.f32.mrb[81].mxu1  ;;  %v11356_v50 = vld [vmem:[#allocation6 + $0x188] ss:$16 sps:$4 sm:$0xff]   ;;  %v11362_v45 = vld [vmem:[#allocation6 + $0x1ac] ss:$16 sps:$4 sm:$0xff]  }
 0xda9   :  { %v2795_v11 = vadd.f32 %v2748_v10, %v1963_v17  ;;  %v2797_v58 = vadd.f32 %v2789_v28, %v2036_v20  ;;  %v2750_v12 = vpop.f32.mrb[82].mxu0  ;;  %v2791_v13 = vpop.f32.mrb[82].mxu1  ;;  %v11368_v17 = vld [vmem:[#allocation6 + $0x1a8] ss:$16 sps:$4 sm:$0xff]   ;;  %v11374_v20 = vld [vmem:[#allocation6 + $0x1cc] ss:$16 sps:$4 sm:$0xff]  }
 0xdaa   :  { %v8267_v19 = vmul.f32 -1.442695, %v2794_v9  ;;  %v2751_v31 = vpop.f32.mrb[83].mxu0  ;;  %v2792_v33 = vpop.f32.mrb[83].mxu1  ;;  %v11377_v62 = vld [vmem:[#allocation6 + $0x1c0] ss:$16 sps:$4 sm:$0xff]  }
 0xdab   :  { %v8268_v6 = vmul.f32 -1.442695, %v2795_v11  ;;  %v8269_v8 = vmul.f32 -1.442695, %v2797_v58  ;;  %v11380_v16 = vld [vmem:[#allocation6 + $0x1c8] ss:$16 sps:$4 sm:$0xff]  }
 0xdac   :  { %9367 = vpow2.f32 %v8267_v19  ;;  %v11383_v9 = vld [vmem:[#allocation6 + $0x1e4] ss:$16 sps:$4 sm:$0xff]   ;;  %v11389_v10 = vld [vmem:[#allocation6 + $0x1e0] ss:$16 sps:$4 sm:$0xff]   ;;  %v11392_v28 = vld [vmem:[#allocation6 + $0x1e8] ss:$16 sps:$4 sm:$0xff]  }
 0xdad   :  { %9369 = vpow2.f32 %v8268_v6  ;;  %v9877_v11 = vld [vmem:[#allocation6 + $0x104] ss:$16 sps:$4 sm:$0xff]   ;;  %v9878_v58 = vld [vmem:[#allocation6 + $0x10c] ss:$16 sps:$4 sm:$0xff]  }
 0xdae   :  { %9371 = vpow2.f32 %v8269_v8  ;;  %v13448_v12 = vld [vmem:[#allocation28_spill] sm:$0xff]  ;;  %v13449_v19 = vld [vmem:[#allocation29_spill] sm:$0xff] }
 0xdaf   :  { %9373 = vtanh.f32 %v2796_v7  ;;  %v11386_v7 = vld [vmem:[#allocation6 + $0x1ec] ss:$16 sps:$4 sm:$0xff]   ;;  %v1965_v13 = vadd.f32 %v13448_v12, %v11073_v26  ;;  %v2038_v31 = vadd.f32 %v13449_v19, %v11076_v25 }
 0xdb0   :  { %v13450_v33 = vld [vmem:[#allocation32_spill] sm:$0xff]  ;;  %v13451_v8 = vld [vmem:[#allocation33_spill] sm:$0xff] }
 0xdb1   :  { %v1967_v6 = vadd.f32 %v13450_v33, %v11083_v63 }
 0xdb6   :  { %v9368_v34 = vpop.eup %9367 }
 0xdb7   :  { %v9370_v47 = vpop.eup %9369  ;;  %v2801_v51 = vadd.f32 1.0, %v9368_v34  ;;  %v2040_v34 = vadd.f32 %v13451_v8, %v11086_v22 }
 0xdb8   :  { %v2807_v30 = vadd.f32 1.0, %v9370_v47  ;;  %v9372_v52 = vpop.eup %9371 }
 0xdb9   :  { %9375 = vrcp.f32 %v2801_v51  ;;  %v9374_v14 = vpop.eup %9373  ;;  %v2814_v43 = vadd.f32 1.0, %v9372_v52 }
 0xdba   :  { %9377 = vrcp.f32 %v2807_v30 }
 0xdbb   :  { %9379 = vrcp.f32 %v2814_v43 }
 0xdc3   :  { %v9376_v55 = vpop.eup %9375 }
 0xdc4   :  { %v9378_v57 = vpop.eup %9377  ;;  %v2818_v3 = vmul.f32 %v9376_v55, %v9374_v14 }
 0xdc5   :  { %v2817_v35 = vmul.f32 %v9378_v57, %v11246_v5  ;;  %v9380_v54 = vpop.eup %9379  ;;  %v11341_v5 = vld [vmem:[#allocation6 + $0x160] ss:$16 sps:$4 sm:$0xff]  }
 0xdc7   :  { %v11296_v23 = vadd.f32 %v2818_v3, %v2817_v35 }
 0xdc9   :  { %9381 = vtanh.f32 %v11296_v23 }
 0xdd3   :  { %v9382_v18 = vpop.eup %9381 }
 0xdd4   :  { %v11299_v38 = vmul.f32 %v9382_v18, %v9380_v54 }
 0xdd6   :  { %v2827_v49 = vpack.c.bf16 %v11299_v38, %v11299_v38 }
 0xdd8   :  { %2861 = vmatmul.mubr.bf16.vlgmr.msra.gmra.mrb[84].mxu0 %v2827_v49  ;;  %2902 = vmatmul.mubr.bf16.vlgmr.msra.gmra.mrb[84].mxu1 %v2827_v49 }
 0xdd9   :  { %2945 = vmatpush1.bf16.msra.mxu0 %v11303_v24  ;;  %2986 = vmatpush1.bf16.msra.mxu1 %v11306_v4 }
 0xdda   :  { %2946 = vmatprep.subr.bf16.mxu0 %v11309_v2  ;;  %2987 = vmatprep.subr.bf16.mxu1 %v11312_v36 }
 0xddb   :  { %2976 = vmatprep.mubr.bf16.mxu0 %v13395_v44  ;;  %3017 = vmatprep.mubr.bf16.mxu1 %v13395_v44 }
 0xddd   :  { %2947 = vmatpush1.bf16.msra.mxu0 %v11317_v1  ;;  %2988 = vmatpush1.bf16.msra.mxu1 %v11320_v37 }
 0xdde   :  { %2948 = vmatprep.subr.bf16.mxu0 %v11323_v48  ;;  %2989 = vmatprep.subr.bf16.mxu1 %v11326_v27 }
 0xde1   :  { %2949 = vmatpush1.bf16.msra.mxu0 %v11329_v59  ;;  %2990 = vmatpush1.bf16.msra.mxu1 %v11332_v56 }
 0xde2   :  { %2950 = vmatprep.subr.bf16.mxu0 %v11335_v40  ;;  %2991 = vmatprep.subr.bf16.mxu1 %v11338_v61 }
 0xde5   :  { %2951 = vmatpush1.bf16.msra.mxu0 %v11341_v5  ;;  %2992 = vmatpush1.bf16.msra.mxu1 %v11344_v32 }
 0xde6   :  { %2952 = vmatprep.subr.bf16.mxu0 %v11347_v29  ;;  %2993 = vmatprep.subr.bf16.mxu1 %v11350_v53 }
 0xde9   :  { %2953 = vmatpush1.bf16.msra.mxu0 %v11353_v15  ;;  %2994 = vmatpush1.bf16.msra.mxu1 %v11356_v50 }
 0xdea   :  { %2954 = vmatprep.subr.bf16.mxu0 %v11359_v39  ;;  %2995 = vmatprep.subr.bf16.mxu1 %v11362_v45 }
 0xded   :  { %2955 = vmatpush1.bf16.msra.mxu0 %v11365_v0  ;;  %2996 = vmatpush1.bf16.msra.mxu1 %v11368_v17 }
 0xdee   :  { %2956 = vmatprep.subr.bf16.mxu0 %v11371_v60  ;;  %2997 = vmatprep.subr.bf16.mxu1 %v11374_v20 }
 0xdf1   :  { %2957 = vmatpush1.bf16.msra.mxu0 %v11377_v62  ;;  %2998 = vmatpush1.bf16.msra.mxu1 %v11380_v16 }
 0xdf2   :  { %2958 = vmatprep.subr.bf16.mxu0 %v11383_v9  ;;  %2999 = vmatprep.subr.bf16.mxu1 %v11386_v7 }
 0xdf5   :  { %2959 = vmatpush1.bf16.msra.mxu0 %v11389_v10  ;;  %3000 = vmatpush1.bf16.msra.mxu1 %v11392_v28 }
 0xdf6   :  { %3060 = vmatprep.subr.bf16.mxu0 %v9877_v11  ;;  %3101 = vmatprep.subr.bf16.mxu1 %v9878_v58 }
 0xeab   :  { %v2862_v47 = vpop.f32.mrb[84].mxu0  ;;  %v2903_v51 = vpop.f32.mrb[84].mxu1 }
 0xeac   :  { %v2910_v30 = vadd.f32 %v2862_v47, %v1965_v13  ;;  %v2912_v52 = vadd.f32 %v2903_v51, %v2038_v31  ;;  %v2864_v14 = vpop.f32.mrb[85].mxu0  ;;  %v2905_v55 = vpop.f32.mrb[85].mxu1 }
 0xead   :  { %v2911_v57 = vadd.f32 %v2864_v14, %v1967_v6  ;;  %v2913_v3 = vadd.f32 %v2905_v55, %v2040_v34  ;;  %v2866_v43 = vpop.f32.mrb[86].mxu0  ;;  %v2907_v35 = vpop.f32.mrb[86].mxu1 }
 0xeae   :  { %v8270_v54 = vmul.f32 -1.442695, %v2910_v30  ;;  %v2867_v18 = vpop.f32.mrb[87].mxu0  ;;  %v2908_v49 = vpop.f32.mrb[87].mxu1 }
 0xeaf   :  { %v8271_v11 = vmul.f32 -1.442695, %v2911_v57  ;;  %v8272_v58 = vmul.f32 -1.442695, %v2913_v3 }
 0xeb0   :  { %9383 = vpow2.f32 %v8270_v54 }
 0xeb1   :  { %9385 = vpow2.f32 %v8271_v11 }
 0xeb2   :  { %9387 = vpow2.f32 %v8272_v58 }
 0xeb3   :  { %9389 = vtanh.f32 %v2912_v52 }
 0xeba   :  { %v9384_v12 = vpop.eup %9383 }
 0xebb   :  { %v9386_v19 = vpop.eup %9385  ;;  %v2917_v33 = vadd.f32 1.0, %v9384_v12 }
 0xebc   :  { %v2923_v13 = vadd.f32 1.0, %v9386_v19  ;;  %v9388_v31 = vpop.eup %9387 }
 0xebd   :  { %9391 = vrcp.f32 %v2917_v33  ;;  %v9390_v6 = vpop.eup %9389  ;;  %v2930_v51 = vadd.f32 1.0, %v9388_v31  ;;  %v8863_v33 = vld [vmem:[#allocation4 + $0x200] ss:$16 sps:$4 sm:$0xff]  }
 0xebe   :  { %9393 = vrcp.f32 %v2923_v13  ;;  %v8866_v13 = vld [vmem:[#allocation4 + $0x208] ss:$16 sps:$4 sm:$0xff]  }
 0xebf   :  { %9395 = vrcp.f32 %v2930_v51  ;;  %v8877_v51 = vld [vmem:[#allocation4 + $0x244] ss:$16 sps:$4 sm:$0xff]  }
 0xec7   :  { %v9392_v8 = vpop.eup %9391 }
 0xec8   :  { %v9394_v34 = vpop.eup %9393  ;;  %v2934_v47 = vmul.f32 %v9392_v8, %v9390_v6  ;;  %v8871_v6 = vld [vmem:[#allocation4 + $0x224] ss:$16 sps:$4 sm:$0xff]   ;;  %v8874_v8 = vld [vmem:[#allocation4 + $0x22c] ss:$16 sps:$4 sm:$0xff]  }
 0xec9   :  { %v2933_v30 = vmul.f32 %v9394_v34, %v11296_v23  ;;  %v9396_v55 = vpop.eup %9395  ;;  %v8865_v23 = vld [vmem:[#allocation4 + $0x204] ss:$16 sps:$4 sm:$0xff]   ;;  %v8869_v34 = vld [vmem:[#allocation4 + $0x220] ss:$16 sps:$4 sm:$0xff]  }
 0xecb   :  { %v11404_v14 = vadd.f32 %v2934_v47, %v2933_v30  ;;  %v8872_v47 = vld [vmem:[#allocation4 + $0x228] ss:$16 sps:$4 sm:$0xff]   ;;  %v8880_v30 = vld [vmem:[#allocation4 + $0x24c] ss:$16 sps:$4 sm:$0xff]  }
 0xecd   :  { %9397 = vtanh.f32 %v11404_v14 }
 0xed7   :  { %v9398_v57 = vpop.eup %9397 }
 0xed8   :  { %v11407_v3 = vmul.f32 %v9398_v57, %v9396_v55  ;;  %v8878_v55 = vld [vmem:[#allocation4 + $0x248] ss:$16 sps:$4 sm:$0xff]   ;;  %v8883_v57 = vld [vmem:[#allocation4 + $0x264] ss:$16 sps:$4 sm:$0xff]  }
 0xeda   :  { %v2943_v52 = vpack.c.bf16 %v11407_v3, %v11407_v3 }
 0xedc   :  { %2977 = vmatmul.mubr.bf16.vlgmr.msra.gmra.mrb[88].mxu0 %v2943_v52  ;;  %3018 = vmatmul.mubr.bf16.vlgmr.msra.gmra.mrb[88].mxu1 %v2943_v52  ;;  %v8886_v52 = vld [vmem:[#allocation4 + $0x26c] ss:$16 sps:$4 sm:$0xff]  }
 0xedd   :  { %3061 = vmatpush1.bf16.msra.mxu0 %v11303_v24  ;;  %3102 = vmatpush1.bf16.msra.mxu1 %v11306_v4  ;;  %v8868_v24 = vld [vmem:[#allocation4 + $0x20c] ss:$16 sps:$4 sm:$0xff]  }
 0xede   :  { %3062 = vmatprep.subr.bf16.mxu0 %v11309_v2  ;;  %3103 = vmatprep.subr.bf16.mxu1 %v11312_v36  ;;  %v13452_v4 = vld [vmem:[#allocation34_spill] sm:$0xff]  ;;  %v13453_v36 = vld [vmem:[#allocation35_spill] sm:$0xff] }
 0xedf   :  { %3092 = vmatprep.mubr.bf16.mxu0 %v13395_v44  ;;  %3133 = vmatprep.mubr.bf16.mxu1 %v13395_v44  ;;  %v1971_v2 = vadd.f32 %v13452_v4, %v11073_v26  ;;  %v8889_v4 = vld [vmem:[#allocation4 + $0x284] ss:$16 sps:$4 sm:$0xff]  }
 0xee1   :  { %3063 = vmatpush1.bf16.msra.mxu0 %v11317_v1  ;;  %3104 = vmatpush1.bf16.msra.mxu1 %v11320_v37  ;;  %v2044_v1 = vadd.f32 %v13453_v36, %v11076_v25  ;;  %v13454_v37 = vld [vmem:[#allocation36_spill] sm:$0xff] }
 0xee2   :  { %3064 = vmatprep.subr.bf16.mxu0 %v11323_v48  ;;  %3105 = vmatprep.subr.bf16.mxu1 %v11326_v27  ;;  %v1973_v48 = vadd.f32 %v13454_v37, %v11083_v63  ;;  %v13455_v27 = vld [vmem:[#allocation37_spill] sm:$0xff]  ;;  %v8887_v36 = vld [vmem:[#allocation4 + $0x280] ss:$16 sps:$4 sm:$0xff]  }
 0xee3   :  { %v8895_v37 = vld [vmem:[#allocation4 + $0x2a4] ss:$16 sps:$4 sm:$0xff]  }
 0xee5   :  { %3065 = vmatpush1.bf16.msra.mxu0 %v11329_v59  ;;  %3106 = vmatpush1.bf16.msra.mxu1 %v11332_v56  ;;  %v2046_v59 = vadd.f32 %v13455_v27, %v11086_v22  ;;  %v8893_v27 = vld [vmem:[#allocation4 + $0x2a0] ss:$16 sps:$4 sm:$0xff]  }
 0xee6   :  { %3066 = vmatprep.subr.bf16.mxu0 %v11335_v40  ;;  %3107 = vmatprep.subr.bf16.mxu1 %v11338_v61 }
 0xee9   :  { %3067 = vmatpush1.bf16.msra.mxu0 %v11341_v5  ;;  %3108 = vmatpush1.bf16.msra.mxu1 %v11344_v32 }
 0xeea   :  { %3068 = vmatprep.subr.bf16.mxu0 %v11347_v29  ;;  %3109 = vmatprep.subr.bf16.mxu1 %v11350_v53 }
 0xeed   :  { %3069 = vmatpush1.bf16.msra.mxu0 %v11353_v15  ;;  %3110 = vmatpush1.bf16.msra.mxu1 %v11356_v50 }
 0xeee   :  { %3070 = vmatprep.subr.bf16.mxu0 %v11359_v39  ;;  %3111 = vmatprep.subr.bf16.mxu1 %v11362_v45 }
 0xef1   :  { %3071 = vmatpush1.bf16.msra.mxu0 %v11365_v0  ;;  %3112 = vmatpush1.bf16.msra.mxu1 %v11368_v17 }
 0xef2   :  { %3072 = vmatprep.subr.bf16.mxu0 %v11371_v60  ;;  %3113 = vmatprep.subr.bf16.mxu1 %v11374_v20 }
 0xef5   :  { %3073 = vmatpush1.bf16.msra.mxu0 %v11377_v62  ;;  %3114 = vmatpush1.bf16.msra.mxu1 %v11380_v16 }
 0xef6   :  { %3074 = vmatprep.subr.bf16.mxu0 %v11383_v9  ;;  %3115 = vmatprep.subr.bf16.mxu1 %v11386_v7 }
 0xef9   :  { %3075 = vmatpush1.bf16.msra.mxu0 %v11389_v10  ;;  %3116 = vmatpush1.bf16.msra.mxu1 %v11392_v28 }
 0xefa   :  { %3432 = vmatprep.subr.bf16.mxu0 %v8865_v23  ;;  %3505 = vmatprep.subr.bf16.mxu1 %v8868_v24  ;;  %v8881_v23 = vld [vmem:[#allocation4 + $0x260] ss:$16 sps:$4 sm:$0xff]   ;;  %v8884_v24 = vld [vmem:[#allocation4 + $0x268] ss:$16 sps:$4 sm:$0xff]  }
 0xfaf   :  { %v2978_v56 = vpop.f32.mrb[88].mxu0  ;;  %v3019_v40 = vpop.f32.mrb[88].mxu1 }
 0xfb0   :  { %v3026_v61 = vadd.f32 %v2978_v56, %v1971_v2  ;;  %v3028_v5 = vadd.f32 %v3019_v40, %v2044_v1  ;;  %v2980_v32 = vpop.f32.mrb[89].mxu0  ;;  %v3021_v29 = vpop.f32.mrb[89].mxu1  ;;  %v8892_v2 = vld [vmem:[#allocation4 + $0x28c] ss:$16 sps:$4 sm:$0xff]   ;;  %v8890_v1 = vld [vmem:[#allocation4 + $0x288] ss:$16 sps:$4 sm:$0xff]  }
 0xfb1   :  { %v3027_v53 = vadd.f32 %v2980_v32, %v1973_v48  ;;  %v3029_v15 = vadd.f32 %v3021_v29, %v2046_v59  ;;  %v2982_v50 = vpop.f32.mrb[90].mxu0  ;;  %v3023_v39 = vpop.f32.mrb[90].mxu1  ;;  %v8898_v48 = vld [vmem:[#allocation4 + $0x2ac] ss:$16 sps:$4 sm:$0xff]   ;;  %v8896_v59 = vld [vmem:[#allocation4 + $0x2a8] ss:$16 sps:$4 sm:$0xff]  }
 0xfb2   :  { %v8273_v45 = vmul.f32 -1.442695, %v3026_v61  ;;  %v2983_v0 = vpop.f32.mrb[91].mxu0  ;;  %v3024_v17 = vpop.f32.mrb[91].mxu1  ;;  %v8901_v56 = vld [vmem:[#allocation4 + $0x2c4] ss:$16 sps:$4 sm:$0xff]   ;;  %v3212_v50 = vpack.c.bf16 %v11149_v21, %v11099_v41  ;;  %v3213_v39 = vpack.c.bf16 %v11249_v46, %v11199_v42 }
 0xfb3   :  { %v8274_v60 = vmul.f32 -1.442695, %v3027_v53  ;;  %v8275_v20 = vmul.f32 -1.442695, %v3029_v15  ;;  %v8904_v40 = vld [vmem:[#allocation4 + $0x2cc] ss:$16 sps:$4 sm:$0xff]  }
 0xfb4   :  { %9399 = vpow2.f32 %v8273_v45  ;;  %v8899_v61 = vld [vmem:[#allocation4 + $0x2c0] ss:$16 sps:$4 sm:$0xff]   ;;  %v8907_v32 = vld [vmem:[#allocation4 + $0x2e4] ss:$16 sps:$4 sm:$0xff]   ;;  %v8910_v29 = vld [vmem:[#allocation4 + $0x2ec] ss:$16 sps:$4 sm:$0xff]   ;;  %v3214_v45 = vpack.c.bf16 %v11407_v3, %v11299_v38 }
 0xfb5   :  { %9401 = vpow2.f32 %v8274_v60  ;;  %v8905_v53 = vld [vmem:[#allocation4 + $0x2e0] ss:$16 sps:$4 sm:$0xff]   ;;  %v8908_v15 = vld [vmem:[#allocation4 + $0x2e8] ss:$16 sps:$4 sm:$0xff]   ;;  %v11473_v41 = vld [vmem:[#allocation6 + $0x204] ss:$16 sps:$4 sm:$0xff]  }
 0xfb6   :  { %9403 = vpow2.f32 %v8275_v20  ;;  %v11475_v21 = vld [vmem:[#allocation6 + $0x20c] ss:$16 sps:$4 sm:$0xff]   ;;  %v11477_v42 = vld [vmem:[#allocation6 + $0x200] ss:$16 sps:$4 sm:$0xff]   ;;  %v11479_v46 = vld [vmem:[#allocation6 + $0x208] ss:$16 sps:$4 sm:$0xff]  }
 0xfb7   :  { %9405 = vtanh.f32 %v3028_v5  ;;  %v8902_v5 = vld [vmem:[#allocation4 + $0x2c8] ss:$16 sps:$4 sm:$0xff]   ;;  %v11485_v38 = vld [vmem:[#allocation6 + $0x224] ss:$16 sps:$4 sm:$0xff]   ;;  %v11487_v3 = vld [vmem:[#allocation6 + $0x22c] ss:$16 sps:$4 sm:$0xff]  }
 0xfb8   :  { %v11489_v0 = vld [vmem:[#allocation6 + $0x220] ss:$16 sps:$4 sm:$0xff]   ;;  %v11491_v17 = vld [vmem:[#allocation6 + $0x228] ss:$16 sps:$4 sm:$0xff]   ;;  %v11497_v60 = vld [vmem:[#allocation6 + $0x244] ss:$16 sps:$4 sm:$0xff]  }
 0xfb9   :  { %v11499_v20 = vld [vmem:[#allocation6 + $0x24c] ss:$16 sps:$4 sm:$0xff]  }
 0xfbe   :  { %v9400_v62 = vpop.eup %9399 }
 0xfbf   :  { %v9402_v16 = vpop.eup %9401  ;;  %v3033_v9 = vadd.f32 1.0, %v9400_v62  ;;  %v11501_v62 = vld [vmem:[#allocation6 + $0x240] ss:$16 sps:$4 sm:$0xff]  }
 0xfc0   :  { %v3039_v7 = vadd.f32 1.0, %v9402_v16  ;;  %v9404_v10 = vpop.eup %9403  ;;  %v11503_v16 = vld [vmem:[#allocation6 + $0x248] ss:$16 sps:$4 sm:$0xff]  }
 0xfc1   :  { %9407 = vrcp.f32 %v3033_v9  ;;  %v9406_v28 = vpop.eup %9405  ;;  %v3046_v18 = vadd.f32 1.0, %v9404_v10  ;;  %v11509_v9 = vld [vmem:[#allocation6 + $0x264] ss:$16 sps:$4 sm:$0xff]   ;;  %v11513_v10 = vld [vmem:[#allocation6 + $0x260] ss:$16 sps:$4 sm:$0xff]  }
 0xfc2   :  { %9409 = vrcp.f32 %v3039_v7  ;;  %v11511_v7 = vld [vmem:[#allocation6 + $0x26c] ss:$16 sps:$4 sm:$0xff]  }
 0xfc3   :  { %9411 = vrcp.f32 %v3046_v18  ;;  %v11527_v18 = vld [vmem:[#allocation6 + $0x288] ss:$16 sps:$4 sm:$0xff]  }
 0xfcb   :  { %v9408_v43 = vpop.eup %9407 }
 0xfcc   :  { %v9410_v35 = vpop.eup %9409  ;;  %v3050_v54 = vmul.f32 %v9408_v43, %v9406_v28  ;;  %v11515_v28 = vld [vmem:[#allocation6 + $0x268] ss:$16 sps:$4 sm:$0xff]   ;;  %v11521_v43 = vld [vmem:[#allocation6 + $0x284] ss:$16 sps:$4 sm:$0xff]  }
 0xfcd   :  { %v3049_v49 = vmul.f32 %v9410_v35, %v11404_v14  ;;  %v9412_v58 = vpop.eup %9411  ;;  %v8875_v14 = vld [vmem:[#allocation4 + $0x240] ss:$16 sps:$4 sm:$0xff]   ;;  %v11523_v35 = vld [vmem:[#allocation6 + $0x28c] ss:$16 sps:$4 sm:$0xff]  }
 0xfcf   :  { %v11452_v11 = vadd.f32 %v3050_v54, %v3049_v49  ;;  %v11525_v54 = vld [vmem:[#allocation6 + $0x280] ss:$16 sps:$4 sm:$0xff]   ;;  %v11533_v49 = vld [vmem:[#allocation6 + $0x2a4] ss:$16 sps:$4 sm:$0xff]  }
 0xfd1   :  { %9413 = vtanh.f32 %v11452_v11 }
 0xfdb   :  { %v9414_v12 = vpop.eup %9413 }
 0xfdc   :  { %v11455_v19 = vmul.f32 %v9414_v12, %v9412_v58  ;;  %v11535_v58 = vld [vmem:[#allocation6 + $0x2ac] ss:$16 sps:$4 sm:$0xff]   ;;  %v11537_v12 = vld [vmem:[#allocation6 + $0x2a0] ss:$16 sps:$4 sm:$0xff]  }
 0xfde   :  { %v3059_v31 = vpack.c.bf16 %v11455_v19, %v11455_v19 }
 0xfe0   :  { %3093 = vmatmul.mubr.bf16.vlgmr.msra.gmra.mrb[92].mxu0 %v3059_v31  ;;  %3134 = vmatmul.mubr.bf16.vlgmr.msra.gmra.mrb[92].mxu1 %v3059_v31  ;;  %v11547_v31 = vld [vmem:[#allocation6 + $0x2cc] ss:$16 sps:$4 sm:$0xff]  }
 0xfe1   :  { %3433 = vmatpush1.bf16.msra.mxu0 %v8863_v33  ;;  %3506 = vmatpush1.bf16.msra.mxu1 %v8866_v13  ;;  %v11539_v33 = vld [vmem:[#allocation6 + $0x2a8] ss:$16 sps:$4 sm:$0xff]   ;;  %v11545_v13 = vld [vmem:[#allocation6 + $0x2c4] ss:$16 sps:$4 sm:$0xff]  }
 0xfe2   :  { %3434 = vmatprep.subr.bf16.mxu0 %v8871_v6  ;;  %3507 = vmatprep.subr.bf16.mxu1 %v8874_v8  ;;  %v11549_v6 = vld [vmem:[#allocation6 + $0x2c0] ss:$16 sps:$4 sm:$0xff]   ;;  %v11551_v8 = vld [vmem:[#allocation6 + $0x2c8] ss:$16 sps:$4 sm:$0xff]  }
 0xfe3   :  { %3464 = vmatprep.mubr.bf16.mxu0 %v13395_v44  ;;  %3537 = vmatprep.mubr.bf16.mxu1 %v13395_v44 }
 0xfe5   :  { %3435 = vmatpush1.bf16.msra.mxu0 %v8869_v34  ;;  %3508 = vmatpush1.bf16.msra.mxu1 %v8872_v47  ;;  %v11557_v34 = vld [vmem:[#allocation6 + $0x2e4] ss:$16 sps:$4 sm:$0xff]   ;;  %v11559_v47 = vld [vmem:[#allocation6 + $0x2ec] ss:$16 sps:$4 sm:$0xff]  }
 0xfe6   :  { %3436 = vmatprep.subr.bf16.mxu0 %v8877_v51  ;;  %3509 = vmatprep.subr.bf16.mxu1 %v8880_v30  ;;  %v11561_v51 = vld [vmem:[#allocation6 + $0x2e0] ss:$16 sps:$4 sm:$0xff]   ;;  %v11563_v30 = vld [vmem:[#allocation6 + $0x2e8] ss:$16 sps:$4 sm:$0xff]  }
 0xfe9   :  { %3437 = vmatpush1.bf16.msra.mxu0 %v8875_v14  ;;  %3510 = vmatpush1.bf16.msra.mxu1 %v8878_v55  ;;  %v13456_v14 = vld [vmem:[#allocation38_spill] sm:$0xff] }
 0xfea   :  { %3438 = vmatprep.subr.bf16.mxu0 %v8883_v57  ;;  %3511 = vmatprep.subr.bf16.mxu1 %v8886_v52  ;;  %v1975_v55 = vadd.f32 %v13456_v14, %v11073_v26  ;;  %v13457_v57 = vld [vmem:[#allocation39_spill] sm:$0xff] }
 0xfeb   :  { %v2048_v52 = vadd.f32 %v13457_v57, %v11076_v25 }
 0xfed   :  { %3439 = vmatpush1.bf16.msra.mxu0 %v8881_v23  ;;  %3512 = vmatpush1.bf16.msra.mxu1 %v8884_v24  ;;  %v13458_v23 = vld [vmem:[#allocation40_spill] sm:$0xff] }
 0xfee   :  { %3440 = vmatprep.subr.bf16.mxu0 %v8889_v4  ;;  %3513 = vmatprep.subr.bf16.mxu1 %v8892_v2  ;;  %v1977_v24 = vadd.f32 %v13458_v23, %v11083_v63  ;;  %v13459_v4 = vld [vmem:[#allocation41_spill] sm:$0xff] }
 0xfef   :  { %v2050_v2 = vadd.f32 %v13459_v4, %v11086_v22 }
 0xff1   :  { %3441 = vmatpush1.bf16.msra.mxu0 %v8887_v36  ;;  %3514 = vmatpush1.bf16.msra.mxu1 %v8890_v1 }
 0xff2   :  { %3442 = vmatprep.subr.bf16.mxu0 %v8895_v37  ;;  %3515 = vmatprep.subr.bf16.mxu1 %v8898_v48 }
 0xff5   :  { %3443 = vmatpush1.bf16.msra.mxu0 %v8893_v27  ;;  %3516 = vmatpush1.bf16.msra.mxu1 %v8896_v59 }
 0xff6   :  { %3444 = vmatprep.subr.bf16.mxu0 %v8901_v56  ;;  %3517 = vmatprep.subr.bf16.mxu1 %v8904_v40 }
 0xff9   :  { %3445 = vmatpush1.bf16.msra.mxu0 %v8899_v61  ;;  %3518 = vmatpush1.bf16.msra.mxu1 %v8902_v5 }
 0xffa   :  { %3446 = vmatprep.subr.bf16.mxu0 %v8907_v32  ;;  %3519 = vmatprep.subr.bf16.mxu1 %v8910_v29 }
 0xffd   :  { %3447 = vmatpush1.bf16.msra.mxu0 %v8905_v53  ;;  %3520 = vmatpush1.bf16.msra.mxu1 %v8908_v15 }
 0xffe   :  { %3774 = vmatprep.subr.bf16.mxu0 %v11473_v41  ;;  %3815 = vmatprep.subr.bf16.mxu1 %v11475_v21 }
0x1000   :  { %3465 = vmatmul.mubr.bf16.vlgmr.msra.gmra.mrb[96].mxu0 %v3212_v50  ;;  %3538 = vmatmul.mubr.bf16.vlgmr.msra.gmra.mrb[96].mxu1 %v3212_v50 }
0x1001   :  { %3474 = vmatprep.mubr.bf16.mxu0 %v13395_v44  ;;  %3547 = vmatprep.mubr.bf16.mxu1 %v13395_v44 }
0x1002   :  { %3775 = vmatpush1.bf16.msra.mxu0 %v11477_v42  ;;  %3816 = vmatpush1.bf16.msra.mxu1 %v11479_v46 }
0x1003   :  { %3776 = vmatprep.subr.bf16.mxu0 %v11485_v38  ;;  %3817 = vmatprep.subr.bf16.mxu1 %v11487_v3 }
0x1006   :  { %3777 = vmatpush1.bf16.msra.mxu0 %v11489_v0  ;;  %3818 = vmatpush1.bf16.msra.mxu1 %v11491_v17 }
0x1007   :  { %3778 = vmatprep.subr.bf16.mxu0 %v11497_v60  ;;  %3819 = vmatprep.subr.bf16.mxu1 %v11499_v20 }
0x1008   :  { %3475 = vmatmul.mubr.bf16.gmra.mrb[100].mxu0 %v3213_v39  ;;  %3548 = vmatmul.mubr.bf16.gmra.mrb[100].mxu1 %v3213_v39 }
0x1009   :  { %3484 = vmatprep.mubr.bf16.mxu0 %v13395_v44  ;;  %3557 = vmatprep.mubr.bf16.mxu1 %v13395_v44 }
0x100a   :  { %3779 = vmatpush1.bf16.msra.mxu0 %v11501_v62  ;;  %3820 = vmatpush1.bf16.msra.mxu1 %v11503_v16 }
0x100b   :  { %3780 = vmatprep.subr.bf16.mxu0 %v11509_v9  ;;  %3821 = vmatprep.subr.bf16.mxu1 %v11511_v7 }
0x100e   :  { %3781 = vmatpush1.bf16.msra.mxu0 %v11513_v10  ;;  %3822 = vmatpush1.bf16.msra.mxu1 %v11515_v28 }
0x100f   :  { %3782 = vmatprep.subr.bf16.mxu0 %v11521_v43  ;;  %3823 = vmatprep.subr.bf16.mxu1 %v11523_v35 }
0x1010   :  { %3485 = vmatmul.mubr.bf16.gmra.mrb[104].mxu0 %v3214_v45  ;;  %3558 = vmatmul.mubr.bf16.gmra.mrb[104].mxu1 %v3214_v45 }
0x1011   :  { %3494 = vmatprep.mubr.bf16.mxu0 %v13395_v44  ;;  %3567 = vmatprep.mubr.bf16.mxu1 %v13395_v44 }
0x1012   :  { %3783 = vmatpush1.bf16.msra.mxu0 %v11525_v54  ;;  %3824 = vmatpush1.bf16.msra.mxu1 %v11527_v18 }
0x1013   :  { %3784 = vmatprep.subr.bf16.mxu0 %v11533_v49  ;;  %3825 = vmatprep.subr.bf16.mxu1 %v11535_v58 }
0x1016   :  { %3785 = vmatpush1.bf16.msra.mxu0 %v11537_v12  ;;  %3826 = vmatpush1.bf16.msra.mxu1 %v11539_v33 }
0x1017   :  { %3786 = vmatprep.subr.bf16.mxu0 %v11545_v13  ;;  %3827 = vmatprep.subr.bf16.mxu1 %v11547_v31 }
0x101a   :  { %3787 = vmatpush1.bf16.msra.mxu0 %v11549_v6  ;;  %3828 = vmatpush1.bf16.msra.mxu1 %v11551_v8 }
0x101b   :  { %3788 = vmatprep.subr.bf16.mxu0 %v11557_v34  ;;  %3829 = vmatprep.subr.bf16.mxu1 %v11559_v47 }
0x101e   :  { %3789 = vmatpush1.bf16.msra.mxu0 %v11561_v51  ;;  %3830 = vmatpush1.bf16.msra.mxu1 %v11563_v30 }
0x101f   :  { %3890 = vmatprep.subr.bf16.mxu0 %v11473_v41  ;;  %3931 = vmatprep.subr.bf16.mxu1 %v11475_v21 }
0x10b3   :  { %v3094_v36 = vpop.f32.mrb[92].mxu0  ;;  %v3135_v1 = vpop.f32.mrb[92].mxu1 }
0x10b4   :  { %v3142_v37 = vadd.f32 %v3094_v36, %v1975_v55  ;;  %v3144_v48 = vadd.f32 %v3135_v1, %v2048_v52  ;;  %v3096_v27 = vpop.f32.mrb[93].mxu0  ;;  %v3137_v59 = vpop.f32.mrb[93].mxu1 }
0x10b5   :  { %v3143_v56 = vadd.f32 %v3096_v27, %v1977_v24  ;;  %v3145_v40 = vadd.f32 %v3137_v59, %v2050_v2  ;;  %v3098_v61 = vpop.f32.mrb[94].mxu0  ;;  %v3139_v5 = vpop.f32.mrb[94].mxu1 }
0x10b6   :  { %v8276_v26 = vmul.f32 -1.442695, %v3142_v37  ;;  %v3099_v32 = vpop.f32.mrb[95].mxu0  ;;  %v3140_v29 = vpop.f32.mrb[95].mxu1 }
0x10b7   :  { %v8277_v25 = vmul.f32 -1.442695, %v3143_v56  ;;  %v8278_v63 = vmul.f32 -1.442695, %v3145_v40 }
0x10b8   :  { %9415 = vpow2.f32 %v8276_v26 }
0x10b9   :  { %9417 = vpow2.f32 %v8277_v25 }
0x10ba   :  { %9419 = vpow2.f32 %v8278_v63 }
0x10bb   :  { %9421 = vtanh.f32 %v3144_v48 }
0x10c2   :  { %v9416_v53 = vpop.eup %9415 }
0x10c3   :  { %v9418_v15 = vpop.eup %9417  ;;  %v3149_v22 = vadd.f32 1.0, %v9416_v53 }
0x10c4   :  { %v3155_v50 = vadd.f32 1.0, %v9418_v15  ;;  %v9420_v39 = vpop.eup %9419 }
0x10c5   :  { %9423 = vrcp.f32 %v3149_v22  ;;  %v9422_v45 = vpop.eup %9421  ;;  %v3162_v52 = vadd.f32 1.0, %v9420_v39 }
0x10c6   :  { %9425 = vrcp.f32 %v3155_v50 }
0x10c7   :  { %9427 = vrcp.f32 %v3162_v52  ;;  %v3250_v52 = vld [vmem:[#allocation8 + $0x8] sm:$0xf] }
0x10cf   :  { %v9424_v14 = vpop.eup %9423 }
0x10d0   :  { %v9426_v55 = vpop.eup %9425  ;;  %v3166_v57 = vmul.f32 %v9424_v14, %v9422_v45 }
0x10d1   :  { %v3165_v23 = vmul.f32 %v9426_v55, %v11452_v11  ;;  %v9428_v32 = vpop.eup %9427 }
0x10d3   :  { %v11580_v24 = vpop.f32.mrb[96].mxu0  ;;  %v11582_v4 = vpop.f32.mrb[96].mxu1  ;;  %v3167_v2 = vadd.f32 %v3166_v57, %v3165_v23 }
0x10d4   :  { %v11584_v36 = vpop.f32.mrb[97].mxu0  ;;  %v11586_v1 = vpop.f32.mrb[97].mxu1 }
0x10d5   :  { %v11588_v37 = vpop.f32.mrb[98].mxu0  ;;  %v11590_v48 = vpop.f32.mrb[98].mxu1  ;;  %9429 = vtanh.f32 %v3167_v2 }
0x10d6   :  { %v11592_v27 = vpop.f32.mrb[99].mxu0  ;;  %v11594_v59 = vpop.f32.mrb[99].mxu1 }
0x10db   :  { %v11596_v11 = vpop.f32.mrb[100].mxu0  ;;  %v11598_v56 = vpop.f32.mrb[100].mxu1 }
0x10dc   :  { %13460 = vst [vmem:[#allocation19_spill] sm:$0xff] %v11598_v56  ;;  %v11600_v40 = vpop.f32.mrb[101].mxu0  ;;  %v11602_v61 = vpop.f32.mrb[101].mxu1 }
0x10dd   :  { %13461 = vst [vmem:[#allocation20_spill] sm:$0xff] %v11600_v40  ;;  %13462 = vst [vmem:[#allocation21_spill] sm:$0xff] %v11602_v61  ;;  %v11604_v5 = vpop.f32.mrb[102].mxu0  ;;  %v11606_v26 = vpop.f32.mrb[102].mxu1 }
0x10de   :  { %13463 = vst [vmem:[#allocation22_spill] sm:$0xff] %v11604_v5  ;;  %13464 = vst [vmem:[#allocation23_spill] sm:$0xff] %v11606_v26  ;;  %v11608_v29 = vpop.f32.mrb[103].mxu0  ;;  %v11610_v25 = vpop.f32.mrb[103].mxu1 }
0x10df   :  { %13465 = vst [vmem:[#allocation24_spill] sm:$0xff] %v11608_v29  ;;  %13466 = vst [vmem:[#allocation25_spill] sm:$0xff] %v11610_v25  ;;  %v9430_v63 = vpop.eup %9429 }
0x10e0   :  { %v3169_v53 = vmul.f32 %v9430_v63, %v9428_v32 }
0x10e2   :  { %v3215_v15 = vpack.c.bf16 %v3169_v53, %v11455_v19 }
0x10e3   :  { %v11613_v22 = vpop.f32.mrb[104].mxu0  ;;  %v11615_v50 = vpop.f32.mrb[104].mxu1 }
0x10e4   :  { %13467 = vst [vmem:[#allocation30_spill] sm:$0xff] %v11613_v22  ;;  %13468 = vst [vmem:[#allocation31_spill] sm:$0xff] %v11615_v50  ;;  %v11617_v39 = vpop.f32.mrb[105].mxu0  ;;  %v11619_v45 = vpop.f32.mrb[105].mxu1  ;;  %3495 = vmatmul.mubr.bf16.gmra.mrb[108].mxu0 %v3215_v15  ;;  %3568 = vmatmul.mubr.bf16.gmra.mrb[108].mxu1 %v3215_v15 }
0x10e5   :  { %13469 = vst [vmem:[#allocation26_spill] sm:$0xff] %v11617_v39  ;;  %13470 = vst [vmem:[#allocation27_spill] sm:$0xff] %v11619_v45  ;;  %v11621_v14 = vpop.f32.mrb[106].mxu0  ;;  %v11623_v55 = vpop.f32.mrb[106].mxu1  ;;  %3806 = vmatprep.mubr.bf16.mxu0 %v13395_v44  ;;  %3847 = vmatprep.mubr.bf16.mxu1 %v13395_v44 }
0x10e6   :  { %13471 = vst [vmem:[#allocation28_spill] sm:$0xff] %v11621_v14  ;;  %13472 = vst [vmem:[#allocation29_spill] sm:$0xff] %v11623_v55  ;;  %v11627_v57 = vpop.f32.mrb[107].mxu0  ;;  %v11629_v19 = vpop.f32.mrb[107].mxu1  ;;  %v13482_v55 = vld [vmem:[#allocation15_spill] sm:$0xff] }
0x10e7   :  { %13473 = vst [vmem:[#allocation32_spill] sm:$0xff] %v11627_v57  ;;  %13474 = vst [vmem:[#allocation33_spill] sm:$0xff] %v11629_v19  ;;  %v13481_v19 = vld [vmem:[#allocation17_spill] sm:$0xff]  ;;  %v11683_v14 = vrot.slane %v3250_v52, %v13482_v55 }
0x10e8   :  { %v11680_v57 = vrot.slane %v3250_v52, %v13481_v19 }
0x10e9   :  { %v3540_v19 = vadd.f32 %v11582_v4, %v11683_v14 }
0x10ec   :  { %3807 = vmatmul.mubr.bf16.vlgmr.msra.gmra.mrb[112].mxu0 %v13395_v44  ;;  %3848 = vmatmul.mubr.bf16.vlgmr.msra.gmra.mrb[112].mxu1 %v13395_v44 }
0x10ed   :  { %3891 = vmatpush1.bf16.msra.mxu0 %v11477_v42  ;;  %3932 = vmatpush1.bf16.msra.mxu1 %v11479_v46 }
0x10ee   :  { %3892 = vmatprep.subr.bf16.mxu0 %v11485_v38  ;;  %3933 = vmatprep.subr.bf16.mxu1 %v11487_v3 }
0x10ef   :  { %3922 = vmatprep.mubr.bf16.mxu0 %v13395_v44  ;;  %3963 = vmatprep.mubr.bf16.mxu1 %v13395_v44 }
0x10f1   :  { %3893 = vmatpush1.bf16.msra.mxu0 %v11489_v0  ;;  %3934 = vmatpush1.bf16.msra.mxu1 %v11491_v17 }
0x10f2   :  { %3894 = vmatprep.subr.bf16.mxu0 %v11497_v60  ;;  %3935 = vmatprep.subr.bf16.mxu1 %v11499_v20 }
0x10f5   :  { %3895 = vmatpush1.bf16.msra.mxu0 %v11501_v62  ;;  %3936 = vmatpush1.bf16.msra.mxu1 %v11503_v16 }
0x10f6   :  { %3896 = vmatprep.subr.bf16.mxu0 %v11509_v9  ;;  %3937 = vmatprep.subr.bf16.mxu1 %v11511_v7 }
0x10f9   :  { %3897 = vmatpush1.bf16.msra.mxu0 %v11513_v10  ;;  %3938 = vmatpush1.bf16.msra.mxu1 %v11515_v28 }
0x10fa   :  { %3898 = vmatprep.subr.bf16.mxu0 %v11521_v43  ;;  %3939 = vmatprep.subr.bf16.mxu1 %v11523_v35 }
0x10fd   :  { %3899 = vmatpush1.bf16.msra.mxu0 %v11525_v54  ;;  %3940 = vmatpush1.bf16.msra.mxu1 %v11527_v18 }
0x10fe   :  { %3900 = vmatprep.subr.bf16.mxu0 %v11533_v49  ;;  %3941 = vmatprep.subr.bf16.mxu1 %v11535_v58 }
0x1101   :  { %3901 = vmatpush1.bf16.msra.mxu0 %v11537_v12  ;;  %3942 = vmatpush1.bf16.msra.mxu1 %v11539_v33 }
0x1102   :  { %3902 = vmatprep.subr.bf16.mxu0 %v11545_v13  ;;  %3943 = vmatprep.subr.bf16.mxu1 %v11547_v31 }
0x1105   :  { %3903 = vmatpush1.bf16.msra.mxu0 %v11549_v6  ;;  %3944 = vmatpush1.bf16.msra.mxu1 %v11551_v8 }
0x1106   :  { %3904 = vmatprep.subr.bf16.mxu0 %v11557_v34  ;;  %3945 = vmatprep.subr.bf16.mxu1 %v11559_v47 }
0x1109   :  { %3905 = vmatpush1.bf16.msra.mxu0 %v11561_v51  ;;  %3946 = vmatpush1.bf16.msra.mxu1 %v11563_v30 }
0x110a   :  { %4006 = vmatprep.subr.bf16.mxu0 %v11473_v41  ;;  %4047 = vmatprep.subr.bf16.mxu1 %v11475_v21 }
0x11b7   :  { %v11667_v23 = vpop.f32.mrb[108].mxu0  ;;  %v11669_v2 = vpop.f32.mrb[108].mxu1 }
0x11b8   :  { %13475 = vst [vmem:[#allocation34_spill] sm:$0xff] %v11667_v23  ;;  %13476 = vst [vmem:[#allocation35_spill] sm:$0xff] %v11669_v2  ;;  %v11671_v32 = vpop.f32.mrb[109].mxu0  ;;  %v11673_v63 = vpop.f32.mrb[109].mxu1  ;;  %v13485_v23 = vld [vmem:[#allocation18_spill] sm:$0xff] }
0x11b9   :  { %13477 = vst [vmem:[#allocation36_spill] sm:$0xff] %v11671_v32  ;;  %13478 = vst [vmem:[#allocation37_spill] sm:$0xff] %v11673_v63  ;;  %v11675_v53 = vpop.f32.mrb[110].mxu0  ;;  %v11677_v15 = vpop.f32.mrb[110].mxu1  ;;  %v11690_v2 = vrot.slane %v3250_v52, %v13485_v23  ;;  %v13486_v32 = vld [vmem:[#allocation16_spill] sm:$0xff] }
0x11ba   :  { %13479 = vst [vmem:[#allocation38_spill] sm:$0xff] %v11675_v53  ;;  %13480 = vst [vmem:[#allocation39_spill] sm:$0xff] %v11677_v15  ;;  %v11685_v45 = vpop.f32.mrb[111].mxu0  ;;  %v11687_v39 = vpop.f32.mrb[111].mxu1  ;;  %v11693_v50 = vrot.slane %v3250_v52, %v13486_v32  ;;  %v3467_v53 = vadd.f32 %v11580_v24, %v11680_v57 }
0x11bb   :  { %13483 = vst [vmem:[#allocation40_spill] sm:$0xff] %v11685_v45  ;;  %13484 = vst [vmem:[#allocation41_spill] sm:$0xff] %v11687_v39  ;;  %v3469_v55 = vadd.f32 %v11584_v36, %v11690_v2 }
0x11bc   :  { %v3542_v45 = vadd.f32 %v11586_v1, %v11693_v50 }
0x11bf   :  { %v3808_v15 = vpop.f32.mrb[112].mxu0  ;;  %v3849_v39 = vpop.f32.mrb[112].mxu1 }
0x11c0   :  { %v3856_v63 = vadd.f32 %v3808_v15, %v3467_v53  ;;  %v3858_v23 = vadd.f32 %v3849_v39, %v3540_v19  ;;  %v3810_v22 = vpop.f32.mrb[113].mxu0  ;;  %v3851_v25 = vpop.f32.mrb[113].mxu1  ;;  %v3546_v15 = vadd.f32 %v11594_v59, %v11693_v50 }
0x11c1   :  { %v3857_v52 = vadd.f32 %v3810_v22, %v3469_v55  ;;  %v3859_v32 = vadd.f32 %v3851_v25, %v3542_v45  ;;  %v3812_v29 = vpop.f32.mrb[114].mxu0  ;;  %v3853_v26 = vpop.f32.mrb[114].mxu1 }
0x11c2   :  { %v8343_v24 = vmul.f32 -1.442695, %v3856_v63  ;;  %v3813_v5 = vpop.f32.mrb[115].mxu0  ;;  %v3854_v61 = vpop.f32.mrb[115].mxu1  ;;  %v3473_v63 = vadd.f32 %v11592_v27, %v11690_v2 }
0x11c3   :  { %v8344_v4 = vmul.f32 -1.442695, %v3857_v52  ;;  %v8345_v36 = vmul.f32 -1.442695, %v3859_v32  ;;  %v3544_v32 = vadd.f32 %v11590_v48, %v11683_v14 }
0x11c4   :  { %9431 = vpow2.f32 %v8343_v24 }
0x11c5   :  { %9433 = vpow2.f32 %v8344_v4 }
0x11c6   :  { %9435 = vpow2.f32 %v8345_v36 }
0x11c7   :  { %9437 = vtanh.f32 %v3858_v23  ;;  %v3471_v23 = vadd.f32 %v11588_v37, %v11680_v57 }
0x11ce   :  { %v9432_v40 = vpop.eup %9431 }
0x11cf   :  { %v9434_v56 = vpop.eup %9433  ;;  %v3863_v1 = vadd.f32 1.0, %v9432_v40 }
0x11d0   :  { %v3869_v53 = vadd.f32 1.0, %v9434_v56  ;;  %v9436_v39 = vpop.eup %9435 }
0x11d1   :  { %9439 = vrcp.f32 %v3863_v1  ;;  %v9438_v22 = vpop.eup %9437  ;;  %v3876_v45 = vadd.f32 1.0, %v9436_v39 }
0x11d2   :  { %9441 = vrcp.f32 %v3869_v53 }
0x11d3   :  { %9443 = vrcp.f32 %v3876_v45 }
0x11db   :  { %v9440_v25 = vpop.eup %9439 }
0x11dc   :  { %v9442_v29 = vpop.eup %9441  ;;  %v3880_v26 = vmul.f32 %v9440_v25, %v9438_v22 }
0x11dd   :  { %v3879_v5 = vmul.f32 0.0, %v9442_v29  ;;  %v9444_v55 = vpop.eup %9443 }
0x11df   :  { %v11703_v61 = vadd.f32 %v3880_v26, %v3879_v5 }
0x11e1   :  { %9445 = vtanh.f32 %v11703_v61 }
0x11eb   :  { %v9446_v19 = vpop.eup %9445 }
0x11ec   :  { %v11706_v40 = vmul.f32 %v9446_v19, %v9444_v55 }
0x11ee   :  { %v3889_v56 = vpack.c.bf16 %v11706_v40, %v11706_v40 }
0x11f0   :  { %3923 = vmatmul.mubr.bf16.vlgmr.msra.gmra.mrb[116].mxu0 %v3889_v56  ;;  %3964 = vmatmul.mubr.bf16.vlgmr.msra.gmra.mrb[116].mxu1 %v3889_v56 }
0x11f1   :  { %4007 = vmatpush1.bf16.msra.mxu0 %v11477_v42  ;;  %4048 = vmatpush1.bf16.msra.mxu1 %v11479_v46 }
0x11f2   :  { %4008 = vmatprep.subr.bf16.mxu0 %v11485_v38  ;;  %4049 = vmatprep.subr.bf16.mxu1 %v11487_v3 }
0x11f3   :  { %4038 = vmatprep.mubr.bf16.mxu0 %v13395_v44  ;;  %4079 = vmatprep.mubr.bf16.mxu1 %v13395_v44 }
0x11f5   :  { %4009 = vmatpush1.bf16.msra.mxu0 %v11489_v0  ;;  %4050 = vmatpush1.bf16.msra.mxu1 %v11491_v17 }
0x11f6   :  { %4010 = vmatprep.subr.bf16.mxu0 %v11497_v60  ;;  %4051 = vmatprep.subr.bf16.mxu1 %v11499_v20 }
0x11f9   :  { %4011 = vmatpush1.bf16.msra.mxu0 %v11501_v62  ;;  %4052 = vmatpush1.bf16.msra.mxu1 %v11503_v16 }
0x11fa   :  { %4012 = vmatprep.subr.bf16.mxu0 %v11509_v9  ;;  %4053 = vmatprep.subr.bf16.mxu1 %v11511_v7 }
0x11fd   :  { %4013 = vmatpush1.bf16.msra.mxu0 %v11513_v10  ;;  %4054 = vmatpush1.bf16.msra.mxu1 %v11515_v28 }
0x11fe   :  { %4014 = vmatprep.subr.bf16.mxu0 %v11521_v43  ;;  %4055 = vmatprep.subr.bf16.mxu1 %v11523_v35 }
0x1201   :  { %4015 = vmatpush1.bf16.msra.mxu0 %v11525_v54  ;;  %4056 = vmatpush1.bf16.msra.mxu1 %v11527_v18 }
0x1202   :  { %4016 = vmatprep.subr.bf16.mxu0 %v11533_v49  ;;  %4057 = vmatprep.subr.bf16.mxu1 %v11535_v58 }
0x1205   :  { %4017 = vmatpush1.bf16.msra.mxu0 %v11537_v12  ;;  %4058 = vmatpush1.bf16.msra.mxu1 %v11539_v33 }
0x1206   :  { %4018 = vmatprep.subr.bf16.mxu0 %v11545_v13  ;;  %4059 = vmatprep.subr.bf16.mxu1 %v11547_v31 }
0x1209   :  { %4019 = vmatpush1.bf16.msra.mxu0 %v11549_v6  ;;  %4060 = vmatpush1.bf16.msra.mxu1 %v11551_v8 }
0x120a   :  { %4020 = vmatprep.subr.bf16.mxu0 %v11557_v34  ;;  %4061 = vmatprep.subr.bf16.mxu1 %v11559_v47 }
0x120d   :  { %4021 = vmatpush1.bf16.msra.mxu0 %v11561_v51  ;;  %4062 = vmatpush1.bf16.msra.mxu1 %v11563_v30 }
0x120e   :  { %4122 = vmatprep.subr.bf16.mxu0 %v11473_v41  ;;  %4163 = vmatprep.subr.bf16.mxu1 %v11475_v21 }
0x12c3   :  { %v3924_v52 = vpop.f32.mrb[116].mxu0  ;;  %v3965_v24 = vpop.f32.mrb[116].mxu1 }
0x12c4   :  { %v3972_v4 = vadd.f32 %v3924_v52, %v3471_v23  ;;  %v3974_v36 = vadd.f32 %v3965_v24, %v3544_v32  ;;  %v3926_v1 = vpop.f32.mrb[117].mxu0  ;;  %v3967_v53 = vpop.f32.mrb[117].mxu1 }
0x12c5   :  { %v3973_v39 = vadd.f32 %v3926_v1, %v3473_v63  ;;  %v3975_v22 = vadd.f32 %v3967_v53, %v3546_v15  ;;  %v3928_v25 = vpop.f32.mrb[118].mxu0  ;;  %v3969_v29 = vpop.f32.mrb[118].mxu1 }
0x12c6   :  { %v8346_v37 = vmul.f32 -1.442695, %v3972_v4  ;;  %v3929_v26 = vpop.f32.mrb[119].mxu0  ;;  %v3970_v45 = vpop.f32.mrb[119].mxu1  ;;  %v13488_v29 = vld [vmem:[#allocation20_spill] sm:$0xff] }
0x12c7   :  { %v8347_v48 = vmul.f32 -1.442695, %v3973_v39  ;;  %v8348_v27 = vmul.f32 -1.442695, %v3975_v22  ;;  %v13487_v22 = vld [vmem:[#allocation19_spill] sm:$0xff]  ;;  %v13489_v26 = vld [vmem:[#allocation21_spill] sm:$0xff] }
0x12c8   :  { %9447 = vpow2.f32 %v8346_v37  ;;  %v3550_v25 = vadd.f32 %v13487_v22, %v11683_v14  ;;  %v3479_v37 = vadd.f32 %v13488_v29, %v11690_v2  ;;  %v3552_v45 = vadd.f32 %v13489_v26, %v11693_v50 }
0x12c9   :  { %9449 = vpow2.f32 %v8347_v48 }
0x12ca   :  { %9451 = vpow2.f32 %v8348_v27 }
0x12cb   :  { %9453 = vtanh.f32 %v3974_v36 }
0x12d2   :  { %v9448_v5 = vpop.eup %9447 }
0x12d3   :  { %v9450_v55 = vpop.eup %9449  ;;  %v3979_v59 = vadd.f32 1.0, %v9448_v5 }
0x12d4   :  { %v3985_v19 = vadd.f32 1.0, %v9450_v55  ;;  %v9452_v56 = vpop.eup %9451 }
0x12d5   :  { %9455 = vrcp.f32 %v3979_v59  ;;  %v9454_v23 = vpop.eup %9453  ;;  %v3992_v52 = vadd.f32 1.0, %v9452_v56 }
0x12d6   :  { %9457 = vrcp.f32 %v3985_v19 }
0x12d7   :  { %9459 = vrcp.f32 %v3992_v52 }
0x12df   :  { %v9456_v32 = vpop.eup %9455 }
0x12e0   :  { %v9458_v63 = vpop.eup %9457  ;;  %v3996_v15 = vmul.f32 %v9456_v32, %v9454_v23 }
0x12e1   :  { %v3995_v24 = vmul.f32 %v9458_v63, %v11703_v61  ;;  %v9460_v1 = vpop.eup %9459  ;;  %v3477_v61 = vadd.f32 %v11596_v11, %v11680_v57 }
0x12e3   :  { %v11753_v4 = vadd.f32 %v3996_v15, %v3995_v24 }
0x12e5   :  { %9461 = vtanh.f32 %v11753_v4 }
0x12ef   :  { %v9462_v53 = vpop.eup %9461 }
0x12f0   :  { %v11756_v39 = vmul.f32 %v9462_v53, %v9460_v1 }
0x12f2   :  { %v4005_v36 = vpack.c.bf16 %v11756_v39, %v11756_v39 }
0x12f4   :  { %4039 = vmatmul.mubr.bf16.vlgmr.msra.gmra.mrb[120].mxu0 %v4005_v36  ;;  %4080 = vmatmul.mubr.bf16.vlgmr.msra.gmra.mrb[120].mxu1 %v4005_v36 }
0x12f5   :  { %4123 = vmatpush1.bf16.msra.mxu0 %v11477_v42  ;;  %4164 = vmatpush1.bf16.msra.mxu1 %v11479_v46 }
0x12f6   :  { %4124 = vmatprep.subr.bf16.mxu0 %v11485_v38  ;;  %4165 = vmatprep.subr.bf16.mxu1 %v11487_v3 }
0x12f7   :  { %4154 = vmatprep.mubr.bf16.mxu0 %v13395_v44  ;;  %4195 = vmatprep.mubr.bf16.mxu1 %v13395_v44 }
0x12f9   :  { %4125 = vmatpush1.bf16.msra.mxu0 %v11489_v0  ;;  %4166 = vmatpush1.bf16.msra.mxu1 %v11491_v17 }
0x12fa   :  { %4126 = vmatprep.subr.bf16.mxu0 %v11497_v60  ;;  %4167 = vmatprep.subr.bf16.mxu1 %v11499_v20 }
0x12fd   :  { %4127 = vmatpush1.bf16.msra.mxu0 %v11501_v62  ;;  %4168 = vmatpush1.bf16.msra.mxu1 %v11503_v16 }
0x12fe   :  { %4128 = vmatprep.subr.bf16.mxu0 %v11509_v9  ;;  %4169 = vmatprep.subr.bf16.mxu1 %v11511_v7 }
0x1301   :  { %4129 = vmatpush1.bf16.msra.mxu0 %v11513_v10  ;;  %4170 = vmatpush1.bf16.msra.mxu1 %v11515_v28 }
0x1302   :  { %4130 = vmatprep.subr.bf16.mxu0 %v11521_v43  ;;  %4171 = vmatprep.subr.bf16.mxu1 %v11523_v35 }
0x1305   :  { %4131 = vmatpush1.bf16.msra.mxu0 %v11525_v54  ;;  %4172 = vmatpush1.bf16.msra.mxu1 %v11527_v18 }
0x1306   :  { %4132 = vmatprep.subr.bf16.mxu0 %v11533_v49  ;;  %4173 = vmatprep.subr.bf16.mxu1 %v11535_v58 }
0x1309   :  { %4133 = vmatpush1.bf16.msra.mxu0 %v11537_v12  ;;  %4174 = vmatpush1.bf16.msra.mxu1 %v11539_v33 }
0x130a   :  { %4134 = vmatprep.subr.bf16.mxu0 %v11545_v13  ;;  %4175 = vmatprep.subr.bf16.mxu1 %v11547_v31 }
0x130d   :  { %4135 = vmatpush1.bf16.msra.mxu0 %v11549_v6  ;;  %4176 = vmatpush1.bf16.msra.mxu1 %v11551_v8 }
0x130e   :  { %4136 = vmatprep.subr.bf16.mxu0 %v11557_v34  ;;  %4177 = vmatprep.subr.bf16.mxu1 %v11559_v47 }
0x1311   :  { %4137 = vmatpush1.bf16.msra.mxu0 %v11561_v51  ;;  %4178 = vmatpush1.bf16.msra.mxu1 %v11563_v30 }
0x1312   :  { %4238 = vmatprep.subr.bf16.mxu0 %v11473_v41  ;;  %4279 = vmatprep.subr.bf16.mxu1 %v11475_v21 }
0x13c7   :  { %v4040_v48 = vpop.f32.mrb[120].mxu0  ;;  %v4081_v27 = vpop.f32.mrb[120].mxu1 }
0x13c8   :  { %v4088_v5 = vadd.f32 %v4040_v48, %v3477_v61  ;;  %v4090_v55 = vadd.f32 %v4081_v27, %v3550_v25  ;;  %v4042_v59 = vpop.f32.mrb[121].mxu0  ;;  %v4083_v19 = vpop.f32.mrb[121].mxu1 }
0x13c9   :  { %v4089_v56 = vadd.f32 %v4042_v59, %v3479_v37  ;;  %v4091_v23 = vadd.f32 %v4083_v19, %v3552_v45  ;;  %v4044_v32 = vpop.f32.mrb[122].mxu0  ;;  %v4085_v63 = vpop.f32.mrb[122].mxu1 }
0x13ca   :  { %v8349_v11 = vmul.f32 -1.442695, %v4088_v5  ;;  %v4045_v15 = vpop.f32.mrb[123].mxu0  ;;  %v4086_v52 = vpop.f32.mrb[123].mxu1  ;;  %v13491_v32 = vld [vmem:[#allocation23_spill] sm:$0xff] }
0x13cb   :  { %v8350_v24 = vmul.f32 -1.442695, %v4089_v56  ;;  %v8351_v1 = vmul.f32 -1.442695, %v4091_v23  ;;  %v3554_v63 = vadd.f32 %v13491_v32, %v11683_v14  ;;  %v13493_v52 = vld [vmem:[#allocation25_spill] sm:$0xff] }
0x13cc   :  { %9463 = vpow2.f32 %v8349_v11  ;;  %v13492_v11 = vld [vmem:[#allocation24_spill] sm:$0xff] }
0x13cd   :  { %9465 = vpow2.f32 %v8350_v24  ;;  %v3483_v15 = vadd.f32 %v13492_v11, %v11690_v2  ;;  %v3556_v24 = vadd.f32 %v13493_v52, %v11693_v50 }
0x13ce   :  { %9467 = vpow2.f32 %v8351_v1 }
0x13cf   :  { %9469 = vtanh.f32 %v4090_v55 }
0x13d6   :  { %v9464_v53 = vpop.eup %9463 }
0x13d7   :  { %v9466_v36 = vpop.eup %9465  ;;  %v4095_v22 = vadd.f32 1.0, %v9464_v53 }
0x13d8   :  { %v4101_v61 = vadd.f32 1.0, %v9466_v36  ;;  %v9468_v25 = vpop.eup %9467 }
0x13d9   :  { %9471 = vrcp.f32 %v4095_v22  ;;  %v9470_v29 = vpop.eup %9469  ;;  %v4108_v48 = vadd.f32 1.0, %v9468_v25 }
0x13da   :  { %9473 = vrcp.f32 %v4101_v61 }
0x13db   :  { %9475 = vrcp.f32 %v4108_v48 }
0x13e3   :  { %v9472_v37 = vpop.eup %9471 }
0x13e4   :  { %v9474_v26 = vpop.eup %9473  ;;  %v4112_v45 = vmul.f32 %v9472_v37, %v9470_v29 }
0x13e5   :  { %v4111_v27 = vmul.f32 %v9474_v26, %v11753_v4  ;;  %v9476_v59 = vpop.eup %9475  ;;  %v13490_v4 = vld [vmem:[#allocation22_spill] sm:$0xff] }
0x13e6   :  { %v3481_v23 = vadd.f32 %v13490_v4, %v11680_v57 }
0x13e7   :  { %v11803_v5 = vadd.f32 %v4112_v45, %v4111_v27 }
0x13e9   :  { %9477 = vtanh.f32 %v11803_v5 }
0x13f3   :  { %v9478_v19 = vpop.eup %9477 }
0x13f4   :  { %v11806_v56 = vmul.f32 %v9478_v19, %v9476_v59 }
0x13f6   :  { %v4121_v55 = vpack.c.bf16 %v11806_v56, %v11806_v56 }
0x13f8   :  { %4155 = vmatmul.mubr.bf16.vlgmr.msra.gmra.mrb[124].mxu0 %v4121_v55  ;;  %4196 = vmatmul.mubr.bf16.vlgmr.msra.gmra.mrb[124].mxu1 %v4121_v55 }
0x13f9   :  { %4239 = vmatpush1.bf16.msra.mxu0 %v11477_v42  ;;  %4280 = vmatpush1.bf16.msra.mxu1 %v11479_v46 }
0x13fa   :  { %4240 = vmatprep.subr.bf16.mxu0 %v11485_v38  ;;  %4281 = vmatprep.subr.bf16.mxu1 %v11487_v3 }
0x13fb   :  { %4270 = vmatprep.mubr.bf16.mxu0 %v13395_v44  ;;  %4311 = vmatprep.mubr.bf16.mxu1 %v13395_v44 }
0x13fd   :  { %4241 = vmatpush1.bf16.msra.mxu0 %v11489_v0  ;;  %4282 = vmatpush1.bf16.msra.mxu1 %v11491_v17 }
0x13fe   :  { %4242 = vmatprep.subr.bf16.mxu0 %v11497_v60  ;;  %4283 = vmatprep.subr.bf16.mxu1 %v11499_v20 }
0x1401   :  { %4243 = vmatpush1.bf16.msra.mxu0 %v11501_v62  ;;  %4284 = vmatpush1.bf16.msra.mxu1 %v11503_v16 }
0x1402   :  { %4244 = vmatprep.subr.bf16.mxu0 %v11509_v9  ;;  %4285 = vmatprep.subr.bf16.mxu1 %v11511_v7 }
0x1405   :  { %4245 = vmatpush1.bf16.msra.mxu0 %v11513_v10  ;;  %4286 = vmatpush1.bf16.msra.mxu1 %v11515_v28 }
0x1406   :  { %4246 = vmatprep.subr.bf16.mxu0 %v11521_v43  ;;  %4287 = vmatprep.subr.bf16.mxu1 %v11523_v35 }
0x1409   :  { %4247 = vmatpush1.bf16.msra.mxu0 %v11525_v54  ;;  %4288 = vmatpush1.bf16.msra.mxu1 %v11527_v18 }
0x140a   :  { %4248 = vmatprep.subr.bf16.mxu0 %v11533_v49  ;;  %4289 = vmatprep.subr.bf16.mxu1 %v11535_v58 }
0x140d   :  { %4249 = vmatpush1.bf16.msra.mxu0 %v11537_v12  ;;  %4290 = vmatpush1.bf16.msra.mxu1 %v11539_v33 }
0x140e   :  { %4250 = vmatprep.subr.bf16.mxu0 %v11545_v13  ;;  %4291 = vmatprep.subr.bf16.mxu1 %v11547_v31 }
0x1411   :  { %4251 = vmatpush1.bf16.msra.mxu0 %v11549_v6  ;;  %4292 = vmatpush1.bf16.msra.mxu1 %v11551_v8 }
0x1412   :  { %4252 = vmatprep.subr.bf16.mxu0 %v11557_v34  ;;  %4293 = vmatprep.subr.bf16.mxu1 %v11559_v47 }
0x1415   :  { %4253 = vmatpush1.bf16.msra.mxu0 %v11561_v51  ;;  %4294 = vmatpush1.bf16.msra.mxu1 %v11563_v30 }
0x1416   :  { %4354 = vmatprep.subr.bf16.mxu0 %v11473_v41  ;;  %4395 = vmatprep.subr.bf16.mxu1 %v11475_v21 }
0x14cb   :  { %v4156_v1 = vpop.f32.mrb[124].mxu0  ;;  %v4197_v53 = vpop.f32.mrb[124].mxu1 }
0x14cc   :  { %v4204_v36 = vadd.f32 %v4156_v1, %v3481_v23  ;;  %v4206_v22 = vadd.f32 %v4197_v53, %v3554_v63  ;;  %v4158_v61 = vpop.f32.mrb[125].mxu0  ;;  %v4199_v25 = vpop.f32.mrb[125].mxu1 }
0x14cd   :  { %v4205_v29 = vadd.f32 %v4158_v61, %v3483_v15  ;;  %v4207_v37 = vadd.f32 %v4199_v25, %v3556_v24  ;;  %v4160_v26 = vpop.f32.mrb[126].mxu0  ;;  %v4201_v45 = vpop.f32.mrb[126].mxu1 }
0x14ce   :  { %v8352_v48 = vmul.f32 -1.442695, %v4204_v36  ;;  %v4161_v27 = vpop.f32.mrb[127].mxu0  ;;  %v4202_v59 = vpop.f32.mrb[127].mxu1 }
0x14cf   :  { %v8353_v19 = vmul.f32 -1.442695, %v4205_v29  ;;  %v8354_v55 = vmul.f32 -1.442695, %v4207_v37 }
0x14d0   :  { %9479 = vpow2.f32 %v8352_v48 }
0x14d1   :  { %9481 = vpow2.f32 %v8353_v19 }
0x14d2   :  { %9483 = vpow2.f32 %v8354_v55  ;;  %v11910_v55 = vld [vmem:[#allocation6 + $0x200] ss:$16 sps:$4 sm:$0xff]  }
0x14d3   :  { %9485 = vtanh.f32 %v4206_v22 }
0x14da   :  { %v9480_v4 = vpop.eup %9479 }
0x14db   :  { %v9482_v32 = vpop.eup %9481  ;;  %v4211_v11 = vadd.f32 1.0, %v9480_v4  ;;  %v11913_v4 = vld [vmem:[#allocation6 + $0x208] ss:$16 sps:$4 sm:$0xff]  }
0x14dc   :  { %v4217_v23 = vadd.f32 1.0, %v9482_v32  ;;  %v9484_v63 = vpop.eup %9483  ;;  %v11916_v32 = vld [vmem:[#allocation6 + $0x224] ss:$16 sps:$4 sm:$0xff]  }
0x14dd   :  { %9487 = vrcp.f32 %v4211_v11  ;;  %v9486_v15 = vpop.eup %9485  ;;  %v4224_v53 = vadd.f32 1.0, %v9484_v63  ;;  %v11919_v11 = vld [vmem:[#allocation6 + $0x22c] ss:$16 sps:$4 sm:$0xff]   ;;  %v11927_v63 = vld [vmem:[#allocation6 + $0x228] ss:$16 sps:$4 sm:$0xff]  }
0x14de   :  { %9489 = vrcp.f32 %v4217_v23  ;;  %v11924_v23 = vld [vmem:[#allocation6 + $0x220] ss:$16 sps:$4 sm:$0xff]  }
0x14df   :  { %9491 = vrcp.f32 %v4224_v53  ;;  %v11942_v53 = vld [vmem:[#allocation6 + $0x264] ss:$16 sps:$4 sm:$0xff]  }
0x14e7   :  { %v9488_v52 = vpop.eup %9487 }
0x14e8   :  { %v9490_v24 = vpop.eup %9489  ;;  %v4228_v1 = vmul.f32 %v9488_v52, %v9486_v15  ;;  %v11930_v15 = vld [vmem:[#allocation6 + $0x244] ss:$16 sps:$4 sm:$0xff]   ;;  %v11933_v52 = vld [vmem:[#allocation6 + $0x24c] ss:$16 sps:$4 sm:$0xff]  }
0x14e9   :  { %v4227_v36 = vmul.f32 %v9490_v24, %v11803_v5  ;;  %v9492_v25 = vpop.eup %9491  ;;  %v11936_v24 = vld [vmem:[#allocation6 + $0x240] ss:$16 sps:$4 sm:$0xff]  }
0x14eb   :  { %v11853_v61 = vadd.f32 %v4228_v1, %v4227_v36  ;;  %v11939_v1 = vld [vmem:[#allocation6 + $0x248] ss:$16 sps:$4 sm:$0xff]   ;;  %v11945_v36 = vld [vmem:[#allocation6 + $0x26c] ss:$16 sps:$4 sm:$0xff]  }
0x14ed   :  { %9493 = vtanh.f32 %v11853_v61 }
0x14f7   :  { %v9494_v29 = vpop.eup %9493 }
0x14f8   :  { %v11856_v37 = vmul.f32 %v9494_v29, %v9492_v25  ;;  %v11951_v25 = vld [vmem:[#allocation6 + $0x268] ss:$16 sps:$4 sm:$0xff]   ;;  %v11954_v29 = vld [vmem:[#allocation6 + $0x284] ss:$16 sps:$4 sm:$0xff]  }
0x14fa   :  { %v4237_v22 = vpack.c.bf16 %v11856_v37, %v11856_v37 }
0x14fc   :  { %4271 = vmatmul.mubr.bf16.vlgmr.msra.gmra.mrb[128].mxu0 %v4237_v22  ;;  %4312 = vmatmul.mubr.bf16.vlgmr.msra.gmra.mrb[128].mxu1 %v4237_v22  ;;  %v11957_v22 = vld [vmem:[#allocation6 + $0x28c] ss:$16 sps:$4 sm:$0xff]  }
0x14fd   :  { %4355 = vmatpush1.bf16.msra.mxu0 %v11477_v42  ;;  %4396 = vmatpush1.bf16.msra.mxu1 %v11479_v46  ;;  %v13494_v42 = vld [vmem:[#allocation30_spill] sm:$0xff] }
0x14fe   :  { %4356 = vmatprep.subr.bf16.mxu0 %v11485_v38  ;;  %4397 = vmatprep.subr.bf16.mxu1 %v11487_v3  ;;  %v3487_v46 = vadd.f32 %v13494_v42, %v11680_v57  ;;  %v13495_v38 = vld [vmem:[#allocation31_spill] sm:$0xff]  ;;  %v11960_v42 = vld [vmem:[#allocation6 + $0x280] ss:$16 sps:$4 sm:$0xff]  }
0x14ff   :  { %4386 = vmatprep.mubr.bf16.mxu0 %v13395_v44  ;;  %4427 = vmatprep.mubr.bf16.mxu1 %v13395_v44  ;;  %v3560_v3 = vadd.f32 %v13495_v38, %v11683_v14  ;;  %v11966_v38 = vld [vmem:[#allocation6 + $0x2a4] ss:$16 sps:$4 sm:$0xff]  }
0x1501   :  { %4357 = vmatpush1.bf16.msra.mxu0 %v11489_v0  ;;  %4398 = vmatpush1.bf16.msra.mxu1 %v11491_v17  ;;  %v13496_v0 = vld [vmem:[#allocation26_spill] sm:$0xff] }
0x1502   :  { %4358 = vmatprep.subr.bf16.mxu0 %v11497_v60  ;;  %4399 = vmatprep.subr.bf16.mxu1 %v11499_v20  ;;  %v3489_v17 = vadd.f32 %v13496_v0, %v11690_v2  ;;  %v13497_v60 = vld [vmem:[#allocation27_spill] sm:$0xff]  ;;  %v11972_v0 = vld [vmem:[#allocation6 + $0x2a0] ss:$16 sps:$4 sm:$0xff]  }
0x1503   :  { %v3562_v20 = vadd.f32 %v13497_v60, %v11693_v50  ;;  %v11978_v60 = vld [vmem:[#allocation6 + $0x2c4] ss:$16 sps:$4 sm:$0xff]  }
0x1505   :  { %4359 = vmatpush1.bf16.msra.mxu0 %v11501_v62  ;;  %4400 = vmatpush1.bf16.msra.mxu1 %v11503_v16 }
0x1506   :  { %4360 = vmatprep.subr.bf16.mxu0 %v11509_v9  ;;  %4401 = vmatprep.subr.bf16.mxu1 %v11511_v7 }
0x1509   :  { %4361 = vmatpush1.bf16.msra.mxu0 %v11513_v10  ;;  %4402 = vmatpush1.bf16.msra.mxu1 %v11515_v28 }
0x150a   :  { %4362 = vmatprep.subr.bf16.mxu0 %v11521_v43  ;;  %4403 = vmatprep.subr.bf16.mxu1 %v11523_v35 }
0x150d   :  { %4363 = vmatpush1.bf16.msra.mxu0 %v11525_v54  ;;  %4404 = vmatpush1.bf16.msra.mxu1 %v11527_v18 }
0x150e   :  { %4364 = vmatprep.subr.bf16.mxu0 %v11533_v49  ;;  %4405 = vmatprep.subr.bf16.mxu1 %v11535_v58 }
0x1511   :  { %4365 = vmatpush1.bf16.msra.mxu0 %v11537_v12  ;;  %4406 = vmatpush1.bf16.msra.mxu1 %v11539_v33 }
0x1512   :  { %4366 = vmatprep.subr.bf16.mxu0 %v11545_v13  ;;  %4407 = vmatprep.subr.bf16.mxu1 %v11547_v31 }
0x1515   :  { %4367 = vmatpush1.bf16.msra.mxu0 %v11549_v6  ;;  %4408 = vmatpush1.bf16.msra.mxu1 %v11551_v8 }
0x1516   :  { %4368 = vmatprep.subr.bf16.mxu0 %v11557_v34  ;;  %4409 = vmatprep.subr.bf16.mxu1 %v11559_v47 }
0x1519   :  { %4369 = vmatpush1.bf16.msra.mxu0 %v11561_v51  ;;  %4410 = vmatpush1.bf16.msra.mxu1 %v11563_v30 }
0x151a   :  { %4470 = vmatprep.subr.bf16.mxu0 %v11473_v41  ;;  %4511 = vmatprep.subr.bf16.mxu1 %v11475_v21 }
0x15cf   :  { %v4272_v62 = vpop.f32.mrb[128].mxu0  ;;  %v4313_v16 = vpop.f32.mrb[128].mxu1 }
0x15d0   :  { %v4320_v9 = vadd.f32 %v4272_v62, %v3487_v46  ;;  %v4322_v7 = vadd.f32 %v4313_v16, %v3560_v3  ;;  %v4274_v10 = vpop.f32.mrb[129].mxu0  ;;  %v4315_v41 = vpop.f32.mrb[129].mxu1  ;;  %v11963_v46 = vld [vmem:[#allocation6 + $0x288] ss:$16 sps:$4 sm:$0xff]   ;;  %v11969_v3 = vld [vmem:[#allocation6 + $0x2ac] ss:$16 sps:$4 sm:$0xff]  }
0x15d1   :  { %v4321_v28 = vadd.f32 %v4274_v10, %v3489_v17  ;;  %v4323_v21 = vadd.f32 %v4315_v41, %v3562_v20  ;;  %v4276_v43 = vpop.f32.mrb[130].mxu0  ;;  %v4317_v35 = vpop.f32.mrb[130].mxu1  ;;  %v11975_v17 = vld [vmem:[#allocation6 + $0x2a8] ss:$16 sps:$4 sm:$0xff]   ;;  %v11981_v20 = vld [vmem:[#allocation6 + $0x2cc] ss:$16 sps:$4 sm:$0xff]  }
0x15d2   :  { %v8355_v54 = vmul.f32 -1.442695, %v4320_v9  ;;  %v4277_v18 = vpop.f32.mrb[131].mxu0  ;;  %v4318_v49 = vpop.f32.mrb[131].mxu1  ;;  %v11984_v62 = vld [vmem:[#allocation6 + $0x2c0] ss:$16 sps:$4 sm:$0xff]  }
0x15d3   :  { %v8356_v58 = vmul.f32 -1.442695, %v4321_v28  ;;  %v8357_v12 = vmul.f32 -1.442695, %v4323_v21  ;;  %v11987_v16 = vld [vmem:[#allocation6 + $0x2c8] ss:$16 sps:$4 sm:$0xff]  }
0x15d4   :  { %9495 = vpow2.f32 %v8355_v54  ;;  %v11990_v9 = vld [vmem:[#allocation6 + $0x2e4] ss:$16 sps:$4 sm:$0xff]   ;;  %v11996_v10 = vld [vmem:[#allocation6 + $0x2e0] ss:$16 sps:$4 sm:$0xff]   ;;  %v11999_v41 = vld [vmem:[#allocation6 + $0x2e8] ss:$16 sps:$4 sm:$0xff]  }
0x15d5   :  { %9497 = vpow2.f32 %v8356_v58  ;;  %v9909_v28 = vld [vmem:[#allocation6 + $0x204] ss:$16 sps:$4 sm:$0xff]   ;;  %v9910_v21 = vld [vmem:[#allocation6 + $0x20c] ss:$16 sps:$4 sm:$0xff]  }
0x15d6   :  { %9499 = vpow2.f32 %v8357_v12  ;;  %v13498_v43 = vld [vmem:[#allocation28_spill] sm:$0xff]  ;;  %v13499_v54 = vld [vmem:[#allocation29_spill] sm:$0xff] }
0x15d7   :  { %9501 = vtanh.f32 %v4322_v7  ;;  %v11993_v7 = vld [vmem:[#allocation6 + $0x2ec] ss:$16 sps:$4 sm:$0xff]   ;;  %v3491_v35 = vadd.f32 %v13498_v43, %v11680_v57  ;;  %v3564_v18 = vadd.f32 %v13499_v54, %v11683_v14 }
0x15d8   :  { %v13500_v49 = vld [vmem:[#allocation32_spill] sm:$0xff]  ;;  %v13501_v12 = vld [vmem:[#allocation33_spill] sm:$0xff] }
0x15d9   :  { %v3493_v58 = vadd.f32 %v13500_v49, %v11690_v2 }
0x15de   :  { %v9496_v33 = vpop.eup %9495 }
0x15df   :  { %v9498_v13 = vpop.eup %9497  ;;  %v4327_v31 = vadd.f32 1.0, %v9496_v33  ;;  %v3566_v33 = vadd.f32 %v13501_v12, %v11693_v50 }
0x15e0   :  { %v4333_v6 = vadd.f32 1.0, %v9498_v13  ;;  %v9500_v8 = vpop.eup %9499 }
0x15e1   :  { %9503 = vrcp.f32 %v4327_v31  ;;  %v9502_v34 = vpop.eup %9501  ;;  %v4340_v5 = vadd.f32 1.0, %v9500_v8 }
0x15e2   :  { %9505 = vrcp.f32 %v4333_v6 }
0x15e3   :  { %9507 = vrcp.f32 %v4340_v5 }
0x15eb   :  { %v9504_v47 = vpop.eup %9503 }
0x15ec   :  { %v9506_v51 = vpop.eup %9505  ;;  %v4344_v30 = vmul.f32 %v9504_v47, %v9502_v34 }
0x15ed   :  { %v4343_v26 = vmul.f32 %v9506_v51, %v11853_v61  ;;  %v9508_v48 = vpop.eup %9507  ;;  %v11948_v61 = vld [vmem:[#allocation6 + $0x260] ss:$16 sps:$4 sm:$0xff]  }
0x15ef   :  { %v11903_v45 = vadd.f32 %v4344_v30, %v4343_v26 }
0x15f1   :  { %9509 = vtanh.f32 %v11903_v45 }
0x15fb   :  { %v9510_v27 = vpop.eup %9509 }
0x15fc   :  { %v11906_v59 = vmul.f32 %v9510_v27, %v9508_v48 }
0x15fe   :  { %v4353_v19 = vpack.c.bf16 %v11906_v59, %v11906_v59 }
0x1600   :  { %4387 = vmatmul.mubr.bf16.vlgmr.msra.gmra.mrb[132].mxu0 %v4353_v19  ;;  %4428 = vmatmul.mubr.bf16.vlgmr.msra.gmra.mrb[132].mxu1 %v4353_v19 }
0x1601   :  { %4471 = vmatpush1.bf16.msra.mxu0 %v11910_v55  ;;  %4512 = vmatpush1.bf16.msra.mxu1 %v11913_v4 }
0x1602   :  { %4472 = vmatprep.subr.bf16.mxu0 %v11916_v32  ;;  %4513 = vmatprep.subr.bf16.mxu1 %v11919_v11 }
0x1603   :  { %4502 = vmatprep.mubr.bf16.mxu0 %v13395_v44  ;;  %4543 = vmatprep.mubr.bf16.mxu1 %v13395_v44 }
0x1605   :  { %4473 = vmatpush1.bf16.msra.mxu0 %v11924_v23  ;;  %4514 = vmatpush1.bf16.msra.mxu1 %v11927_v63 }
0x1606   :  { %4474 = vmatprep.subr.bf16.mxu0 %v11930_v15  ;;  %4515 = vmatprep.subr.bf16.mxu1 %v11933_v52 }
0x1609   :  { %4475 = vmatpush1.bf16.msra.mxu0 %v11936_v24  ;;  %4516 = vmatpush1.bf16.msra.mxu1 %v11939_v1 }
0x160a   :  { %4476 = vmatprep.subr.bf16.mxu0 %v11942_v53  ;;  %4517 = vmatprep.subr.bf16.mxu1 %v11945_v36 }
0x160d   :  { %4477 = vmatpush1.bf16.msra.mxu0 %v11948_v61  ;;  %4518 = vmatpush1.bf16.msra.mxu1 %v11951_v25 }
0x160e   :  { %4478 = vmatprep.subr.bf16.mxu0 %v11954_v29  ;;  %4519 = vmatprep.subr.bf16.mxu1 %v11957_v22 }
0x1611   :  { %4479 = vmatpush1.bf16.msra.mxu0 %v11960_v42  ;;  %4520 = vmatpush1.bf16.msra.mxu1 %v11963_v46 }
0x1612   :  { %4480 = vmatprep.subr.bf16.mxu0 %v11966_v38  ;;  %4521 = vmatprep.subr.bf16.mxu1 %v11969_v3 }
0x1615   :  { %4481 = vmatpush1.bf16.msra.mxu0 %v11972_v0  ;;  %4522 = vmatpush1.bf16.msra.mxu1 %v11975_v17 }
0x1616   :  { %4482 = vmatprep.subr.bf16.mxu0 %v11978_v60  ;;  %4523 = vmatprep.subr.bf16.mxu1 %v11981_v20 }
0x1619   :  { %4483 = vmatpush1.bf16.msra.mxu0 %v11984_v62  ;;  %4524 = vmatpush1.bf16.msra.mxu1 %v11987_v16 }
0x161a   :  { %4484 = vmatprep.subr.bf16.mxu0 %v11990_v9  ;;  %4525 = vmatprep.subr.bf16.mxu1 %v11993_v7 }
0x161d   :  { %4485 = vmatpush1.bf16.msra.mxu0 %v11996_v10  ;;  %4526 = vmatpush1.bf16.msra.mxu1 %v11999_v41 }
0x161e   :  { %4586 = vmatprep.subr.bf16.mxu0 %v9909_v28  ;;  %4627 = vmatprep.subr.bf16.mxu1 %v9910_v21 }
0x16d3   :  { %v4388_v13 = vpop.f32.mrb[132].mxu0  ;;  %v4429_v31 = vpop.f32.mrb[132].mxu1 }
0x16d4   :  { %v4436_v6 = vadd.f32 %v4388_v13, %v3491_v35  ;;  %v4438_v8 = vadd.f32 %v4429_v31, %v3564_v18  ;;  %v4390_v34 = vpop.f32.mrb[133].mxu0  ;;  %v4431_v47 = vpop.f32.mrb[133].mxu1 }
0x16d5   :  { %v4437_v51 = vadd.f32 %v4390_v34, %v3493_v58  ;;  %v4439_v30 = vadd.f32 %v4431_v47, %v3566_v33  ;;  %v4392_v5 = vpop.f32.mrb[134].mxu0  ;;  %v4433_v26 = vpop.f32.mrb[134].mxu1 }
0x16d6   :  { %v8358_v48 = vmul.f32 -1.442695, %v4436_v6  ;;  %v4393_v27 = vpop.f32.mrb[135].mxu0  ;;  %v4434_v19 = vpop.f32.mrb[135].mxu1 }
0x16d7   :  { %v8359_v28 = vmul.f32 -1.442695, %v4437_v51  ;;  %v8360_v21 = vmul.f32 -1.442695, %v4439_v30 }
0x16d8   :  { %9511 = vpow2.f32 %v8358_v48 }
0x16d9   :  { %9513 = vpow2.f32 %v8359_v28 }
0x16da   :  { %9515 = vpow2.f32 %v8360_v21 }
0x16db   :  { %9517 = vtanh.f32 %v4438_v8 }
0x16e2   :  { %v9512_v43 = vpop.eup %9511 }
0x16e3   :  { %v9514_v54 = vpop.eup %9513  ;;  %v4443_v49 = vadd.f32 1.0, %v9512_v43 }
0x16e4   :  { %v4449_v35 = vadd.f32 1.0, %v9514_v54  ;;  %v9516_v18 = vpop.eup %9515 }
0x16e5   :  { %9519 = vrcp.f32 %v4443_v49  ;;  %v9518_v58 = vpop.eup %9517  ;;  %v4456_v31 = vadd.f32 1.0, %v9516_v18  ;;  %v8959_v49 = vld [vmem:[#allocation4 + $0x300] ss:$16 sps:$4 sm:$0xff]  }
0x16e6   :  { %9521 = vrcp.f32 %v4449_v35  ;;  %v8962_v35 = vld [vmem:[#allocation4 + $0x308] ss:$16 sps:$4 sm:$0xff]  }
0x16e7   :  { %9523 = vrcp.f32 %v4456_v31  ;;  %v8973_v31 = vld [vmem:[#allocation4 + $0x344] ss:$16 sps:$4 sm:$0xff]  }
0x16ef   :  { %v9520_v12 = vpop.eup %9519 }
0x16f0   :  { %v9522_v33 = vpop.eup %9521  ;;  %v4460_v13 = vmul.f32 %v9520_v12, %v9518_v58  ;;  %v8967_v58 = vld [vmem:[#allocation4 + $0x324] ss:$16 sps:$4 sm:$0xff]   ;;  %v8970_v12 = vld [vmem:[#allocation4 + $0x32c] ss:$16 sps:$4 sm:$0xff]  }
0x16f1   :  { %v4459_v6 = vmul.f32 %v9522_v33, %v11903_v45  ;;  %v9524_v47 = vpop.eup %9523  ;;  %v8961_v45 = vld [vmem:[#allocation4 + $0x304] ss:$16 sps:$4 sm:$0xff]   ;;  %v8965_v33 = vld [vmem:[#allocation4 + $0x320] ss:$16 sps:$4 sm:$0xff]  }
0x16f3   :  { %v12011_v34 = vadd.f32 %v4460_v13, %v4459_v6  ;;  %v8968_v13 = vld [vmem:[#allocation4 + $0x328] ss:$16 sps:$4 sm:$0xff]   ;;  %v8976_v6 = vld [vmem:[#allocation4 + $0x34c] ss:$16 sps:$4 sm:$0xff]  }
0x16f5   :  { %9525 = vtanh.f32 %v12011_v34 }
0x16ff   :  { %v9526_v51 = vpop.eup %9525 }
0x1700   :  { %v12014_v30 = vmul.f32 %v9526_v51, %v9524_v47  ;;  %v8974_v47 = vld [vmem:[#allocation4 + $0x348] ss:$16 sps:$4 sm:$0xff]   ;;  %v8979_v51 = vld [vmem:[#allocation4 + $0x364] ss:$16 sps:$4 sm:$0xff]  }
0x1702   :  { %v4469_v8 = vpack.c.bf16 %v12014_v30, %v12014_v30 }
0x1704   :  { %4503 = vmatmul.mubr.bf16.vlgmr.msra.gmra.mrb[136].mxu0 %v4469_v8  ;;  %4544 = vmatmul.mubr.bf16.vlgmr.msra.gmra.mrb[136].mxu1 %v4469_v8  ;;  %v8982_v8 = vld [vmem:[#allocation4 + $0x36c] ss:$16 sps:$4 sm:$0xff]  }
0x1705   :  { %4587 = vmatpush1.bf16.msra.mxu0 %v11910_v55  ;;  %4628 = vmatpush1.bf16.msra.mxu1 %v11913_v4  ;;  %v8964_v55 = vld [vmem:[#allocation4 + $0x30c] ss:$16 sps:$4 sm:$0xff]  }
0x1706   :  { %4588 = vmatprep.subr.bf16.mxu0 %v11916_v32  ;;  %4629 = vmatprep.subr.bf16.mxu1 %v11919_v11  ;;  %v13502_v4 = vld [vmem:[#allocation34_spill] sm:$0xff]  ;;  %v13503_v11 = vld [vmem:[#allocation35_spill] sm:$0xff] }
0x1707   :  { %4618 = vmatprep.mubr.bf16.mxu0 %v13395_v44  ;;  %4659 = vmatprep.mubr.bf16.mxu1 %v13395_v44  ;;  %v3497_v32 = vadd.f32 %v13502_v4, %v11680_v57  ;;  %v8985_v4 = vld [vmem:[#allocation4 + $0x384] ss:$16 sps:$4 sm:$0xff]  }
0x1709   :  { %4589 = vmatpush1.bf16.msra.mxu0 %v11924_v23  ;;  %4630 = vmatpush1.bf16.msra.mxu1 %v11927_v63  ;;  %v3570_v23 = vadd.f32 %v13503_v11, %v11683_v14  ;;  %v13504_v63 = vld [vmem:[#allocation36_spill] sm:$0xff] }
0x170a   :  { %4590 = vmatprep.subr.bf16.mxu0 %v11930_v15  ;;  %4631 = vmatprep.subr.bf16.mxu1 %v11933_v52  ;;  %v3499_v15 = vadd.f32 %v13504_v63, %v11690_v2  ;;  %v13505_v52 = vld [vmem:[#allocation37_spill] sm:$0xff]  ;;  %v8983_v11 = vld [vmem:[#allocation4 + $0x380] ss:$16 sps:$4 sm:$0xff]  }
0x170b   :  { %v8991_v63 = vld [vmem:[#allocation4 + $0x3a4] ss:$16 sps:$4 sm:$0xff]  }
0x170d   :  { %4591 = vmatpush1.bf16.msra.mxu0 %v11936_v24  ;;  %4632 = vmatpush1.bf16.msra.mxu1 %v11939_v1  ;;  %v3572_v24 = vadd.f32 %v13505_v52, %v11693_v50  ;;  %v8989_v52 = vld [vmem:[#allocation4 + $0x3a0] ss:$16 sps:$4 sm:$0xff]  }
0x170e   :  { %4592 = vmatprep.subr.bf16.mxu0 %v11942_v53  ;;  %4633 = vmatprep.subr.bf16.mxu1 %v11945_v36 }
0x1711   :  { %4593 = vmatpush1.bf16.msra.mxu0 %v11948_v61  ;;  %4634 = vmatpush1.bf16.msra.mxu1 %v11951_v25 }
0x1712   :  { %4594 = vmatprep.subr.bf16.mxu0 %v11954_v29  ;;  %4635 = vmatprep.subr.bf16.mxu1 %v11957_v22 }
0x1715   :  { %4595 = vmatpush1.bf16.msra.mxu0 %v11960_v42  ;;  %4636 = vmatpush1.bf16.msra.mxu1 %v11963_v46 }
0x1716   :  { %4596 = vmatprep.subr.bf16.mxu0 %v11966_v38  ;;  %4637 = vmatprep.subr.bf16.mxu1 %v11969_v3 }
0x1719   :  { %4597 = vmatpush1.bf16.msra.mxu0 %v11972_v0  ;;  %4638 = vmatpush1.bf16.msra.mxu1 %v11975_v17 }
0x171a   :  { %4598 = vmatprep.subr.bf16.mxu0 %v11978_v60  ;;  %4639 = vmatprep.subr.bf16.mxu1 %v11981_v20 }
0x171d   :  { %4599 = vmatpush1.bf16.msra.mxu0 %v11984_v62  ;;  %4640 = vmatpush1.bf16.msra.mxu1 %v11987_v16 }
0x171e   :  { %4600 = vmatprep.subr.bf16.mxu0 %v11990_v9  ;;  %4641 = vmatprep.subr.bf16.mxu1 %v11993_v7 }
0x1721   :  { %4601 = vmatpush1.bf16.msra.mxu0 %v11996_v10  ;;  %4642 = vmatpush1.bf16.msra.mxu1 %v11999_v41 }
0x1722   :  { %4958 = vmatprep.subr.bf16.mxu0 %v8961_v45  ;;  %5031 = vmatprep.subr.bf16.mxu1 %v8964_v55  ;;  %v8977_v45 = vld [vmem:[#allocation4 + $0x360] ss:$16 sps:$4 sm:$0xff]   ;;  %v8980_v55 = vld [vmem:[#allocation4 + $0x368] ss:$16 sps:$4 sm:$0xff]  }
0x17d7   :  { %v4504_v1 = vpop.f32.mrb[136].mxu0  ;;  %v4545_v53 = vpop.f32.mrb[136].mxu1 }
0x17d8   :  { %v4552_v36 = vadd.f32 %v4504_v1, %v3497_v32  ;;  %v4554_v61 = vadd.f32 %v4545_v53, %v3570_v23  ;;  %v4506_v25 = vpop.f32.mrb[137].mxu0  ;;  %v4547_v29 = vpop.f32.mrb[137].mxu1  ;;  %v8988_v32 = vld [vmem:[#allocation4 + $0x38c] ss:$16 sps:$4 sm:$0xff]   ;;  %v8986_v23 = vld [vmem:[#allocation4 + $0x388] ss:$16 sps:$4 sm:$0xff]  }
0x17d9   :  { %v4553_v22 = vadd.f32 %v4506_v25, %v3499_v15  ;;  %v4555_v42 = vadd.f32 %v4547_v29, %v3572_v24  ;;  %v4508_v46 = vpop.f32.mrb[138].mxu0  ;;  %v4549_v38 = vpop.f32.mrb[138].mxu1  ;;  %v8994_v15 = vld [vmem:[#allocation4 + $0x3ac] ss:$16 sps:$4 sm:$0xff]   ;;  %v8992_v24 = vld [vmem:[#allocation4 + $0x3a8] ss:$16 sps:$4 sm:$0xff]  }
0x17da   :  { %v8361_v3 = vmul.f32 -1.442695, %v4552_v36  ;;  %v4509_v0 = vpop.f32.mrb[139].mxu0  ;;  %v4550_v17 = vpop.f32.mrb[139].mxu1  ;;  %v8997_v1 = vld [vmem:[#allocation4 + $0x3c4] ss:$16 sps:$4 sm:$0xff]   ;;  %v4738_v46 = vpack.c.bf16 %v11756_v39, %v11706_v40  ;;  %v4739_v38 = vpack.c.bf16 %v11856_v37, %v11806_v56 }
0x17db   :  { %v8362_v60 = vmul.f32 -1.442695, %v4553_v22  ;;  %v8363_v20 = vmul.f32 -1.442695, %v4555_v42  ;;  %v9000_v53 = vld [vmem:[#allocation4 + $0x3cc] ss:$16 sps:$4 sm:$0xff]  }
0x17dc   :  { %9527 = vpow2.f32 %v8361_v3  ;;  %v8995_v36 = vld [vmem:[#allocation4 + $0x3c0] ss:$16 sps:$4 sm:$0xff]   ;;  %v9003_v25 = vld [vmem:[#allocation4 + $0x3e4] ss:$16 sps:$4 sm:$0xff]   ;;  %v9006_v29 = vld [vmem:[#allocation4 + $0x3ec] ss:$16 sps:$4 sm:$0xff]   ;;  %v4740_v3 = vpack.c.bf16 %v12014_v30, %v11906_v59 }
0x17dd   :  { %9529 = vpow2.f32 %v8362_v60  ;;  %v9001_v22 = vld [vmem:[#allocation4 + $0x3e0] ss:$16 sps:$4 sm:$0xff]   ;;  %v9004_v42 = vld [vmem:[#allocation4 + $0x3e8] ss:$16 sps:$4 sm:$0xff]   ;;  %v12080_v40 = vld [vmem:[#allocation6 + $0x304] ss:$16 sps:$4 sm:$0xff]  }
0x17de   :  { %9531 = vpow2.f32 %v8363_v20  ;;  %v12082_v39 = vld [vmem:[#allocation6 + $0x30c] ss:$16 sps:$4 sm:$0xff]   ;;  %v12084_v56 = vld [vmem:[#allocation6 + $0x300] ss:$16 sps:$4 sm:$0xff]   ;;  %v12086_v37 = vld [vmem:[#allocation6 + $0x308] ss:$16 sps:$4 sm:$0xff]  }
0x17df   :  { %9533 = vtanh.f32 %v4554_v61  ;;  %v8998_v61 = vld [vmem:[#allocation4 + $0x3c8] ss:$16 sps:$4 sm:$0xff]   ;;  %v12092_v59 = vld [vmem:[#allocation6 + $0x324] ss:$16 sps:$4 sm:$0xff]   ;;  %v12094_v30 = vld [vmem:[#allocation6 + $0x32c] ss:$16 sps:$4 sm:$0xff]  }
0x17e0   :  { %v12096_v0 = vld [vmem:[#allocation6 + $0x320] ss:$16 sps:$4 sm:$0xff]   ;;  %v12098_v17 = vld [vmem:[#allocation6 + $0x328] ss:$16 sps:$4 sm:$0xff]   ;;  %v12104_v60 = vld [vmem:[#allocation6 + $0x344] ss:$16 sps:$4 sm:$0xff]  }
0x17e1   :  { %v12106_v20 = vld [vmem:[#allocation6 + $0x34c] ss:$16 sps:$4 sm:$0xff]  }
0x17e6   :  { %v9528_v62 = vpop.eup %9527 }
0x17e7   :  { %v9530_v16 = vpop.eup %9529  ;;  %v4559_v9 = vadd.f32 1.0, %v9528_v62  ;;  %v12108_v62 = vld [vmem:[#allocation6 + $0x340] ss:$16 sps:$4 sm:$0xff]  }
0x17e8   :  { %v4565_v7 = vadd.f32 1.0, %v9530_v16  ;;  %v9532_v10 = vpop.eup %9531  ;;  %v12110_v16 = vld [vmem:[#allocation6 + $0x348] ss:$16 sps:$4 sm:$0xff]  }
0x17e9   :  { %9535 = vrcp.f32 %v4559_v9  ;;  %v9534_v41 = vpop.eup %9533  ;;  %v4572_v27 = vadd.f32 1.0, %v9532_v10  ;;  %v12116_v9 = vld [vmem:[#allocation6 + $0x364] ss:$16 sps:$4 sm:$0xff]   ;;  %v12120_v10 = vld [vmem:[#allocation6 + $0x360] ss:$16 sps:$4 sm:$0xff]  }
0x17ea   :  { %9537 = vrcp.f32 %v4565_v7  ;;  %v12118_v7 = vld [vmem:[#allocation6 + $0x36c] ss:$16 sps:$4 sm:$0xff]  }
0x17eb   :  { %9539 = vrcp.f32 %v4572_v27  ;;  %v12134_v27 = vld [vmem:[#allocation6 + $0x388] ss:$16 sps:$4 sm:$0xff]  }
0x17f3   :  { %v9536_v5 = vpop.eup %9535 }
0x17f4   :  { %v9538_v26 = vpop.eup %9537  ;;  %v4576_v48 = vmul.f32 %v9536_v5, %v9534_v41  ;;  %v12122_v41 = vld [vmem:[#allocation6 + $0x368] ss:$16 sps:$4 sm:$0xff]   ;;  %v12128_v5 = vld [vmem:[#allocation6 + $0x384] ss:$16 sps:$4 sm:$0xff]  }
0x17f5   :  { %v4575_v19 = vmul.f32 %v9538_v26, %v12011_v34  ;;  %v9540_v21 = vpop.eup %9539  ;;  %v8971_v34 = vld [vmem:[#allocation4 + $0x340] ss:$16 sps:$4 sm:$0xff]   ;;  %v12130_v26 = vld [vmem:[#allocation6 + $0x38c] ss:$16 sps:$4 sm:$0xff]  }
0x17f7   :  { %v12059_v28 = vadd.f32 %v4576_v48, %v4575_v19  ;;  %v12132_v48 = vld [vmem:[#allocation6 + $0x380] ss:$16 sps:$4 sm:$0xff]   ;;  %v12140_v19 = vld [vmem:[#allocation6 + $0x3a4] ss:$16 sps:$4 sm:$0xff]  }
0x17f9   :  { %9541 = vtanh.f32 %v12059_v28 }
0x1803   :  { %v9542_v43 = vpop.eup %9541 }
0x1804   :  { %v12062_v54 = vmul.f32 %v9542_v43, %v9540_v21  ;;  %v12142_v21 = vld [vmem:[#allocation6 + $0x3ac] ss:$16 sps:$4 sm:$0xff]   ;;  %v12144_v43 = vld [vmem:[#allocation6 + $0x3a0] ss:$16 sps:$4 sm:$0xff]  }
0x1806   :  { %v4585_v18 = vpack.c.bf16 %v12062_v54, %v12062_v54 }
0x1808   :  { %4619 = vmatmul.mubr.bf16.vlgmr.msra.gmra.mrb[140].mxu0 %v4585_v18  ;;  %4660 = vmatmul.mubr.bf16.vlgmr.msra.gmra.mrb[140].mxu1 %v4585_v18  ;;  %v12154_v18 = vld [vmem:[#allocation6 + $0x3cc] ss:$16 sps:$4 sm:$0xff]  }
0x1809   :  { %4959 = vmatpush1.bf16.msra.mxu0 %v8959_v49  ;;  %5032 = vmatpush1.bf16.msra.mxu1 %v8962_v35  ;;  %v12146_v49 = vld [vmem:[#allocation6 + $0x3a8] ss:$16 sps:$4 sm:$0xff]   ;;  %v12152_v35 = vld [vmem:[#allocation6 + $0x3c4] ss:$16 sps:$4 sm:$0xff]  }
0x180a   :  { %4960 = vmatprep.subr.bf16.mxu0 %v8967_v58  ;;  %5033 = vmatprep.subr.bf16.mxu1 %v8970_v12  ;;  %v12156_v58 = vld [vmem:[#allocation6 + $0x3c0] ss:$16 sps:$4 sm:$0xff]   ;;  %v12158_v12 = vld [vmem:[#allocation6 + $0x3c8] ss:$16 sps:$4 sm:$0xff]  }
0x180b   :  { %4990 = vmatprep.mubr.bf16.mxu0 %v13395_v44  ;;  %5063 = vmatprep.mubr.bf16.mxu1 %v13395_v44 }
0x180d   :  { %4961 = vmatpush1.bf16.msra.mxu0 %v8965_v33  ;;  %5034 = vmatpush1.bf16.msra.mxu1 %v8968_v13  ;;  %v12164_v33 = vld [vmem:[#allocation6 + $0x3e4] ss:$16 sps:$4 sm:$0xff]   ;;  %v12166_v13 = vld [vmem:[#allocation6 + $0x3ec] ss:$16 sps:$4 sm:$0xff]  }
0x180e   :  { %4962 = vmatprep.subr.bf16.mxu0 %v8973_v31  ;;  %5035 = vmatprep.subr.bf16.mxu1 %v8976_v6  ;;  %v12168_v31 = vld [vmem:[#allocation6 + $0x3e0] ss:$16 sps:$4 sm:$0xff]   ;;  %v12170_v6 = vld [vmem:[#allocation6 + $0x3e8] ss:$16 sps:$4 sm:$0xff]  }
0x1811   :  { %4963 = vmatpush1.bf16.msra.mxu0 %v8971_v34  ;;  %5036 = vmatpush1.bf16.msra.mxu1 %v8974_v47  ;;  %v13506_v34 = vld [vmem:[#allocation38_spill] sm:$0xff] }
0x1812   :  { %4964 = vmatprep.subr.bf16.mxu0 %v8979_v51  ;;  %5037 = vmatprep.subr.bf16.mxu1 %v8982_v8  ;;  %v3501_v47 = vadd.f32 %v13506_v34, %v11680_v57  ;;  %v13507_v51 = vld [vmem:[#allocation39_spill] sm:$0xff] }
0x1813   :  { %v3574_v8 = vadd.f32 %v13507_v51, %v11683_v14 }
0x1815   :  { %4965 = vmatpush1.bf16.msra.mxu0 %v8977_v45  ;;  %5038 = vmatpush1.bf16.msra.mxu1 %v8980_v55  ;;  %v13508_v45 = vld [vmem:[#allocation40_spill] sm:$0xff] }
0x1816   :  { %4966 = vmatprep.subr.bf16.mxu0 %v8985_v4  ;;  %5039 = vmatprep.subr.bf16.mxu1 %v8988_v32  ;;  %v3503_v55 = vadd.f32 %v13508_v45, %v11690_v2  ;;  %v13509_v4 = vld [vmem:[#allocation41_spill] sm:$0xff] }
0x1817   :  { %v3576_v32 = vadd.f32 %v13509_v4, %v11693_v50 }
0x1819   :  { %4967 = vmatpush1.bf16.msra.mxu0 %v8983_v11  ;;  %5040 = vmatpush1.bf16.msra.mxu1 %v8986_v23 }
0x181a   :  { %4968 = vmatprep.subr.bf16.mxu0 %v8991_v63  ;;  %5041 = vmatprep.subr.bf16.mxu1 %v8994_v15 }
0x181d   :  { %4969 = vmatpush1.bf16.msra.mxu0 %v8989_v52  ;;  %5042 = vmatpush1.bf16.msra.mxu1 %v8992_v24 }
0x181e   :  { %4970 = vmatprep.subr.bf16.mxu0 %v8997_v1  ;;  %5043 = vmatprep.subr.bf16.mxu1 %v9000_v53 }
0x1821   :  { %4971 = vmatpush1.bf16.msra.mxu0 %v8995_v36  ;;  %5044 = vmatpush1.bf16.msra.mxu1 %v8998_v61 }
0x1822   :  { %4972 = vmatprep.subr.bf16.mxu0 %v9003_v25  ;;  %5045 = vmatprep.subr.bf16.mxu1 %v9006_v29 }
0x1825   :  { %4973 = vmatpush1.bf16.msra.mxu0 %v9001_v22  ;;  %5046 = vmatpush1.bf16.msra.mxu1 %v9004_v42 }
0x1826   :  { %5300 = vmatprep.subr.bf16.mxu0 %v12080_v40  ;;  %5341 = vmatprep.subr.bf16.mxu1 %v12082_v39 }
0x1828   :  { %4991 = vmatmul.mubr.bf16.vlgmr.msra.gmra.mrb[144].mxu0 %v4738_v46  ;;  %5064 = vmatmul.mubr.bf16.vlgmr.msra.gmra.mrb[144].mxu1 %v4738_v46 }
0x1829   :  { %5000 = vmatprep.mubr.bf16.mxu0 %v13395_v44  ;;  %5073 = vmatprep.mubr.bf16.mxu1 %v13395_v44 }
0x182a   :  { %5301 = vmatpush1.bf16.msra.mxu0 %v12084_v56  ;;  %5342 = vmatpush1.bf16.msra.mxu1 %v12086_v37 }
0x182b   :  { %5302 = vmatprep.subr.bf16.mxu0 %v12092_v59  ;;  %5343 = vmatprep.subr.bf16.mxu1 %v12094_v30 }
0x182e   :  { %5303 = vmatpush1.bf16.msra.mxu0 %v12096_v0  ;;  %5344 = vmatpush1.bf16.msra.mxu1 %v12098_v17 }
0x182f   :  { %5304 = vmatprep.subr.bf16.mxu0 %v12104_v60  ;;  %5345 = vmatprep.subr.bf16.mxu1 %v12106_v20 }
0x1830   :  { %5001 = vmatmul.mubr.bf16.gmra.mrb[148].mxu0 %v4739_v38  ;;  %5074 = vmatmul.mubr.bf16.gmra.mrb[148].mxu1 %v4739_v38 }
0x1831   :  { %5010 = vmatprep.mubr.bf16.mxu0 %v13395_v44  ;;  %5083 = vmatprep.mubr.bf16.mxu1 %v13395_v44 }
0x1832   :  { %5305 = vmatpush1.bf16.msra.mxu0 %v12108_v62  ;;  %5346 = vmatpush1.bf16.msra.mxu1 %v12110_v16 }
0x1833   :  { %5306 = vmatprep.subr.bf16.mxu0 %v12116_v9  ;;  %5347 = vmatprep.subr.bf16.mxu1 %v12118_v7 }
0x1836   :  { %5307 = vmatpush1.bf16.msra.mxu0 %v12120_v10  ;;  %5348 = vmatpush1.bf16.msra.mxu1 %v12122_v41 }
0x1837   :  { %5308 = vmatprep.subr.bf16.mxu0 %v12128_v5  ;;  %5349 = vmatprep.subr.bf16.mxu1 %v12130_v26 }
0x1838   :  { %5011 = vmatmul.mubr.bf16.gmra.mrb[152].mxu0 %v4740_v3  ;;  %5084 = vmatmul.mubr.bf16.gmra.mrb[152].mxu1 %v4740_v3 }
0x1839   :  { %5020 = vmatprep.mubr.bf16.mxu0 %v13395_v44  ;;  %5093 = vmatprep.mubr.bf16.mxu1 %v13395_v44 }
0x183a   :  { %5309 = vmatpush1.bf16.msra.mxu0 %v12132_v48  ;;  %5350 = vmatpush1.bf16.msra.mxu1 %v12134_v27 }
0x183b   :  { %5310 = vmatprep.subr.bf16.mxu0 %v12140_v19  ;;  %5351 = vmatprep.subr.bf16.mxu1 %v12142_v21 }
0x183e   :  { %5311 = vmatpush1.bf16.msra.mxu0 %v12144_v43  ;;  %5352 = vmatpush1.bf16.msra.mxu1 %v12146_v49 }
0x183f   :  { %5312 = vmatprep.subr.bf16.mxu0 %v12152_v35  ;;  %5353 = vmatprep.subr.bf16.mxu1 %v12154_v18 }
0x1842   :  { %5313 = vmatpush1.bf16.msra.mxu0 %v12156_v58  ;;  %5354 = vmatpush1.bf16.msra.mxu1 %v12158_v12 }
0x1843   :  { %5314 = vmatprep.subr.bf16.mxu0 %v12164_v33  ;;  %5355 = vmatprep.subr.bf16.mxu1 %v12166_v13 }
0x1846   :  { %5315 = vmatpush1.bf16.msra.mxu0 %v12168_v31  ;;  %5356 = vmatpush1.bf16.msra.mxu1 %v12170_v6 }
0x1847   :  { %5416 = vmatprep.subr.bf16.mxu0 %v12080_v40  ;;  %5457 = vmatprep.subr.bf16.mxu1 %v12082_v39 }
0x18db   :  { %v4620_v11 = vpop.f32.mrb[140].mxu0  ;;  %v4661_v23 = vpop.f32.mrb[140].mxu1 }
0x18dc   :  { %v4668_v63 = vadd.f32 %v4620_v11, %v3501_v47  ;;  %v4670_v15 = vadd.f32 %v4661_v23, %v3574_v8  ;;  %v4622_v52 = vpop.f32.mrb[141].mxu0  ;;  %v4663_v24 = vpop.f32.mrb[141].mxu1 }
0x18dd   :  { %v4669_v1 = vadd.f32 %v4622_v52, %v3503_v55  ;;  %v4671_v53 = vadd.f32 %v4663_v24, %v3576_v32  ;;  %v4624_v36 = vpop.f32.mrb[142].mxu0  ;;  %v4665_v61 = vpop.f32.mrb[142].mxu1 }
0x18de   :  { %v8364_v57 = vmul.f32 -1.442695, %v4668_v63  ;;  %v4625_v25 = vpop.f32.mrb[143].mxu0  ;;  %v4666_v29 = vpop.f32.mrb[143].mxu1 }
0x18df   :  { %v8365_v14 = vmul.f32 -1.442695, %v4669_v1  ;;  %v8366_v2 = vmul.f32 -1.442695, %v4671_v53 }
0x18e0   :  { %9543 = vpow2.f32 %v8364_v57 }
0x18e1   :  { %9545 = vpow2.f32 %v8365_v14 }
0x18e2   :  { %9547 = vpow2.f32 %v8366_v2 }
0x18e3   :  { %9549 = vtanh.f32 %v4670_v15 }
0x18ea   :  { %v9544_v22 = vpop.eup %9543 }
0x18eb   :  { %v9546_v42 = vpop.eup %9545  ;;  %v4675_v50 = vadd.f32 1.0, %v9544_v22 }
0x18ec   :  { %v4681_v46 = vadd.f32 1.0, %v9546_v42  ;;  %v9548_v38 = vpop.eup %9547 }
0x18ed   :  { %9551 = vrcp.f32 %v4675_v50  ;;  %v9550_v3 = vpop.eup %9549  ;;  %v4688_v8 = vadd.f32 1.0, %v9548_v38 }
0x18ee   :  { %9553 = vrcp.f32 %v4681_v46 }
0x18ef   :  { %9555 = vrcp.f32 %v4688_v8  ;;  %v4776_v8 = vld [vmem:[#allocation8 + $0xc] sm:$0xf] }
0x18f7   :  { %v9552_v34 = vpop.eup %9551 }
0x18f8   :  { %v9554_v47 = vpop.eup %9553  ;;  %v4692_v51 = vmul.f32 %v9552_v34, %v9550_v3 }
0x18f9   :  { %v4691_v45 = vmul.f32 %v9554_v47, %v12059_v28  ;;  %v9556_v25 = vpop.eup %9555 }
0x18fb   :  { %v12187_v55 = vpop.f32.mrb[144].mxu0  ;;  %v12189_v4 = vpop.f32.mrb[144].mxu1  ;;  %v4693_v32 = vadd.f32 %v4692_v51, %v4691_v45 }
0x18fc   :  { %v12191_v11 = vpop.f32.mrb[145].mxu0  ;;  %v12193_v23 = vpop.f32.mrb[145].mxu1 }
0x18fd   :  { %v12195_v63 = vpop.f32.mrb[146].mxu0  ;;  %v12197_v15 = vpop.f32.mrb[146].mxu1  ;;  %9557 = vtanh.f32 %v4693_v32 }
0x18fe   :  { %v12199_v52 = vpop.f32.mrb[147].mxu0  ;;  %v12201_v24 = vpop.f32.mrb[147].mxu1 }
0x1903   :  { %v12203_v28 = vpop.f32.mrb[148].mxu0  ;;  %v12205_v1 = vpop.f32.mrb[148].mxu1 }
0x1904   :  { %13510 = vst [vmem:[#allocation19_spill] sm:$0xff] %v12205_v1  ;;  %v12207_v53 = vpop.f32.mrb[149].mxu0  ;;  %v12209_v36 = vpop.f32.mrb[149].mxu1 }
0x1905   :  { %13511 = vst [vmem:[#allocation20_spill] sm:$0xff] %v12207_v53  ;;  %13512 = vst [vmem:[#allocation21_spill] sm:$0xff] %v12209_v36  ;;  %v12211_v61 = vpop.f32.mrb[150].mxu0  ;;  %v12213_v57 = vpop.f32.mrb[150].mxu1 }
0x1906   :  { %13513 = vst [vmem:[#allocation22_spill] sm:$0xff] %v12211_v61  ;;  %13514 = vst [vmem:[#allocation23_spill] sm:$0xff] %v12213_v57  ;;  %v12215_v29 = vpop.f32.mrb[151].mxu0  ;;  %v12217_v14 = vpop.f32.mrb[151].mxu1 }
0x1907   :  { %13515 = vst [vmem:[#allocation24_spill] sm:$0xff] %v12215_v29  ;;  %13516 = vst [vmem:[#allocation25_spill] sm:$0xff] %v12217_v14  ;;  %v9558_v2 = vpop.eup %9557 }
0x1908   :  { %v4695_v22 = vmul.f32 %v9558_v2, %v9556_v25 }
0x190a   :  { %v4741_v42 = vpack.c.bf16 %v4695_v22, %v12062_v54 }
0x190b   :  { %v12220_v50 = vpop.f32.mrb[152].mxu0  ;;  %v12222_v46 = vpop.f32.mrb[152].mxu1 }
0x190c   :  { %13517 = vst [vmem:[#allocation30_spill] sm:$0xff] %v12220_v50  ;;  %13518 = vst [vmem:[#allocation31_spill] sm:$0xff] %v12222_v46  ;;  %v12224_v38 = vpop.f32.mrb[153].mxu0  ;;  %v12226_v3 = vpop.f32.mrb[153].mxu1  ;;  %5021 = vmatmul.mubr.bf16.gmra.mrb[156].mxu0 %v4741_v42  ;;  %5094 = vmatmul.mubr.bf16.gmra.mrb[156].mxu1 %v4741_v42 }
0x190d   :  { %13519 = vst [vmem:[#allocation26_spill] sm:$0xff] %v12224_v38  ;;  %13520 = vst [vmem:[#allocation27_spill] sm:$0xff] %v12226_v3  ;;  %v12228_v34 = vpop.f32.mrb[154].mxu0  ;;  %v12230_v47 = vpop.f32.mrb[154].mxu1  ;;  %5332 = vmatprep.mubr.bf16.mxu0 %v13395_v44  ;;  %5373 = vmatprep.mubr.bf16.mxu1 %v13395_v44 }
0x190e   :  { %13521 = vst [vmem:[#allocation28_spill] sm:$0xff] %v12228_v34  ;;  %13522 = vst [vmem:[#allocation29_spill] sm:$0xff] %v12230_v47  ;;  %v12234_v51 = vpop.f32.mrb[155].mxu0  ;;  %v12236_v54 = vpop.f32.mrb[155].mxu1  ;;  %v13532_v47 = vld [vmem:[#allocation15_spill] sm:$0xff] }
0x190f   :  { %13523 = vst [vmem:[#allocation32_spill] sm:$0xff] %v12234_v51  ;;  %13524 = vst [vmem:[#allocation33_spill] sm:$0xff] %v12236_v54  ;;  %v13531_v54 = vld [vmem:[#allocation17_spill] sm:$0xff]  ;;  %v12290_v34 = vrot.slane %v4776_v8, %v13532_v47 }
0x1910   :  { %v12287_v51 = vrot.slane %v4776_v8, %v13531_v54 }
0x1911   :  { %v5066_v54 = vadd.f32 %v12189_v4, %v12290_v34 }
0x1914   :  { %5333 = vmatmul.mubr.bf16.vlgmr.msra.gmra.mrb[160].mxu0 %v13395_v44  ;;  %5374 = vmatmul.mubr.bf16.vlgmr.msra.gmra.mrb[160].mxu1 %v13395_v44 }
0x1915   :  { %5417 = vmatpush1.bf16.msra.mxu0 %v12084_v56  ;;  %5458 = vmatpush1.bf16.msra.mxu1 %v12086_v37 }
0x1916   :  { %5418 = vmatprep.subr.bf16.mxu0 %v12092_v59  ;;  %5459 = vmatprep.subr.bf16.mxu1 %v12094_v30 }
0x1917   :  { %5448 = vmatprep.mubr.bf16.mxu0 %v13395_v44  ;;  %5489 = vmatprep.mubr.bf16.mxu1 %v13395_v44 }
0x1919   :  { %5419 = vmatpush1.bf16.msra.mxu0 %v12096_v0  ;;  %5460 = vmatpush1.bf16.msra.mxu1 %v12098_v17 }
0x191a   :  { %5420 = vmatprep.subr.bf16.mxu0 %v12104_v60  ;;  %5461 = vmatprep.subr.bf16.mxu1 %v12106_v20 }
0x191d   :  { %5421 = vmatpush1.bf16.msra.mxu0 %v12108_v62  ;;  %5462 = vmatpush1.bf16.msra.mxu1 %v12110_v16 }
0x191e   :  { %5422 = vmatprep.subr.bf16.mxu0 %v12116_v9  ;;  %5463 = vmatprep.subr.bf16.mxu1 %v12118_v7 }
0x1921   :  { %5423 = vmatpush1.bf16.msra.mxu0 %v12120_v10  ;;  %5464 = vmatpush1.bf16.msra.mxu1 %v12122_v41 }
0x1922   :  { %5424 = vmatprep.subr.bf16.mxu0 %v12128_v5  ;;  %5465 = vmatprep.subr.bf16.mxu1 %v12130_v26 }
0x1925   :  { %5425 = vmatpush1.bf16.msra.mxu0 %v12132_v48  ;;  %5466 = vmatpush1.bf16.msra.mxu1 %v12134_v27 }
0x1926   :  { %5426 = vmatprep.subr.bf16.mxu0 %v12140_v19  ;;  %5467 = vmatprep.subr.bf16.mxu1 %v12142_v21 }
0x1929   :  { %5427 = vmatpush1.bf16.msra.mxu0 %v12144_v43  ;;  %5468 = vmatpush1.bf16.msra.mxu1 %v12146_v49 }
0x192a   :  { %5428 = vmatprep.subr.bf16.mxu0 %v12152_v35  ;;  %5469 = vmatprep.subr.bf16.mxu1 %v12154_v18 }
0x192d   :  { %5429 = vmatpush1.bf16.msra.mxu0 %v12156_v58  ;;  %5470 = vmatpush1.bf16.msra.mxu1 %v12158_v12 }
0x192e   :  { %5430 = vmatprep.subr.bf16.mxu0 %v12164_v33  ;;  %5471 = vmatprep.subr.bf16.mxu1 %v12166_v13 }
0x1931   :  { %5431 = vmatpush1.bf16.msra.mxu0 %v12168_v31  ;;  %5472 = vmatpush1.bf16.msra.mxu1 %v12170_v6 }
0x1932   :  { %5532 = vmatprep.subr.bf16.mxu0 %v12080_v40  ;;  %5573 = vmatprep.subr.bf16.mxu1 %v12082_v39 }
0x19df   :  { %v12274_v45 = vpop.f32.mrb[156].mxu0  ;;  %v12276_v32 = vpop.f32.mrb[156].mxu1 }
0x19e0   :  { %13525 = vst [vmem:[#allocation34_spill] sm:$0xff] %v12274_v45  ;;  %13526 = vst [vmem:[#allocation35_spill] sm:$0xff] %v12276_v32  ;;  %v12278_v25 = vpop.f32.mrb[157].mxu0  ;;  %v12280_v2 = vpop.f32.mrb[157].mxu1  ;;  %v13535_v45 = vld [vmem:[#allocation18_spill] sm:$0xff] }
0x19e1   :  { %13527 = vst [vmem:[#allocation36_spill] sm:$0xff] %v12278_v25  ;;  %13528 = vst [vmem:[#allocation37_spill] sm:$0xff] %v12280_v2  ;;  %v12282_v22 = vpop.f32.mrb[158].mxu0  ;;  %v12284_v42 = vpop.f32.mrb[158].mxu1  ;;  %v12297_v32 = vrot.slane %v4776_v8, %v13535_v45  ;;  %v13536_v25 = vld [vmem:[#allocation16_spill] sm:$0xff] }
0x19e2   :  { %13529 = vst [vmem:[#allocation38_spill] sm:$0xff] %v12282_v22  ;;  %13530 = vst [vmem:[#allocation39_spill] sm:$0xff] %v12284_v42  ;;  %v12292_v3 = vpop.f32.mrb[159].mxu0  ;;  %v12294_v38 = vpop.f32.mrb[159].mxu1  ;;  %v12300_v46 = vrot.slane %v4776_v8, %v13536_v25  ;;  %v4993_v22 = vadd.f32 %v12187_v55, %v12287_v51 }
0x19e3   :  { %13533 = vst [vmem:[#allocation40_spill] sm:$0xff] %v12292_v3  ;;  %13534 = vst [vmem:[#allocation41_spill] sm:$0xff] %v12294_v38  ;;  %v4995_v47 = vadd.f32 %v12191_v11, %v12297_v32 }
0x19e4   :  { %v5068_v3 = vadd.f32 %v12193_v23, %v12300_v46 }
0x19e7   :  { %v5334_v42 = vpop.f32.mrb[160].mxu0  ;;  %v5375_v38 = vpop.f32.mrb[160].mxu1 }
0x19e8   :  { %v5382_v2 = vadd.f32 %v5334_v42, %v4993_v22  ;;  %v5384_v45 = vadd.f32 %v5375_v38, %v5066_v54  ;;  %v5336_v50 = vpop.f32.mrb[161].mxu0  ;;  %v5377_v14 = vpop.f32.mrb[161].mxu1  ;;  %v5072_v42 = vadd.f32 %v12201_v24, %v12300_v46 }
0x19e9   :  { %v5383_v8 = vadd.f32 %v5336_v50, %v4995_v47  ;;  %v5385_v25 = vadd.f32 %v5377_v14, %v5068_v3  ;;  %v5338_v29 = vpop.f32.mrb[162].mxu0  ;;  %v5379_v57 = vpop.f32.mrb[162].mxu1 }
0x19ea   :  { %v8431_v55 = vmul.f32 -1.442695, %v5382_v2  ;;  %v5339_v61 = vpop.f32.mrb[163].mxu0  ;;  %v5380_v36 = vpop.f32.mrb[163].mxu1  ;;  %v4999_v2 = vadd.f32 %v12199_v52, %v12297_v32 }
0x19eb   :  { %v8432_v4 = vmul.f32 -1.442695, %v5383_v8  ;;  %v8433_v11 = vmul.f32 -1.442695, %v5385_v25  ;;  %v5070_v25 = vadd.f32 %v12197_v15, %v12290_v34 }
0x19ec   :  { %9559 = vpow2.f32 %v8431_v55 }
0x19ed   :  { %9561 = vpow2.f32 %v8432_v4 }
0x19ee   :  { %9563 = vpow2.f32 %v8433_v11 }
0x19ef   :  { %9565 = vtanh.f32 %v5384_v45  ;;  %v4997_v45 = vadd.f32 %v12195_v63, %v12287_v51 }
0x19f6   :  { %v9560_v53 = vpop.eup %9559 }
0x19f7   :  { %v9562_v1 = vpop.eup %9561  ;;  %v5389_v23 = vadd.f32 1.0, %v9560_v53 }
0x19f8   :  { %v5395_v22 = vadd.f32 1.0, %v9562_v1  ;;  %v9564_v38 = vpop.eup %9563 }
0x19f9   :  { %9567 = vrcp.f32 %v5389_v23  ;;  %v9566_v50 = vpop.eup %9565  ;;  %v5402_v3 = vadd.f32 1.0, %v9564_v38 }
0x19fa   :  { %9569 = vrcp.f32 %v5395_v22 }
0x19fb   :  { %9571 = vrcp.f32 %v5402_v3 }
0x1a03   :  { %v9568_v14 = vpop.eup %9567 }
0x1a04   :  { %v9570_v29 = vpop.eup %9569  ;;  %v5406_v57 = vmul.f32 %v9568_v14, %v9566_v50 }
0x1a05   :  { %v5405_v61 = vmul.f32 0.0, %v9570_v29  ;;  %v9572_v47 = vpop.eup %9571 }
0x1a07   :  { %v12310_v36 = vadd.f32 %v5406_v57, %v5405_v61 }
0x1a09   :  { %9573 = vtanh.f32 %v12310_v36 }
0x1a13   :  { %v9574_v54 = vpop.eup %9573 }
0x1a14   :  { %v12313_v53 = vmul.f32 %v9574_v54, %v9572_v47 }
0x1a16   :  { %v5415_v1 = vpack.c.bf16 %v12313_v53, %v12313_v53 }
0x1a18   :  { %5449 = vmatmul.mubr.bf16.vlgmr.msra.gmra.mrb[164].mxu0 %v5415_v1  ;;  %5490 = vmatmul.mubr.bf16.vlgmr.msra.gmra.mrb[164].mxu1 %v5415_v1 }
0x1a19   :  { %5533 = vmatpush1.bf16.msra.mxu0 %v12084_v56  ;;  %5574 = vmatpush1.bf16.msra.mxu1 %v12086_v37 }
0x1a1a   :  { %5534 = vmatprep.subr.bf16.mxu0 %v12092_v59  ;;  %5575 = vmatprep.subr.bf16.mxu1 %v12094_v30 }
0x1a1b   :  { %5564 = vmatprep.mubr.bf16.mxu0 %v13395_v44  ;;  %5605 = vmatprep.mubr.bf16.mxu1 %v13395_v44 }
0x1a1d   :  { %5535 = vmatpush1.bf16.msra.mxu0 %v12096_v0  ;;  %5576 = vmatpush1.bf16.msra.mxu1 %v12098_v17 }
0x1a1e   :  { %5536 = vmatprep.subr.bf16.mxu0 %v12104_v60  ;;  %5577 = vmatprep.subr.bf16.mxu1 %v12106_v20 }
0x1a21   :  { %5537 = vmatpush1.bf16.msra.mxu0 %v12108_v62  ;;  %5578 = vmatpush1.bf16.msra.mxu1 %v12110_v16 }
0x1a22   :  { %5538 = vmatprep.subr.bf16.mxu0 %v12116_v9  ;;  %5579 = vmatprep.subr.bf16.mxu1 %v12118_v7 }
0x1a25   :  { %5539 = vmatpush1.bf16.msra.mxu0 %v12120_v10  ;;  %5580 = vmatpush1.bf16.msra.mxu1 %v12122_v41 }
0x1a26   :  { %5540 = vmatprep.subr.bf16.mxu0 %v12128_v5  ;;  %5581 = vmatprep.subr.bf16.mxu1 %v12130_v26 }
0x1a29   :  { %5541 = vmatpush1.bf16.msra.mxu0 %v12132_v48  ;;  %5582 = vmatpush1.bf16.msra.mxu1 %v12134_v27 }
0x1a2a   :  { %5542 = vmatprep.subr.bf16.mxu0 %v12140_v19  ;;  %5583 = vmatprep.subr.bf16.mxu1 %v12142_v21 }
0x1a2d   :  { %5543 = vmatpush1.bf16.msra.mxu0 %v12144_v43  ;;  %5584 = vmatpush1.bf16.msra.mxu1 %v12146_v49 }
0x1a2e   :  { %5544 = vmatprep.subr.bf16.mxu0 %v12152_v35  ;;  %5585 = vmatprep.subr.bf16.mxu1 %v12154_v18 }
0x1a31   :  { %5545 = vmatpush1.bf16.msra.mxu0 %v12156_v58  ;;  %5586 = vmatpush1.bf16.msra.mxu1 %v12158_v12 }
0x1a32   :  { %5546 = vmatprep.subr.bf16.mxu0 %v12164_v33  ;;  %5587 = vmatprep.subr.bf16.mxu1 %v12166_v13 }
0x1a35   :  { %5547 = vmatpush1.bf16.msra.mxu0 %v12168_v31  ;;  %5588 = vmatpush1.bf16.msra.mxu1 %v12170_v6 }
0x1a36   :  { %5648 = vmatprep.subr.bf16.mxu0 %v12080_v40  ;;  %5689 = vmatprep.subr.bf16.mxu1 %v12082_v39 }
0x1aeb   :  { %v5450_v8 = vpop.f32.mrb[164].mxu0  ;;  %v5491_v55 = vpop.f32.mrb[164].mxu1 }
0x1aec   :  { %v5498_v4 = vadd.f32 %v5450_v8, %v4997_v45  ;;  %v5500_v11 = vadd.f32 %v5491_v55, %v5070_v25  ;;  %v5452_v23 = vpop.f32.mrb[165].mxu0  ;;  %v5493_v22 = vpop.f32.mrb[165].mxu1 }
0x1aed   :  { %v5499_v38 = vadd.f32 %v5452_v23, %v4999_v2  ;;  %v5501_v50 = vadd.f32 %v5493_v22, %v5072_v42  ;;  %v5454_v14 = vpop.f32.mrb[166].mxu0  ;;  %v5495_v29 = vpop.f32.mrb[166].mxu1 }
0x1aee   :  { %v8434_v63 = vmul.f32 -1.442695, %v5498_v4  ;;  %v5455_v57 = vpop.f32.mrb[167].mxu0  ;;  %v5496_v3 = vpop.f32.mrb[167].mxu1  ;;  %v13538_v29 = vld [vmem:[#allocation20_spill] sm:$0xff] }
0x1aef   :  { %v8435_v15 = vmul.f32 -1.442695, %v5499_v38  ;;  %v8436_v52 = vmul.f32 -1.442695, %v5501_v50  ;;  %v13537_v50 = vld [vmem:[#allocation19_spill] sm:$0xff]  ;;  %v13539_v57 = vld [vmem:[#allocation21_spill] sm:$0xff] }
0x1af0   :  { %9575 = vpow2.f32 %v8434_v63  ;;  %v5076_v14 = vadd.f32 %v13537_v50, %v12290_v34  ;;  %v5005_v63 = vadd.f32 %v13538_v29, %v12297_v32  ;;  %v5078_v3 = vadd.f32 %v13539_v57, %v12300_v46 }
0x1af1   :  { %9577 = vpow2.f32 %v8435_v15 }
0x1af2   :  { %9579 = vpow2.f32 %v8436_v52 }
0x1af3   :  { %9581 = vtanh.f32 %v5500_v11 }
0x1afa   :  { %v9576_v61 = vpop.eup %9575 }
0x1afb   :  { %v9578_v47 = vpop.eup %9577  ;;  %v5505_v24 = vadd.f32 1.0, %v9576_v61 }
0x1afc   :  { %v5511_v54 = vadd.f32 1.0, %v9578_v47  ;;  %v9580_v1 = vpop.eup %9579 }
0x1afd   :  { %9583 = vrcp.f32 %v5505_v24  ;;  %v9582_v45 = vpop.eup %9581  ;;  %v5518_v8 = vadd.f32 1.0, %v9580_v1 }
0x1afe   :  { %9585 = vrcp.f32 %v5511_v54 }
0x1aff   :  { %9587 = vrcp.f32 %v5518_v8 }
0x1b07   :  { %v9584_v25 = vpop.eup %9583 }
0x1b08   :  { %v9586_v2 = vpop.eup %9585  ;;  %v5522_v42 = vmul.f32 %v9584_v25, %v9582_v45 }
0x1b09   :  { %v5521_v55 = vmul.f32 %v9586_v2, %v12310_v36  ;;  %v9588_v23 = vpop.eup %9587  ;;  %v5003_v36 = vadd.f32 %v12203_v28, %v12287_v51 }
0x1b0b   :  { %v12360_v4 = vadd.f32 %v5522_v42, %v5521_v55 }
0x1b0d   :  { %9589 = vtanh.f32 %v12360_v4 }
0x1b17   :  { %v9590_v22 = vpop.eup %9589 }
0x1b18   :  { %v12363_v38 = vmul.f32 %v9590_v22, %v9588_v23 }
0x1b1a   :  { %v5531_v11 = vpack.c.bf16 %v12363_v38, %v12363_v38 }
0x1b1c   :  { %5565 = vmatmul.mubr.bf16.vlgmr.msra.gmra.mrb[168].mxu0 %v5531_v11  ;;  %5606 = vmatmul.mubr.bf16.vlgmr.msra.gmra.mrb[168].mxu1 %v5531_v11 }
0x1b1d   :  { %5649 = vmatpush1.bf16.msra.mxu0 %v12084_v56  ;;  %5690 = vmatpush1.bf16.msra.mxu1 %v12086_v37 }
0x1b1e   :  { %5650 = vmatprep.subr.bf16.mxu0 %v12092_v59  ;;  %5691 = vmatprep.subr.bf16.mxu1 %v12094_v30 }
0x1b1f   :  { %5680 = vmatprep.mubr.bf16.mxu0 %v13395_v44  ;;  %5721 = vmatprep.mubr.bf16.mxu1 %v13395_v44 }
0x1b21   :  { %5651 = vmatpush1.bf16.msra.mxu0 %v12096_v0  ;;  %5692 = vmatpush1.bf16.msra.mxu1 %v12098_v17 }
0x1b22   :  { %5652 = vmatprep.subr.bf16.mxu0 %v12104_v60  ;;  %5693 = vmatprep.subr.bf16.mxu1 %v12106_v20 }
0x1b25   :  { %5653 = vmatpush1.bf16.msra.mxu0 %v12108_v62  ;;  %5694 = vmatpush1.bf16.msra.mxu1 %v12110_v16 }
0x1b26   :  { %5654 = vmatprep.subr.bf16.mxu0 %v12116_v9  ;;  %5695 = vmatprep.subr.bf16.mxu1 %v12118_v7 }
0x1b29   :  { %5655 = vmatpush1.bf16.msra.mxu0 %v12120_v10  ;;  %5696 = vmatpush1.bf16.msra.mxu1 %v12122_v41 }
0x1b2a   :  { %5656 = vmatprep.subr.bf16.mxu0 %v12128_v5  ;;  %5697 = vmatprep.subr.bf16.mxu1 %v12130_v26 }
0x1b2d   :  { %5657 = vmatpush1.bf16.msra.mxu0 %v12132_v48  ;;  %5698 = vmatpush1.bf16.msra.mxu1 %v12134_v27 }
0x1b2e   :  { %5658 = vmatprep.subr.bf16.mxu0 %v12140_v19  ;;  %5699 = vmatprep.subr.bf16.mxu1 %v12142_v21 }
0x1b31   :  { %5659 = vmatpush1.bf16.msra.mxu0 %v12144_v43  ;;  %5700 = vmatpush1.bf16.msra.mxu1 %v12146_v49 }
0x1b32   :  { %5660 = vmatprep.subr.bf16.mxu0 %v12152_v35  ;;  %5701 = vmatprep.subr.bf16.mxu1 %v12154_v18 }
0x1b35   :  { %5661 = vmatpush1.bf16.msra.mxu0 %v12156_v58  ;;  %5702 = vmatpush1.bf16.msra.mxu1 %v12158_v12 }
0x1b36   :  { %5662 = vmatprep.subr.bf16.mxu0 %v12164_v33  ;;  %5703 = vmatprep.subr.bf16.mxu1 %v12166_v13 }
0x1b39   :  { %5663 = vmatpush1.bf16.msra.mxu0 %v12168_v31  ;;  %5704 = vmatpush1.bf16.msra.mxu1 %v12170_v6 }
0x1b3a   :  { %5764 = vmatprep.subr.bf16.mxu0 %v12080_v40  ;;  %5805 = vmatprep.subr.bf16.mxu1 %v12082_v39 }
0x1bef   :  { %v5566_v15 = vpop.f32.mrb[168].mxu0  ;;  %v5607_v52 = vpop.f32.mrb[168].mxu1 }
0x1bf0   :  { %v5614_v61 = vadd.f32 %v5566_v15, %v5003_v36  ;;  %v5616_v47 = vadd.f32 %v5607_v52, %v5076_v14  ;;  %v5568_v24 = vpop.f32.mrb[169].mxu0  ;;  %v5609_v54 = vpop.f32.mrb[169].mxu1 }
0x1bf1   :  { %v5615_v1 = vadd.f32 %v5568_v24, %v5005_v63  ;;  %v5617_v45 = vadd.f32 %v5609_v54, %v5078_v3  ;;  %v5570_v25 = vpop.f32.mrb[170].mxu0  ;;  %v5611_v2 = vpop.f32.mrb[170].mxu1 }
0x1bf2   :  { %v8437_v28 = vmul.f32 -1.442695, %v5614_v61  ;;  %v5571_v42 = vpop.f32.mrb[171].mxu0  ;;  %v5612_v8 = vpop.f32.mrb[171].mxu1  ;;  %v13541_v25 = vld [vmem:[#allocation23_spill] sm:$0xff] }
0x1bf3   :  { %v8438_v55 = vmul.f32 -1.442695, %v5615_v1  ;;  %v8439_v23 = vmul.f32 -1.442695, %v5617_v45  ;;  %v5080_v2 = vadd.f32 %v13541_v25, %v12290_v34  ;;  %v13543_v8 = vld [vmem:[#allocation25_spill] sm:$0xff] }
0x1bf4   :  { %9591 = vpow2.f32 %v8437_v28  ;;  %v13542_v28 = vld [vmem:[#allocation24_spill] sm:$0xff] }
0x1bf5   :  { %9593 = vpow2.f32 %v8438_v55  ;;  %v5009_v42 = vadd.f32 %v13542_v28, %v12297_v32  ;;  %v5082_v55 = vadd.f32 %v13543_v8, %v12300_v46 }
0x1bf6   :  { %9595 = vpow2.f32 %v8439_v23 }
0x1bf7   :  { %9597 = vtanh.f32 %v5616_v47 }
0x1bfe   :  { %v9592_v22 = vpop.eup %9591 }
0x1bff   :  { %v9594_v11 = vpop.eup %9593  ;;  %v5621_v50 = vadd.f32 1.0, %v9592_v22 }
0x1c00   :  { %v5627_v36 = vadd.f32 1.0, %v9594_v11  ;;  %v9596_v14 = vpop.eup %9595 }
0x1c01   :  { %9599 = vrcp.f32 %v5621_v50  ;;  %v9598_v29 = vpop.eup %9597  ;;  %v5634_v15 = vadd.f32 1.0, %v9596_v14 }
0x1c02   :  { %9601 = vrcp.f32 %v5627_v36 }
0x1c03   :  { %9603 = vrcp.f32 %v5634_v15 }
0x1c0b   :  { %v9600_v63 = vpop.eup %9599 }
0x1c0c   :  { %v9602_v57 = vpop.eup %9601  ;;  %v5638_v3 = vmul.f32 %v9600_v63, %v9598_v29 }
0x1c0d   :  { %v5637_v52 = vmul.f32 %v9602_v57, %v12360_v4  ;;  %v9604_v24 = vpop.eup %9603  ;;  %v13540_v4 = vld [vmem:[#allocation22_spill] sm:$0xff] }
0x1c0e   :  { %v5007_v45 = vadd.f32 %v13540_v4, %v12287_v51 }
0x1c0f   :  { %v12410_v61 = vadd.f32 %v5638_v3, %v5637_v52 }
0x1c11   :  { %9605 = vtanh.f32 %v12410_v61 }
0x1c1b   :  { %v9606_v54 = vpop.eup %9605 }
0x1c1c   :  { %v12413_v1 = vmul.f32 %v9606_v54, %v9604_v24 }
0x1c1e   :  { %v5647_v47 = vpack.c.bf16 %v12413_v1, %v12413_v1 }
0x1c20   :  { %5681 = vmatmul.mubr.bf16.vlgmr.msra.gmra.mrb[172].mxu0 %v5647_v47  ;;  %5722 = vmatmul.mubr.bf16.vlgmr.msra.gmra.mrb[172].mxu1 %v5647_v47 }
0x1c21   :  { %5765 = vmatpush1.bf16.msra.mxu0 %v12084_v56  ;;  %5806 = vmatpush1.bf16.msra.mxu1 %v12086_v37 }
0x1c22   :  { %5766 = vmatprep.subr.bf16.mxu0 %v12092_v59  ;;  %5807 = vmatprep.subr.bf16.mxu1 %v12094_v30 }
0x1c23   :  { %5796 = vmatprep.mubr.bf16.mxu0 %v13395_v44  ;;  %5837 = vmatprep.mubr.bf16.mxu1 %v13395_v44 }
0x1c25   :  { %5767 = vmatpush1.bf16.msra.mxu0 %v12096_v0  ;;  %5808 = vmatpush1.bf16.msra.mxu1 %v12098_v17 }
0x1c26   :  { %5768 = vmatprep.subr.bf16.mxu0 %v12104_v60  ;;  %5809 = vmatprep.subr.bf16.mxu1 %v12106_v20 }
0x1c29   :  { %5769 = vmatpush1.bf16.msra.mxu0 %v12108_v62  ;;  %5810 = vmatpush1.bf16.msra.mxu1 %v12110_v16 }
0x1c2a   :  { %5770 = vmatprep.subr.bf16.mxu0 %v12116_v9  ;;  %5811 = vmatprep.subr.bf16.mxu1 %v12118_v7 }
0x1c2d   :  { %5771 = vmatpush1.bf16.msra.mxu0 %v12120_v10  ;;  %5812 = vmatpush1.bf16.msra.mxu1 %v12122_v41 }
0x1c2e   :  { %5772 = vmatprep.subr.bf16.mxu0 %v12128_v5  ;;  %5813 = vmatprep.subr.bf16.mxu1 %v12130_v26 }
0x1c31   :  { %5773 = vmatpush1.bf16.msra.mxu0 %v12132_v48  ;;  %5814 = vmatpush1.bf16.msra.mxu1 %v12134_v27 }
0x1c32   :  { %5774 = vmatprep.subr.bf16.mxu0 %v12140_v19  ;;  %5815 = vmatprep.subr.bf16.mxu1 %v12142_v21 }
0x1c35   :  { %5775 = vmatpush1.bf16.msra.mxu0 %v12144_v43  ;;  %5816 = vmatpush1.bf16.msra.mxu1 %v12146_v49 }
0x1c36   :  { %5776 = vmatprep.subr.bf16.mxu0 %v12152_v35  ;;  %5817 = vmatprep.subr.bf16.mxu1 %v12154_v18 }
0x1c39   :  { %5777 = vmatpush1.bf16.msra.mxu0 %v12156_v58  ;;  %5818 = vmatpush1.bf16.msra.mxu1 %v12158_v12 }
0x1c3a   :  { %5778 = vmatprep.subr.bf16.mxu0 %v12164_v33  ;;  %5819 = vmatprep.subr.bf16.mxu1 %v12166_v13 }
0x1c3d   :  { %5779 = vmatpush1.bf16.msra.mxu0 %v12168_v31  ;;  %5820 = vmatpush1.bf16.msra.mxu1 %v12170_v6 }
0x1c3e   :  { %5880 = vmatprep.subr.bf16.mxu0 %v12080_v40  ;;  %5921 = vmatprep.subr.bf16.mxu1 %v12082_v39 }
0x1cf3   :  { %v5682_v23 = vpop.f32.mrb[172].mxu0  ;;  %v5723_v22 = vpop.f32.mrb[172].mxu1 }
0x1cf4   :  { %v5730_v11 = vadd.f32 %v5682_v23, %v5007_v45  ;;  %v5732_v50 = vadd.f32 %v5723_v22, %v5080_v2  ;;  %v5684_v36 = vpop.f32.mrb[173].mxu0  ;;  %v5725_v14 = vpop.f32.mrb[173].mxu1 }
0x1cf5   :  { %v5731_v29 = vadd.f32 %v5684_v36, %v5009_v42  ;;  %v5733_v63 = vadd.f32 %v5725_v14, %v5082_v55  ;;  %v5686_v57 = vpop.f32.mrb[174].mxu0  ;;  %v5727_v3 = vpop.f32.mrb[174].mxu1 }
0x1cf6   :  { %v8440_v15 = vmul.f32 -1.442695, %v5730_v11  ;;  %v5687_v52 = vpop.f32.mrb[175].mxu0  ;;  %v5728_v24 = vpop.f32.mrb[175].mxu1 }
0x1cf7   :  { %v8441_v54 = vmul.f32 -1.442695, %v5731_v29  ;;  %v8442_v47 = vmul.f32 -1.442695, %v5733_v63 }
0x1cf8   :  { %9607 = vpow2.f32 %v8440_v15 }
0x1cf9   :  { %9609 = vpow2.f32 %v8441_v54 }
0x1cfa   :  { %9611 = vpow2.f32 %v8442_v47  ;;  %v12517_v47 = vld [vmem:[#allocation6 + $0x300] ss:$16 sps:$4 sm:$0xff]  }
0x1cfb   :  { %9613 = vtanh.f32 %v5732_v50 }
0x1d02   :  { %v9608_v4 = vpop.eup %9607 }
0x1d03   :  { %v9610_v25 = vpop.eup %9609  ;;  %v5737_v28 = vadd.f32 1.0, %v9608_v4  ;;  %v12520_v4 = vld [vmem:[#allocation6 + $0x308] ss:$16 sps:$4 sm:$0xff]  }
0x1d04   :  { %v5743_v45 = vadd.f32 1.0, %v9610_v25  ;;  %v9612_v2 = vpop.eup %9611  ;;  %v12523_v25 = vld [vmem:[#allocation6 + $0x324] ss:$16 sps:$4 sm:$0xff]  }
0x1d05   :  { %9615 = vrcp.f32 %v5737_v28  ;;  %v9614_v42 = vpop.eup %9613  ;;  %v5750_v22 = vadd.f32 1.0, %v9612_v2  ;;  %v12526_v28 = vld [vmem:[#allocation6 + $0x32c] ss:$16 sps:$4 sm:$0xff]   ;;  %v12534_v2 = vld [vmem:[#allocation6 + $0x328] ss:$16 sps:$4 sm:$0xff]  }
0x1d06   :  { %9617 = vrcp.f32 %v5743_v45  ;;  %v12531_v45 = vld [vmem:[#allocation6 + $0x320] ss:$16 sps:$4 sm:$0xff]  }
0x1d07   :  { %9619 = vrcp.f32 %v5750_v22  ;;  %v12549_v22 = vld [vmem:[#allocation6 + $0x364] ss:$16 sps:$4 sm:$0xff]  }
0x1d0f   :  { %v9616_v8 = vpop.eup %9615 }
0x1d10   :  { %v9618_v55 = vpop.eup %9617  ;;  %v5754_v23 = vmul.f32 %v9616_v8, %v9614_v42  ;;  %v12537_v42 = vld [vmem:[#allocation6 + $0x344] ss:$16 sps:$4 sm:$0xff]   ;;  %v12540_v8 = vld [vmem:[#allocation6 + $0x34c] ss:$16 sps:$4 sm:$0xff]  }
0x1d11   :  { %v5753_v11 = vmul.f32 %v9618_v55, %v12410_v61  ;;  %v9620_v14 = vpop.eup %9619  ;;  %v12543_v55 = vld [vmem:[#allocation6 + $0x340] ss:$16 sps:$4 sm:$0xff]  }
0x1d13   :  { %v12460_v36 = vadd.f32 %v5754_v23, %v5753_v11  ;;  %v12546_v23 = vld [vmem:[#allocation6 + $0x348] ss:$16 sps:$4 sm:$0xff]   ;;  %v12552_v11 = vld [vmem:[#allocation6 + $0x36c] ss:$16 sps:$4 sm:$0xff]  }
0x1d15   :  { %9621 = vtanh.f32 %v12460_v36 }
0x1d1f   :  { %v9622_v29 = vpop.eup %9621 }
0x1d20   :  { %v12463_v63 = vmul.f32 %v9622_v29, %v9620_v14  ;;  %v12558_v14 = vld [vmem:[#allocation6 + $0x368] ss:$16 sps:$4 sm:$0xff]   ;;  %v12561_v29 = vld [vmem:[#allocation6 + $0x384] ss:$16 sps:$4 sm:$0xff]  }
0x1d22   :  { %v5763_v50 = vpack.c.bf16 %v12463_v63, %v12463_v63 }
0x1d24   :  { %5797 = vmatmul.mubr.bf16.vlgmr.msra.gmra.mrb[176].mxu0 %v5763_v50  ;;  %5838 = vmatmul.mubr.bf16.vlgmr.msra.gmra.mrb[176].mxu1 %v5763_v50  ;;  %v12564_v50 = vld [vmem:[#allocation6 + $0x38c] ss:$16 sps:$4 sm:$0xff]  }
0x1d25   :  { %5881 = vmatpush1.bf16.msra.mxu0 %v12084_v56  ;;  %5922 = vmatpush1.bf16.msra.mxu1 %v12086_v37  ;;  %v13544_v56 = vld [vmem:[#allocation30_spill] sm:$0xff] }
0x1d26   :  { %5882 = vmatprep.subr.bf16.mxu0 %v12092_v59  ;;  %5923 = vmatprep.subr.bf16.mxu1 %v12094_v30  ;;  %v5013_v37 = vadd.f32 %v13544_v56, %v12287_v51  ;;  %v13545_v59 = vld [vmem:[#allocation31_spill] sm:$0xff]  ;;  %v12567_v56 = vld [vmem:[#allocation6 + $0x380] ss:$16 sps:$4 sm:$0xff]  }
0x1d27   :  { %5912 = vmatprep.mubr.bf16.mxu0 %v13395_v44  ;;  %5953 = vmatprep.mubr.bf16.mxu1 %v13395_v44  ;;  %v5086_v30 = vadd.f32 %v13545_v59, %v12290_v34  ;;  %v12573_v59 = vld [vmem:[#allocation6 + $0x3a4] ss:$16 sps:$4 sm:$0xff]  }
0x1d29   :  { %5883 = vmatpush1.bf16.msra.mxu0 %v12096_v0  ;;  %5924 = vmatpush1.bf16.msra.mxu1 %v12098_v17  ;;  %v13546_v0 = vld [vmem:[#allocation26_spill] sm:$0xff] }
0x1d2a   :  { %5884 = vmatprep.subr.bf16.mxu0 %v12104_v60  ;;  %5925 = vmatprep.subr.bf16.mxu1 %v12106_v20  ;;  %v5015_v17 = vadd.f32 %v13546_v0, %v12297_v32  ;;  %v13547_v60 = vld [vmem:[#allocation27_spill] sm:$0xff]  ;;  %v12579_v0 = vld [vmem:[#allocation6 + $0x3a0] ss:$16 sps:$4 sm:$0xff]  }
0x1d2b   :  { %v5088_v20 = vadd.f32 %v13547_v60, %v12300_v46  ;;  %v12585_v60 = vld [vmem:[#allocation6 + $0x3c4] ss:$16 sps:$4 sm:$0xff]  }
0x1d2d   :  { %5885 = vmatpush1.bf16.msra.mxu0 %v12108_v62  ;;  %5926 = vmatpush1.bf16.msra.mxu1 %v12110_v16 }
0x1d2e   :  { %5886 = vmatprep.subr.bf16.mxu0 %v12116_v9  ;;  %5927 = vmatprep.subr.bf16.mxu1 %v12118_v7 }
0x1d31   :  { %5887 = vmatpush1.bf16.msra.mxu0 %v12120_v10  ;;  %5928 = vmatpush1.bf16.msra.mxu1 %v12122_v41 }
0x1d32   :  { %5888 = vmatprep.subr.bf16.mxu0 %v12128_v5  ;;  %5929 = vmatprep.subr.bf16.mxu1 %v12130_v26 }
0x1d35   :  { %5889 = vmatpush1.bf16.msra.mxu0 %v12132_v48  ;;  %5930 = vmatpush1.bf16.msra.mxu1 %v12134_v27 }
0x1d36   :  { %5890 = vmatprep.subr.bf16.mxu0 %v12140_v19  ;;  %5931 = vmatprep.subr.bf16.mxu1 %v12142_v21 }
0x1d39   :  { %5891 = vmatpush1.bf16.msra.mxu0 %v12144_v43  ;;  %5932 = vmatpush1.bf16.msra.mxu1 %v12146_v49 }
0x1d3a   :  { %5892 = vmatprep.subr.bf16.mxu0 %v12152_v35  ;;  %5933 = vmatprep.subr.bf16.mxu1 %v12154_v18 }
0x1d3d   :  { %5893 = vmatpush1.bf16.msra.mxu0 %v12156_v58  ;;  %5934 = vmatpush1.bf16.msra.mxu1 %v12158_v12 }
0x1d3e   :  { %5894 = vmatprep.subr.bf16.mxu0 %v12164_v33  ;;  %5935 = vmatprep.subr.bf16.mxu1 %v12166_v13 }
0x1d41   :  { %5895 = vmatpush1.bf16.msra.mxu0 %v12168_v31  ;;  %5936 = vmatpush1.bf16.msra.mxu1 %v12170_v6 }
0x1d42   :  { %5996 = vmatprep.subr.bf16.mxu0 %v12080_v40  ;;  %6037 = vmatprep.subr.bf16.mxu1 %v12082_v39 }
0x1df7   :  { %v5798_v62 = vpop.f32.mrb[176].mxu0  ;;  %v5839_v16 = vpop.f32.mrb[176].mxu1 }
0x1df8   :  { %v5846_v9 = vadd.f32 %v5798_v62, %v5013_v37  ;;  %v5848_v7 = vadd.f32 %v5839_v16, %v5086_v30  ;;  %v5800_v10 = vpop.f32.mrb[177].mxu0  ;;  %v5841_v40 = vpop.f32.mrb[177].mxu1  ;;  %v12570_v37 = vld [vmem:[#allocation6 + $0x388] ss:$16 sps:$4 sm:$0xff]   ;;  %v12576_v30 = vld [vmem:[#allocation6 + $0x3ac] ss:$16 sps:$4 sm:$0xff]  }
0x1df9   :  { %v5847_v41 = vadd.f32 %v5800_v10, %v5015_v17  ;;  %v5849_v39 = vadd.f32 %v5841_v40, %v5088_v20  ;;  %v5802_v5 = vpop.f32.mrb[178].mxu0  ;;  %v5843_v26 = vpop.f32.mrb[178].mxu1  ;;  %v12582_v17 = vld [vmem:[#allocation6 + $0x3a8] ss:$16 sps:$4 sm:$0xff]   ;;  %v12588_v20 = vld [vmem:[#allocation6 + $0x3cc] ss:$16 sps:$4 sm:$0xff]  }
0x1dfa   :  { %v8443_v48 = vmul.f32 -1.442695, %v5846_v9  ;;  %v5803_v27 = vpop.f32.mrb[179].mxu0  ;;  %v5844_v19 = vpop.f32.mrb[179].mxu1  ;;  %v12591_v62 = vld [vmem:[#allocation6 + $0x3c0] ss:$16 sps:$4 sm:$0xff]  }
0x1dfb   :  { %v8444_v21 = vmul.f32 -1.442695, %v5847_v41  ;;  %v8445_v43 = vmul.f32 -1.442695, %v5849_v39  ;;  %v12594_v16 = vld [vmem:[#allocation6 + $0x3c8] ss:$16 sps:$4 sm:$0xff]  }
0x1dfc   :  { %9623 = vpow2.f32 %v8443_v48  ;;  %v12597_v9 = vld [vmem:[#allocation6 + $0x3e4] ss:$16 sps:$4 sm:$0xff]   ;;  %v12603_v10 = vld [vmem:[#allocation6 + $0x3e0] ss:$16 sps:$4 sm:$0xff]   ;;  %v12606_v40 = vld [vmem:[#allocation6 + $0x3e8] ss:$16 sps:$4 sm:$0xff]  }
0x1dfd   :  { %9625 = vpow2.f32 %v8444_v21  ;;  %v9941_v41 = vld [vmem:[#allocation6 + $0x304] ss:$16 sps:$4 sm:$0xff]   ;;  %v9942_v39 = vld [vmem:[#allocation6 + $0x30c] ss:$16 sps:$4 sm:$0xff]  }
0x1dfe   :  { %9627 = vpow2.f32 %v8445_v43  ;;  %v13548_v5 = vld [vmem:[#allocation28_spill] sm:$0xff]  ;;  %v13549_v48 = vld [vmem:[#allocation29_spill] sm:$0xff] }
0x1dff   :  { %9629 = vtanh.f32 %v5848_v7  ;;  %v12600_v7 = vld [vmem:[#allocation6 + $0x3ec] ss:$16 sps:$4 sm:$0xff]   ;;  %v5017_v26 = vadd.f32 %v13548_v5, %v12287_v51  ;;  %v5090_v27 = vadd.f32 %v13549_v48, %v12290_v34 }
0x1e00   :  { %v13550_v19 = vld [vmem:[#allocation32_spill] sm:$0xff]  ;;  %v13551_v43 = vld [vmem:[#allocation33_spill] sm:$0xff] }
0x1e01   :  { %v5019_v21 = vadd.f32 %v13550_v19, %v12297_v32 }
0x1e06   :  { %v9624_v49 = vpop.eup %9623 }
0x1e07   :  { %v9626_v35 = vpop.eup %9625  ;;  %v5853_v18 = vadd.f32 1.0, %v9624_v49  ;;  %v5092_v49 = vadd.f32 %v13551_v43, %v12300_v46 }
0x1e08   :  { %v5859_v58 = vadd.f32 1.0, %v9626_v35  ;;  %v9628_v12 = vpop.eup %9627 }
0x1e09   :  { %9631 = vrcp.f32 %v5853_v18  ;;  %v9630_v33 = vpop.eup %9629  ;;  %v5866_v61 = vadd.f32 1.0, %v9628_v12 }
0x1e0a   :  { %9633 = vrcp.f32 %v5859_v58 }
0x1e0b   :  { %9635 = vrcp.f32 %v5866_v61 }
0x1e13   :  { %v9632_v13 = vpop.eup %9631 }
0x1e14   :  { %v9634_v31 = vpop.eup %9633  ;;  %v5870_v6 = vmul.f32 %v9632_v13, %v9630_v33 }
0x1e15   :  { %v5869_v57 = vmul.f32 %v9634_v31, %v12460_v36  ;;  %v9636_v15 = vpop.eup %9635  ;;  %v12555_v36 = vld [vmem:[#allocation6 + $0x360] ss:$16 sps:$4 sm:$0xff]  }
0x1e17   :  { %v12510_v3 = vadd.f32 %v5870_v6, %v5869_v57 }
0x1e19   :  { %9637 = vtanh.f32 %v12510_v3 }
0x1e23   :  { %v9638_v52 = vpop.eup %9637 }
0x1e24   :  { %v12513_v24 = vmul.f32 %v9638_v52, %v9636_v15 }
0x1e26   :  { %v5879_v54 = vpack.c.bf16 %v12513_v24, %v12513_v24 }
0x1e28   :  { %5913 = vmatmul.mubr.bf16.vlgmr.msra.gmra.mrb[180].mxu0 %v5879_v54  ;;  %5954 = vmatmul.mubr.bf16.vlgmr.msra.gmra.mrb[180].mxu1 %v5879_v54 }
0x1e29   :  { %5997 = vmatpush1.bf16.msra.mxu0 %v12517_v47  ;;  %6038 = vmatpush1.bf16.msra.mxu1 %v12520_v4 }
0x1e2a   :  { %5998 = vmatprep.subr.bf16.mxu0 %v12523_v25  ;;  %6039 = vmatprep.subr.bf16.mxu1 %v12526_v28 }
0x1e2b   :  { %6028 = vmatprep.mubr.bf16.mxu0 %v13395_v44  ;;  %6069 = vmatprep.mubr.bf16.mxu1 %v13395_v44 }
0x1e2d   :  { %5999 = vmatpush1.bf16.msra.mxu0 %v12531_v45  ;;  %6040 = vmatpush1.bf16.msra.mxu1 %v12534_v2 }
0x1e2e   :  { %6000 = vmatprep.subr.bf16.mxu0 %v12537_v42  ;;  %6041 = vmatprep.subr.bf16.mxu1 %v12540_v8 }
0x1e31   :  { %6001 = vmatpush1.bf16.msra.mxu0 %v12543_v55  ;;  %6042 = vmatpush1.bf16.msra.mxu1 %v12546_v23 }
0x1e32   :  { %6002 = vmatprep.subr.bf16.mxu0 %v12549_v22  ;;  %6043 = vmatprep.subr.bf16.mxu1 %v12552_v11 }
0x1e35   :  { %6003 = vmatpush1.bf16.msra.mxu0 %v12555_v36  ;;  %6044 = vmatpush1.bf16.msra.mxu1 %v12558_v14 }
0x1e36   :  { %6004 = vmatprep.subr.bf16.mxu0 %v12561_v29  ;;  %6045 = vmatprep.subr.bf16.mxu1 %v12564_v50 }
0x1e39   :  { %6005 = vmatpush1.bf16.msra.mxu0 %v12567_v56  ;;  %6046 = vmatpush1.bf16.msra.mxu1 %v12570_v37 }
0x1e3a   :  { %6006 = vmatprep.subr.bf16.mxu0 %v12573_v59  ;;  %6047 = vmatprep.subr.bf16.mxu1 %v12576_v30 }
0x1e3d   :  { %6007 = vmatpush1.bf16.msra.mxu0 %v12579_v0  ;;  %6048 = vmatpush1.bf16.msra.mxu1 %v12582_v17 }
0x1e3e   :  { %6008 = vmatprep.subr.bf16.mxu0 %v12585_v60  ;;  %6049 = vmatprep.subr.bf16.mxu1 %v12588_v20 }
0x1e41   :  { %6009 = vmatpush1.bf16.msra.mxu0 %v12591_v62  ;;  %6050 = vmatpush1.bf16.msra.mxu1 %v12594_v16 }
0x1e42   :  { %6010 = vmatprep.subr.bf16.mxu0 %v12597_v9  ;;  %6051 = vmatprep.subr.bf16.mxu1 %v12600_v7 }
0x1e45   :  { %6011 = vmatpush1.bf16.msra.mxu0 %v12603_v10  ;;  %6052 = vmatpush1.bf16.msra.mxu1 %v12606_v40 }
0x1e46   :  { %6112 = vmatprep.subr.bf16.mxu0 %v9941_v41  ;;  %6153 = vmatprep.subr.bf16.mxu1 %v9942_v39 }
0x1efb   :  { %v5914_v35 = vpop.f32.mrb[180].mxu0  ;;  %v5955_v18 = vpop.f32.mrb[180].mxu1 }
0x1efc   :  { %v5962_v58 = vadd.f32 %v5914_v35, %v5017_v26  ;;  %v5964_v12 = vadd.f32 %v5955_v18, %v5090_v27  ;;  %v5916_v33 = vpop.f32.mrb[181].mxu0  ;;  %v5957_v13 = vpop.f32.mrb[181].mxu1 }
0x1efd   :  { %v5963_v31 = vadd.f32 %v5916_v33, %v5019_v21  ;;  %v5965_v6 = vadd.f32 %v5957_v13, %v5092_v49  ;;  %v5918_v61 = vpop.f32.mrb[182].mxu0  ;;  %v5959_v57 = vpop.f32.mrb[182].mxu1 }
0x1efe   :  { %v8446_v15 = vmul.f32 -1.442695, %v5962_v58  ;;  %v5919_v52 = vpop.f32.mrb[183].mxu0  ;;  %v5960_v54 = vpop.f32.mrb[183].mxu1 }
0x1eff   :  { %v8447_v41 = vmul.f32 -1.442695, %v5963_v31  ;;  %v8448_v39 = vmul.f32 -1.442695, %v5965_v6 }
0x1f00   :  { %9639 = vpow2.f32 %v8446_v15 }
0x1f01   :  { %9641 = vpow2.f32 %v8447_v41 }
0x1f02   :  { %9643 = vpow2.f32 %v8448_v39 }
0x1f03   :  { %9645 = vtanh.f32 %v5964_v12 }
0x1f0a   :  { %v9640_v5 = vpop.eup %9639 }
0x1f0b   :  { %v9642_v48 = vpop.eup %9641  ;;  %v5969_v19 = vadd.f32 1.0, %v9640_v5 }
0x1f0c   :  { %v5975_v26 = vadd.f32 1.0, %v9642_v48  ;;  %v9644_v27 = vpop.eup %9643 }
0x1f0d   :  { %9647 = vrcp.f32 %v5969_v19  ;;  %v9646_v21 = vpop.eup %9645  ;;  %v5982_v18 = vadd.f32 1.0, %v9644_v27  ;;  %v9055_v19 = vld [vmem:[#allocation4 + $0x400] ss:$16 sps:$4 sm:$0xff]  }
0x1f0e   :  { %9649 = vrcp.f32 %v5975_v26  ;;  %v9058_v26 = vld [vmem:[#allocation4 + $0x408] ss:$16 sps:$4 sm:$0xff]  }
0x1f0f   :  { %9651 = vrcp.f32 %v5982_v18  ;;  %v9069_v18 = vld [vmem:[#allocation4 + $0x444] ss:$16 sps:$4 sm:$0xff]  }
0x1f17   :  { %v9648_v43 = vpop.eup %9647 }
0x1f18   :  { %v9650_v49 = vpop.eup %9649  ;;  %v5986_v35 = vmul.f32 %v9648_v43, %v9646_v21  ;;  %v9063_v21 = vld [vmem:[#allocation4 + $0x424] ss:$16 sps:$4 sm:$0xff]   ;;  %v9066_v43 = vld [vmem:[#allocation4 + $0x42c] ss:$16 sps:$4 sm:$0xff]  }
0x1f19   :  { %v5985_v58 = vmul.f32 %v9650_v49, %v12510_v3  ;;  %v9652_v13 = vpop.eup %9651  ;;  %v9057_v3 = vld [vmem:[#allocation4 + $0x404] ss:$16 sps:$4 sm:$0xff]   ;;  %v9061_v49 = vld [vmem:[#allocation4 + $0x420] ss:$16 sps:$4 sm:$0xff]  }
0x1f1b   :  { %v12618_v33 = vadd.f32 %v5986_v35, %v5985_v58  ;;  %v9064_v35 = vld [vmem:[#allocation4 + $0x428] ss:$16 sps:$4 sm:$0xff]   ;;  %v9072_v58 = vld [vmem:[#allocation4 + $0x44c] ss:$16 sps:$4 sm:$0xff]  }
0x1f1d   :  { %9653 = vtanh.f32 %v12618_v33 }
0x1f27   :  { %v9654_v31 = vpop.eup %9653 }
0x1f28   :  { %v12621_v6 = vmul.f32 %v9654_v31, %v9652_v13  ;;  %v9070_v13 = vld [vmem:[#allocation4 + $0x448] ss:$16 sps:$4 sm:$0xff]   ;;  %v9075_v31 = vld [vmem:[#allocation4 + $0x464] ss:$16 sps:$4 sm:$0xff]  }
0x1f2a   :  { %v5995_v12 = vpack.c.bf16 %v12621_v6, %v12621_v6 }
0x1f2c   :  { %6029 = vmatmul.mubr.bf16.vlgmr.msra.gmra.mrb[184].mxu0 %v5995_v12  ;;  %6070 = vmatmul.mubr.bf16.vlgmr.msra.gmra.mrb[184].mxu1 %v5995_v12  ;;  %v9078_v12 = vld [vmem:[#allocation4 + $0x46c] ss:$16 sps:$4 sm:$0xff]  }
0x1f2d   :  { %6113 = vmatpush1.bf16.msra.mxu0 %v12517_v47  ;;  %6154 = vmatpush1.bf16.msra.mxu1 %v12520_v4  ;;  %v9060_v47 = vld [vmem:[#allocation4 + $0x40c] ss:$16 sps:$4 sm:$0xff]  }
0x1f2e   :  { %6114 = vmatprep.subr.bf16.mxu0 %v12523_v25  ;;  %6155 = vmatprep.subr.bf16.mxu1 %v12526_v28  ;;  %v13552_v4 = vld [vmem:[#allocation34_spill] sm:$0xff]  ;;  %v13553_v28 = vld [vmem:[#allocation35_spill] sm:$0xff] }
0x1f2f   :  { %6144 = vmatprep.mubr.bf16.mxu0 %v13395_v44  ;;  %6185 = vmatprep.mubr.bf16.mxu1 %v13395_v44  ;;  %v5023_v25 = vadd.f32 %v13552_v4, %v12287_v51  ;;  %v9081_v4 = vld [vmem:[#allocation4 + $0x484] ss:$16 sps:$4 sm:$0xff]  }
0x1f31   :  { %6115 = vmatpush1.bf16.msra.mxu0 %v12531_v45  ;;  %6156 = vmatpush1.bf16.msra.mxu1 %v12534_v2  ;;  %v5096_v45 = vadd.f32 %v13553_v28, %v12290_v34  ;;  %v13554_v2 = vld [vmem:[#allocation36_spill] sm:$0xff] }
0x1f32   :  { %6116 = vmatprep.subr.bf16.mxu0 %v12537_v42  ;;  %6157 = vmatprep.subr.bf16.mxu1 %v12540_v8  ;;  %v5025_v42 = vadd.f32 %v13554_v2, %v12297_v32  ;;  %v13555_v8 = vld [vmem:[#allocation37_spill] sm:$0xff]  ;;  %v9079_v28 = vld [vmem:[#allocation4 + $0x480] ss:$16 sps:$4 sm:$0xff]  }
0x1f33   :  { %v9087_v2 = vld [vmem:[#allocation4 + $0x4a4] ss:$16 sps:$4 sm:$0xff]  }
0x1f35   :  { %6117 = vmatpush1.bf16.msra.mxu0 %v12543_v55  ;;  %6158 = vmatpush1.bf16.msra.mxu1 %v12546_v23  ;;  %v5098_v55 = vadd.f32 %v13555_v8, %v12300_v46  ;;  %v9085_v8 = vld [vmem:[#allocation4 + $0x4a0] ss:$16 sps:$4 sm:$0xff]  }
0x1f36   :  { %6118 = vmatprep.subr.bf16.mxu0 %v12549_v22  ;;  %6159 = vmatprep.subr.bf16.mxu1 %v12552_v11 }
0x1f39   :  { %6119 = vmatpush1.bf16.msra.mxu0 %v12555_v36  ;;  %6160 = vmatpush1.bf16.msra.mxu1 %v12558_v14 }
0x1f3a   :  { %6120 = vmatprep.subr.bf16.mxu0 %v12561_v29  ;;  %6161 = vmatprep.subr.bf16.mxu1 %v12564_v50 }
0x1f3d   :  { %6121 = vmatpush1.bf16.msra.mxu0 %v12567_v56  ;;  %6162 = vmatpush1.bf16.msra.mxu1 %v12570_v37 }
0x1f3e   :  { %6122 = vmatprep.subr.bf16.mxu0 %v12573_v59  ;;  %6163 = vmatprep.subr.bf16.mxu1 %v12576_v30 }
0x1f41   :  { %6123 = vmatpush1.bf16.msra.mxu0 %v12579_v0  ;;  %6164 = vmatpush1.bf16.msra.mxu1 %v12582_v17 }
0x1f42   :  { %6124 = vmatprep.subr.bf16.mxu0 %v12585_v60  ;;  %6165 = vmatprep.subr.bf16.mxu1 %v12588_v20 }
0x1f45   :  { %6125 = vmatpush1.bf16.msra.mxu0 %v12591_v62  ;;  %6166 = vmatpush1.bf16.msra.mxu1 %v12594_v16 }
0x1f46   :  { %6126 = vmatprep.subr.bf16.mxu0 %v12597_v9  ;;  %6167 = vmatprep.subr.bf16.mxu1 %v12600_v7 }
0x1f49   :  { %6127 = vmatpush1.bf16.msra.mxu0 %v12603_v10  ;;  %6168 = vmatpush1.bf16.msra.mxu1 %v12606_v40 }
0x1f4a   :  { %6484 = vmatprep.subr.bf16.mxu0 %v9057_v3  ;;  %6557 = vmatprep.subr.bf16.mxu1 %v9060_v47  ;;  %v9073_v3 = vld [vmem:[#allocation4 + $0x460] ss:$16 sps:$4 sm:$0xff]   ;;  %v9076_v47 = vld [vmem:[#allocation4 + $0x468] ss:$16 sps:$4 sm:$0xff]  }
0x1fff   :  { %v6030_v23 = vpop.f32.mrb[184].mxu0  ;;  %v6071_v22 = vpop.f32.mrb[184].mxu1 }
0x2000   :  { %v6078_v11 = vadd.f32 %v6030_v23, %v5023_v25  ;;  %v6080_v36 = vadd.f32 %v6071_v22, %v5096_v45  ;;  %v6032_v14 = vpop.f32.mrb[185].mxu0  ;;  %v6073_v29 = vpop.f32.mrb[185].mxu1  ;;  %v9084_v25 = vld [vmem:[#allocation4 + $0x48c] ss:$16 sps:$4 sm:$0xff]   ;;  %v9082_v45 = vld [vmem:[#allocation4 + $0x488] ss:$16 sps:$4 sm:$0xff]  }
0x2001   :  { %v6079_v50 = vadd.f32 %v6032_v14, %v5025_v42  ;;  %v6081_v56 = vadd.f32 %v6073_v29, %v5098_v55  ;;  %v6034_v37 = vpop.f32.mrb[186].mxu0  ;;  %v6075_v59 = vpop.f32.mrb[186].mxu1  ;;  %v9090_v42 = vld [vmem:[#allocation4 + $0x4ac] ss:$16 sps:$4 sm:$0xff]   ;;  %v9088_v55 = vld [vmem:[#allocation4 + $0x4a8] ss:$16 sps:$4 sm:$0xff]  }
0x2002   :  { %v8449_v30 = vmul.f32 -1.442695, %v6078_v11  ;;  %v6035_v0 = vpop.f32.mrb[187].mxu0  ;;  %v6076_v17 = vpop.f32.mrb[187].mxu1  ;;  %v9093_v23 = vld [vmem:[#allocation4 + $0x4c4] ss:$16 sps:$4 sm:$0xff]   ;;  %v6264_v37 = vpack.c.bf16 %v12363_v38, %v12313_v53  ;;  %v6265_v59 = vpack.c.bf16 %v12463_v63, %v12413_v1 }
0x2003   :  { %v8450_v60 = vmul.f32 -1.442695, %v6079_v50  ;;  %v8451_v20 = vmul.f32 -1.442695, %v6081_v56  ;;  %v9096_v22 = vld [vmem:[#allocation4 + $0x4cc] ss:$16 sps:$4 sm:$0xff]  }
0x2004   :  { %9655 = vpow2.f32 %v8449_v30  ;;  %v9091_v11 = vld [vmem:[#allocation4 + $0x4c0] ss:$16 sps:$4 sm:$0xff]   ;;  %v9099_v14 = vld [vmem:[#allocation4 + $0x4e4] ss:$16 sps:$4 sm:$0xff]   ;;  %v9102_v29 = vld [vmem:[#allocation4 + $0x4ec] ss:$16 sps:$4 sm:$0xff]   ;;  %v6266_v30 = vpack.c.bf16 %v12621_v6, %v12513_v24 }
0x2005   :  { %9657 = vpow2.f32 %v8450_v60  ;;  %v9097_v50 = vld [vmem:[#allocation4 + $0x4e0] ss:$16 sps:$4 sm:$0xff]   ;;  %v9100_v56 = vld [vmem:[#allocation4 + $0x4e8] ss:$16 sps:$4 sm:$0xff]   ;;  %v12687_v53 = vld [vmem:[#allocation6 + $0x404] ss:$16 sps:$4 sm:$0xff]  }
0x2006   :  { %9659 = vpow2.f32 %v8451_v20  ;;  %v12689_v38 = vld [vmem:[#allocation6 + $0x40c] ss:$16 sps:$4 sm:$0xff]   ;;  %v12691_v1 = vld [vmem:[#allocation6 + $0x400] ss:$16 sps:$4 sm:$0xff]   ;;  %v12693_v63 = vld [vmem:[#allocation6 + $0x408] ss:$16 sps:$4 sm:$0xff]  }
0x2007   :  { %9661 = vtanh.f32 %v6080_v36  ;;  %v9094_v36 = vld [vmem:[#allocation4 + $0x4c8] ss:$16 sps:$4 sm:$0xff]   ;;  %v12699_v24 = vld [vmem:[#allocation6 + $0x424] ss:$16 sps:$4 sm:$0xff]   ;;  %v12701_v6 = vld [vmem:[#allocation6 + $0x42c] ss:$16 sps:$4 sm:$0xff]  }
0x2008   :  { %v12703_v0 = vld [vmem:[#allocation6 + $0x420] ss:$16 sps:$4 sm:$0xff]   ;;  %v12705_v17 = vld [vmem:[#allocation6 + $0x428] ss:$16 sps:$4 sm:$0xff]   ;;  %v12711_v60 = vld [vmem:[#allocation6 + $0x444] ss:$16 sps:$4 sm:$0xff]  }
0x2009   :  { %v12713_v20 = vld [vmem:[#allocation6 + $0x44c] ss:$16 sps:$4 sm:$0xff]  }
0x200e   :  { %v9656_v62 = vpop.eup %9655 }
0x200f   :  { %v9658_v16 = vpop.eup %9657  ;;  %v6085_v9 = vadd.f32 1.0, %v9656_v62  ;;  %v12715_v62 = vld [vmem:[#allocation6 + $0x440] ss:$16 sps:$4 sm:$0xff]  }
0x2010   :  { %v6091_v7 = vadd.f32 1.0, %v9658_v16  ;;  %v9660_v10 = vpop.eup %9659  ;;  %v12717_v16 = vld [vmem:[#allocation6 + $0x448] ss:$16 sps:$4 sm:$0xff]  }
0x2011   :  { %9663 = vrcp.f32 %v6085_v9  ;;  %v9662_v40 = vpop.eup %9661  ;;  %v6098_v52 = vadd.f32 1.0, %v9660_v10  ;;  %v12723_v9 = vld [vmem:[#allocation6 + $0x464] ss:$16 sps:$4 sm:$0xff]   ;;  %v12727_v10 = vld [vmem:[#allocation6 + $0x460] ss:$16 sps:$4 sm:$0xff]  }
0x2012   :  { %9665 = vrcp.f32 %v6091_v7  ;;  %v12725_v7 = vld [vmem:[#allocation6 + $0x46c] ss:$16 sps:$4 sm:$0xff]  }
0x2013   :  { %9667 = vrcp.f32 %v6098_v52  ;;  %v12741_v52 = vld [vmem:[#allocation6 + $0x488] ss:$16 sps:$4 sm:$0xff]  }
0x201b   :  { %v9664_v61 = vpop.eup %9663 }
0x201c   :  { %v9666_v57 = vpop.eup %9665  ;;  %v6102_v15 = vmul.f32 %v9664_v61, %v9662_v40  ;;  %v12729_v40 = vld [vmem:[#allocation6 + $0x468] ss:$16 sps:$4 sm:$0xff]   ;;  %v12735_v61 = vld [vmem:[#allocation6 + $0x484] ss:$16 sps:$4 sm:$0xff]  }
0x201d   :  { %v6101_v54 = vmul.f32 %v9666_v57, %v12618_v33  ;;  %v9668_v39 = vpop.eup %9667  ;;  %v9067_v33 = vld [vmem:[#allocation4 + $0x440] ss:$16 sps:$4 sm:$0xff]   ;;  %v12737_v57 = vld [vmem:[#allocation6 + $0x48c] ss:$16 sps:$4 sm:$0xff]  }
0x201f   :  { %v12666_v41 = vadd.f32 %v6102_v15, %v6101_v54  ;;  %v12739_v15 = vld [vmem:[#allocation6 + $0x480] ss:$16 sps:$4 sm:$0xff]   ;;  %v12747_v54 = vld [vmem:[#allocation6 + $0x4a4] ss:$16 sps:$4 sm:$0xff]  }
0x2021   :  { %9669 = vtanh.f32 %v12666_v41 }
0x202b   :  { %v9670_v5 = vpop.eup %9669 }
0x202c   :  { %v12669_v48 = vmul.f32 %v9670_v5, %v9668_v39  ;;  %v12749_v39 = vld [vmem:[#allocation6 + $0x4ac] ss:$16 sps:$4 sm:$0xff]   ;;  %v12751_v5 = vld [vmem:[#allocation6 + $0x4a0] ss:$16 sps:$4 sm:$0xff]  }
0x202e   :  { %v6111_v27 = vpack.c.bf16 %v12669_v48, %v12669_v48 }
0x2030   :  { %6145 = vmatmul.mubr.bf16.vlgmr.msra.gmra.mrb[188].mxu0 %v6111_v27  ;;  %6186 = vmatmul.mubr.bf16.vlgmr.msra.gmra.mrb[188].mxu1 %v6111_v27  ;;  %v12761_v27 = vld [vmem:[#allocation6 + $0x4cc] ss:$16 sps:$4 sm:$0xff]  }
0x2031   :  { %6485 = vmatpush1.bf16.msra.mxu0 %v9055_v19  ;;  %6558 = vmatpush1.bf16.msra.mxu1 %v9058_v26  ;;  %v12753_v19 = vld [vmem:[#allocation6 + $0x4a8] ss:$16 sps:$4 sm:$0xff]   ;;  %v12759_v26 = vld [vmem:[#allocation6 + $0x4c4] ss:$16 sps:$4 sm:$0xff]  }
0x2032   :  { %6486 = vmatprep.subr.bf16.mxu0 %v9063_v21  ;;  %6559 = vmatprep.subr.bf16.mxu1 %v9066_v43  ;;  %v12763_v21 = vld [vmem:[#allocation6 + $0x4c0] ss:$16 sps:$4 sm:$0xff]   ;;  %v12765_v43 = vld [vmem:[#allocation6 + $0x4c8] ss:$16 sps:$4 sm:$0xff]  }
0x2033   :  { %6516 = vmatprep.mubr.bf16.mxu0 %v13395_v44  ;;  %6589 = vmatprep.mubr.bf16.mxu1 %v13395_v44 }
0x2035   :  { %6487 = vmatpush1.bf16.msra.mxu0 %v9061_v49  ;;  %6560 = vmatpush1.bf16.msra.mxu1 %v9064_v35  ;;  %v12771_v49 = vld [vmem:[#allocation6 + $0x4e4] ss:$16 sps:$4 sm:$0xff]   ;;  %v12773_v35 = vld [vmem:[#allocation6 + $0x4ec] ss:$16 sps:$4 sm:$0xff]  }
0x2036   :  { %6488 = vmatprep.subr.bf16.mxu0 %v9069_v18  ;;  %6561 = vmatprep.subr.bf16.mxu1 %v9072_v58  ;;  %v12775_v18 = vld [vmem:[#allocation6 + $0x4e0] ss:$16 sps:$4 sm:$0xff]   ;;  %v12777_v58 = vld [vmem:[#allocation6 + $0x4e8] ss:$16 sps:$4 sm:$0xff]  }
0x2039   :  { %6489 = vmatpush1.bf16.msra.mxu0 %v9067_v33  ;;  %6562 = vmatpush1.bf16.msra.mxu1 %v9070_v13  ;;  %v13556_v33 = vld [vmem:[#allocation38_spill] sm:$0xff] }
0x203a   :  { %6490 = vmatprep.subr.bf16.mxu0 %v9075_v31  ;;  %6563 = vmatprep.subr.bf16.mxu1 %v9078_v12  ;;  %v5027_v13 = vadd.f32 %v13556_v33, %v12287_v51  ;;  %v13557_v31 = vld [vmem:[#allocation39_spill] sm:$0xff] }
0x203b   :  { %v5100_v12 = vadd.f32 %v13557_v31, %v12290_v34 }
0x203d   :  { %6491 = vmatpush1.bf16.msra.mxu0 %v9073_v3  ;;  %6564 = vmatpush1.bf16.msra.mxu1 %v9076_v47  ;;  %v13558_v3 = vld [vmem:[#allocation40_spill] sm:$0xff] }
0x203e   :  { %6492 = vmatprep.subr.bf16.mxu0 %v9081_v4  ;;  %6565 = vmatprep.subr.bf16.mxu1 %v9084_v25  ;;  %v5029_v47 = vadd.f32 %v13558_v3, %v12297_v32  ;;  %v13559_v4 = vld [vmem:[#allocation41_spill] sm:$0xff] }
0x203f   :  { %v5102_v25 = vadd.f32 %v13559_v4, %v12300_v46 }
0x2041   :  { %6493 = vmatpush1.bf16.msra.mxu0 %v9079_v28  ;;  %6566 = vmatpush1.bf16.msra.mxu1 %v9082_v45 }
0x2042   :  { %6494 = vmatprep.subr.bf16.mxu0 %v9087_v2  ;;  %6567 = vmatprep.subr.bf16.mxu1 %v9090_v42 }
0x2045   :  { %6495 = vmatpush1.bf16.msra.mxu0 %v9085_v8  ;;  %6568 = vmatpush1.bf16.msra.mxu1 %v9088_v55 }
0x2046   :  { %6496 = vmatprep.subr.bf16.mxu0 %v9093_v23  ;;  %6569 = vmatprep.subr.bf16.mxu1 %v9096_v22 }
0x2049   :  { %6497 = vmatpush1.bf16.msra.mxu0 %v9091_v11  ;;  %6570 = vmatpush1.bf16.msra.mxu1 %v9094_v36 }
0x204a   :  { %6498 = vmatprep.subr.bf16.mxu0 %v9099_v14  ;;  %6571 = vmatprep.subr.bf16.mxu1 %v9102_v29 }
0x204d   :  { %6499 = vmatpush1.bf16.msra.mxu0 %v9097_v50  ;;  %6572 = vmatpush1.bf16.msra.mxu1 %v9100_v56 }
0x204e   :  { %6826 = vmatprep.subr.bf16.mxu0 %v12687_v53  ;;  %6867 = vmatprep.subr.bf16.mxu1 %v12689_v38 }
0x2050   :  { %6517 = vmatmul.mubr.bf16.vlgmr.msra.gmra.mrb[192].mxu0 %v6264_v37  ;;  %6590 = vmatmul.mubr.bf16.vlgmr.msra.gmra.mrb[192].mxu1 %v6264_v37 }
0x2051   :  { %6526 = vmatprep.mubr.bf16.mxu0 %v13395_v44  ;;  %6599 = vmatprep.mubr.bf16.mxu1 %v13395_v44 }
0x2052   :  { %6827 = vmatpush1.bf16.msra.mxu0 %v12691_v1  ;;  %6868 = vmatpush1.bf16.msra.mxu1 %v12693_v63 }
0x2053   :  { %6828 = vmatprep.subr.bf16.mxu0 %v12699_v24  ;;  %6869 = vmatprep.subr.bf16.mxu1 %v12701_v6 }
0x2056   :  { %6829 = vmatpush1.bf16.msra.mxu0 %v12703_v0  ;;  %6870 = vmatpush1.bf16.msra.mxu1 %v12705_v17 }
0x2057   :  { %6830 = vmatprep.subr.bf16.mxu0 %v12711_v60  ;;  %6871 = vmatprep.subr.bf16.mxu1 %v12713_v20 }
0x2058   :  { %6527 = vmatmul.mubr.bf16.gmra.mrb[196].mxu0 %v6265_v59  ;;  %6600 = vmatmul.mubr.bf16.gmra.mrb[196].mxu1 %v6265_v59 }
0x2059   :  { %6536 = vmatprep.mubr.bf16.mxu0 %v13395_v44  ;;  %6609 = vmatprep.mubr.bf16.mxu1 %v13395_v44 }
0x205a   :  { %6831 = vmatpush1.bf16.msra.mxu0 %v12715_v62  ;;  %6872 = vmatpush1.bf16.msra.mxu1 %v12717_v16 }
0x205b   :  { %6832 = vmatprep.subr.bf16.mxu0 %v12723_v9  ;;  %6873 = vmatprep.subr.bf16.mxu1 %v12725_v7 }
0x205e   :  { %6833 = vmatpush1.bf16.msra.mxu0 %v12727_v10  ;;  %6874 = vmatpush1.bf16.msra.mxu1 %v12729_v40 }
0x205f   :  { %6834 = vmatprep.subr.bf16.mxu0 %v12735_v61  ;;  %6875 = vmatprep.subr.bf16.mxu1 %v12737_v57 }
0x2060   :  { %6537 = vmatmul.mubr.bf16.gmra.mrb[200].mxu0 %v6266_v30  ;;  %6610 = vmatmul.mubr.bf16.gmra.mrb[200].mxu1 %v6266_v30 }
0x2061   :  { %6546 = vmatprep.mubr.bf16.mxu0 %v13395_v44  ;;  %6619 = vmatprep.mubr.bf16.mxu1 %v13395_v44 }
0x2062   :  { %6835 = vmatpush1.bf16.msra.mxu0 %v12739_v15  ;;  %6876 = vmatpush1.bf16.msra.mxu1 %v12741_v52 }
0x2063   :  { %6836 = vmatprep.subr.bf16.mxu0 %v12747_v54  ;;  %6877 = vmatprep.subr.bf16.mxu1 %v12749_v39 }
0x2066   :  { %6837 = vmatpush1.bf16.msra.mxu0 %v12751_v5  ;;  %6878 = vmatpush1.bf16.msra.mxu1 %v12753_v19 }
0x2067   :  { %6838 = vmatprep.subr.bf16.mxu0 %v12759_v26  ;;  %6879 = vmatprep.subr.bf16.mxu1 %v12761_v27 }
0x206a   :  { %6839 = vmatpush1.bf16.msra.mxu0 %v12763_v21  ;;  %6880 = vmatpush1.bf16.msra.mxu1 %v12765_v43 }
0x206b   :  { %6840 = vmatprep.subr.bf16.mxu0 %v12771_v49  ;;  %6881 = vmatprep.subr.bf16.mxu1 %v12773_v35 }
0x206e   :  { %6841 = vmatpush1.bf16.msra.mxu0 %v12775_v18  ;;  %6882 = vmatpush1.bf16.msra.mxu1 %v12777_v58 }
0x206f   :  { %6941 = vmatprep.subr.bf16.mxu0 %v12687_v53  ;;  %6982 = vmatprep.subr.bf16.mxu1 %v12689_v38 }
0x2103   :  { %v6146_v28 = vpop.f32.mrb[188].mxu0  ;;  %v6187_v45 = vpop.f32.mrb[188].mxu1 }
0x2104   :  { %v6194_v2 = vadd.f32 %v6146_v28, %v5027_v13  ;;  %v6196_v42 = vadd.f32 %v6187_v45, %v5100_v12  ;;  %v6148_v8 = vpop.f32.mrb[189].mxu0  ;;  %v6189_v55 = vpop.f32.mrb[189].mxu1 }
0x2105   :  { %v6195_v23 = vadd.f32 %v6148_v8, %v5029_v47  ;;  %v6197_v22 = vadd.f32 %v6189_v55, %v5102_v25  ;;  %v6150_v11 = vpop.f32.mrb[190].mxu0  ;;  %v6191_v36 = vpop.f32.mrb[190].mxu1 }
0x2106   :  { %v8452_v51 = vmul.f32 -1.442695, %v6194_v2  ;;  %v6151_v14 = vpop.f32.mrb[191].mxu0  ;;  %v6192_v29 = vpop.f32.mrb[191].mxu1 }
0x2107   :  { %v8453_v34 = vmul.f32 -1.442695, %v6195_v23  ;;  %v8454_v32 = vmul.f32 -1.442695, %v6197_v22 }
0x2108   :  { %9671 = vpow2.f32 %v8452_v51 }
0x2109   :  { %9673 = vpow2.f32 %v8453_v34 }
0x210a   :  { %9675 = vpow2.f32 %v8454_v32 }
0x210b   :  { %9677 = vtanh.f32 %v6196_v42 }
0x2112   :  { %v9672_v50 = vpop.eup %9671 }
0x2113   :  { %v9674_v56 = vpop.eup %9673  ;;  %v6201_v46 = vadd.f32 1.0, %v9672_v50 }
0x2114   :  { %v6207_v37 = vadd.f32 1.0, %v9674_v56  ;;  %v9676_v59 = vpop.eup %9675 }
0x2115   :  { %9679 = vrcp.f32 %v6201_v46  ;;  %v9678_v30 = vpop.eup %9677  ;;  %v6214_v12 = vadd.f32 1.0, %v9676_v59 }
0x2116   :  { %9681 = vrcp.f32 %v6207_v37 }
0x2117   :  { %9683 = vrcp.f32 %v6214_v12  ;;  %v6302_v12 = vld [vmem:[#allocation8 + $0x10] sm:$0xf] }
0x211f   :  { %v9680_v33 = vpop.eup %9679 }
0x2120   :  { %v9682_v13 = vpop.eup %9681  ;;  %v6218_v31 = vmul.f32 %v9680_v33, %v9678_v30 }
0x2121   :  { %v6217_v3 = vmul.f32 %v9682_v13, %v12666_v41  ;;  %v9684_v14 = vpop.eup %9683 }
0x2123   :  { %v12794_v47 = vpop.f32.mrb[192].mxu0  ;;  %v12796_v4 = vpop.f32.mrb[192].mxu1  ;;  %v6219_v25 = vadd.f32 %v6218_v31, %v6217_v3 }
0x2124   :  { %v12798_v28 = vpop.f32.mrb[193].mxu0  ;;  %v12800_v45 = vpop.f32.mrb[193].mxu1 }
0x2125   :  { %v12802_v2 = vpop.f32.mrb[194].mxu0  ;;  %v12804_v42 = vpop.f32.mrb[194].mxu1  ;;  %9685 = vtanh.f32 %v6219_v25 }
0x2126   :  { %v12806_v8 = vpop.f32.mrb[195].mxu0  ;;  %v12808_v55 = vpop.f32.mrb[195].mxu1 }
0x212b   :  { %v12810_v41 = vpop.f32.mrb[196].mxu0  ;;  %v12812_v23 = vpop.f32.mrb[196].mxu1 }
0x212c   :  { %13560 = vst [vmem:[#allocation19_spill] sm:$0xff] %v12812_v23  ;;  %v12814_v22 = vpop.f32.mrb[197].mxu0  ;;  %v12816_v11 = vpop.f32.mrb[197].mxu1 }
0x212d   :  { %13561 = vst [vmem:[#allocation20_spill] sm:$0xff] %v12814_v22  ;;  %13562 = vst [vmem:[#allocation21_spill] sm:$0xff] %v12816_v11  ;;  %v12818_v36 = vpop.f32.mrb[198].mxu0  ;;  %v12820_v51 = vpop.f32.mrb[198].mxu1 }
0x212e   :  { %13563 = vst [vmem:[#allocation22_spill] sm:$0xff] %v12818_v36  ;;  %13564 = vst [vmem:[#allocation23_spill] sm:$0xff] %v12820_v51  ;;  %v12822_v29 = vpop.f32.mrb[199].mxu0  ;;  %v12824_v34 = vpop.f32.mrb[199].mxu1 }
0x212f   :  { %13565 = vst [vmem:[#allocation24_spill] sm:$0xff] %v12822_v29  ;;  %13566 = vst [vmem:[#allocation25_spill] sm:$0xff] %v12824_v34  ;;  %v9686_v32 = vpop.eup %9685 }
0x2130   :  { %v6221_v50 = vmul.f32 %v9686_v32, %v9684_v14 }
0x2132   :  { %v6267_v56 = vpack.c.bf16 %v6221_v50, %v12669_v48 }
0x2133   :  { %v12827_v46 = vpop.f32.mrb[200].mxu0  ;;  %v12829_v37 = vpop.f32.mrb[200].mxu1 }
0x2134   :  { %13567 = vst [vmem:[#allocation30_spill] sm:$0xff] %v12827_v46  ;;  %13568 = vst [vmem:[#allocation31_spill] sm:$0xff] %v12829_v37  ;;  %v12831_v59 = vpop.f32.mrb[201].mxu0  ;;  %v12833_v30 = vpop.f32.mrb[201].mxu1  ;;  %6547 = vmatmul.mubr.bf16.gmra.mrb[204].mxu0 %v6267_v56  ;;  %6620 = vmatmul.mubr.bf16.gmra.mrb[204].mxu1 %v6267_v56 }
0x2135   :  { %13569 = vst [vmem:[#allocation26_spill] sm:$0xff] %v12831_v59  ;;  %13570 = vst [vmem:[#allocation27_spill] sm:$0xff] %v12833_v30  ;;  %v12835_v33 = vpop.f32.mrb[202].mxu0  ;;  %v12837_v13 = vpop.f32.mrb[202].mxu1  ;;  %6858 = vmatprep.mubr.bf16.mxu0 %v13395_v44  ;;  %6899 = vmatprep.mubr.bf16.mxu1 %v13395_v44 }
0x2136   :  { %13571 = vst [vmem:[#allocation28_spill] sm:$0xff] %v12835_v33  ;;  %13572 = vst [vmem:[#allocation29_spill] sm:$0xff] %v12837_v13  ;;  %v12841_v31 = vpop.f32.mrb[203].mxu0  ;;  %v12843_v48 = vpop.f32.mrb[203].mxu1  ;;  %v13582_v13 = vld [vmem:[#allocation15_spill] sm:$0xff] }
0x2137   :  { %13573 = vst [vmem:[#allocation32_spill] sm:$0xff] %v12841_v31  ;;  %13574 = vst [vmem:[#allocation33_spill] sm:$0xff] %v12843_v48  ;;  %v13581_v48 = vld [vmem:[#allocation17_spill] sm:$0xff]  ;;  %v12897_v33 = vrot.slane %v6302_v12, %v13582_v13 }
0x2138   :  { %v12894_v31 = vrot.slane %v6302_v12, %v13581_v48 }
0x2139   :  { %v6592_v48 = vadd.f32 %v12796_v4, %v12897_v33 }
0x213c   :  { %6859 = vmatmul.mubr.bf16.vlgmr.msra.gmra.mrb[208].mxu0 %v13395_v44  ;;  %6900 = vmatmul.mubr.bf16.vlgmr.msra.gmra.mrb[208].mxu1 %v13395_v44 }
0x213d   :  { %6942 = vmatpush1.bf16.msra.mxu0 %v12691_v1  ;;  %6983 = vmatpush1.bf16.msra.mxu1 %v12693_v63 }
0x213e   :  { %6943 = vmatprep.subr.bf16.mxu0 %v12699_v24  ;;  %6984 = vmatprep.subr.bf16.mxu1 %v12701_v6 }
0x213f   :  { %6973 = vmatprep.mubr.bf16.mxu0 %v13395_v44  ;;  %7014 = vmatprep.mubr.bf16.mxu1 %v13395_v44 }
0x2141   :  { %6944 = vmatpush1.bf16.msra.mxu0 %v12703_v0  ;;  %6985 = vmatpush1.bf16.msra.mxu1 %v12705_v17 }
0x2142   :  { %6945 = vmatprep.subr.bf16.mxu0 %v12711_v60  ;;  %6986 = vmatprep.subr.bf16.mxu1 %v12713_v20 }
0x2145   :  { %6946 = vmatpush1.bf16.msra.mxu0 %v12715_v62  ;;  %6987 = vmatpush1.bf16.msra.mxu1 %v12717_v16 }
0x2146   :  { %6947 = vmatprep.subr.bf16.mxu0 %v12723_v9  ;;  %6988 = vmatprep.subr.bf16.mxu1 %v12725_v7 }
0x2149   :  { %6948 = vmatpush1.bf16.msra.mxu0 %v12727_v10  ;;  %6989 = vmatpush1.bf16.msra.mxu1 %v12729_v40 }
0x214a   :  { %6949 = vmatprep.subr.bf16.mxu0 %v12735_v61  ;;  %6990 = vmatprep.subr.bf16.mxu1 %v12737_v57 }
0x214d   :  { %6950 = vmatpush1.bf16.msra.mxu0 %v12739_v15  ;;  %6991 = vmatpush1.bf16.msra.mxu1 %v12741_v52 }
0x214e   :  { %6951 = vmatprep.subr.bf16.mxu0 %v12747_v54  ;;  %6992 = vmatprep.subr.bf16.mxu1 %v12749_v39 }
0x2151   :  { %6952 = vmatpush1.bf16.msra.mxu0 %v12751_v5  ;;  %6993 = vmatpush1.bf16.msra.mxu1 %v12753_v19 }
0x2152   :  { %6953 = vmatprep.subr.bf16.mxu0 %v12759_v26  ;;  %6994 = vmatprep.subr.bf16.mxu1 %v12761_v27 }
0x2155   :  { %6954 = vmatpush1.bf16.msra.mxu0 %v12763_v21  ;;  %6995 = vmatpush1.bf16.msra.mxu1 %v12765_v43 }
0x2156   :  { %6955 = vmatprep.subr.bf16.mxu0 %v12771_v49  ;;  %6996 = vmatprep.subr.bf16.mxu1 %v12773_v35 }
0x2159   :  { %6956 = vmatpush1.bf16.msra.mxu0 %v12775_v18  ;;  %6997 = vmatpush1.bf16.msra.mxu1 %v12777_v58 }
0x215a   :  { %7056 = vmatprep.subr.bf16.mxu0 %v12687_v53  ;;  %7097 = vmatprep.subr.bf16.mxu1 %v12689_v38 }
0x2207   :  { %v12881_v3 = vpop.f32.mrb[204].mxu0  ;;  %v12883_v25 = vpop.f32.mrb[204].mxu1 }
0x2208   :  { %13575 = vst [vmem:[#allocation34_spill] sm:$0xff] %v12881_v3  ;;  %13576 = vst [vmem:[#allocation35_spill] sm:$0xff] %v12883_v25  ;;  %v12885_v14 = vpop.f32.mrb[205].mxu0  ;;  %v12887_v32 = vpop.f32.mrb[205].mxu1  ;;  %v13585_v3 = vld [vmem:[#allocation18_spill] sm:$0xff] }
0x2209   :  { %13577 = vst [vmem:[#allocation36_spill] sm:$0xff] %v12885_v14  ;;  %13578 = vst [vmem:[#allocation37_spill] sm:$0xff] %v12887_v32  ;;  %v12889_v50 = vpop.f32.mrb[206].mxu0  ;;  %v12891_v56 = vpop.f32.mrb[206].mxu1  ;;  %v12904_v25 = vrot.slane %v6302_v12, %v13585_v3  ;;  %v13586_v14 = vld [vmem:[#allocation16_spill] sm:$0xff] }
0x220a   :  { %13579 = vst [vmem:[#allocation38_spill] sm:$0xff] %v12889_v50  ;;  %13580 = vst [vmem:[#allocation39_spill] sm:$0xff] %v12891_v56  ;;  %v12899_v30 = vpop.f32.mrb[207].mxu0  ;;  %v12901_v59 = vpop.f32.mrb[207].mxu1  ;;  %v12907_v37 = vrot.slane %v6302_v12, %v13586_v14  ;;  %v6519_v50 = vadd.f32 %v12794_v47, %v12894_v31 }
0x220b   :  { %13583 = vst [vmem:[#allocation40_spill] sm:$0xff] %v12899_v30  ;;  %13584 = vst [vmem:[#allocation41_spill] sm:$0xff] %v12901_v59  ;;  %v6521_v13 = vadd.f32 %v12798_v28, %v12904_v25 }
0x220c   :  { %v6594_v30 = vadd.f32 %v12800_v45, %v12907_v37 }
0x220f   :  { %v6860_v56 = vpop.f32.mrb[208].mxu0  ;;  %v6901_v59 = vpop.f32.mrb[208].mxu1 }
0x2210   :  { %v6908_v32 = vadd.f32 %v6860_v56, %v6519_v50  ;;  %v6910_v3 = vadd.f32 %v6901_v59, %v6592_v48  ;;  %v6862_v46 = vpop.f32.mrb[209].mxu0  ;;  %v6903_v34 = vpop.f32.mrb[209].mxu1 }
0x2211   :  { %v6909_v12 = vadd.f32 %v6862_v46, %v6521_v13  ;;  %v6911_v14 = vadd.f32 %v6903_v34, %v6594_v30  ;;  %v6864_v29 = vpop.f32.mrb[210].mxu0  ;;  %v6905_v51 = vpop.f32.mrb[210].mxu1  ;;  %v6596_v13 = vadd.f32 %v12804_v42, %v12897_v33 }
0x2212   :  { %v8519_v47 = vmul.f32 -1.442695, %v6908_v32  ;;  %v6865_v36 = vpop.f32.mrb[211].mxu0  ;;  %v6906_v11 = vpop.f32.mrb[211].mxu1 }
0x2213   :  { %v8520_v4 = vmul.f32 -1.442695, %v6909_v12  ;;  %v8521_v28 = vmul.f32 -1.442695, %v6911_v14  ;;  %v6598_v12 = vadd.f32 %v12808_v55, %v12907_v37 }
0x2214   :  { %9687 = vpow2.f32 %v8519_v47 }
0x2215   :  { %9689 = vpow2.f32 %v8520_v4 }
0x2216   :  { %9691 = vpow2.f32 %v8521_v28 }
0x2217   :  { %9693 = vtanh.f32 %v6910_v3  ;;  %v6525_v3 = vadd.f32 %v12806_v8, %v12904_v25 }
0x221e   :  { %v9688_v22 = vpop.eup %9687 }
0x221f   :  { %v9690_v23 = vpop.eup %9689  ;;  %v6915_v45 = vadd.f32 1.0, %v9688_v22 }
0x2220   :  { %v6921_v50 = vadd.f32 1.0, %v9690_v23  ;;  %v9692_v59 = vpop.eup %9691  ;;  %v6523_v23 = vadd.f32 %v12802_v2, %v12894_v31 }
0x2221   :  { %9695 = vrcp.f32 %v6915_v45  ;;  %v9694_v46 = vpop.eup %9693  ;;  %v6928_v30 = vadd.f32 1.0, %v9692_v59 }
0x2222   :  { %9697 = vrcp.f32 %v6921_v50 }
0x2223   :  { %9699 = vrcp.f32 %v6928_v30 }
0x222b   :  { %v9696_v34 = vpop.eup %9695 }
0x222c   :  { %v9698_v29 = vpop.eup %9697  ;;  %v6932_v51 = vmul.f32 %v9696_v34, %v9694_v46 }
0x222d   :  { %v6931_v36 = vmul.f32 0.0, %v9698_v29  ;;  %v9700_v32 = vpop.eup %9699 }
0x222f   :  { %v12917_v11 = vadd.f32 %v6932_v51, %v6931_v36 }
0x2231   :  { %9701 = vtanh.f32 %v12917_v11 }
0x223b   :  { %v9702_v56 = vpop.eup %9701 }
0x223c   :  { %v6935_v22 = vmul.f32 %v9702_v56, %v9700_v32 }
0x223e   :  { %v6940_v48 = vpack.c.bf16 %v6935_v22, %v6935_v22 }
0x2240   :  { %6974 = vmatmul.mubr.bf16.vlgmr.msra.gmra.mrb[212].mxu0 %v6940_v48  ;;  %7015 = vmatmul.mubr.bf16.vlgmr.msra.gmra.mrb[212].mxu1 %v6940_v48 }
0x2241   :  { %7057 = vmatpush1.bf16.msra.mxu0 %v12691_v1  ;;  %7098 = vmatpush1.bf16.msra.mxu1 %v12693_v63 }
0x2242   :  { %7058 = vmatprep.subr.bf16.mxu0 %v12699_v24  ;;  %7099 = vmatprep.subr.bf16.mxu1 %v12701_v6 }
0x2243   :  { %7088 = vmatprep.mubr.bf16.mxu0 %v13395_v44  ;;  %7129 = vmatprep.mubr.bf16.mxu1 %v13395_v44 }
0x2245   :  { %7059 = vmatpush1.bf16.msra.mxu0 %v12703_v0  ;;  %7100 = vmatpush1.bf16.msra.mxu1 %v12705_v17 }
0x2246   :  { %7060 = vmatprep.subr.bf16.mxu0 %v12711_v60  ;;  %7101 = vmatprep.subr.bf16.mxu1 %v12713_v20 }
0x2249   :  { %7061 = vmatpush1.bf16.msra.mxu0 %v12715_v62  ;;  %7102 = vmatpush1.bf16.msra.mxu1 %v12717_v16 }
0x224a   :  { %7062 = vmatprep.subr.bf16.mxu0 %v12723_v9  ;;  %7103 = vmatprep.subr.bf16.mxu1 %v12725_v7 }
0x224d   :  { %7063 = vmatpush1.bf16.msra.mxu0 %v12727_v10  ;;  %7104 = vmatpush1.bf16.msra.mxu1 %v12729_v40 }
0x224e   :  { %7064 = vmatprep.subr.bf16.mxu0 %v12735_v61  ;;  %7105 = vmatprep.subr.bf16.mxu1 %v12737_v57 }
0x2251   :  { %7065 = vmatpush1.bf16.msra.mxu0 %v12739_v15  ;;  %7106 = vmatpush1.bf16.msra.mxu1 %v12741_v52 }
0x2252   :  { %7066 = vmatprep.subr.bf16.mxu0 %v12747_v54  ;;  %7107 = vmatprep.subr.bf16.mxu1 %v12749_v39 }
0x2255   :  { %7067 = vmatpush1.bf16.msra.mxu0 %v12751_v5  ;;  %7108 = vmatpush1.bf16.msra.mxu1 %v12753_v19 }
0x2256   :  { %7068 = vmatprep.subr.bf16.mxu0 %v12759_v26  ;;  %7109 = vmatprep.subr.bf16.mxu1 %v12761_v27 }
0x2259   :  { %7069 = vmatpush1.bf16.msra.mxu0 %v12763_v21  ;;  %7110 = vmatpush1.bf16.msra.mxu1 %v12765_v43 }
0x225a   :  { %7070 = vmatprep.subr.bf16.mxu0 %v12771_v49  ;;  %7111 = vmatprep.subr.bf16.mxu1 %v12773_v35 }
0x225d   :  { %7071 = vmatpush1.bf16.msra.mxu0 %v12775_v18  ;;  %7112 = vmatpush1.bf16.msra.mxu1 %v12777_v58 }
0x225e   :  { %7171 = vmatprep.subr.bf16.mxu0 %v12687_v53  ;;  %7212 = vmatprep.subr.bf16.mxu1 %v12689_v38 }
0x2313   :  { %v6975_v14 = vpop.f32.mrb[212].mxu0  ;;  %v7016_v47 = vpop.f32.mrb[212].mxu1 }
0x2314   :  { %v7023_v4 = vadd.f32 %v6975_v14, %v6523_v23  ;;  %v7025_v28 = vadd.f32 %v7016_v47, %v6596_v13  ;;  %v6977_v45 = vpop.f32.mrb[213].mxu0  ;;  %v7018_v50 = vpop.f32.mrb[213].mxu1 }
0x2315   :  { %v7024_v59 = vadd.f32 %v6977_v45, %v6525_v3  ;;  %v7026_v46 = vadd.f32 %v7018_v50, %v6598_v12  ;;  %v6979_v34 = vpop.f32.mrb[214].mxu0  ;;  %v7020_v29 = vpop.f32.mrb[214].mxu1 }
0x2316   :  { %v8522_v2 = vmul.f32 -1.442695, %v7023_v4  ;;  %v6980_v51 = vpop.f32.mrb[215].mxu0  ;;  %v7021_v30 = vpop.f32.mrb[215].mxu1  ;;  %v13588_v34 = vld [vmem:[#allocation20_spill] sm:$0xff] }
0x2317   :  { %v8523_v42 = vmul.f32 -1.442695, %v7024_v59  ;;  %v8524_v8 = vmul.f32 -1.442695, %v7026_v46  ;;  %v13587_v59 = vld [vmem:[#allocation19_spill] sm:$0xff]  ;;  %v6531_v29 = vadd.f32 %v13588_v34, %v12904_v25 }
0x2318   :  { %9703 = vpow2.f32 %v8522_v2  ;;  %v6602_v46 = vadd.f32 %v13587_v59, %v12897_v33  ;;  %v13589_v2 = vld [vmem:[#allocation21_spill] sm:$0xff] }
0x2319   :  { %9705 = vpow2.f32 %v8523_v42  ;;  %v6604_v51 = vadd.f32 %v13589_v2, %v12907_v37 }
0x231a   :  { %9707 = vpow2.f32 %v8524_v8 }
0x231b   :  { %9709 = vtanh.f32 %v7025_v28 }
0x2322   :  { %v9704_v36 = vpop.eup %9703 }
0x2323   :  { %v9706_v32 = vpop.eup %9705  ;;  %v7030_v55 = vadd.f32 1.0, %v9704_v36 }
0x2324   :  { %v7036_v56 = vadd.f32 1.0, %v9706_v32  ;;  %v9708_v22 = vpop.eup %9707 }
0x2325   :  { %9711 = vrcp.f32 %v7030_v55  ;;  %v9710_v48 = vpop.eup %9709  ;;  %v7043_v12 = vadd.f32 1.0, %v9708_v22 }
0x2326   :  { %9713 = vrcp.f32 %v7036_v56 }
0x2327   :  { %9715 = vrcp.f32 %v7043_v12 }
0x232f   :  { %v9712_v23 = vpop.eup %9711 }
0x2330   :  { %v9714_v13 = vpop.eup %9713  ;;  %v7047_v3 = vmul.f32 %v9712_v23, %v9710_v48 }
0x2331   :  { %v7046_v14 = vmul.f32 %v9714_v13, %v12917_v11  ;;  %v9716_v4 = vpop.eup %9715  ;;  %v6529_v11 = vadd.f32 %v12810_v41, %v12894_v31 }
0x2333   :  { %v12963_v47 = vadd.f32 %v7047_v3, %v7046_v14 }
0x2335   :  { %9717 = vtanh.f32 %v12963_v47 }
0x233f   :  { %v9718_v45 = vpop.eup %9717 }
0x2340   :  { %v7050_v50 = vmul.f32 %v9718_v45, %v9716_v4 }
0x2342   :  { %v7055_v28 = vpack.c.bf16 %v7050_v50, %v7050_v50 }
0x2344   :  { %7089 = vmatmul.mubr.bf16.vlgmr.msra.gmra.mrb[216].mxu0 %v7055_v28  ;;  %7130 = vmatmul.mubr.bf16.vlgmr.msra.gmra.mrb[216].mxu1 %v7055_v28 }
0x2345   :  { %7172 = vmatpush1.bf16.msra.mxu0 %v12691_v1  ;;  %7213 = vmatpush1.bf16.msra.mxu1 %v12693_v63 }
0x2346   :  { %7173 = vmatprep.subr.bf16.mxu0 %v12699_v24  ;;  %7214 = vmatprep.subr.bf16.mxu1 %v12701_v6 }
0x2347   :  { %7203 = vmatprep.mubr.bf16.mxu0 %v13395_v44  ;;  %7244 = vmatprep.mubr.bf16.mxu1 %v13395_v44 }
0x2349   :  { %7174 = vmatpush1.bf16.msra.mxu0 %v12703_v0  ;;  %7215 = vmatpush1.bf16.msra.mxu1 %v12705_v17 }
0x234a   :  { %7175 = vmatprep.subr.bf16.mxu0 %v12711_v60  ;;  %7216 = vmatprep.subr.bf16.mxu1 %v12713_v20 }
0x234d   :  { %7176 = vmatpush1.bf16.msra.mxu0 %v12715_v62  ;;  %7217 = vmatpush1.bf16.msra.mxu1 %v12717_v16 }
0x234e   :  { %7177 = vmatprep.subr.bf16.mxu0 %v12723_v9  ;;  %7218 = vmatprep.subr.bf16.mxu1 %v12725_v7 }
0x2351   :  { %7178 = vmatpush1.bf16.msra.mxu0 %v12727_v10  ;;  %7219 = vmatpush1.bf16.msra.mxu1 %v12729_v40 }
0x2352   :  { %7179 = vmatprep.subr.bf16.mxu0 %v12735_v61  ;;  %7220 = vmatprep.subr.bf16.mxu1 %v12737_v57 }
0x2355   :  { %7180 = vmatpush1.bf16.msra.mxu0 %v12739_v15  ;;  %7221 = vmatpush1.bf16.msra.mxu1 %v12741_v52 }
0x2356   :  { %7181 = vmatprep.subr.bf16.mxu0 %v12747_v54  ;;  %7222 = vmatprep.subr.bf16.mxu1 %v12749_v39 }
0x2359   :  { %7182 = vmatpush1.bf16.msra.mxu0 %v12751_v5  ;;  %7223 = vmatpush1.bf16.msra.mxu1 %v12753_v19 }
0x235a   :  { %7183 = vmatprep.subr.bf16.mxu0 %v12759_v26  ;;  %7224 = vmatprep.subr.bf16.mxu1 %v12761_v27 }
0x235d   :  { %7184 = vmatpush1.bf16.msra.mxu0 %v12763_v21  ;;  %7225 = vmatpush1.bf16.msra.mxu1 %v12765_v43 }
0x235e   :  { %7185 = vmatprep.subr.bf16.mxu0 %v12771_v49  ;;  %7226 = vmatprep.subr.bf16.mxu1 %v12773_v35 }
0x2361   :  { %7186 = vmatpush1.bf16.msra.mxu0 %v12775_v18  ;;  %7227 = vmatpush1.bf16.msra.mxu1 %v12777_v58 }
0x2362   :  { %7286 = vmatprep.subr.bf16.mxu0 %v12687_v53  ;;  %7327 = vmatprep.subr.bf16.mxu1 %v12689_v38 }
0x2417   :  { %v7090_v30 = vpop.f32.mrb[216].mxu0  ;;  %v7131_v42 = vpop.f32.mrb[216].mxu1 }
0x2418   :  { %v7138_v8 = vadd.f32 %v7090_v30, %v6529_v11  ;;  %v7140_v36 = vadd.f32 %v7131_v42, %v6602_v46  ;;  %v7092_v32 = vpop.f32.mrb[217].mxu0  ;;  %v7133_v55 = vpop.f32.mrb[217].mxu1 }
0x2419   :  { %v7139_v56 = vadd.f32 %v7092_v32, %v6531_v29  ;;  %v7141_v22 = vadd.f32 %v7133_v55, %v6604_v51  ;;  %v7094_v48 = vpop.f32.mrb[218].mxu0  ;;  %v7135_v23 = vpop.f32.mrb[218].mxu1 }
0x241a   :  { %v8525_v41 = vmul.f32 -1.442695, %v7138_v8  ;;  %v7095_v13 = vpop.f32.mrb[219].mxu0  ;;  %v7136_v3 = vpop.f32.mrb[219].mxu1  ;;  %v13592_v48 = vld [vmem:[#allocation24_spill] sm:$0xff] }
0x241b   :  { %v8526_v12 = vmul.f32 -1.442695, %v7139_v56  ;;  %v8527_v14 = vmul.f32 -1.442695, %v7141_v22  ;;  %v13591_v56 = vld [vmem:[#allocation23_spill] sm:$0xff]  ;;  %v6535_v23 = vadd.f32 %v13592_v48, %v12904_v25 }
0x241c   :  { %9719 = vpow2.f32 %v8525_v41  ;;  %v6606_v22 = vadd.f32 %v13591_v56, %v12897_v33  ;;  %v13593_v41 = vld [vmem:[#allocation25_spill] sm:$0xff] }
0x241d   :  { %9721 = vpow2.f32 %v8526_v12  ;;  %v6608_v13 = vadd.f32 %v13593_v41, %v12907_v37 }
0x241e   :  { %9723 = vpow2.f32 %v8527_v14 }
0x241f   :  { %9725 = vtanh.f32 %v7140_v36 }
0x2426   :  { %v9720_v4 = vpop.eup %9719 }
0x2427   :  { %v9722_v45 = vpop.eup %9721  ;;  %v7145_v50 = vadd.f32 1.0, %v9720_v4 }
0x2428   :  { %v7151_v28 = vadd.f32 1.0, %v9722_v45  ;;  %v9724_v11 = vpop.eup %9723 }
0x2429   :  { %9727 = vrcp.f32 %v7145_v50  ;;  %v9726_v59 = vpop.eup %9725  ;;  %v7158_v2 = vadd.f32 1.0, %v9724_v11 }
0x242a   :  { %9729 = vrcp.f32 %v7151_v28 }
0x242b   :  { %9731 = vrcp.f32 %v7158_v2 }
0x2433   :  { %v9728_v46 = vpop.eup %9727 }
0x2434   :  { %v9730_v34 = vpop.eup %9729  ;;  %v7162_v29 = vmul.f32 %v9728_v46, %v9726_v59 }
0x2435   :  { %v7161_v51 = vmul.f32 %v9730_v34, %v12963_v47  ;;  %v9732_v42 = vpop.eup %9731  ;;  %v13590_v47 = vld [vmem:[#allocation22_spill] sm:$0xff] }
0x2436   :  { %v6533_v55 = vadd.f32 %v13590_v47, %v12894_v31 }
0x2437   :  { %v13009_v30 = vadd.f32 %v7162_v29, %v7161_v51 }
0x2439   :  { %9733 = vtanh.f32 %v13009_v30 }
0x2443   :  { %v9734_v8 = vpop.eup %9733 }
0x2444   :  { %v7165_v32 = vmul.f32 %v9734_v8, %v9732_v42 }
0x2446   :  { %v7170_v36 = vpack.c.bf16 %v7165_v32, %v7165_v32 }
0x2448   :  { %7204 = vmatmul.mubr.bf16.vlgmr.msra.gmra.mrb[220].mxu0 %v7170_v36  ;;  %7245 = vmatmul.mubr.bf16.vlgmr.msra.gmra.mrb[220].mxu1 %v7170_v36 }
0x2449   :  { %7287 = vmatpush1.bf16.msra.mxu0 %v12691_v1  ;;  %7328 = vmatpush1.bf16.msra.mxu1 %v12693_v63 }
0x244a   :  { %7288 = vmatprep.subr.bf16.mxu0 %v12699_v24  ;;  %7329 = vmatprep.subr.bf16.mxu1 %v12701_v6 }
0x244b   :  { %7318 = vmatprep.mubr.bf16.mxu0 %v13395_v44  ;;  %7359 = vmatprep.mubr.bf16.mxu1 %v13395_v44 }
0x244d   :  { %7289 = vmatpush1.bf16.msra.mxu0 %v12703_v0  ;;  %7330 = vmatpush1.bf16.msra.mxu1 %v12705_v17 }
0x244e   :  { %7290 = vmatprep.subr.bf16.mxu0 %v12711_v60  ;;  %7331 = vmatprep.subr.bf16.mxu1 %v12713_v20 }
0x2451   :  { %7291 = vmatpush1.bf16.msra.mxu0 %v12715_v62  ;;  %7332 = vmatpush1.bf16.msra.mxu1 %v12717_v16 }
0x2452   :  { %7292 = vmatprep.subr.bf16.mxu0 %v12723_v9  ;;  %7333 = vmatprep.subr.bf16.mxu1 %v12725_v7 }
0x2455   :  { %7293 = vmatpush1.bf16.msra.mxu0 %v12727_v10  ;;  %7334 = vmatpush1.bf16.msra.mxu1 %v12729_v40 }
0x2456   :  { %7294 = vmatprep.subr.bf16.mxu0 %v12735_v61  ;;  %7335 = vmatprep.subr.bf16.mxu1 %v12737_v57 }
0x2459   :  { %7295 = vmatpush1.bf16.msra.mxu0 %v12739_v15  ;;  %7336 = vmatpush1.bf16.msra.mxu1 %v12741_v52 }
0x245a   :  { %7296 = vmatprep.subr.bf16.mxu0 %v12747_v54  ;;  %7337 = vmatprep.subr.bf16.mxu1 %v12749_v39 }
0x245d   :  { %7297 = vmatpush1.bf16.msra.mxu0 %v12751_v5  ;;  %7338 = vmatpush1.bf16.msra.mxu1 %v12753_v19 }
0x245e   :  { %7298 = vmatprep.subr.bf16.mxu0 %v12759_v26  ;;  %7339 = vmatprep.subr.bf16.mxu1 %v12761_v27 }
0x2461   :  { %7299 = vmatpush1.bf16.msra.mxu0 %v12763_v21  ;;  %7340 = vmatpush1.bf16.msra.mxu1 %v12765_v43 }
0x2462   :  { %7300 = vmatprep.subr.bf16.mxu0 %v12771_v49  ;;  %7341 = vmatprep.subr.bf16.mxu1 %v12773_v35 }
0x2465   :  { %7301 = vmatpush1.bf16.msra.mxu0 %v12775_v18  ;;  %7342 = vmatpush1.bf16.msra.mxu1 %v12777_v58 }
0x2466   :  { %7401 = vmatprep.subr.bf16.mxu0 %v12687_v53  ;;  %7442 = vmatprep.subr.bf16.mxu1 %v12689_v38 }
0x251b   :  { %v7205_v3 = vpop.f32.mrb[220].mxu0  ;;  %v7246_v12 = vpop.f32.mrb[220].mxu1 }
0x251c   :  { %v7253_v14 = vadd.f32 %v7205_v3, %v6533_v55  ;;  %v7255_v4 = vadd.f32 %v7246_v12, %v6606_v22  ;;  %v7207_v45 = vpop.f32.mrb[221].mxu0  ;;  %v7248_v50 = vpop.f32.mrb[221].mxu1 }
0x251d   :  { %v7254_v28 = vadd.f32 %v7207_v45, %v6535_v23  ;;  %v7256_v11 = vadd.f32 %v7248_v50, %v6608_v13  ;;  %v7209_v59 = vpop.f32.mrb[222].mxu0  ;;  %v7250_v46 = vpop.f32.mrb[222].mxu1 }
0x251e   :  { %v8528_v34 = vmul.f32 -1.442695, %v7253_v14  ;;  %v7210_v29 = vpop.f32.mrb[223].mxu0  ;;  %v7251_v2 = vpop.f32.mrb[223].mxu1 }
0x251f   :  { %v8529_v51 = vmul.f32 -1.442695, %v7254_v28  ;;  %v8530_v42 = vmul.f32 -1.442695, %v7256_v11  ;;  %v13104_v29 = vld [vmem:[#allocation6 + $0x400] ss:$16 sps:$4 sm:$0xff]  }
0x2520   :  { %9735 = vpow2.f32 %v8528_v34  ;;  %v13107_v2 = vld [vmem:[#allocation6 + $0x408] ss:$16 sps:$4 sm:$0xff]  }
0x2521   :  { %9737 = vpow2.f32 %v8529_v51  ;;  %v13110_v51 = vld [vmem:[#allocation6 + $0x424] ss:$16 sps:$4 sm:$0xff]  }
0x2522   :  { %9739 = vpow2.f32 %v8530_v42  ;;  %v13113_v42 = vld [vmem:[#allocation6 + $0x42c] ss:$16 sps:$4 sm:$0xff]  }
0x2523   :  { %9741 = vtanh.f32 %v7255_v4 }
0x252a   :  { %v9736_v8 = vpop.eup %9735 }
0x252b   :  { %v9738_v32 = vpop.eup %9737  ;;  %v7260_v36 = vadd.f32 1.0, %v9736_v8  ;;  %v13118_v8 = vld [vmem:[#allocation6 + $0x420] ss:$16 sps:$4 sm:$0xff]  }
0x252c   :  { %v7266_v47 = vadd.f32 1.0, %v9738_v32  ;;  %v9740_v55 = vpop.eup %9739  ;;  %v13121_v32 = vld [vmem:[#allocation6 + $0x428] ss:$16 sps:$4 sm:$0xff]  }
0x252d   :  { %9743 = vrcp.f32 %v7260_v36  ;;  %v9742_v56 = vpop.eup %9741  ;;  %v7273_v41 = vadd.f32 1.0, %v9740_v55  ;;  %v13124_v36 = vld [vmem:[#allocation6 + $0x444] ss:$16 sps:$4 sm:$0xff]   ;;  %v13130_v55 = vld [vmem:[#allocation6 + $0x440] ss:$16 sps:$4 sm:$0xff]  }
0x252e   :  { %9745 = vrcp.f32 %v7266_v47  ;;  %v13127_v47 = vld [vmem:[#allocation6 + $0x44c] ss:$16 sps:$4 sm:$0xff]  }
0x252f   :  { %9747 = vrcp.f32 %v7273_v41  ;;  %v13145_v41 = vld [vmem:[#allocation6 + $0x468] ss:$16 sps:$4 sm:$0xff]  }
0x2537   :  { %v9744_v22 = vpop.eup %9743 }
0x2538   :  { %v9746_v48 = vpop.eup %9745  ;;  %v7277_v23 = vmul.f32 %v9744_v22, %v9742_v56  ;;  %v13133_v56 = vld [vmem:[#allocation6 + $0x448] ss:$16 sps:$4 sm:$0xff]   ;;  %v13136_v22 = vld [vmem:[#allocation6 + $0x464] ss:$16 sps:$4 sm:$0xff]  }
0x2539   :  { %v7276_v13 = vmul.f32 %v9746_v48, %v13009_v30  ;;  %v9748_v12 = vpop.eup %9747  ;;  %v13139_v48 = vld [vmem:[#allocation6 + $0x46c] ss:$16 sps:$4 sm:$0xff]  }
0x253b   :  { %v13055_v3 = vadd.f32 %v7277_v23, %v7276_v13  ;;  %v13142_v23 = vld [vmem:[#allocation6 + $0x460] ss:$16 sps:$4 sm:$0xff]   ;;  %v13148_v13 = vld [vmem:[#allocation6 + $0x484] ss:$16 sps:$4 sm:$0xff]  }
0x253d   :  { %9749 = vtanh.f32 %v13055_v3 }
0x2547   :  { %v9750_v14 = vpop.eup %9749 }
0x2548   :  { %v7280_v45 = vmul.f32 %v9750_v14, %v9748_v12  ;;  %v13154_v12 = vld [vmem:[#allocation6 + $0x480] ss:$16 sps:$4 sm:$0xff]   ;;  %v13157_v14 = vld [vmem:[#allocation6 + $0x488] ss:$16 sps:$4 sm:$0xff]  }
0x254a   :  { %v7285_v4 = vpack.c.bf16 %v7280_v45, %v7280_v45  ;;  %v13160_v45 = vld [vmem:[#allocation6 + $0x4a4] ss:$16 sps:$4 sm:$0xff]  }
0x254c   :  { %7319 = vmatmul.mubr.bf16.vlgmr.msra.gmra.mrb[224].mxu0 %v7285_v4  ;;  %7360 = vmatmul.mubr.bf16.vlgmr.msra.gmra.mrb[224].mxu1 %v7285_v4  ;;  %v13163_v4 = vld [vmem:[#allocation6 + $0x4ac] ss:$16 sps:$4 sm:$0xff]  }
0x254d   :  { %7402 = vmatpush1.bf16.msra.mxu0 %v12691_v1  ;;  %7443 = vmatpush1.bf16.msra.mxu1 %v12693_v63  ;;  %v13594_v1 = vld [vmem:[#allocation30_spill] sm:$0xff] }
0x254e   :  { %7403 = vmatprep.subr.bf16.mxu0 %v12699_v24  ;;  %7444 = vmatprep.subr.bf16.mxu1 %v12701_v6  ;;  %v6539_v63 = vadd.f32 %v13594_v1, %v12894_v31  ;;  %v13595_v24 = vld [vmem:[#allocation31_spill] sm:$0xff]  ;;  %v13166_v1 = vld [vmem:[#allocation6 + $0x4a0] ss:$16 sps:$4 sm:$0xff]  }
0x254f   :  { %7433 = vmatprep.mubr.bf16.mxu0 %v13395_v44  ;;  %7474 = vmatprep.mubr.bf16.mxu1 %v13395_v44  ;;  %v6612_v6 = vadd.f32 %v13595_v24, %v12897_v33  ;;  %v13172_v24 = vld [vmem:[#allocation6 + $0x4c4] ss:$16 sps:$4 sm:$0xff]  }
0x2551   :  { %7404 = vmatpush1.bf16.msra.mxu0 %v12703_v0  ;;  %7445 = vmatpush1.bf16.msra.mxu1 %v12705_v17  ;;  %v13596_v0 = vld [vmem:[#allocation26_spill] sm:$0xff] }
0x2552   :  { %7405 = vmatprep.subr.bf16.mxu0 %v12711_v60  ;;  %7446 = vmatprep.subr.bf16.mxu1 %v12713_v20  ;;  %v6541_v17 = vadd.f32 %v13596_v0, %v12904_v25  ;;  %v13597_v60 = vld [vmem:[#allocation27_spill] sm:$0xff]  ;;  %v13178_v0 = vld [vmem:[#allocation6 + $0x4c0] ss:$16 sps:$4 sm:$0xff]  }
0x2553   :  { %v6614_v20 = vadd.f32 %v13597_v60, %v12907_v37  ;;  %v13184_v60 = vld [vmem:[#allocation6 + $0x4e4] ss:$16 sps:$4 sm:$0xff]  }
0x2555   :  { %7406 = vmatpush1.bf16.msra.mxu0 %v12715_v62  ;;  %7447 = vmatpush1.bf16.msra.mxu1 %v12717_v16 }
0x2556   :  { %7407 = vmatprep.subr.bf16.mxu0 %v12723_v9  ;;  %7448 = vmatprep.subr.bf16.mxu1 %v12725_v7 }
0x2559   :  { %7408 = vmatpush1.bf16.msra.mxu0 %v12727_v10  ;;  %7449 = vmatpush1.bf16.msra.mxu1 %v12729_v40 }
0x255a   :  { %7409 = vmatprep.subr.bf16.mxu0 %v12735_v61  ;;  %7450 = vmatprep.subr.bf16.mxu1 %v12737_v57 }
0x255d   :  { %7410 = vmatpush1.bf16.msra.mxu0 %v12739_v15  ;;  %7451 = vmatpush1.bf16.msra.mxu1 %v12741_v52 }
0x255e   :  { %7411 = vmatprep.subr.bf16.mxu0 %v12747_v54  ;;  %7452 = vmatprep.subr.bf16.mxu1 %v12749_v39 }
0x2561   :  { %7412 = vmatpush1.bf16.msra.mxu0 %v12751_v5  ;;  %7453 = vmatpush1.bf16.msra.mxu1 %v12753_v19 }
0x2562   :  { %7413 = vmatprep.subr.bf16.mxu0 %v12759_v26  ;;  %7454 = vmatprep.subr.bf16.mxu1 %v12761_v27 }
0x2565   :  { %7414 = vmatpush1.bf16.msra.mxu0 %v12763_v21  ;;  %7455 = vmatpush1.bf16.msra.mxu1 %v12765_v43 }
0x2566   :  { %7415 = vmatprep.subr.bf16.mxu0 %v12771_v49  ;;  %7456 = vmatprep.subr.bf16.mxu1 %v12773_v35 }
0x2569   :  { %7416 = vmatpush1.bf16.msra.mxu0 %v12775_v18  ;;  %7457 = vmatpush1.bf16.msra.mxu1 %v12777_v58 }
0x256a   :  { %7516 = vmatprep.subr.bf16.mxu0 %v12687_v53  ;;  %7557 = vmatprep.subr.bf16.mxu1 %v12689_v38 }
0x261f   :  { %v7320_v62 = vpop.f32.mrb[224].mxu0  ;;  %v7361_v16 = vpop.f32.mrb[224].mxu1 }
0x2620   :  { %v7368_v9 = vadd.f32 %v7320_v62, %v6539_v63  ;;  %v7370_v7 = vadd.f32 %v7361_v16, %v6612_v6  ;;  %v7322_v10 = vpop.f32.mrb[225].mxu0  ;;  %v7363_v53 = vpop.f32.mrb[225].mxu1  ;;  %v13169_v63 = vld [vmem:[#allocation6 + $0x4a8] ss:$16 sps:$4 sm:$0xff]   ;;  %v13175_v6 = vld [vmem:[#allocation6 + $0x4cc] ss:$16 sps:$4 sm:$0xff]  }
0x2621   :  { %v7369_v40 = vadd.f32 %v7322_v10, %v6541_v17  ;;  %v7371_v38 = vadd.f32 %v7363_v53, %v6614_v20  ;;  %v7324_v61 = vpop.f32.mrb[226].mxu0  ;;  %v7365_v57 = vpop.f32.mrb[226].mxu1  ;;  %v13181_v17 = vld [vmem:[#allocation6 + $0x4c8] ss:$16 sps:$4 sm:$0xff]   ;;  %v13187_v20 = vld [vmem:[#allocation6 + $0x4ec] ss:$16 sps:$4 sm:$0xff]  }
0x2622   :  { %v8531_v15 = vmul.f32 -1.442695, %v7368_v9  ;;  %v7325_v52 = vpop.f32.mrb[227].mxu0  ;;  %v7366_v54 = vpop.f32.mrb[227].mxu1  ;;  %v13190_v62 = vld [vmem:[#allocation6 + $0x4e0] ss:$16 sps:$4 sm:$0xff]  }
0x2623   :  { %v8532_v39 = vmul.f32 -1.442695, %v7369_v40  ;;  %v8533_v5 = vmul.f32 -1.442695, %v7371_v38  ;;  %v13193_v16 = vld [vmem:[#allocation6 + $0x4e8] ss:$16 sps:$4 sm:$0xff]  }
0x2624   :  { %9751 = vpow2.f32 %v8531_v15  ;;  %v9973_v9 = vld [vmem:[#allocation6 + $0x404] ss:$16 sps:$4 sm:$0xff]  }
0x2625   :  { %9753 = vpow2.f32 %v8532_v39  ;;  %v13598_v10 = vld [vmem:[#allocation28_spill] sm:$0xff]  ;;  %v13599_v40 = vld [vmem:[#allocation29_spill] sm:$0xff] }
0x2626   :  { %9755 = vpow2.f32 %v8533_v5  ;;  %v6543_v53 = vadd.f32 %v13598_v10, %v12894_v31  ;;  %v6616_v38 = vadd.f32 %v13599_v40, %v12897_v33  ;;  %v13600_v61 = vld [vmem:[#allocation32_spill] sm:$0xff]  ;;  %v13601_v15 = vld [vmem:[#allocation33_spill] sm:$0xff] }
0x2627   :  { %9757 = vtanh.f32 %v7370_v7  ;;  %v9974_v7 = vld [vmem:[#allocation6 + $0x40c] ss:$16 sps:$4 sm:$0xff]   ;;  %v6545_v57 = vadd.f32 %v13600_v61, %v12904_v25  ;;  %v6618_v52 = vadd.f32 %v13601_v15, %v12907_v37 }
0x262e   :  { %v9752_v19 = vpop.eup %9751 }
0x262f   :  { %v9754_v26 = vpop.eup %9753  ;;  %v7375_v27 = vadd.f32 1.0, %v9752_v19 }
0x2630   :  { %v7381_v21 = vadd.f32 1.0, %v9754_v26  ;;  %v9756_v43 = vpop.eup %9755 }
0x2631   :  { %9759 = vrcp.f32 %v7375_v27  ;;  %v9758_v49 = vpop.eup %9757  ;;  %v7388_v30 = vadd.f32 1.0, %v9756_v43 }
0x2632   :  { %9761 = vrcp.f32 %v7381_v21 }
0x2633   :  { %9763 = vrcp.f32 %v7388_v30 }
0x263b   :  { %v9760_v35 = vpop.eup %9759 }
0x263c   :  { %v9762_v18 = vpop.eup %9761  ;;  %v7392_v58 = vmul.f32 %v9760_v35, %v9758_v49 }
0x263d   :  { %v7391_v50 = vmul.f32 %v9762_v18, %v13055_v3  ;;  %v9764_v11 = vpop.eup %9763  ;;  %v13151_v3 = vld [vmem:[#allocation6 + $0x48c] ss:$16 sps:$4 sm:$0xff]  }
0x263f   :  { %v13101_v28 = vadd.f32 %v7392_v58, %v7391_v50 }
0x2641   :  { %9765 = vtanh.f32 %v13101_v28 }
0x264b   :  { %v9766_v59 = vpop.eup %9765 }
0x264c   :  { %v7395_v46 = vmul.f32 %v9766_v59, %v9764_v11 }
0x264e   :  { %v7400_v34 = vpack.c.bf16 %v7395_v46, %v7395_v46 }
0x2650   :  { %7434 = vmatmul.mubr.bf16.vlgmr.msra.gmra.mrb[228].mxu0 %v7400_v34  ;;  %7475 = vmatmul.mubr.bf16.vlgmr.msra.gmra.mrb[228].mxu1 %v7400_v34 }
0x2651   :  { %7517 = vmatpush1.bf16.msra.mxu0 %v13104_v29  ;;  %7558 = vmatpush1.bf16.msra.mxu1 %v13107_v2 }
0x2652   :  { %7518 = vmatprep.subr.bf16.mxu0 %v13110_v51  ;;  %7559 = vmatprep.subr.bf16.mxu1 %v13113_v42 }
0x2653   :  { %7548 = vmatprep.mubr.bf16.mxu0 %v13395_v44  ;;  %7589 = vmatprep.mubr.bf16.mxu1 %v13395_v44 }
0x2655   :  { %7519 = vmatpush1.bf16.msra.mxu0 %v13118_v8  ;;  %7560 = vmatpush1.bf16.msra.mxu1 %v13121_v32 }
0x2656   :  { %7520 = vmatprep.subr.bf16.mxu0 %v13124_v36  ;;  %7561 = vmatprep.subr.bf16.mxu1 %v13127_v47 }
0x2659   :  { %7521 = vmatpush1.bf16.msra.mxu0 %v13130_v55  ;;  %7562 = vmatpush1.bf16.msra.mxu1 %v13133_v56 }
0x265a   :  { %7522 = vmatprep.subr.bf16.mxu0 %v13136_v22  ;;  %7563 = vmatprep.subr.bf16.mxu1 %v13139_v48 }
0x265d   :  { %7523 = vmatpush1.bf16.msra.mxu0 %v13142_v23  ;;  %7564 = vmatpush1.bf16.msra.mxu1 %v13145_v41 }
0x265e   :  { %7524 = vmatprep.subr.bf16.mxu0 %v13148_v13  ;;  %7565 = vmatprep.subr.bf16.mxu1 %v13151_v3 }
0x2661   :  { %7525 = vmatpush1.bf16.msra.mxu0 %v13154_v12  ;;  %7566 = vmatpush1.bf16.msra.mxu1 %v13157_v14 }
0x2662   :  { %7526 = vmatprep.subr.bf16.mxu0 %v13160_v45  ;;  %7567 = vmatprep.subr.bf16.mxu1 %v13163_v4 }
0x2665   :  { %7527 = vmatpush1.bf16.msra.mxu0 %v13166_v1  ;;  %7568 = vmatpush1.bf16.msra.mxu1 %v13169_v63 }
0x2666   :  { %7528 = vmatprep.subr.bf16.mxu0 %v13172_v24  ;;  %7569 = vmatprep.subr.bf16.mxu1 %v13175_v6 }
0x2669   :  { %7529 = vmatpush1.bf16.msra.mxu0 %v13178_v0  ;;  %7570 = vmatpush1.bf16.msra.mxu1 %v13181_v17 }
0x266a   :  { %7530 = vmatprep.subr.bf16.mxu0 %v13184_v60  ;;  %7571 = vmatprep.subr.bf16.mxu1 %v13187_v20 }
0x266d   :  { %7531 = vmatpush1.bf16.msra.mxu0 %v13190_v62  ;;  %7572 = vmatpush1.bf16.msra.mxu1 %v13193_v16 }
0x266e   :  { %7631 = vmatprep.subr.bf16.mxu0 %v9973_v9  ;;  %7672 = vmatprep.subr.bf16.mxu1 %v9974_v7 }
0x2723   :  { %v7435_v54 = vpop.f32.mrb[228].mxu0  ;;  %v7476_v39 = vpop.f32.mrb[228].mxu1 }
0x2724   :  { %v7483_v5 = vadd.f32 %v7435_v54, %v6543_v53  ;;  %v7485_v19 = vadd.f32 %v7476_v39, %v6616_v38  ;;  %v7437_v26 = vpop.f32.mrb[229].mxu0  ;;  %v7478_v27 = vpop.f32.mrb[229].mxu1 }
0x2725   :  { %v7484_v21 = vadd.f32 %v7437_v26, %v6545_v57  ;;  %v7486_v43 = vadd.f32 %v7478_v27, %v6618_v52  ;;  %v7439_v49 = vpop.f32.mrb[230].mxu0  ;;  %v7480_v35 = vpop.f32.mrb[230].mxu1 }
0x2726   :  { %v8534_v18 = vmul.f32 -1.442695, %v7483_v5  ;;  %v7440_v58 = vpop.f32.mrb[231].mxu0  ;;  %v7481_v30 = vpop.f32.mrb[231].mxu1 }
0x2727   :  { %v8535_v50 = vmul.f32 -1.442695, %v7484_v21  ;;  %v8536_v11 = vmul.f32 -1.442695, %v7486_v43  ;;  %v10101_v58 = vmov 0.0   ;;  %v9152_v30 = vld [vmem:[%s13360_s6 + $0x8] sm:$0xff]  }
0x2728   :  { %9767 = vpow2.f32 %v8534_v18  ;;  %v9151_v18 = vld [vmem:[%s13360_s6] sm:$0xff]  }
0x2729   :  { %9769 = vpow2.f32 %v8535_v50  ;;  %v9153_v50 = vld [vmem:[%s13360_s6 + $0x10] sm:$0xff]  }
0x272a   :  { %9771 = vpow2.f32 %v8536_v11  ;;  %v9154_v11 = vld [vmem:[%s13360_s6 + $0x18] sm:$0xff]  }
0x272b   :  { %9773 = vtanh.f32 %v7485_v19 }
0x2732   :  { %v9768_v59 = vpop.eup %9767 }
0x2733   :  { %v9770_v46 = vpop.eup %9769  ;;  %v7490_v34 = vadd.f32 1.0, %v9768_v59  ;;  %v9155_v59 = vld [vmem:[%s13360_s6 + $0x20] sm:$0xff]  }
0x2734   :  { %v7496_v9 = vadd.f32 1.0, %v9770_v46  ;;  %v9772_v7 = vpop.eup %9771  ;;  %v9156_v46 = vld [vmem:[%s13360_s6 + $0x28] sm:$0xff]  }
0x2735   :  { %9775 = vrcp.f32 %v7490_v34  ;;  %v9774_v10 = vpop.eup %9773  ;;  %v7503_v61 = vadd.f32 1.0, %v9772_v7  ;;  %v9157_v34 = vld [vmem:[%s13360_s6 + $0x30] sm:$0xff]   ;;  %v9159_v7 = vld [vmem:[%s13362_s8] sm:$0xff]  }
0x2736   :  { %9777 = vrcp.f32 %v7496_v9  ;;  %v9158_v9 = vld [vmem:[%s13360_s6 + $0x38] sm:$0xff]  }
0x2737   :  { %9779 = vrcp.f32 %v7503_v61  ;;  %v9164_v61 = vld [vmem:[%s13362_s8 + $0x28] sm:$0xff]  }
0x273f   :  { %v9776_v53 = vpop.eup %9775 }
0x2740   :  { %v9778_v40 = vpop.eup %9777  ;;  %v7507_v38 = vmul.f32 %v9776_v53, %v9774_v10  ;;  %v9160_v10 = vld [vmem:[%s13362_s8 + $0x8] sm:$0xff]   ;;  %v9161_v53 = vld [vmem:[%s13362_s8 + $0x10] sm:$0xff]  }
0x2741   :  { %v7506_v57 = vmul.f32 %v9778_v40, %v13101_v28  ;;  %v9780_v52 = vpop.eup %9779  ;;  %v9162_v40 = vld [vmem:[%s13362_s8 + $0x18] sm:$0xff]  }
0x2743   :  { %v13205_v15 = vadd.f32 %v7507_v38, %v7506_v57  ;;  %v9163_v38 = vld [vmem:[%s13362_s8 + $0x20] sm:$0xff]  }
0x2744   :  { %v13606_v57 = vld [vmem:[#allocation38_spill] sm:$0xff] }
0x2745   :  { %9781 = vtanh.f32 %v13205_v15 }
0x274f   :  { %v9782_v54 = vpop.eup %9781 }
0x2750   :  { %v7510_v39 = vmul.f32 %v9782_v54, %v9780_v52  ;;  %v13607_v52 = vld [vmem:[#allocation39_spill] sm:$0xff] }
0x2751   :  { %v6626_v54 = vadd.f32 %v13607_v52, %v12897_v33 }
0x2752   :  { %v7515_v5 = vpack.c.bf16 %v7510_v39, %v7510_v39  ;;  %v13608_v39 = vld [vmem:[#allocation40_spill] sm:$0xff] }
0x2754   :  { %7549 = vmatmul.mubr.bf16.vlgmr.msra.gmra.mrb[232].mxu0 %v7515_v5  ;;  %7590 = vmatmul.mubr.bf16.vlgmr.msra.gmra.mrb[232].mxu1 %v7515_v5  ;;  %v6555_v5 = vadd.f32 %v13608_v39, %v12904_v25 }
0x2755   :  { %7632 = vmatpush1.bf16.msra.mxu0 %v13104_v29  ;;  %7673 = vmatpush1.bf16.msra.mxu1 %v13107_v2  ;;  %v13603_v29 = vld [vmem:[#allocation35_spill] sm:$0xff] }
0x2756   :  { %7633 = vmatprep.subr.bf16.mxu0 %v13110_v51  ;;  %7674 = vmatprep.subr.bf16.mxu1 %v13113_v42  ;;  %v6622_v2 = vadd.f32 %v13603_v29, %v12897_v33  ;;  %v13604_v51 = vld [vmem:[#allocation36_spill] sm:$0xff] }
0x2757   :  { %7663 = vmatprep.mubr.bf16.mxu0 %v13395_v44  ;;  %7704 = vmatprep.mubr.bf16.mxu1 %v13395_v44  ;;  %v13602_v44 = vld [vmem:[#allocation34_spill] sm:$0xff]  ;;  %v6551_v42 = vadd.f32 %v13604_v51, %v12904_v25 }
0x2758   :  { %v6549_v28 = vadd.f32 %v13602_v44, %v12894_v31  ;;  %v13609_v44 = vld [vmem:[#allocation41_spill] sm:$0xff] }
0x2759   :  { %7634 = vmatpush1.bf16.msra.mxu0 %v13118_v8  ;;  %7675 = vmatpush1.bf16.msra.mxu1 %v13121_v32  ;;  %v13605_v8 = vld [vmem:[#allocation37_spill] sm:$0xff] }
0x275a   :  { %7635 = vmatprep.subr.bf16.mxu0 %v13124_v36  ;;  %7676 = vmatprep.subr.bf16.mxu1 %v13127_v47  ;;  %v6624_v32 = vadd.f32 %v13605_v8, %v12907_v37 }
0x275d   :  { %7636 = vmatpush1.bf16.msra.mxu0 %v13130_v55  ;;  %7677 = vmatpush1.bf16.msra.mxu1 %v13133_v56 }
0x275e   :  { %7637 = vmatprep.subr.bf16.mxu0 %v13136_v22  ;;  %7678 = vmatprep.subr.bf16.mxu1 %v13139_v48 }
0x2761   :  { %7638 = vmatpush1.bf16.msra.mxu0 %v13142_v23  ;;  %7679 = vmatpush1.bf16.msra.mxu1 %v13145_v41 }
0x2762   :  { %7639 = vmatprep.subr.bf16.mxu0 %v13148_v13  ;;  %7680 = vmatprep.subr.bf16.mxu1 %v13151_v3 }
0x2765   :  { %7640 = vmatpush1.bf16.msra.mxu0 %v13154_v12  ;;  %7681 = vmatpush1.bf16.msra.mxu1 %v13157_v14 }
0x2766   :  { %7641 = vmatprep.subr.bf16.mxu0 %v13160_v45  ;;  %7682 = vmatprep.subr.bf16.mxu1 %v13163_v4 }
0x2769   :  { %7642 = vmatpush1.bf16.msra.mxu0 %v13166_v1  ;;  %7683 = vmatpush1.bf16.msra.mxu1 %v13169_v63 }
0x276a   :  { %7643 = vmatprep.subr.bf16.mxu0 %v13172_v24  ;;  %7684 = vmatprep.subr.bf16.mxu1 %v13175_v6 }
0x276d   :  { %7644 = vmatpush1.bf16.msra.mxu0 %v13178_v0  ;;  %7685 = vmatpush1.bf16.msra.mxu1 %v13181_v17 }
0x276e   :  { %7645 = vmatprep.subr.bf16.mxu0 %v13184_v60  ;;  %7686 = vmatprep.subr.bf16.mxu1 %v13187_v20 }
0x2771   :  { %7646 = vmatpush1.bf16.msra.mxu0 %v13190_v62  ;;  %7687 = vmatpush1.bf16.msra.mxu1 %v13193_v16 }
0x2772   :  { %8599 = vmatprep.subr.bf16.mxu0 %v10101_v58  ;;  %8619 = vmatprep.subr.bf16.mxu1 %v10101_v58 }
0x2827   :  { %v7550_v36 = vpop.f32.mrb[232].mxu0  ;;  %v7591_v47 = vpop.f32.mrb[232].mxu1 }
0x2828   :  { %v7598_v55 = vadd.f32 %v7550_v36, %v6549_v28  ;;  %v7600_v56 = vadd.f32 %v7591_v47, %v6622_v2  ;;  %v7552_v22 = vpop.f32.mrb[233].mxu0  ;;  %v7593_v48 = vpop.f32.mrb[233].mxu1  ;;  %v6628_v28 = vadd.f32 %v13609_v44, %v12907_v37  ;;  %v8563_v44 = vld [vmem:[%s13365_s11] ss:$0 sm:$0xff] }
0x2829   :  { %v7599_v23 = vadd.f32 %v7552_v22, %v6551_v42  ;;  %v7601_v41 = vadd.f32 %v7593_v48, %v6624_v32  ;;  %v7554_v13 = vpop.f32.mrb[234].mxu0  ;;  %v7595_v3 = vpop.f32.mrb[234].mxu1 }
0x282a   :  { %v8537_v12 = vmul.f32 -1.442695, %v7598_v55  ;;  %v7555_v14 = vpop.f32.mrb[235].mxu0  ;;  %v7596_v45 = vpop.f32.mrb[235].mxu1 }
0x282b   :  { %v8538_v4 = vmul.f32 -1.442695, %v7599_v23  ;;  %v8539_v1 = vmul.f32 -1.442695, %v7601_v41 }
0x282c   :  { %9783 = vpow2.f32 %v8537_v12 }
0x282d   :  { %9785 = vpow2.f32 %v8538_v4 }
0x282e   :  { %9787 = vpow2.f32 %v8539_v1 }
0x282f   :  { %9789 = vtanh.f32 %v7600_v56 }
0x2836   :  { %v9784_v63 = vpop.eup %9783 }
0x2837   :  { %v9786_v24 = vpop.eup %9785  ;;  %v7605_v6 = vadd.f32 1.0, %v9784_v63 }
0x2838   :  { %v7611_v0 = vadd.f32 1.0, %v9786_v24  ;;  %v9788_v17 = vpop.eup %9787 }
0x2839   :  { %9791 = vrcp.f32 %v7605_v6  ;;  %v9790_v60 = vpop.eup %9789  ;;  %v7618_v19 = vadd.f32 1.0, %v9788_v17  ;;  %v8543_v17 = vld [vmem:[%s13358_s4] ss:$0 sm:$0xff] }
0x283a   :  { %9793 = vrcp.f32 %v7611_v0 }
0x283b   :  { %9795 = vrcp.f32 %v7618_v19 }
0x2843   :  { %v9792_v20 = vpop.eup %9791 }
0x2844   :  { %v9794_v62 = vpop.eup %9793  ;;  %v7622_v16 = vmul.f32 %v9792_v20, %v9790_v60  ;;  %v8544_v20 = vld [vmem:[#allocation9] ss:$0 sm:$0xff] }
0x2845   :  { %v7621_v26 = vmul.f32 %v9794_v62, %v13205_v15  ;;  %v9796_v21 = vpop.eup %9795  ;;  %v6553_v15 = vadd.f32 %v13606_v57, %v12894_v31 }
0x2847   :  { %v13249_v27 = vadd.f32 %v7622_v16, %v7621_v26  ;;  %v9165_v26 = vld [vmem:[%s13362_s8 + $0x30] sm:$0xff]  }
0x2849   :  { %9797 = vtanh.f32 %v13249_v27 }
0x2853   :  { %v9798_v43 = vpop.eup %9797 }
0x2854   :  { %v7625_v49 = vmul.f32 %v9798_v43, %v9796_v21  ;;  %v9167_v21 = vld [vmem:[#allocation11] sm:$0xff]   ;;  %v9168_v43 = vld [vmem:[#allocation11 + $0x8] sm:$0xff]  }
0x2856   :  { %v7630_v35 = vpack.c.bf16 %v7625_v49, %v7625_v49  ;;  %v9169_v49 = vld [vmem:[#allocation11 + $0x10] sm:$0xff]  }
0x2858   :  { %7664 = vmatmul.mubr.bf16.vlgmr.msra.gmra.mrb[236].mxu0 %v7630_v35  ;;  %7705 = vmatmul.mubr.bf16.vlgmr.msra.gmra.mrb[236].mxu1 %v7630_v35  ;;  %v9170_v35 = vld [vmem:[#allocation11 + $0x18] sm:$0xff]  }
0x2859   :  { %8600 = vmatpush3.bf16.msra.mxu0 %v9151_v18  ;;  %8615 = vmatprep.mubr.msk.bf16.mxu0 %vm10102_vm0, %v10101_v58  ;;  %v9171_v18 = vld [vmem:[#allocation11 + $0x20] sm:$0xff]  }
0x285a   :  { %8601 = vmatprep.subr.bf16.mxu0 %v10101_v58  ;;  %8635 = vmatprep.mubr.msk.bf16.mxu1 %vm10102_vm0, %v10101_v58 }
0x285b   :  { %8620 = vmatpush3.bf16.msra.mxu1 %v9159_v7 }
0x285c   :  { %8621 = vmatprep.subr.bf16.mxu1 %v10101_v58 }
0x285d   :  { %8602 = vmatpush3.bf16.msra.mxu0 %v9152_v30  ;;  %v9172_v30 = vld [vmem:[#allocation11 + $0x28] sm:$0xff]  }
0x285e   :  { %8603 = vmatprep.subr.bf16.mxu0 %v10101_v58 }
0x285f   :  { %8622 = vmatpush3.bf16.msra.mxu1 %v9160_v10 }
0x2860   :  { %8623 = vmatprep.subr.bf16.mxu1 %v10101_v58 }
0x2861   :  { %8604 = vmatpush3.bf16.msra.mxu0 %v9153_v50  ;;  %v8545_v50 = vld [vmem:[%s13361_s7] ss:$0 sm:$0xff] }
0x2862   :  { %8605 = vmatprep.subr.bf16.mxu0 %v10101_v58 }
0x2863   :  { %8624 = vmatpush3.bf16.msra.mxu1 %v9161_v53  ;;  %v9173_v53 = vld [vmem:[#allocation11 + $0x30] sm:$0xff]  }
0x2864   :  { %8625 = vmatprep.subr.bf16.mxu1 %v10101_v58 }
0x2865   :  { %8606 = vmatpush3.bf16.msra.mxu0 %v9154_v11 }
0x2866   :  { %8607 = vmatprep.subr.bf16.mxu0 %v10101_v58 }
0x2867   :  { %8626 = vmatpush3.bf16.msra.mxu1 %v9162_v40  ;;  %v9174_v40 = vld [vmem:[#allocation11 + $0x38] sm:$0xff]  }
0x2868   :  { %8627 = vmatprep.subr.bf16.mxu1 %v10101_v58 }
0x2869   :  { %8608 = vmatpush3.bf16.msra.mxu0 %v9155_v59 }
0x286a   :  { %8609 = vmatprep.subr.bf16.mxu0 %v10101_v58 }
0x286b   :  { %8628 = vmatpush3.bf16.msra.mxu1 %v9163_v38  ;;  %v8554_v38 = vld [vmem:[%s13363_s9] ss:$0 sm:$0xff] }
0x286c   :  { %8629 = vmatprep.subr.bf16.mxu1 %v10101_v58 }
0x286d   :  { %8610 = vmatpush3.bf16.msra.mxu0 %v9156_v46 }
0x286e   :  { %8611 = vmatprep.subr.bf16.mxu0 %v10101_v58 }
0x286f   :  { %8630 = vmatpush3.bf16.msra.mxu1 %v9164_v61 }
0x2870   :  { %8631 = vmatprep.subr.bf16.mxu1 %v10101_v58 }
0x2871   :  { %8612 = vmatpush3.bf16.msra.mxu0 %v9157_v34 }
0x2872   :  { %8613 = vmatprep.subr.bf16.mxu0 %v10101_v58 }
0x2873   :  { %8632 = vmatpush3.bf16.msra.mxu1 %v9165_v26 }
0x2874   :  { %8633 = vmatprep.subr.bf16.mxu1 %v10101_v58 }
0x2875   :  { %8614 = vmatpush3.bf16.msra.mxu0 %v9158_v9 }
0x2876   :  { %8639 = vmatprep.subr.bf16.mxu0 %v10101_v58 }
0x292b   :  { %v7665_v29 = vpop.f32.mrb[236].mxu0  ;;  %v7706_v2 = vpop.f32.mrb[236].mxu1 }
0x292c   :  { %v7713_v51 = vadd.f32 %v7665_v29, %v6553_v15  ;;  %v7715_v42 = vadd.f32 %v7706_v2, %v6626_v54  ;;  %v7667_v8 = vpop.f32.mrb[237].mxu0  ;;  %v7708_v32 = vpop.f32.mrb[237].mxu1 }
0x292d   :  { %v7714_v36 = vadd.f32 %v7667_v8, %v6555_v5  ;;  %v7716_v47 = vadd.f32 %v7708_v32, %v6628_v28  ;;  %v7669_v55 = vpop.f32.mrb[238].mxu0  ;;  %v7710_v56 = vpop.f32.mrb[238].mxu1 }
0x292e   :  { %v8540_v31 = vmul.f32 -1.442695, %v7713_v51  ;;  %v7670_v22 = vpop.f32.mrb[239].mxu0  ;;  %v7711_v48 = vpop.f32.mrb[239].mxu1 }
0x292f   :  { %v8541_v33 = vmul.f32 -1.442695, %v7714_v36  ;;  %v8542_v25 = vmul.f32 -1.442695, %v7716_v47 }
0x2930   :  { %9799 = vpow2.f32 %v8540_v31 }
0x2931   :  { %9801 = vpow2.f32 %v8541_v33 }
0x2932   :  { %9803 = vpow2.f32 %v8542_v25 }
0x2933   :  { %9805 = vtanh.f32 %v7715_v42 }
0x293a   :  { %v9800_v23 = vpop.eup %9799 }
0x293b   :  { %v9802_v41 = vpop.eup %9801  ;;  %v7720_v37 = vadd.f32 1.0, %v9800_v23 }
0x293c   :  { %v7726_v13 = vadd.f32 1.0, %v9802_v41  ;;  %v9804_v3 = vpop.eup %9803 }
0x293d   :  { %9807 = vrcp.f32 %v7720_v37  ;;  %v9806_v12 = vpop.eup %9805  ;;  %v7733_v1 = vadd.f32 1.0, %v9804_v3 }
0x293e   :  { %9809 = vrcp.f32 %v7726_v13 }
0x293f   :  { %9811 = vrcp.f32 %v7733_v1 }
0x2947   :  { %v9808_v14 = vpop.eup %9807 }
0x2948   :  { %v9810_v45 = vpop.eup %9809  ;;  %v7737_v4 = vmul.f32 %v9808_v14, %v9806_v12 }
0x2949   :  { %v7736_v63 = vmul.f32 %v9810_v45, %v13249_v27  ;;  %v9812_v6 = vpop.eup %9811  ;;  %v9166_v27 = vld [vmem:[%s13362_s8 + $0x38] sm:$0xff]  }
0x294a   :  { %8634 = vmatpush3.bf16.msra.mxu1 %v9166_v27 }
0x294b   :  { %v7738_v24 = vadd.f32 %v7737_v4, %v7736_v63 }
0x294d   :  { %9813 = vtanh.f32 %v7738_v24 }
0x2957   :  { %v9814_v0 = vpop.eup %9813 }
0x2958   :  { %v7740_v60 = vmul.f32 %v9814_v0, %v9812_v6 }
0x295a   :  { %v7748_v62 = vmul.f32 %v8543_v17, %v7740_v60 }
0x295c   :  { %v7756_v16 = vadd.f32 %v8544_v20, %v7748_v62 }
0x295e   :  { %v7757_v19 = vpack.c.bf16 %v7756_v16, %v7756_v16 }
0x2960   :  { %8616 = vmatmul.mubr.bf16.vlgmr.msra.gmra.mrb[240].mxu0 %v7757_v19 }
0x2961   :  { %8655 = vmatprep.mubr.msk.bf16.mxu0 %vm10102_vm0, %v10101_v58  ;;  %8640 = vmatpush3.bf16.msra.mxu0 %v9167_v21 }
0x2962   :  { %8641 = vmatprep.subr.bf16.mxu0 %v10101_v58 }
0x2965   :  { %8642 = vmatpush3.bf16.msra.mxu0 %v9168_v43 }
0x2966   :  { %8643 = vmatprep.subr.bf16.mxu0 %v10101_v58 }
0x2969   :  { %8644 = vmatpush3.bf16.msra.mxu0 %v9169_v49 }
0x296a   :  { %8645 = vmatprep.subr.bf16.mxu0 %v10101_v58 }
0x296d   :  { %8646 = vmatpush3.bf16.msra.mxu0 %v9170_v35 }
0x296e   :  { %8647 = vmatprep.subr.bf16.mxu0 %v10101_v58 }
0x2971   :  { %8648 = vmatpush3.bf16.msra.mxu0 %v9171_v18 }
0x2972   :  { %8649 = vmatprep.subr.bf16.mxu0 %v10101_v58 }
0x2975   :  { %8650 = vmatpush3.bf16.msra.mxu0 %v9172_v30 }
0x2976   :  { %8651 = vmatprep.subr.bf16.mxu0 %v10101_v58 }
0x2979   :  { %8652 = vmatpush3.bf16.msra.mxu0 %v9173_v53 }
0x297a   :  { %8653 = vmatprep.subr.bf16.mxu0 %v10101_v58 }
0x297d   :  { %8654 = vmatpush3.bf16.msra.mxu0 %v9174_v40 }
0x2a33   :  { %v7863_v11 = vpop.f32.mrb[240].mxu0 }
0x2a34   :  { %v7864_v59 = vadd.f32 %v8545_v50, %v7863_v11  ;;  %v8617_v46 = vpop.f32.mrb[241].mxu0 }
0x2a35   :  { %v7866_v34 = vpop.f32.mrb[242].mxu0 }
0x2a36   :  { %v7869_v9 = vmax.f32 %v7864_v59, 0.0  ;;  %v8618_v7 = vpop.f32.mrb[243].mxu0 }
0x2a38   :  { %v7870_v10 = vpack.c.bf16 %v7869_v9, %v7869_v9 }
0x2a3a   :  { %8636 = vmatmul.mubr.bf16.vlgmr.msra.gmra.mrb[240].mxu1 %v7870_v10 }
0x2b0d   :  { %v7976_v61 = vpop.f32.mrb[240].mxu1 }
0x2b0e   :  { %v7977_v57 = vadd.f32 %v8554_v38, %v7976_v61  ;;  %v8637_v15 = vpop.f32.mrb[241].mxu1 }
0x2b0f   :  { %v7979_v52 = vpop.f32.mrb[242].mxu1 }
0x2b10   :  { %v7982_v54 = vmax.f32 %v7977_v57, 0.0  ;;  %v8638_v39 = vpop.f32.mrb[243].mxu1 }
0x2b12   :  { %v7983_v5 = vpack.c.bf16 %v7982_v54, %v7982_v54 }
0x2b14   :  { %8656 = vmatmul.mubr.bf16.vlgmr.msra.gmra.mrb[244].mxu0 %v7983_v5 }
0x2be7   :  { %v8089_v28 = vpop.f32.mrb[244].mxu0 }
0x2be8   :  { %v8090_v58 = vadd.f32 %v8563_v44, %v8089_v28  ;;  %v8657_v29 = vpop.f32.mrb[245].mxu0 }
0x2be9   :  { %v8092_v2 = vpop.f32.mrb[246].mxu0 }
0x2bea   :  { %8095 = vst [vmem:[%s13366_s12] sm:$0xff] %v8090_v58  ;;  %v8658_v51 = vpop.f32.mrb[247].mxu0 }
0x2beb   :  { %8100 = vsyncpa [#allocation5], 1 }
0x2bec   :  { %8101 = vsyncpa [#allocation7], 1 }
0x2bed   :  { %8102 = vsyncpa [#allocation10], 1 }

</bundles_post_ra>
